<compile_context>
chip_gen: v6e
topology: v6e:2x2x1
jax: 0.10.0
libtpu: 0.0.40
codegen_flags: <defaults>
</compile_context>

<pallas_src>
import functools

import jax
import jax.numpy as jnp
from jax.experimental import pallas as pl
from jax.experimental.pallas import tpu as pltpu

EPS = 1e-5


# --------------------------------------------------------------------------- #
# Hardware feature detection
# --------------------------------------------------------------------------- #
def _vmem_budget_bytes():
    """Per-core VMEM budget: physical capacity minus headroom for compiler scratch.

    v5e/v6e: 128 MiB physical; v7x: 64 MiB.  Conservative 64 MiB fallback if the
    query is unavailable.
    """
    try:
        phys = int(pltpu.get_tpu_info().vmem_capacity_bytes)
    except Exception:
        phys = 64 * 1024 * 1024
    phys = min(phys, 128 * 1024 * 1024)
    return max(32 * 1024 * 1024, phys - 8 * 1024 * 1024)


@functools.cache
def _roll_mode():
    """Probe pltpu.roll once: +1 = jnp.roll convention, -1 = opposite, 0 = unavailable."""
    try:
        def k(x_ref, o_ref):
            o_ref[...] = pltpu.roll(x_ref[...], 1, axis=0)

        x = jnp.tile(jnp.arange(16, dtype=jnp.float32)[:, None], (1, 128))
        out = jax.device_get(
            pl.pallas_call(k, out_shape=jax.ShapeDtypeStruct((16, 128), jnp.float32))(x))
        if float(out[1, 0]) == 0.0:     # out[1] = x[0]  -> jnp.roll semantics
            return 1
        if float(out[1, 0]) == 2.0:     # out[1] = x[2]  -> opposite semantics
            return -1
        return 0
    except Exception:
        return 0


# --------------------------------------------------------------------------- #
# Shared in-kernel helpers
# --------------------------------------------------------------------------- #
def _shift_cols(v, d, W, roll_mode):
    """s[:, w, :] = v[:, w + d, :] for in-range columns (d in {-1, +1}).

    The single out-of-range column holds an arbitrary value; the caller
    overwrites it with the reflect column.  roll_mode selects the XLU roll
    (and its direction) or a slice+concat fallback.
    """
    if roll_mode == 0:
        if d == 1:
            return jnp.concatenate([v[:, 1:, :], v[:, W - 1:, :]], axis=1)
        return jnp.concatenate([v[:, 0:1, :], v[:, :W - 1, :]], axis=1)
    return pltpu.roll(v, (-d * roll_mode) % W, axis=1)


def _conv3x3_reflect_w(a, w_ref, rows, W, roll_mode):
    """3x3 conv: 'valid' along H (a is H-padded by 1 row each side), reflect along W.

    a      : (rows+2, W, C) bf16 — everything W-aligned (no sublane-offset slices)
    w_ref  : (3, 3, C, C) bf16 Ref, (ky, kx, cin, cout)
    returns: (rows, W, C) f32, bias-free (bias cancels under InstanceNorm)

    The horizontal taps are obtained by shifting the f32 *partial sums* along W
    (matmul and column-shift commute), so the MXU reads one aligned bf16
    activation and the shifts run on the XLU instead of the vector-store slot.
    """
    def vsum(kx):                                   # sum over the 3 vertical taps
        acc = jnp.einsum("hwk,ko->hwo", a[0:rows], w_ref[0, kx],
                         preferred_element_type=jnp.float32)
        for ky in (1, 2):
            acc += jnp.einsum("hwk,ko->hwo", a[ky:ky + rows], w_ref[ky, kx],
                              preferred_element_type=jnp.float32)
        return acc

    acc_l, acc_c, acc_r = vsum(0), vsum(1), vsum(2)
    wi = jax.lax.broadcasted_iota(jnp.int32, (1, W, 1), 1)
    # kx=0 tap: out[:, w] += acc_l[:, w-1]; reflect column -1 -> column 1.
    left = _shift_cols(acc_l, -1, W, roll_mode)
    left = jnp.where(wi == 0, acc_l[:, 1:2, :], left)
    # kx=2 tap: out[:, w] += acc_r[:, w+1]; reflect column W -> column W-2.
    right = _shift_cols(acc_r, 1, W, roll_mode)
    right = jnp.where(wi == W - 1, acc_r[:, W - 2:W - 1, :], right)
    return acc_c + left + right


def _instance_norm(acc, n_pix, relu):
    """InstanceNorm2d(affine=False) over a full (H, W, C) f32 image (+ optional ReLU)."""
    inv_n = 1.0 / n_pix
    mean = jnp.sum(acc, axis=(0, 1), keepdims=True) * inv_n
    # One-pass stats; E[x^2]-E[x]^2 can go slightly negative in f32 -> clamp.
    var = jnp.sum(acc * acc, axis=(0, 1), keepdims=True) * inv_n - mean * mean
    y = (acc - mean) * jax.lax.rsqrt(jnp.maximum(var, 0.0) + EPS)
    return jnp.maximum(y, 0.0) if relu else y


# --------------------------------------------------------------------------- #
# Fused whole-image kernel (small / mid sizes)
# --------------------------------------------------------------------------- #
def _fused_kernel(x_ref, w1_ref, w2_ref, out_ref, *, H, W, roll_mode):
    """Whole ResnetBlock for one image, fully resident in VMEM."""

    def hpad(t):
        # Reflect(1) along H only (major axis -> aligned); single C-wide bf16 cast.
        tb = t.astype(jnp.bfloat16)
        return jnp.concatenate([tb[1:2], tb, tb[H - 2:H - 1]], axis=0)

    n_pix = H * W
    h = _conv3x3_reflect_w(hpad(x_ref[0]), w1_ref, H, W, roll_mode)
    h = _instance_norm(h, n_pix, relu=True)
    y = _conv3x3_reflect_w(hpad(h), w2_ref, H, W, roll_mode)
    y = _instance_norm(y, n_pix, relu=False)
    # Re-read the (VMEM-resident) input block for the residual instead of
    # keeping the value live across both convs.
    out_ref[0] = (x_ref[0] + y).astype(out_ref.dtype)


# --------------------------------------------------------------------------- #
# Row-blocked kernels (production sizes that don't fit whole-image in VMEM)
# --------------------------------------------------------------------------- #
def _tiled_conv_kernel(x_ref, halo_ref, w_ref, t_ref, st_ref, *, TH, W, roll_mode):
    """One row block of conv1: un-normalized output + InstanceNorm partial sums."""
    hl = halo_ref[0]                                               # (2, W, C)
    a = jnp.concatenate([hl[0:1], x_ref[0], hl[1:2]], axis=0).astype(jnp.bfloat16)
    acc = _conv3x3_reflect_w(a, w_ref, TH, W, roll_mode)           # (TH, W, C) f32
    t_ref[0] = acc
    s = jnp.sum(acc, axis=(0, 1), keepdims=True)
    ss = jnp.sum(acc * acc, axis=(0, 1), keepdims=True)
    st_ref[0, 0] = jnp.concatenate([s[0], ss[0]], axis=0)          # (2, C)


def _tiled_norm_conv_kernel(t1_ref, halo_ref, nrm_ref, w_ref, t2_ref, st_ref, *,
                            TH, W, roll_mode):
    """One row block of IN1 + ReLU + conv2 (+ IN2 partial sums)."""
    nrm = nrm_ref[0]                                               # (2, C)
    mean = nrm[0:1, :].reshape(1, 1, -1)
    inv = nrm[1:2, :].reshape(1, 1, -1)
    hl = halo_ref[0]
    a = jnp.concatenate([hl[0:1], t1_ref[0], hl[1:2]], axis=0)     # un-normalized
    a = jnp.maximum((a - mean) * inv, 0.0).astype(jnp.bfloat16)    # IN1 + ReLU
    acc = _conv3x3_reflect_w(a, w_ref, TH, W, roll_mode)
    t2_ref[0] = acc
    s = jnp.sum(acc, axis=(0, 1), keepdims=True)
    ss = jnp.sum(acc * acc, axis=(0, 1), keepdims=True)
    st_ref[0, 0] = jnp.concatenate([s[0], ss[0]], axis=0)


def _residual_norm_kernel(x_ref, t2_ref, nrm_ref, out_ref):
    """out = x + InstanceNorm2(conv2 output), elementwise per row block."""
    nrm = nrm_ref[0]
    mean = nrm[0:1, :].reshape(1, 1, -1)
    inv = nrm[1:2, :].reshape(1, 1, -1)
    out_ref[0] = (x_ref[0] + (t2_ref[0] - mean) * inv).astype(out_ref.dtype)


# --------------------------------------------------------------------------- #
# Wrappers
# --------------------------------------------------------------------------- #
def _weight_spec(Cp, index_map, wmode):
    if wmode is None:
        return pl.BlockSpec((3, 3, Cp, Cp), index_map)
    # Weights are grid-invariant -> single buffer (saves ~half the weight VMEM).
    return pl.BlockSpec((3, 3, Cp, Cp), index_map, pipeline_mode=wmode)


def _fused_forward(x, w1b, w2b, vmem_limit, roll_mode, wmode):
    N, H, W, Cp = x.shape
    blk = pl.BlockSpec((1, H, W, Cp), lambda n: (n, 0, 0, 0))
    wspec = _weight_spec(Cp, lambda n: (0, 0, 0, 0), wmode)
    return pl.pallas_call(
        functools.partial(_fused_kernel, H=H, W=W, roll_mode=roll_mode),
        out_shape=jax.ShapeDtypeStruct((N, H, W, Cp), jnp.float32),
        grid_spec=pltpu.PrefetchScalarGridSpec(
            num_scalar_prefetch=0,
            grid=(N,),
            in_specs=[blk, wspec, wspec],
            out_specs=blk,
        ),
        compiler_params=pltpu.CompilerParams(
            dimension_semantics=("parallel",),
            vmem_limit_bytes=vmem_limit,
        ),
    )(x, w1b, w2b)


def _halo_rows(t, TH):
    """Conv-input rows just above/below each H block (reflect rows at image edges).

    t: (N, H, W, C) -> (N, nH*2, W, C), rows [2h, 2h+1] = (top, bottom) halo of
    block h.  Gathering 2 rows per block in JAX keeps the in-kernel access a
    plain rectangular BlockSpec (no data-dependent DMA).
    """
    H = t.shape[1]
    nH = H // TH
    blk = jnp.arange(nH)
    up = jnp.where(blk == 0, 1, blk * TH - 1)
    dn = jnp.where(blk == nH - 1, H - 2, (blk + 1) * TH)
    return t[:, jnp.stack([up, dn], axis=1).reshape(-1)]


def _block_stats_to_norm(st, n_pix):
    """(N, nH, 2, C) per-block [sum, sumsq] -> (N, 2, C) [mean, inv_std]."""
    tot = jnp.sum(st, axis=1)
    mean = tot[:, 0] / n_pix
    var = jnp.maximum(tot[:, 1] / n_pix - mean * mean, 0.0)
    return jnp.stack([mean, jax.lax.rsqrt(var + EPS)], axis=1)


def _tiled_forward(x, w1b, w2b, TH, vmem_limit, roll_mode, wmode):
    N, H, W, Cp = x.shape
    nH = H // TH
    n_pix = H * W

    blk = pl.BlockSpec((1, TH, W, Cp), lambda n, h: (n, h, 0, 0))
    halo = pl.BlockSpec((1, 2, W, Cp), lambda n, h: (n, h, 0, 0))
    stat = pl.BlockSpec((1, 1, 2, Cp), lambda n, h: (n, h, 0, 0))
    nrm = pl.BlockSpec((1, 2, Cp), lambda n, h: (n, 0, 0))
    wspec = _weight_spec(Cp, lambda n, h: (0, 0, 0, 0), wmode)
    cparams = pltpu.CompilerParams(
        dimension_semantics=("parallel", "parallel"),
        vmem_limit_bytes=vmem_limit,
    )
    act_shape = jax.ShapeDtypeStruct((N, H, W, Cp), jnp.float32)
    st_shape = jax.ShapeDtypeStruct((N, nH, 2, Cp), jnp.float32)

    # Pass 1: conv1 (un-normalized) + per-block InstanceNorm partial sums.
    t1, st1 = pl.pallas_call(
        functools.partial(_tiled_conv_kernel, TH=TH, W=W, roll_mode=roll_mode),
        out_shape=(act_shape, st_shape),
        grid_spec=pltpu.PrefetchScalarGridSpec(
            num_scalar_prefetch=0, grid=(N, nH),
            in_specs=[blk, halo, wspec],
            out_specs=(blk, stat)),
        compiler_params=cparams,
    )(x, _halo_rows(x, TH), w1b)
    nrm1 = _block_stats_to_norm(st1, n_pix)

    # Pass 2: IN1 + ReLU + conv2 (un-normalized) + IN2 partial sums.
    t2, st2 = pl.pallas_call(
        functools.partial(_tiled_norm_conv_kernel, TH=TH, W=W, roll_mode=roll_mode),
        out_shape=(act_shape, st_shape),
        grid_spec=pltpu.PrefetchScalarGridSpec(
            num_scalar_prefetch=0, grid=(N, nH),
            in_specs=[blk, halo, nrm, wspec],
            out_specs=(blk, stat)),
        compiler_params=cparams,
    )(t1, _halo_rows(t1, TH), nrm1, w2b)
    nrm2 = _block_stats_to_norm(st2, n_pix)

    # Pass 3: normalize the conv2 output and add the residual.
    return pl.pallas_call(
        _residual_norm_kernel,
        out_shape=act_shape,
        grid_spec=pltpu.PrefetchScalarGridSpec(
            num_scalar_prefetch=0, grid=(N, nH),
            in_specs=[blk, blk, nrm],
            out_specs=blk),
        compiler_params=cparams,
    )(x, t2, nrm2)


def _fused_vmem_bytes(H, W, Cp):
    # dbl-buffered f32 in/out blocks (8+8 B/elem) + bf16 H-padded activation (~2)
    # + three f32 partial-sum accumulators (12) + ~2 f32 temporaries of slack,
    # plus two (possibly double-buffered) bf16 weight tensors.
    return H * W * Cp * 38 + 2 * 2 * 9 * Cp * Cp * 2


def _pick_tile_h(H, W, Cp, budget):
    """Largest row-block height dividing H that fits the VMEM budget.

    Bigger TH keeps the per-matmul M = TH*W large (>= ~512 keeps the v6e/v7x
    MXU pipeline full) and amortizes per-grid-step overhead.
    """
    per_row = W * Cp * 38
    avail = int(0.9 * budget) - 2 * 2 * 9 * Cp * Cp * 2
    th_max = max(1, avail // per_row)
    th = 1
    for d in range(1, H + 1):
        if H % d == 0 and d <= th_max:
            th = d
    return th


def resnet_block_forward_nhwc(x, w1, w2, *, force_tiled=False, tile_h=None):
    """ResnetBlock forward on an NHWC activation with C already padded to 128*k.

    Chained blocks (pix2pixHD stacks 9) should stay in this layout and call this
    entry point directly, so NCHW<->NHWC transposes and the channel pad/slice
    are paid once per chain instead of once per block.

    Conv biases are omitted on purpose: InstanceNorm2d(affine=False) subtracts
    the per-channel spatial mean, which cancels a constant bias exactly.
    """
    N, H, W, Cp = x.shape
    if Cp % 128 != 0:
        raise ValueError("channel dim must be padded to a multiple of 128")
    x = x.astype(jnp.float32)
    w1b = jnp.asarray(w1, jnp.bfloat16)
    w2b = jnp.asarray(w2, jnp.bfloat16)

    budget = _vmem_budget_bytes()
    roll_mode = _roll_mode()
    use_fused = (not force_tiled) and _fused_vmem_bytes(H, W, Cp) <= int(0.9 * budget)
    th = None
    if not use_fused:
        th = int(tile_h) if tile_h is not None else _pick_tile_h(H, W, Cp, budget)
        if H % th != 0:
            # TODO(synk): support a ragged last row block (pl.BoundedSlice).
            raise ValueError(f"tile_h={th} must divide H={H}")

    # Prefer single-buffered (grid-invariant) weights; fall back to default
    # double buffering if this jax version rejects pipeline_mode / Buffered(1).
    wmodes = []
    if hasattr(pl, "Buffered"):
        try:
            wmodes.append(pl.Buffered(1))
        except Exception:
            pass
    wmodes.append(None)

    err = None
    for wmode in wmodes:
        try:
            if use_fused:
                return _fused_forward(x, w1b, w2b, budget, roll_mode, wmode)
            return _tiled_forward(x, w1b, w2b, th, budget, roll_mode, wmode)
        except Exception as e:  # retry with default weight buffering
            err = e
    raise err


def resnet_block_forward(x_nchw, w1, b1, w2, b2, *, force_tiled=False, tile_h=None):
    """PyTorch-layout entry: x (N, C, H, W) f32; w* (3, 3, C, C) HWIO; b* (C,)
    (unused: cancelled exactly by InstanceNorm2d(affine=False))."""
    del b1, b2
    N, C, H, W = x_nchw.shape
    Cp = ((C + 127) // 128) * 128
    x = jnp.transpose(x_nchw, (0, 2, 3, 1)).astype(jnp.float32)
    if Cp != C:
        x = jnp.pad(x, ((0, 0), (0, 0), (0, 0), (0, Cp - C)))
        w1 = jnp.pad(w1, ((0, 0), (0, 0), (0, Cp - C), (0, Cp - C)))
        w2 = jnp.pad(w2, ((0, 0), (0, 0), (0, Cp - C), (0, Cp - C)))
    out = resnet_block_forward_nhwc(x, w1, w2, force_tiled=force_tiled, tile_h=tile_h)
    return jnp.transpose(out[..., :C], (0, 3, 1, 2))


# --------------------------------------------------------------------------- #
# Pure-JAX reference + test
# --------------------------------------------------------------------------- #
def _ref_forward(x_nchw, w1, b1, w2, b2, matmul_dtype=jnp.float32):
    """Reference with PyTorch semantics. matmul_dtype=bf16 mirrors the kernel's
    MXU precision; f32 is the exact reference."""
    x = jnp.transpose(x_nchw, (0, 2, 3, 1))

    def conv3x3(inp, w, b):
        pad = jnp.pad(inp, ((0, 0), (1, 1), (1, 1), (0, 0)), mode="reflect")
        out = jax.lax.conv_general_dilated(
            pad.astype(matmul_dtype), w.astype(matmul_dtype), (1, 1), "VALID",
            dimension_numbers=("NHWC", "HWIO", "NHWC"),
            preferred_element_type=jnp.float32)
        return out + b

    def inorm(y):
        m = jnp.mean(y, axis=(1, 2), keepdims=True)
        v = jnp.mean((y - m) ** 2, axis=(1, 2), keepdims=True)
        return (y - m) * jax.lax.rsqrt(v + EPS)

    h = jnp.maximum(inorm(conv3x3(x, w1, b1)), 0.0)
    h = inorm(conv3x3(h, w2, b2))
    return jnp.transpose(x + h, (0, 3, 1, 2))


if __name__ == "__main__":
    N, C, H, W = 2, 4, 16, 16
    key = jax.random.PRNGKey(0)
    k_x, k_w1, k_b1, k_w2, k_b2 = jax.random.split(key, 5)

    x = jax.random.normal(k_x, (N, C, H, W), dtype=jnp.float32)

    # PyTorch-style uniform init, HWIO layout.
    fan_in = C * 3 * 3
    bound = 1.0 / (fan_in ** 0.5)
    w1 = jax.random.uniform(k_w1, (3, 3, C, C), jnp.float32, -bound, bound)
    b1 = jax.random.uniform(k_b1, (C,), jnp.float32, -bound, bound)
    w2 = jax.random.uniform(k_w2, (3, 3, C, C), jnp.float32, -bound, bound)
    b2 = jax.random.uniform(k_b2, (C,), jnp.float32, -bound, bound)

    ref_bf16 = jax.block_until_ready(_ref_forward(x, w1, b1, w2, b2, jnp.bfloat16))
    ref_f32 = jax.block_until_ready(_ref_forward(x, w1, b1, w2, b2, jnp.float32))

    # Exercise both paths: fused whole-image, and the row-blocked production path.
    out_fused = jax.block_until_ready(resnet_block_forward(x, w1, b1, w2, b2))
    out_tiled = jax.block_until_ready(
        resnet_block_forward(x, w1, b1, w2, b2, force_tiled=True, tile_h=8))

    for name, out in (("fused", out_fused), ("tiled", out_tiled)):
        assert out.shape == (N, C, H, W), (name, out.shape)
        assert jnp.allclose(out, ref_bf16, atol=1e-2, rtol=1e-2), \
            f"{name}: mismatch vs bf16-matmul reference"
        assert jnp.allclose(out, ref_f32, atol=1e-1, rtol=1e-1), \
            f"{name}: mismatch vs f32 reference"

    print("KERNEL_OK")
</pallas_src>

<mosaic_0001>
module attributes {stable_mosaic.version = 11 : i64} {
  func.func @k(%arg0: memref<16x128xf32, #tpu.memory_space<vmem>>, %arg1: memref<16x128xf32, #tpu.memory_space<vmem>>) attributes {dimension_semantics = [], scalar_prefetch = 0 : i64, scratch_operands = 0 : i64, tpu.core_type = #tpu.core_type<tc>} {
    %c0 = arith.constant 0 : index
    %c0_0 = arith.constant 0 : index
    %0 = vector.load %arg0[%c0, %c0_0] : memref<16x128xf32, #tpu.memory_space<vmem>>, vector<16x128xf32>
    %c1_i32 = arith.constant 1 : i32
    %1 = tpu.dynamic_rotate %0 by %c1_i32 dim 0 : vector<16x128xf32>, i32 -> vector<16x128xf32>
    %c0_1 = arith.constant 0 : index
    %c0_2 = arith.constant 0 : index
    %2 = vector.load %arg1[%c0_1, %c0_2] : memref<16x128xf32, #tpu.memory_space<vmem>>, vector<16x128xf32>
    tpu.vector_store %arg1[%c0_1, %c0_2], %1 {strides = array<i32>} : memref<16x128xf32, #tpu.memory_space<vmem>>, vector<16x128xf32>,
    return
  }
}

module attributes {stable_mosaic.version = 11 : i64} {
  func.func @_fused_kernel(%arg0: i32, %arg1: memref<1x16x16x128xf32, #tpu.memory_space<vmem>>, %arg2: memref<3x3x128x128xbf16, #tpu.memory_space<vmem>>, %arg3: memref<3x3x128x128xbf16, #tpu.memory_space<vmem>>, %arg4: memref<1x16x16x128xf32, #tpu.memory_space<vmem>>) attributes {dimension_semantics = [#tpu.dimension_semantics<parallel>], iteration_bounds = array<i64: 2>, scalar_prefetch = 0 : i64, scratch_operands = 0 : i64, tpu.core_type = #tpu.core_type<tc>, window_params = [{transform_indices = @transform_0, window_bounds = array<i64: 1, 16, 16, 128>}, {pipeline_mode = #tpu.pipeline_mode<synchronous>, transform_indices = @transform_1, window_bounds = array<i64: 3, 3, 128, 128>}, {pipeline_mode = #tpu.pipeline_mode<synchronous>, transform_indices = @transform_2, window_bounds = array<i64: 3, 3, 128, 128>}, {transform_indices = @transform_3, window_bounds = array<i64: 1, 16, 16, 128>}]} {
    %c0 = arith.constant 0 : index
    %c0_0 = arith.constant 0 : index
    %c0_1 = arith.constant 0 : index
    %c0_2 = arith.constant 0 : index
    %0 = vector.load %arg1[%c0, %c0_0, %c0_1, %c0_2] : memref<1x16x16x128xf32, #tpu.memory_space<vmem>>, vector<1x16x16x128xf32>
    %1 = vector.shape_cast %0 : vector<1x16x16x128xf32> to vector<16x16x128xf32>
    %2 = arith.truncf %1 : vector<16x16x128xf32> to vector<16x16x128xbf16>
    %3 = vector.extract_strided_slice %2 {offsets = [1, 0, 0], sizes = [1, 16, 128], strides = [1, 1, 1]} : vector<16x16x128xbf16> to vector<1x16x128xbf16>
    %4 = vector.extract_strided_slice %2 {offsets = [14, 0, 0], sizes = [1, 16, 128], strides = [1, 1, 1]} : vector<16x16x128xbf16> to vector<1x16x128xbf16>
    %5 = tpu.concatenate %3, %2, %4 in 0 : vector<1x16x128xbf16>, vector<16x16x128xbf16>, vector<1x16x128xbf16> -> vector<18x16x128xbf16>
    %6 = vector.extract_strided_slice %5 {offsets = [0, 0, 0], sizes = [16, 16, 128], strides = [1, 1, 1]} : vector<18x16x128xbf16> to vector<16x16x128xbf16>
    %c0_3 = arith.constant 0 : index
    %c0_4 = arith.constant 0 : index
    %c0_5 = arith.constant 0 : index
    %c0_6 = arith.constant 0 : index
    %7 = vector.load %arg2[%c0_3, %c0_4, %c0_5, %c0_6] : memref<3x3x128x128xbf16, #tpu.memory_space<vmem>>, vector<1x1x128x128xbf16>
    %8 = vector.shape_cast %7 : vector<1x1x128x128xbf16> to vector<128x128xbf16>
    "tpu.trace_start"() <{level = 10 : i32, message = "hwk,ko->hwo"}> : () -> ()
    %cst = arith.constant dense<0.000000e+00> : vector<16x16x128xf32>
    %9 = tpu.matmul %6, %8, %cst {dimension_numbers = #tpu.dot_dimension_numbers<[2], [0], [0, 1], [1], [0, 0, 0, 1, 1, 1], [], []>} : vector<16x16x128xbf16>, vector<128x128xbf16>, vector<16x16x128xf32> -> vector<16x16x128xf32>
    "tpu.trace_stop"() : () -> ()
    %10 = vector.extract_strided_slice %5 {offsets = [1, 0, 0], sizes = [16, 16, 128], strides = [1, 1, 1]} : vector<18x16x128xbf16> to vector<16x16x128xbf16>
    %c1 = arith.constant 1 : index
    %c0_7 = arith.constant 0 : index
    %c0_8 = arith.constant 0 : index
    %c0_9 = arith.constant 0 : index
    %11 = vector.load %arg2[%c1, %c0_7, %c0_8, %c0_9] : memref<3x3x128x128xbf16, #tpu.memory_space<vmem>>, vector<1x1x128x128xbf16>
    %12 = vector.shape_cast %11 : vector<1x1x128x128xbf16> to vector<128x128xbf16>
    "tpu.trace_start"() <{level = 10 : i32, message = "hwk,ko->hwo"}> : () -> ()
    %cst_10 = arith.constant dense<0.000000e+00> : vector<16x16x128xf32>
    %13 = tpu.matmul %10, %12, %cst_10 {dimension_numbers = #tpu.dot_dimension_numbers<[2], [0], [0, 1], [1], [0, 0, 0, 1, 1, 1], [], []>} : vector<16x16x128xbf16>, vector<128x128xbf16>, vector<16x16x128xf32> -> vector<16x16x128xf32>
    "tpu.trace_stop"() : () -> ()
    %14 = arith.addf %9, %13 : vector<16x16x128xf32>
    %15 = vector.extract_strided_slice %5 {offsets = [2, 0, 0], sizes = [16, 16, 128], strides = [1, 1, 1]} : vector<18x16x128xbf16> to vector<16x16x128xbf16>
    %c2 = arith.constant 2 : index
    %c0_11 = arith.constant 0 : index
    %c0_12 = arith.constant 0 : index
    %c0_13 = arith.constant 0 : index
    %16 = vector.load %arg2[%c2, %c0_11, %c0_12, %c0_13] : memref<3x3x128x128xbf16, #tpu.memory_space<vmem>>, vector<1x1x128x128xbf16>
    %17 = vector.shape_cast %16 : vector<1x1x128x128xbf16> to vector<128x128xbf16>
    "tpu.trace_start"() <{level = 10 : i32, message = "hwk,ko->hwo"}> : () -> ()
    %cst_14 = arith.constant dense<0.000000e+00> : vector<16x16x128xf32>
    %18 = tpu.matmul %15, %17, %cst_14 {dimension_numbers = #tpu.dot_dimension_numbers<[2], [0], [0, 1], [1], [0, 0, 0, 1, 1, 1], [], []>} : vector<16x16x128xbf16>, vector<128x128xbf16>, vector<16x16x128xf32> -> vector<16x16x128xf32>
    "tpu.trace_stop"() : () -> ()
    %19 = arith.addf %14, %18 : vector<16x16x128xf32>
    %20 = vector.extract_strided_slice %5 {offsets = [0, 0, 0], sizes = [16, 16, 128], strides = [1, 1, 1]} : vector<18x16x128xbf16> to vector<16x16x128xbf16>
    %c0_15 = arith.constant 0 : index
    %c1_16 = arith.constant 1 : index
    %c0_17 = arith.constant 0 : index
    %c0_18 = arith.constant 0 : index
    %21 = vector.load %arg2[%c0_15, %c1_16, %c0_17, %c0_18] : memref<3x3x128x128xbf16, #tpu.memory_space<vmem>>, vector<1x1x128x128xbf16>
    %22 = vector.shape_cast %21 : vector<1x1x128x128xbf16> to vector<128x128xbf16>
    "tpu.trace_start"() <{level = 10 : i32, message = "hwk,ko->hwo"}> : () -> ()
    %cst_19 = arith.constant dense<0.000000e+00> : vector<16x16x128xf32>
    %23 = tpu.matmul %20, %22, %cst_19 {dimension_numbers = #tpu.dot_dimension_numbers<[2], [0], [0, 1], [1], [0, 0, 0, 1, 1, 1], [], []>} : vector<16x16x128xbf16>, vector<128x128xbf16>, vector<16x16x128xf32> -> vector<16x16x128xf32>
    "tpu.trace_stop"() : () -> ()
    %24 = vector.extract_strided_slice %5 {offsets = [1, 0, 0], sizes = [16, 16, 128], strides = [1, 1, 1]} : vector<18x16x128xbf16> to vector<16x16x128xbf16>
    %c1_20 = arith.constant 1 : index
    %c1_21 = arith.constant 1 : index
    %c0_22 = arith.constant 0 : index
    %c0_23 = arith.constant 0 : index
    %25 = vector.load %arg2[%c1_20, %c1_21, %c0_22, %c0_23] : memref<3x3x128x128xbf16, #tpu.memory_space<vmem>>, vector<1x1x128x128xbf16>
    %26 = vector.shape_cast %25 : vector<1x1x128x128xbf16> to vector<128x128xbf16>
    "tpu.trace_start"() <{level = 10 : i32, message = "hwk,ko->hwo"}> : () -> ()
    %cst_24 = arith.constant dense<0.000000e+00> : vector<16x16x128xf32>
    %27 = tpu.matmul %24, %26, %cst_24 {dimension_numbers = #tpu.dot_dimension_numbers<[2], [0], [0, 1], [1], [0, 0, 0, 1, 1, 1], [], []>} : vector<16x16x128xbf16>, vector<128x128xbf16>, vector<16x16x128xf32> -> vector<16x16x128xf32>
    "tpu.trace_stop"() : () -> ()
    %28 = arith.addf %23, %27 : vector<16x16x128xf32>
    %29 = vector.extract_strided_slice %5 {offsets = [2, 0, 0], sizes = [16, 16, 128], strides = [1, 1, 1]} : vector<18x16x128xbf16> to vector<16x16x128xbf16>
    %c2_25 = arith.constant 2 : index
    %c1_26 = arith.constant 1 : index
    %c0_27 = arith.constant 0 : index
    %c0_28 = arith.constant 0 : index
    %30 = vector.load %arg2[%c2_25, %c1_26, %c0_27, %c0_28] : memref<3x3x128x128xbf16, #tpu.memory_space<vmem>>, vector<1x1x128x128xbf16>
    %31 = vector.shape_cast %30 : vector<1x1x128x128xbf16> to vector<128x128xbf16>
    "tpu.trace_start"() <{level = 10 : i32, message = "hwk,ko->hwo"}> : () -> ()
    %cst_29 = arith.constant dense<0.000000e+00> : vector<16x16x128xf32>
    %32 = tpu.matmul %29, %31, %cst_29 {dimension_numbers = #tpu.dot_dimension_numbers<[2], [0], [0, 1], [1], [0, 0, 0, 1, 1, 1], [], []>} : vector<16x16x128xbf16>, vector<128x128xbf16>, vector<16x16x128xf32> -> vector<16x16x128xf32>
    "tpu.trace_stop"() : () -> ()
    %33 = arith.addf %28, %32 : vector<16x16x128xf32>
    %34 = vector.extract_strided_slice %5 {offsets = [0, 0, 0], sizes = [16, 16, 128], strides = [1, 1, 1]} : vector<18x16x128xbf16> to vector<16x16x128xbf16>
    %c0_30 = arith.constant 0 : index
    %c2_31 = arith.constant 2 : index
    %c0_32 = arith.constant 0 : index
    %c0_33 = arith.constant 0 : index
    %35 = vector.load %arg2[%c0_30, %c2_31, %c0_32, %c0_33] : memref<3x3x128x128xbf16, #tpu.memory_space<vmem>>, vector<1x1x128x128xbf16>
    %36 = vector.shape_cast %35 : vector<1x1x128x128xbf16> to vector<128x128xbf16>
    "tpu.trace_start"() <{level = 10 : i32, message = "hwk,ko->hwo"}> : () -> ()
    %cst_34 = arith.constant dense<0.000000e+00> : vector<16x16x128xf32>
    %37 = tpu.matmul %34, %36, %cst_34 {dimension_numbers = #tpu.dot_dimension_numbers<[2], [0], [0, 1], [1], [0, 0, 0, 1, 1, 1], [], []>} : vector<16x16x128xbf16>, vector<128x128xbf16>, vector<16x16x128xf32> -> vector<16x16x128xf32>
    "tpu.trace_stop"() : () -> ()
    %38 = vector.extract_strided_slice %5 {offsets = [1, 0, 0], sizes = [16, 16, 128], strides = [1, 1, 1]} : vector<18x16x128xbf16> to vector<16x16x128xbf16>
    %c1_35 = arith.constant 1 : index
    %c2_36 = arith.constant 2 : index
    %c0_37 = arith.constant 0 : index
    %c0_38 = arith.constant 0 : index
    %39 = vector.load %arg2[%c1_35, %c2_36, %c0_37, %c0_38] : memref<3x3x128x128xbf16, #tpu.memory_space<vmem>>, vector<1x1x128x128xbf16>
    %40 = vector.shape_cast %39 : vector<1x1x128x128xbf16> to vector<128x128xbf16>
    "tpu.trace_start"() <{level = 10 : i32, message = "hwk,ko->hwo"}> : () -> ()
    %cst_39 = arith.constant dense<0.000000e+00> : vector<16x16x128xf32>
    %41 = tpu.matmul %38, %40, %cst_39 {dimension_numbers = #tpu.dot_dimension_numbers<[2], [0], [0, 1], [1], [0, 0, 0, 1, 1, 1], [], []>} : vector<16x16x128xbf16>, vector<128x128xbf16>, vector<16x16x128xf32> -> vector<16x16x128xf32>
    "tpu.trace_stop"() : () -> ()
    %42 = arith.addf %37, %41 : vector<16x16x128xf32>
    %43 = vector.extract_strided_slice %5 {offsets = [2, 0, 0], sizes = [16, 16, 128], strides = [1, 1, 1]} : vector<18x16x128xbf16> to vector<16x16x128xbf16>
    %c2_40 = arith.constant 2 : index
    %c2_41 = arith.constant 2 : index
    %c0_42 = arith.constant 0 : index
    %c0_43 = arith.constant 0 : index
    %44 = vector.load %arg2[%c2_40, %c2_41, %c0_42, %c0_43] : memref<3x3x128x128xbf16, #tpu.memory_space<vmem>>, vector<1x1x128x128xbf16>
    %45 = vector.shape_cast %44 : vector<1x1x128x128xbf16> to vector<128x128xbf16>
    "tpu.trace_start"() <{level = 10 : i32, message = "hwk,ko->hwo"}> : () -> ()
    %cst_44 = arith.constant dense<0.000000e+00> : vector<16x16x128xf32>
    %46 = tpu.matmul %43, %45, %cst_44 {dimension_numbers = #tpu.dot_dimension_numbers<[2], [0], [0, 1], [1], [0, 0, 0, 1, 1, 1], [], []>} : vector<16x16x128xbf16>, vector<128x128xbf16>, vector<16x16x128xf32> -> vector<16x16x128xf32>
    "tpu.trace_stop"() : () -> ()
    %47 = arith.addf %42, %46 : vector<16x16x128xf32>
    %48 = tpu.iota {dimensions = array<i32: 1>} : vector<1x16x1xi32>
    %49 = vector.extract_strided_slice %19 {offsets = [0, 0, 0], sizes = [16, 1, 128], strides = [1, 1, 1]} : vector<16x16x128xf32> to vector<16x1x128xf32>
    %50 = vector.extract_strided_slice %19 {offsets = [0, 0, 0], sizes = [16, 15, 128], strides = [1, 1, 1]} : vector<16x16x128xf32> to vector<16x15x128xf32>
    %51 = tpu.concatenate %49, %50 in 1 : vector<16x1x128xf32>, vector<16x15x128xf32> -> vector<16x16x128xf32>
    %c0_i32 = arith.constant 0 : i32
    %52 = vector.broadcast %c0_i32 : i32 to vector<1x16x1xi32>
    %53 = arith.cmpi eq, %48, %52 : vector<1x16x1xi32>
    %54 = vector.extract_strided_slice %19 {offsets = [0, 1, 0], sizes = [16, 1, 128], strides = [1, 1, 1]} : vector<16x16x128xf32> to vector<16x1x128xf32>
    %55 = vector.shape_cast %53 : vector<1x16x1xi1> to vector<1x16x1xi1>
    %56 = vector.broadcast %55 : vector<1x16x1xi1> to vector<16x16x128xi1>
    %57 = vector.shape_cast %54 : vector<16x1x128xf32> to vector<16x1x128xf32>
    %58 = vector.broadcast %57 : vector<16x1x128xf32> to vector<16x16x128xf32>
    %59 = arith.select %56, %58, %51 : vector<16x16x128xi1>, vector<16x16x128xf32>
    %60 = vector.extract_strided_slice %47 {offsets = [0, 1, 0], sizes = [16, 15, 128], strides = [1, 1, 1]} : vector<16x16x128xf32> to vector<16x15x128xf32>
    %61 = vector.extract_strided_slice %47 {offsets = [0, 15, 0], sizes = [16, 1, 128], strides = [1, 1, 1]} : vector<16x16x128xf32> to vector<16x1x128xf32>
    %62 = tpu.concatenate %60, %61 in 1 : vector<16x15x128xf32>, vector<16x1x128xf32> -> vector<16x16x128xf32>
    %c15_i32 = arith.constant 15 : i32
    %63 = vector.broadcast %c15_i32 : i32 to vector<1x16x1xi32>
    %64 = arith.cmpi eq, %48, %63 : vector<1x16x1xi32>
    %65 = vector.extract_strided_slice %47 {offsets = [0, 14, 0], sizes = [16, 1, 128], strides = [1, 1, 1]} : vector<16x16x128xf32> to vector<16x1x128xf32>
    %66 = vector.shape_cast %64 : vector<1x16x1xi1> to vector<1x16x1xi1>
    %67 = vector.broadcast %66 : vector<1x16x1xi1> to vector<16x16x128xi1>
    %68 = vector.shape_cast %65 : vector<16x1x128xf32> to vector<16x1x128xf32>
    %69 = vector.broadcast %68 : vector<16x1x128xf32> to vector<16x16x128xf32>
    %70 = arith.select %67, %69, %62 : vector<16x16x128xi1>, vector<16x16x128xf32>
    %71 = arith.addf %33, %59 : vector<16x16x128xf32>
    %72 = arith.addf %71, %70 : vector<16x16x128xf32>
    %cst_45 = arith.constant dense<0.000000e+00> : vector<128xf32>
    %73 = vector.multi_reduction <add>, %72, %cst_45 [0, 1] : vector<16x16x128xf32> to vector<128xf32>
    %74 = vector.shape_cast %73 : vector<128xf32> to vector<1x1x128xf32>
    %cst_46 = arith.constant 3.906250e-03 : f32
    %75 = vector.broadcast %cst_46 : f32 to vector<1x1x128xf32>
    %76 = arith.mulf %74, %75 : vector<1x1x128xf32>
    %77 = arith.mulf %72, %72 : vector<16x16x128xf32>
    %cst_47 = arith.constant dense<0.000000e+00> : vector<128xf32>
    %78 = vector.multi_reduction <add>, %77, %cst_47 [0, 1] : vector<16x16x128xf32> to vector<128xf32>
    %79 = vector.shape_cast %78 : vector<128xf32> to vector<1x1x128xf32>
    %cst_48 = arith.constant 3.906250e-03 : f32
    %80 = vector.broadcast %cst_48 : f32 to vector<1x1x128xf32>
    %81 = arith.mulf %79, %80 : vector<1x1x128xf32>
    %82 = arith.mulf %76, %76 : vector<1x1x128xf32>
    %83 = arith.subf %81, %82 : vector<1x1x128xf32>
    %84 = vector.broadcast %76 : vector<1x1x128xf32> to vector<16x16x128xf32>
    %85 = arith.subf %72, %84 : vector<16x16x128xf32>
    %cst_49 = arith.constant 0.000000e+00 : f32
    %86 = vector.broadcast %cst_49 : f32 to vector<1x1x128xf32>
    %87 = arith.maximumf %83, %86 : vector<1x1x128xf32>
    %cst_50 = arith.constant 9.99999974E-6 : f32
    %88 = vector.broadcast %cst_50 : f32 to vector<1x1x128xf32>
    %89 = arith.addf %87, %88 : vector<1x1x128xf32>
    %90 = math.rsqrt %89 : vector<1x1x128xf32>
    %91 = vector.broadcast %90 : vector<1x1x128xf32> to vector<16x16x128xf32>
    %92 = arith.mulf %85, %91 : vector<16x16x128xf32>
    %cst_51 = arith.constant 0.000000e+00 : f32
    %93 = vector.broadcast %cst_51 : f32 to vector<16x16x128xf32>
    %94 = arith.maximumf %92, %93 : vector<16x16x128xf32>
    %95 = arith.truncf %94 : vector<16x16x128xf32> to vector<16x16x128xbf16>
    %96 = vector.extract_strided_slice %95 {offsets = [1, 0, 0], sizes = [1, 16, 128], strides = [1, 1, 1]} : vector<16x16x128xbf16> to vector<1x16x128xbf16>
    %97 = vector.extract_strided_slice %95 {offsets = [14, 0, 0], sizes = [1, 16, 128], strides = [1, 1, 1]} : vector<16x16x128xbf16> to vector<1x16x128xbf16>
    %98 = tpu.concatenate %96, %95, %97 in 0 : vector<1x16x128xbf16>, vector<16x16x128xbf16>, vector<1x16x128xbf16> -> vector<18x16x128xbf16>
    %99 = vector.extract_strided_slice %98 {offsets = [0, 0, 0], sizes = [16, 16, 128], strides = [1, 1, 1]} : vector<18x16x128xbf16> to vector<16x16x128xbf16>
    %c0_52 = arith.constant 0 : index
    %c0_53 = arith.constant 0 : index
    %c0_54 = arith.constant 0 : index
    %c0_55 = arith.constant 0 : index
    %100 = vector.load %arg3[%c0_52, %c0_53, %c0_54, %c0_55] : memref<3x3x128x128xbf16, #tpu.memory_space<vmem>>, vector<1x1x128x128xbf16>
    %101 = vector.shape_cast %100 : vector<1x1x128x128xbf16> to vector<128x128xbf16>
    "tpu.trace_start"() <{level = 10 : i32, message = "hwk,ko->hwo"}> : () -> ()
    %cst_56 = arith.constant dense<0.000000e+00> : vector<16x16x128xf32>
    %102 = tpu.matmul %99, %101, %cst_56 {dimension_numbers = #tpu.dot_dimension_numbers<[2], [0], [0, 1], [1], [0, 0, 0, 1, 1, 1], [], []>} : vector<16x16x128xbf16>, vector<128x128xbf16>, vector<16x16x128xf32> -> vector<16x16x128xf32>
    "tpu.trace_stop"() : () -> ()
    %103 = vector.extract_strided_slice %98 {offsets = [1, 0, 0], sizes = [16, 16, 128], strides = [1, 1, 1]} : vector<18x16x128xbf16> to vector<16x16x128xbf16>
    %c1_57 = arith.constant 1 : index
    %c0_58 = arith.constant 0 : index
    %c0_59 = arith.constant 0 : index
    %c0_60 = arith.constant 0 : index
    %104 = vector.load %arg3[%c1_57, %c0_58, %c0_59, %c0_60] : memref<3x3x128x128xbf16, #tpu.memory_space<vmem>>, vector<1x1x128x128xbf16>
    %105 = vector.shape_cast %104 : vector<1x1x128x128xbf16> to vector<128x128xbf16>
    "tpu.trace_start"() <{level = 10 : i32, message = "hwk,ko->hwo"}> : () -> ()
    %cst_61 = arith.constant dense<0.000000e+00> : vector<16x16x128xf32>
    %106 = tpu.matmul %103, %105, %cst_61 {dimension_numbers = #tpu.dot_dimension_numbers<[2], [0], [0, 1], [1], [0, 0, 0, 1, 1, 1], [], []>} : vector<16x16x128xbf16>, vector<128x128xbf16>, vector<16x16x128xf32> -> vector<16x16x128xf32>
    "tpu.trace_stop"() : () -> ()
    %107 = arith.addf %102, %106 : vector<16x16x128xf32>
    %108 = vector.extract_strided_slice %98 {offsets = [2, 0, 0], sizes = [16, 16, 128], strides = [1, 1, 1]} : vector<18x16x128xbf16> to vector<16x16x128xbf16>
    %c2_62 = arith.constant 2 : index
    %c0_63 = arith.constant 0 : index
    %c0_64 = arith.constant 0 : index
    %c0_65 = arith.constant 0 : index
    %109 = vector.load %arg3[%c2_62, %c0_63, %c0_64, %c0_65] : memref<3x3x128x128xbf16, #tpu.memory_space<vmem>>, vector<1x1x128x128xbf16>
    %110 = vector.shape_cast %109 : vector<1x1x128x128xbf16> to vector<128x128xbf16>
    "tpu.trace_start"() <{level = 10 : i32, message = "hwk,ko->hwo"}> : () -> ()
    %cst_66 = arith.constant dense<0.000000e+00> : vector<16x16x128xf32>
    %111 = tpu.matmul %108, %110, %cst_66 {dimension_numbers = #tpu.dot_dimension_numbers<[2], [0], [0, 1], [1], [0, 0, 0, 1, 1, 1], [], []>} : vector<16x16x128xbf16>, vector<128x128xbf16>, vector<16x16x128xf32> -> vector<16x16x128xf32>
    "tpu.trace_stop"() : () -> ()
    %112 = arith.addf %107, %111 : vector<16x16x128xf32>
    %113 = vector.extract_strided_slice %98 {offsets = [0, 0, 0], sizes = [16, 16, 128], strides = [1, 1, 1]} : vector<18x16x128xbf16> to vector<16x16x128xbf16>
    %c0_67 = arith.constant 0 : index
    %c1_68 = arith.constant 1 : index
    %c0_69 = arith.constant 0 : index
    %c0_70 = arith.constant 0 : index
    %114 = vector.load %arg3[%c0_67, %c1_68, %c0_69, %c0_70] : memref<3x3x128x128xbf16, #tpu.memory_space<vmem>>, vector<1x1x128x128xbf16>
    %115 = vector.shape_cast %114 : vector<1x1x128x128xbf16> to vector<128x128xbf16>
    "tpu.trace_start"() <{level = 10 : i32, message = "hwk,ko->hwo"}> : () -> ()
    %cst_71 = arith.constant dense<0.000000e+00> : vector<16x16x128xf32>
    %116 = tpu.matmul %113, %115, %cst_71 {dimension_numbers = #tpu.dot_dimension_numbers<[2], [0], [0, 1], [1], [0, 0, 0, 1, 1, 1], [], []>} : vector<16x16x128xbf16>, vector<128x128xbf16>, vector<16x16x128xf32> -> vector<16x16x128xf32>
    "tpu.trace_stop"() : () -> ()
    %117 = vector.extract_strided_slice %98 {offsets = [1, 0, 0], sizes = [16, 16, 128], strides = [1, 1, 1]} : vector<18x16x128xbf16> to vector<16x16x128xbf16>
    %c1_72 = arith.constant 1 : index
    %c1_73 = arith.constant 1 : index
    %c0_74 = arith.constant 0 : index
    %c0_75 = arith.constant 0 : index
    %118 = vector.load %arg3[%c1_72, %c1_73, %c0_74, %c0_75] : memref<3x3x128x128xbf16, #tpu.memory_space<vmem>>, vector<1x1x128x128xbf16>
    %119 = vector.shape_cast %118 : vector<1x1x128x128xbf16> to vector<128x128xbf16>
    "tpu.trace_start"() <{level = 10 : i32, message = "hwk,ko->hwo"}> : () -> ()
    %cst_76 = arith.constant dense<0.000000e+00> : vector<16x16x128xf32>
    %120 = tpu.matmul %117, %119, %cst_76 {dimension_numbers = #tpu.dot_dimension_numbers<[2], [0], [0, 1], [1], [0, 0, 0, 1, 1, 1], [], []>} : vector<16x16x128xbf16>, vector<128x128xbf16>, vector<16x16x128xf32> -> vector<16x16x128xf32>
    "tpu.trace_stop"() : () -> ()
    %121 = arith.addf %116, %120 : vector<16x16x128xf32>
    %122 = vector.extract_strided_slice %98 {offsets = [2, 0, 0], sizes = [16, 16, 128], strides = [1, 1, 1]} : vector<18x16x128xbf16> to vector<16x16x128xbf16>
    %c2_77 = arith.constant 2 : index
    %c1_78 = arith.constant 1 : index
    %c0_79 = arith.constant 0 : index
    %c0_80 = arith.constant 0 : index
    %123 = vector.load %arg3[%c2_77, %c1_78, %c0_79, %c0_80] : memref<3x3x128x128xbf16, #tpu.memory_space<vmem>>, vector<1x1x128x128xbf16>
    %124 = vector.shape_cast %123 : vector<1x1x128x128xbf16> to vector<128x128xbf16>
    "tpu.trace_start"() <{level = 10 : i32, message = "hwk,ko->hwo"}> : () -> ()
    %cst_81 = arith.constant dense<0.000000e+00> : vector<16x16x128xf32>
    %125 = tpu.matmul %122, %124, %cst_81 {dimension_numbers = #tpu.dot_dimension_numbers<[2], [0], [0, 1], [1], [0, 0, 0, 1, 1, 1], [], []>} : vector<16x16x128xbf16>, vector<128x128xbf16>, vector<16x16x128xf32> -> vector<16x16x128xf32>
    "tpu.trace_stop"() : () -> ()
    %126 = arith.addf %121, %125 : vector<16x16x128xf32>
    %127 = vector.extract_strided_slice %98 {offsets = [0, 0, 0], sizes = [16, 16, 128], strides = [1, 1, 1]} : vector<18x16x128xbf16> to vector<16x16x128xbf16>
    %c0_82 = arith.constant 0 : index
    %c2_83 = arith.constant 2 : index
    %c0_84 = arith.constant 0 : index
    %c0_85 = arith.constant 0 : index
    %128 = vector.load %arg3[%c0_82, %c2_83, %c0_84, %c0_85] : memref<3x3x128x128xbf16, #tpu.memory_space<vmem>>, vector<1x1x128x128xbf16>
    %129 = vector.shape_cast %128 : vector<1x1x128x128xbf16> to vector<128x128xbf16>
    "tpu.trace_start"() <{level = 10 : i32, message = "hwk,ko->hwo"}> : () -> ()
    %cst_86 = arith.constant dense<0.000000e+00> : vector<16x16x128xf32>
    %130 = tpu.matmul %127, %129, %cst_86 {dimension_numbers = #tpu.dot_dimension_numbers<[2], [0], [0, 1], [1], [0, 0, 0, 1, 1, 1], [], []>} : vector<16x16x128xbf16>, vector<128x128xbf16>, vector<16x16x128xf32> -> vector<16x16x128xf32>
    "tpu.trace_stop"() : () -> ()
    %131 = vector.extract_strided_slice %98 {offsets = [1, 0, 0], sizes = [16, 16, 128], strides = [1, 1, 1]} : vector<18x16x128xbf16> to vector<16x16x128xbf16>
    %c1_87 = arith.constant 1 : index
    %c2_88 = arith.constant 2 : index
    %c0_89 = arith.constant 0 : index
    %c0_90 = arith.constant 0 : index
    %132 = vector.load %arg3[%c1_87, %c2_88, %c0_89, %c0_90] : memref<3x3x128x128xbf16, #tpu.memory_space<vmem>>, vector<1x1x128x128xbf16>
    %133 = vector.shape_cast %132 : vector<1x1x128x128xbf16> to vector<128x128xbf16>
    "tpu.trace_start"() <{level = 10 : i32, message = "hwk,ko->hwo"}> : () -> ()
    %cst_91 = arith.constant dense<0.000000e+00> : vector<16x16x128xf32>
    %134 = tpu.matmul %131, %133, %cst_91 {dimension_numbers = #tpu.dot_dimension_numbers<[2], [0], [0, 1], [1], [0, 0, 0, 1, 1, 1], [], []>} : vector<16x16x128xbf16>, vector<128x128xbf16>, vector<16x16x128xf32> -> vector<16x16x128xf32>
    "tpu.trace_stop"() : () -> ()
    %135 = arith.addf %130, %134 : vector<16x16x128xf32>
    %136 = vector.extract_strided_slice %98 {offsets = [2, 0, 0], sizes = [16, 16, 128], strides = [1, 1, 1]} : vector<18x16x128xbf16> to vector<16x16x128xbf16>
    %c2_92 = arith.constant 2 : index
    %c2_93 = arith.constant 2 : index
    %c0_94 = arith.constant 0 : index
    %c0_95 = arith.constant 0 : index
    %137 = vector.load %arg3[%c2_92, %c2_93, %c0_94, %c0_95] : memref<3x3x128x128xbf16, #tpu.memory_space<vmem>>, vector<1x1x128x128xbf16>
    %138 = vector.shape_cast %137 : vector<1x1x128x128xbf16> to vector<128x128xbf16>
    "tpu.trace_start"() <{level = 10 : i32, message = "hwk,ko->hwo"}> : () -> ()
    %cst_96 = arith.constant dense<0.000000e+00> : vector<16x16x128xf32>
    %139 = tpu.matmul %136, %138, %cst_96 {dimension_numbers = #tpu.dot_dimension_numbers<[2], [0], [0, 1], [1], [0, 0, 0, 1, 1, 1], [], []>} : vector<16x16x128xbf16>, vector<128x128xbf16>, vector<16x16x128xf32> -> vector<16x16x128xf32>
    "tpu.trace_stop"() : () -> ()
    %140 = arith.addf %135, %139 : vector<16x16x128xf32>
    %141 = tpu.iota {dimensions = array<i32: 1>} : vector<1x16x1xi32>
    %142 = vector.extract_strided_slice %112 {offsets = [0, 0, 0], sizes = [16, 1, 128], strides = [1, 1, 1]} : vector<16x16x128xf32> to vector<16x1x128xf32>
    %143 = vector.extract_strided_slice %112 {offsets = [0, 0, 0], sizes = [16, 15, 128], strides = [1, 1, 1]} : vector<16x16x128xf32> to vector<16x15x128xf32>
    %144 = tpu.concatenate %142, %143 in 1 : vector<16x1x128xf32>, vector<16x15x128xf32> -> vector<16x16x128xf32>
    %c0_i32_97 = arith.constant 0 : i32
    %145 = vector.broadcast %c0_i32_97 : i32 to vector<1x16x1xi32>
    %146 = arith.cmpi eq, %141, %145 : vector<1x16x1xi32>
    %147 = vector.extract_strided_slice %112 {offsets = [0, 1, 0], sizes = [16, 1, 128], strides = [1, 1, 1]} : vector<16x16x128xf32> to vector<16x1x128xf32>
    %148 = vector.shape_cast %146 : vector<1x16x1xi1> to vector<1x16x1xi1>
    %149 = vector.broadcast %148 : vector<1x16x1xi1> to vector<16x16x128xi1>
    %150 = vector.shape_cast %147 : vector<16x1x128xf32> to vector<16x1x128xf32>
    %151 = vector.broadcast %150 : vector<16x1x128xf32> to vector<16x16x128xf32>
    %152 = arith.select %149, %151, %144 : vector<16x16x128xi1>, vector<16x16x128xf32>
    %153 = vector.extract_strided_slice %140 {offsets = [0, 1, 0], sizes = [16, 15, 128], strides = [1, 1, 1]} : vector<16x16x128xf32> to vector<16x15x128xf32>
    %154 = vector.extract_strided_slice %140 {offsets = [0, 15, 0], sizes = [16, 1, 128], strides = [1, 1, 1]} : vector<16x16x128xf32> to vector<16x1x128xf32>
    %155 = tpu.concatenate %153, %154 in 1 : vector<16x15x128xf32>, vector<16x1x128xf32> -> vector<16x16x128xf32>
    %c15_i32_98 = arith.constant 15 : i32
    %156 = vector.broadcast %c15_i32_98 : i32 to vector<1x16x1xi32>
    %157 = arith.cmpi eq, %141, %156 : vector<1x16x1xi32>
    %158 = vector.extract_strided_slice %140 {offsets = [0, 14, 0], sizes = [16, 1, 128], strides = [1, 1, 1]} : vector<16x16x128xf32> to vector<16x1x128xf32>
    %159 = vector.shape_cast %157 : vector<1x16x1xi1> to vector<1x16x1xi1>
    %160 = vector.broadcast %159 : vector<1x16x1xi1> to vector<16x16x128xi1>
    %161 = vector.shape_cast %158 : vector<16x1x128xf32> to vector<16x1x128xf32>
    %162 = vector.broadcast %161 : vector<16x1x128xf32> to vector<16x16x128xf32>
    %163 = arith.select %160, %162, %155 : vector<16x16x128xi1>, vector<16x16x128xf32>
    %164 = arith.addf %126, %152 : vector<16x16x128xf32>
    %165 = arith.addf %164, %163 : vector<16x16x128xf32>
    %cst_99 = arith.constant dense<0.000000e+00> : vector<128xf32>
    %166 = vector.multi_reduction <add>, %165, %cst_99 [0, 1] : vector<16x16x128xf32> to vector<128xf32>
    %167 = vector.shape_cast %166 : vector<128xf32> to vector<1x1x128xf32>
    %cst_100 = arith.constant 3.906250e-03 : f32
    %168 = vector.broadcast %cst_100 : f32 to vector<1x1x128xf32>
    %169 = arith.mulf %167, %168 : vector<1x1x128xf32>
    %170 = arith.mulf %165, %165 : vector<16x16x128xf32>
    %cst_101 = arith.constant dense<0.000000e+00> : vector<128xf32>
    %171 = vector.multi_reduction <add>, %170, %cst_101 [0, 1] : vector<16x16x128xf32> to vector<128xf32>
    %172 = vector.shape_cast %171 : vector<128xf32> to vector<1x1x128xf32>
    %cst_102 = arith.constant 3.906250e-03 : f32
    %173 = vector.broadcast %cst_102 : f32 to vector<1x1x128xf32>
    %174 = arith.mulf %172, %173 : vector<1x1x128xf32>
    %175 = arith.mulf %169, %169 : vector<1x1x128xf32>
    %176 = arith.subf %174, %175 : vector<1x1x128xf32>
    %177 = vector.broadcast %169 : vector<1x1x128xf32> to vector<16x16x128xf32>
    %178 = arith.subf %165, %177 : vector<16x16x128xf32>
    %cst_103 = arith.constant 0.000000e+00 : f32
    %179 = vector.broadcast %cst_103 : f32 to vector<1x1x128xf32>
    %180 = arith.maximumf %176, %179 : vector<1x1x128xf32>
    %cst_104 = arith.constant 9.99999974E-6 : f32
    %181 = vector.broadcast %cst_104 : f32 to vector<1x1x128xf32>
    %182 = arith.addf %180, %181 : vector<1x1x128xf32>
    %183 = math.rsqrt %182 : vector<1x1x128xf32>
    %184 = vector.broadcast %183 : vector<1x1x128xf32> to vector<16x16x128xf32>
    %185 = arith.mulf %178, %184 : vector<16x16x128xf32>
    %c0_105 = arith.constant 0 : index
    %c0_106 = arith.constant 0 : index
    %c0_107 = arith.constant 0 : index
    %c0_108 = arith.constant 0 : index
    %186 = vector.load %arg1[%c0_105, %c0_106, %c0_107, %c0_108] : memref<1x16x16x128xf32, #tpu.memory_space<vmem>>, vector<1x16x16x128xf32>
    %187 = vector.shape_cast %186 : vector<1x16x16x128xf32> to vector<16x16x128xf32>
    %188 = arith.addf %187, %185 : vector<16x16x128xf32>
    %c0_109 = arith.constant 0 : index
    %c0_110 = arith.constant 0 : index
    %c0_111 = arith.constant 0 : index
    %c0_112 = arith.constant 0 : index
    %189 = vector.load %arg4[%c0_109, %c0_110, %c0_111, %c0_112] : memref<1x16x16x128xf32, #tpu.memory_space<vmem>>, vector<1x16x16x128xf32>
    %190 = vector.shape_cast %189 : vector<1x16x16x128xf32> to vector<16x16x128xf32>
    %191 = vector.shape_cast %188 : vector<16x16x128xf32> to vector<1x16x16x128xf32>
    tpu.vector_store %arg4[%c0_109, %c0_110, %c0_111, %c0_112], %191 {strides = array<i32>} : memref<1x16x16x128xf32, #tpu.memory_space<vmem>>, vector<1x16x16x128xf32>,
    return
  }
  func.func @transform_0(%arg0: i32) -> (i32, i32, i32, i32) {
    %c0_i32 = arith.constant 0 : i32
    %c0_i32_0 = arith.constant 0 : i32
    %c0_i32_1 = arith.constant 0 : i32
    %c0_i32_2 = arith.constant 0 : i32
    return %arg0, %c0_i32, %c0_i32_0, %c0_i32_1 : i32, i32, i32, i32
  }
  func.func @transform_1(%arg0: i32) -> (i32, i32, i32, i32) {
    %c0_i32 = arith.constant 0 : i32
    %c0_i32_0 = arith.constant 0 : i32
    %c0_i32_1 = arith.constant 0 : i32
    %c0_i32_2 = arith.constant 0 : i32
    %c0_i32_3 = arith.constant 0 : i32
    return %c0_i32, %c0_i32_0, %c0_i32_1, %c0_i32_2 : i32, i32, i32, i32
  }
  func.func @transform_2(%arg0: i32) -> (i32, i32, i32, i32) {
    %c0_i32 = arith.constant 0 : i32
    %c0_i32_0 = arith.constant 0 : i32
    %c0_i32_1 = arith.constant 0 : i32
    %c0_i32_2 = arith.constant 0 : i32
    %c0_i32_3 = arith.constant 0 : i32
    return %c0_i32, %c0_i32_0, %c0_i32_1, %c0_i32_2 : i32, i32, i32, i32
  }
  func.func @transform_3(%arg0: i32) -> (i32, i32, i32, i32) {
    %c0_i32 = arith.constant 0 : i32
    %c0_i32_0 = arith.constant 0 : i32
    %c0_i32_1 = arith.constant 0 : i32
    %c0_i32_2 = arith.constant 0 : i32
    return %arg0, %c0_i32, %c0_i32_0, %c0_i32_1 : i32, i32, i32, i32
  }
}

module attributes {stable_mosaic.version = 11 : i64} {
  func.func @_fused_kernel(%arg0: i32, %arg1: memref<1x16x16x128xf32, #tpu.memory_space<vmem>>, %arg2: memref<3x3x128x128xbf16, #tpu.memory_space<vmem>>, %arg3: memref<3x3x128x128xbf16, #tpu.memory_space<vmem>>, %arg4: memref<1x16x16x128xf32, #tpu.memory_space<vmem>>) attributes {dimension_semantics = [#tpu.dimension_semantics<parallel>], iteration_bounds = array<i64: 2>, scalar_prefetch = 0 : i64, scratch_operands = 0 : i64, tpu.core_type = #tpu.core_type<tc>, window_params = [{transform_indices = @transform_0, window_bounds = array<i64: 1, 16, 16, 128>}, {pipeline_mode = #tpu.pipeline_mode<synchronous>, transform_indices = @transform_1, window_bounds = array<i64: 3, 3, 128, 128>}, {pipeline_mode = #tpu.pipeline_mode<synchronous>, transform_indices = @transform_2, window_bounds = array<i64: 3, 3, 128, 128>}, {transform_indices = @transform_3, window_bounds = array<i64: 1, 16, 16, 128>}]} {
    %c0 = arith.constant 0 : index
    %c0_0 = arith.constant 0 : index
    %c0_1 = arith.constant 0 : index
    %c0_2 = arith.constant 0 : index
    %0 = vector.load %arg1[%c0, %c0_0, %c0_1, %c0_2] : memref<1x16x16x128xf32, #tpu.memory_space<vmem>>, vector<1x16x16x128xf32>
    %1 = vector.shape_cast %0 : vector<1x16x16x128xf32> to vector<16x16x128xf32>
    %2 = arith.truncf %1 : vector<16x16x128xf32> to vector<16x16x128xbf16>
    %3 = vector.extract_strided_slice %2 {offsets = [1, 0, 0], sizes = [1, 16, 128], strides = [1, 1, 1]} : vector<16x16x128xbf16> to vector<1x16x128xbf16>
    %4 = vector.extract_strided_slice %2 {offsets = [14, 0, 0], sizes = [1, 16, 128], strides = [1, 1, 1]} : vector<16x16x128xbf16> to vector<1x16x128xbf16>
    %5 = tpu.concatenate %3, %2, %4 in 0 : vector<1x16x128xbf16>, vector<16x16x128xbf16>, vector<1x16x128xbf16> -> vector<18x16x128xbf16>
    %6 = vector.extract_strided_slice %5 {offsets = [0, 0, 0], sizes = [16, 16, 128], strides = [1, 1, 1]} : vector<18x16x128xbf16> to vector<16x16x128xbf16>
    %c0_3 = arith.constant 0 : index
    %c0_4 = arith.constant 0 : index
    %c0_5 = arith.constant 0 : index
    %c0_6 = arith.constant 0 : index
    %7 = vector.load %arg2[%c0_3, %c0_4, %c0_5, %c0_6] : memref<3x3x128x128xbf16, #tpu.memory_space<vmem>>, vector<1x1x128x128xbf16>
    %8 = vector.shape_cast %7 : vector<1x1x128x128xbf16> to vector<128x128xbf16>
    "tpu.trace_start"() <{level = 10 : i32, message = "hwk,ko->hwo"}> : () -> ()
    %cst = arith.constant dense<0.000000e+00> : vector<16x16x128xf32>
    %9 = tpu.matmul %6, %8, %cst {dimension_numbers = #tpu.dot_dimension_numbers<[2], [0], [0, 1], [1], [0, 0, 0, 1, 1, 1], [], []>} : vector<16x16x128xbf16>, vector<128x128xbf16>, vector<16x16x128xf32> -> vector<16x16x128xf32>
    "tpu.trace_stop"() : () -> ()
    %10 = vector.extract_strided_slice %5 {offsets = [1, 0, 0], sizes = [16, 16, 128], strides = [1, 1, 1]} : vector<18x16x128xbf16> to vector<16x16x128xbf16>
    %c1 = arith.constant 1 : index
    %c0_7 = arith.constant 0 : index
    %c0_8 = arith.constant 0 : index
    %c0_9 = arith.constant 0 : index
    %11 = vector.load %arg2[%c1, %c0_7, %c0_8, %c0_9] : memref<3x3x128x128xbf16, #tpu.memory_space<vmem>>, vector<1x1x128x128xbf16>
    %12 = vector.shape_cast %11 : vector<1x1x128x128xbf16> to vector<128x128xbf16>
    "tpu.trace_start"() <{level = 10 : i32, message = "hwk,ko->hwo"}> : () -> ()
    %cst_10 = arith.constant dense<0.000000e+00> : vector<16x16x128xf32>
    %13 = tpu.matmul %10, %12, %cst_10 {dimension_numbers = #tpu.dot_dimension_numbers<[2], [0], [0, 1], [1], [0, 0, 0, 1, 1, 1], [], []>} : vector<16x16x128xbf16>, vector<128x128xbf16>, vector<16x16x128xf32> -> vector<16x16x128xf32>
    "tpu.trace_stop"() : () -> ()
    %14 = arith.addf %9, %13 : vector<16x16x128xf32>
    %15 = vector.extract_strided_slice %5 {offsets = [2, 0, 0], sizes = [16, 16, 128], strides = [1, 1, 1]} : vector<18x16x128xbf16> to vector<16x16x128xbf16>
    %c2 = arith.constant 2 : index
    %c0_11 = arith.constant 0 : index
    %c0_12 = arith.constant 0 : index
    %c0_13 = arith.constant 0 : index
    %16 = vector.load %arg2[%c2, %c0_11, %c0_12, %c0_13] : memref<3x3x128x128xbf16, #tpu.memory_space<vmem>>, vector<1x1x128x128xbf16>
    %17 = vector.shape_cast %16 : vector<1x1x128x128xbf16> to vector<128x128xbf16>
    "tpu.trace_start"() <{level = 10 : i32, message = "hwk,ko->hwo"}> : () -> ()
    %cst_14 = arith.constant dense<0.000000e+00> : vector<16x16x128xf32>
    %18 = tpu.matmul %15, %17, %cst_14 {dimension_numbers = #tpu.dot_dimension_numbers<[2], [0], [0, 1], [1], [0, 0, 0, 1, 1, 1], [], []>} : vector<16x16x128xbf16>, vector<128x128xbf16>, vector<16x16x128xf32> -> vector<16x16x128xf32>
    "tpu.trace_stop"() : () -> ()
    %19 = arith.addf %14, %18 : vector<16x16x128xf32>
    %20 = vector.extract_strided_slice %5 {offsets = [0, 0, 0], sizes = [16, 16, 128], strides = [1, 1, 1]} : vector<18x16x128xbf16> to vector<16x16x128xbf16>
    %c0_15 = arith.constant 0 : index
    %c1_16 = arith.constant 1 : index
    %c0_17 = arith.constant 0 : index
    %c0_18 = arith.constant 0 : index
    %21 = vector.load %arg2[%c0_15, %c1_16, %c0_17, %c0_18] : memref<3x3x128x128xbf16, #tpu.memory_space<vmem>>, vector<1x1x128x128xbf16>
    %22 = vector.shape_cast %21 : vector<1x1x128x128xbf16> to vector<128x128xbf16>
    "tpu.trace_start"() <{level = 10 : i32, message = "hwk,ko->hwo"}> : () -> ()
    %cst_19 = arith.constant dense<0.000000e+00> : vector<16x16x128xf32>
    %23 = tpu.matmul %20, %22, %cst_19 {dimension_numbers = #tpu.dot_dimension_numbers<[2], [0], [0, 1], [1], [0, 0, 0, 1, 1, 1], [], []>} : vector<16x16x128xbf16>, vector<128x128xbf16>, vector<16x16x128xf32> -> vector<16x16x128xf32>
    "tpu.trace_stop"() : () -> ()
    %24 = vector.extract_strided_slice %5 {offsets = [1, 0, 0], sizes = [16, 16, 128], strides = [1, 1, 1]} : vector<18x16x128xbf16> to vector<16x16x128xbf16>
    %c1_20 = arith.constant 1 : index
    %c1_21 = arith.constant 1 : index
    %c0_22 = arith.constant 0 : index
    %c0_23 = arith.constant 0 : index
    %25 = vector.load %arg2[%c1_20, %c1_21, %c0_22, %c0_23] : memref<3x3x128x128xbf16, #tpu.memory_space<vmem>>, vector<1x1x128x128xbf16>
    %26 = vector.shape_cast %25 : vector<1x1x128x128xbf16> to vector<128x128xbf16>
    "tpu.trace_start"() <{level = 10 : i32, message = "hwk,ko->hwo"}> : () -> ()
    %cst_24 = arith.constant dense<0.000000e+00> : vector<16x16x128xf32>
    %27 = tpu.matmul %24, %26, %cst_24 {dimension_numbers = #tpu.dot_dimension_numbers<[2], [0], [0, 1], [1], [0, 0, 0, 1, 1, 1], [], []>} : vector<16x16x128xbf16>, vector<128x128xbf16>, vector<16x16x128xf32> -> vector<16x16x128xf32>
    "tpu.trace_stop"() : () -> ()
    %28 = arith.addf %23, %27 : vector<16x16x128xf32>
    %29 = vector.extract_strided_slice %5 {offsets = [2, 0, 0], sizes = [16, 16, 128], strides = [1, 1, 1]} : vector<18x16x128xbf16> to vector<16x16x128xbf16>
    %c2_25 = arith.constant 2 : index
    %c1_26 = arith.constant 1 : index
    %c0_27 = arith.constant 0 : index
    %c0_28 = arith.constant 0 : index
    %30 = vector.load %arg2[%c2_25, %c1_26, %c0_27, %c0_28] : memref<3x3x128x128xbf16, #tpu.memory_space<vmem>>, vector<1x1x128x128xbf16>
    %31 = vector.shape_cast %30 : vector<1x1x128x128xbf16> to vector<128x128xbf16>
    "tpu.trace_start"() <{level = 10 : i32, message = "hwk,ko->hwo"}> : () -> ()
    %cst_29 = arith.constant dense<0.000000e+00> : vector<16x16x128xf32>
    %32 = tpu.matmul %29, %31, %cst_29 {dimension_numbers = #tpu.dot_dimension_numbers<[2], [0], [0, 1], [1], [0, 0, 0, 1, 1, 1], [], []>} : vector<16x16x128xbf16>, vector<128x128xbf16>, vector<16x16x128xf32> -> vector<16x16x128xf32>
    "tpu.trace_stop"() : () -> ()
    %33 = arith.addf %28, %32 : vector<16x16x128xf32>
    %34 = vector.extract_strided_slice %5 {offsets = [0, 0, 0], sizes = [16, 16, 128], strides = [1, 1, 1]} : vector<18x16x128xbf16> to vector<16x16x128xbf16>
    %c0_30 = arith.constant 0 : index
    %c2_31 = arith.constant 2 : index
    %c0_32 = arith.constant 0 : index
    %c0_33 = arith.constant 0 : index
    %35 = vector.load %arg2[%c0_30, %c2_31, %c0_32, %c0_33] : memref<3x3x128x128xbf16, #tpu.memory_space<vmem>>, vector<1x1x128x128xbf16>
    %36 = vector.shape_cast %35 : vector<1x1x128x128xbf16> to vector<128x128xbf16>
    "tpu.trace_start"() <{level = 10 : i32, message = "hwk,ko->hwo"}> : () -> ()
    %cst_34 = arith.constant dense<0.000000e+00> : vector<16x16x128xf32>
    %37 = tpu.matmul %34, %36, %cst_34 {dimension_numbers = #tpu.dot_dimension_numbers<[2], [0], [0, 1], [1], [0, 0, 0, 1, 1, 1], [], []>} : vector<16x16x128xbf16>, vector<128x128xbf16>, vector<16x16x128xf32> -> vector<16x16x128xf32>
    "tpu.trace_stop"() : () -> ()
    %38 = vector.extract_strided_slice %5 {offsets = [1, 0, 0], sizes = [16, 16, 128], strides = [1, 1, 1]} : vector<18x16x128xbf16> to vector<16x16x128xbf16>
    %c1_35 = arith.constant 1 : index
    %c2_36 = arith.constant 2 : index
    %c0_37 = arith.constant 0 : index
    %c0_38 = arith.constant 0 : index
    %39 = vector.load %arg2[%c1_35, %c2_36, %c0_37, %c0_38] : memref<3x3x128x128xbf16, #tpu.memory_space<vmem>>, vector<1x1x128x128xbf16>
    %40 = vector.shape_cast %39 : vector<1x1x128x128xbf16> to vector<128x128xbf16>
    "tpu.trace_start"() <{level = 10 : i32, message = "hwk,ko->hwo"}> : () -> ()
    %cst_39 = arith.constant dense<0.000000e+00> : vector<16x16x128xf32>
    %41 = tpu.matmul %38, %40, %cst_39 {dimension_numbers = #tpu.dot_dimension_numbers<[2], [0], [0, 1], [1], [0, 0, 0, 1, 1, 1], [], []>} : vector<16x16x128xbf16>, vector<128x128xbf16>, vector<16x16x128xf32> -> vector<16x16x128xf32>
    "tpu.trace_stop"() : () -> ()
    %42 = arith.addf %37, %41 : vector<16x16x128xf32>
    %43 = vector.extract_strided_slice %5 {offsets = [2, 0, 0], sizes = [16, 16, 128], strides = [1, 1, 1]} : vector<18x16x128xbf16> to vector<16x16x128xbf16>
    %c2_40 = arith.constant 2 : index
    %c2_41 = arith.constant 2 : index
    %c0_42 = arith.constant 0 : index
    %c0_43 = arith.constant 0 : index
    %44 = vector.load %arg2[%c2_40, %c2_41, %c0_42, %c0_43] : memref<3x3x128x128xbf16, #tpu.memory_space<vmem>>, vector<1x1x128x128xbf16>
    %45 = vector.shape_cast %44 : vector<1x1x128x128xbf16> to vector<128x128xbf16>
    "tpu.trace_start"() <{level = 10 : i32, message = "hwk,ko->hwo"}> : () -> ()
    %cst_44 = arith.constant dense<0.000000e+00> : vector<16x16x128xf32>
    %46 = tpu.matmul %43, %45, %cst_44 {dimension_numbers = #tpu.dot_dimension_numbers<[2], [0], [0, 1], [1], [0, 0, 0, 1, 1, 1], [], []>} : vector<16x16x128xbf16>, vector<128x128xbf16>, vector<16x16x128xf32> -> vector<16x16x128xf32>
    "tpu.trace_stop"() : () -> ()
    %47 = arith.addf %42, %46 : vector<16x16x128xf32>
    %48 = tpu.iota {dimensions = array<i32: 1>} : vector<1x16x1xi32>
    %49 = vector.extract_strided_slice %19 {offsets = [0, 0, 0], sizes = [16, 1, 128], strides = [1, 1, 1]} : vector<16x16x128xf32> to vector<16x1x128xf32>
    %50 = vector.extract_strided_slice %19 {offsets = [0, 0, 0], sizes = [16, 15, 128], strides = [1, 1, 1]} : vector<16x16x128xf32> to vector<16x15x128xf32>
    %51 = tpu.concatenate %49, %50 in 1 : vector<16x1x128xf32>, vector<16x15x128xf32> -> vector<16x16x128xf32>
    %c0_i32 = arith.constant 0 : i32
    %52 = vector.broadcast %c0_i32 : i32 to vector<1x16x1xi32>
    %53 = arith.cmpi eq, %48, %52 : vector<1x16x1xi32>
    %54 = vector.extract_strided_slice %19 {offsets = [0, 1, 0], sizes = [16, 1, 128], strides = [1, 1, 1]} : vector<16x16x128xf32> to vector<16x1x128xf32>
    %55 = vector.shape_cast %53 : vector<1x16x1xi1> to vector<1x16x1xi1>
    %56 = vector.broadcast %55 : vector<1x16x1xi1> to vector<16x16x128xi1>
    %57 = vector.shape_cast %54 : vector<16x1x128xf32> to vector<16x1x128xf32>
    %58 = vector.broadcast %57 : vector<16x1x128xf32> to vector<16x16x128xf32>
    %59 = arith.select %56, %58, %51 : vector<16x16x128xi1>, vector<16x16x128xf32>
    %60 = vector.extract_strided_slice %47 {offsets = [0, 1, 0], sizes = [16, 15, 128], strides = [1, 1, 1]} : vector<16x16x128xf32> to vector<16x15x128xf32>
    %61 = vector.extract_strided_slice %47 {offsets = [0, 15, 0], sizes = [16, 1, 128], strides = [1, 1, 1]} : vector<16x16x128xf32> to vector<16x1x128xf32>
    %62 = tpu.concatenate %60, %61 in 1 : vector<16x15x128xf32>, vector<16x1x128xf32> -> vector<16x16x128xf32>
    %c15_i32 = arith.constant 15 : i32
    %63 = vector.broadcast %c15_i32 : i32 to vector<1x16x1xi32>
    %64 = arith.cmpi eq, %48, %63 : vector<1x16x1xi32>
    %65 = vector.extract_strided_slice %47 {offsets = [0, 14, 0], sizes = [16, 1, 128], strides = [1, 1, 1]} : vector<16x16x128xf32> to vector<16x1x128xf32>
    %66 = vector.shape_cast %64 : vector<1x16x1xi1> to vector<1x16x1xi1>
    %67 = vector.broadcast %66 : vector<1x16x1xi1> to vector<16x16x128xi1>
    %68 = vector.shape_cast %65 : vector<16x1x128xf32> to vector<16x1x128xf32>
    %69 = vector.broadcast %68 : vector<16x1x128xf32> to vector<16x16x128xf32>
    %70 = arith.select %67, %69, %62 : vector<16x16x128xi1>, vector<16x16x128xf32>
    %71 = arith.addf %33, %59 : vector<16x16x128xf32>
    %72 = arith.addf %71, %70 : vector<16x16x128xf32>
    %cst_45 = arith.constant dense<0.000000e+00> : vector<128xf32>
    %73 = vector.multi_reduction <add>, %72, %cst_45 [0, 1] : vector<16x16x128xf32> to vector<128xf32>
    %74 = vector.shape_cast %73 : vector<128xf32> to vector<1x1x128xf32>
    %cst_46 = arith.constant 3.906250e-03 : f32
    %75 = vector.broadcast %cst_46 : f32 to vector<1x1x128xf32>
    %76 = arith.mulf %74, %75 : vector<1x1x128xf32>
    %77 = arith.mulf %72, %72 : vector<16x16x128xf32>
    %cst_47 = arith.constant dense<0.000000e+00> : vector<128xf32>
    %78 = vector.multi_reduction <add>, %77, %cst_47 [0, 1] : vector<16x16x128xf32> to vector<128xf32>
    %79 = vector.shape_cast %78 : vector<128xf32> to vector<1x1x128xf32>
    %cst_48 = arith.constant 3.906250e-03 : f32
    %80 = vector.broadcast %cst_48 : f32 to vector<1x1x128xf32>
    %81 = arith.mulf %79, %80 : vector<1x1x128xf32>
    %82 = arith.mulf %76, %76 : vector<1x1x128xf32>
    %83 = arith.subf %81, %82 : vector<1x1x128xf32>
    %84 = vector.broadcast %76 : vector<1x1x128xf32> to vector<16x16x128xf32>
    %85 = arith.subf %72, %84 : vector<16x16x128xf32>
    %cst_49 = arith.constant 0.000000e+00 : f32
    %86 = vector.broadcast %cst_49 : f32 to vector<1x1x128xf32>
    %87 = arith.maximumf %83, %86 : vector<1x1x128xf32>
    %cst_50 = arith.constant 9.99999974E-6 : f32
    %88 = vector.broadcast %cst_50 : f32 to vector<1x1x128xf32>
    %89 = arith.addf %87, %88 : vector<1x1x128xf32>
    %90 = math.rsqrt %89 : vector<1x1x128xf32>
    %91 = vector.broadcast %90 : vector<1x1x128xf32> to vector<16x16x128xf32>
    %92 = arith.mulf %85, %91 : vector<16x16x128xf32>
    %cst_51 = arith.constant 0.000000e+00 : f32
    %93 = vector.broadcast %cst_51 : f32 to vector<16x16x128xf32>
    %94 = arith.maximumf %92, %93 : vector<16x16x128xf32>
    %95 = arith.truncf %94 : vector<16x16x128xf32> to vector<16x16x128xbf16>
    %96 = vector.extract_strided_slice %95 {offsets = [1, 0, 0], sizes = [1, 16, 128], strides = [1, 1, 1]} : vector<16x16x128xbf16> to vector<1x16x128xbf16>
    %97 = vector.extract_strided_slice %95 {offsets = [14, 0, 0], sizes = [1, 16, 128], strides = [1, 1, 1]} : vector<16x16x128xbf16> to vector<1x16x128xbf16>
    %98 = tpu.concatenate %96, %95, %97 in 0 : vector<1x16x128xbf16>, vector<16x16x128xbf16>, vector<1x16x128xbf16> -> vector<18x16x128xbf16>
    %99 = vector.extract_strided_slice %98 {offsets = [0, 0, 0], sizes = [16, 16, 128], strides = [1, 1, 1]} : vector<18x16x128xbf16> to vector<16x16x128xbf16>
    %c0_52 = arith.constant 0 : index
    %c0_53 = arith.constant 0 : index
    %c0_54 = arith.constant 0 : index
    %c0_55 = arith.constant 0 : index
    %100 = vector.load %arg3[%c0_52, %c0_53, %c0_54, %c0_55] : memref<3x3x128x128xbf16, #tpu.memory_space<vmem>>, vector<1x1x128x128xbf16>
    %101 = vector.shape_cast %100 : vector<1x1x128x128xbf16> to vector<128x128xbf16>
    "tpu.trace_start"() <{level = 10 : i32, message = "hwk,ko->hwo"}> : () -> ()
    %cst_56 = arith.constant dense<0.000000e+00> : vector<16x16x128xf32>
    %102 = tpu.matmul %99, %101, %cst_56 {dimension_numbers = #tpu.dot_dimension_numbers<[2], [0], [0, 1], [1], [0, 0, 0, 1, 1, 1], [], []>} : vector<16x16x128xbf16>, vector<128x128xbf16>, vector<16x16x128xf32> -> vector<16x16x128xf32>
    "tpu.trace_stop"() : () -> ()
    %103 = vector.extract_strided_slice %98 {offsets = [1, 0, 0], sizes = [16, 16, 128], strides = [1, 1, 1]} : vector<18x16x128xbf16> to vector<16x16x128xbf16>
    %c1_57 = arith.constant 1 : index
    %c0_58 = arith.constant 0 : index
    %c0_59 = arith.constant 0 : index
    %c0_60 = arith.constant 0 : index
    %104 = vector.load %arg3[%c1_57, %c0_58, %c0_59, %c0_60] : memref<3x3x128x128xbf16, #tpu.memory_space<vmem>>, vector<1x1x128x128xbf16>
    %105 = vector.shape_cast %104 : vector<1x1x128x128xbf16> to vector<128x128xbf16>
    "tpu.trace_start"() <{level = 10 : i32, message = "hwk,ko->hwo"}> : () -> ()
    %cst_61 = arith.constant dense<0.000000e+00> : vector<16x16x128xf32>
    %106 = tpu.matmul %103, %105, %cst_61 {dimension_numbers = #tpu.dot_dimension_numbers<[2], [0], [0, 1], [1], [0, 0, 0, 1, 1, 1], [], []>} : vector<16x16x128xbf16>, vector<128x128xbf16>, vector<16x16x128xf32> -> vector<16x16x128xf32>
    "tpu.trace_stop"() : () -> ()
    %107 = arith.addf %102, %106 : vector<16x16x128xf32>
    %108 = vector.extract_strided_slice %98 {offsets = [2, 0, 0], sizes = [16, 16, 128], strides = [1, 1, 1]} : vector<18x16x128xbf16> to vector<16x16x128xbf16>
    %c2_62 = arith.constant 2 : index
    %c0_63 = arith.constant 0 : index
    %c0_64 = arith.constant 0 : index
    %c0_65 = arith.constant 0 : index
    %109 = vector.load %arg3[%c2_62, %c0_63, %c0_64, %c0_65] : memref<3x3x128x128xbf16, #tpu.memory_space<vmem>>, vector<1x1x128x128xbf16>
    %110 = vector.shape_cast %109 : vector<1x1x128x128xbf16> to vector<128x128xbf16>
    "tpu.trace_start"() <{level = 10 : i32, message = "hwk,ko->hwo"}> : () -> ()
    %cst_66 = arith.constant dense<0.000000e+00> : vector<16x16x128xf32>
    %111 = tpu.matmul %108, %110, %cst_66 {dimension_numbers = #tpu.dot_dimension_numbers<[2], [0], [0, 1], [1], [0, 0, 0, 1, 1, 1], [], []>} : vector<16x16x128xbf16>, vector<128x128xbf16>, vector<16x16x128xf32> -> vector<16x16x128xf32>
    "tpu.trace_stop"() : () -> ()
    %112 = arith.addf %107, %111 : vector<16x16x128xf32>
    %113 = vector.extract_strided_slice %98 {offsets = [0, 0, 0], sizes = [16, 16, 128], strides = [1, 1, 1]} : vector<18x16x128xbf16> to vector<16x16x128xbf16>
    %c0_67 = arith.constant 0 : index
    %c1_68 = arith.constant 1 : index
    %c0_69 = arith.constant 0 : index
    %c0_70 = arith.constant 0 : index
    %114 = vector.load %arg3[%c0_67, %c1_68, %c0_69, %c0_70] : memref<3x3x128x128xbf16, #tpu.memory_space<vmem>>, vector<1x1x128x128xbf16>
    %115 = vector.shape_cast %114 : vector<1x1x128x128xbf16> to vector<128x128xbf16>
    "tpu.trace_start"() <{level = 10 : i32, message = "hwk,ko->hwo"}> : () -> ()
    %cst_71 = arith.constant dense<0.000000e+00> : vector<16x16x128xf32>
    %116 = tpu.matmul %113, %115, %cst_71 {dimension_numbers = #tpu.dot_dimension_numbers<[2], [0], [0, 1], [1], [0, 0, 0, 1, 1, 1], [], []>} : vector<16x16x128xbf16>, vector<128x128xbf16>, vector<16x16x128xf32> -> vector<16x16x128xf32>
    "tpu.trace_stop"() : () -> ()
    %117 = vector.extract_strided_slice %98 {offsets = [1, 0, 0], sizes = [16, 16, 128], strides = [1, 1, 1]} : vector<18x16x128xbf16> to vector<16x16x128xbf16>
    %c1_72 = arith.constant 1 : index
    %c1_73 = arith.constant 1 : index
    %c0_74 = arith.constant 0 : index
    %c0_75 = arith.constant 0 : index
    %118 = vector.load %arg3[%c1_72, %c1_73, %c0_74, %c0_75] : memref<3x3x128x128xbf16, #tpu.memory_space<vmem>>, vector<1x1x128x128xbf16>
    %119 = vector.shape_cast %118 : vector<1x1x128x128xbf16> to vector<128x128xbf16>
    "tpu.trace_start"() <{level = 10 : i32, message = "hwk,ko->hwo"}> : () -> ()
    %cst_76 = arith.constant dense<0.000000e+00> : vector<16x16x128xf32>
    %120 = tpu.matmul %117, %119, %cst_76 {dimension_numbers = #tpu.dot_dimension_numbers<[2], [0], [0, 1], [1], [0, 0, 0, 1, 1, 1], [], []>} : vector<16x16x128xbf16>, vector<128x128xbf16>, vector<16x16x128xf32> -> vector<16x16x128xf32>
    "tpu.trace_stop"() : () -> ()
    %121 = arith.addf %116, %120 : vector<16x16x128xf32>
    %122 = vector.extract_strided_slice %98 {offsets = [2, 0, 0], sizes = [16, 16, 128], strides = [1, 1, 1]} : vector<18x16x128xbf16> to vector<16x16x128xbf16>
    %c2_77 = arith.constant 2 : index
    %c1_78 = arith.constant 1 : index
    %c0_79 = arith.constant 0 : index
    %c0_80 = arith.constant 0 : index
    %123 = vector.load %arg3[%c2_77, %c1_78, %c0_79, %c0_80] : memref<3x3x128x128xbf16, #tpu.memory_space<vmem>>, vector<1x1x128x128xbf16>
    %124 = vector.shape_cast %123 : vector<1x1x128x128xbf16> to vector<128x128xbf16>
    "tpu.trace_start"() <{level = 10 : i32, message = "hwk,ko->hwo"}> : () -> ()
    %cst_81 = arith.constant dense<0.000000e+00> : vector<16x16x128xf32>
    %125 = tpu.matmul %122, %124, %cst_81 {dimension_numbers = #tpu.dot_dimension_numbers<[2], [0], [0, 1], [1], [0, 0, 0, 1, 1, 1], [], []>} : vector<16x16x128xbf16>, vector<128x128xbf16>, vector<16x16x128xf32> -> vector<16x16x128xf32>
    "tpu.trace_stop"() : () -> ()
    %126 = arith.addf %121, %125 : vector<16x16x128xf32>
    %127 = vector.extract_strided_slice %98 {offsets = [0, 0, 0], sizes = [16, 16, 128], strides = [1, 1, 1]} : vector<18x16x128xbf16> to vector<16x16x128xbf16>
    %c0_82 = arith.constant 0 : index
    %c2_83 = arith.constant 2 : index
    %c0_84 = arith.constant 0 : index
    %c0_85 = arith.constant 0 : index
    %128 = vector.load %arg3[%c0_82, %c2_83, %c0_84, %c0_85] : memref<3x3x128x128xbf16, #tpu.memory_space<vmem>>, vector<1x1x128x128xbf16>
    %129 = vector.shape_cast %128 : vector<1x1x128x128xbf16> to vector<128x128xbf16>
    "tpu.trace_start"() <{level = 10 : i32, message = "hwk,ko->hwo"}> : () -> ()
    %cst_86 = arith.constant dense<0.000000e+00> : vector<16x16x128xf32>
    %130 = tpu.matmul %127, %129, %cst_86 {dimension_numbers = #tpu.dot_dimension_numbers<[2], [0], [0, 1], [1], [0, 0, 0, 1, 1, 1], [], []>} : vector<16x16x128xbf16>, vector<128x128xbf16>, vector<16x16x128xf32> -> vector<16x16x128xf32>
    "tpu.trace_stop"() : () -> ()
    %131 = vector.extract_strided_slice %98 {offsets = [1, 0, 0], sizes = [16, 16, 128], strides = [1, 1, 1]} : vector<18x16x128xbf16> to vector<16x16x128xbf16>
    %c1_87 = arith.constant 1 : index
    %c2_88 = arith.constant 2 : index
    %c0_89 = arith.constant 0 : index
    %c0_90 = arith.constant 0 : index
    %132 = vector.load %arg3[%c1_87, %c2_88, %c0_89, %c0_90] : memref<3x3x128x128xbf16, #tpu.memory_space<vmem>>, vector<1x1x128x128xbf16>
    %133 = vector.shape_cast %132 : vector<1x1x128x128xbf16> to vector<128x128xbf16>
    "tpu.trace_start"() <{level = 10 : i32, message = "hwk,ko->hwo"}> : () -> ()
    %cst_91 = arith.constant dense<0.000000e+00> : vector<16x16x128xf32>
    %134 = tpu.matmul %131, %133, %cst_91 {dimension_numbers = #tpu.dot_dimension_numbers<[2], [0], [0, 1], [1], [0, 0, 0, 1, 1, 1], [], []>} : vector<16x16x128xbf16>, vector<128x128xbf16>, vector<16x16x128xf32> -> vector<16x16x128xf32>
    "tpu.trace_stop"() : () -> ()
    %135 = arith.addf %130, %134 : vector<16x16x128xf32>
    %136 = vector.extract_strided_slice %98 {offsets = [2, 0, 0], sizes = [16, 16, 128], strides = [1, 1, 1]} : vector<18x16x128xbf16> to vector<16x16x128xbf16>
    %c2_92 = arith.constant 2 : index
    %c2_93 = arith.constant 2 : index
    %c0_94 = arith.constant 0 : index
    %c0_95 = arith.constant 0 : index
    %137 = vector.load %arg3[%c2_92, %c2_93, %c0_94, %c0_95] : memref<3x3x128x128xbf16, #tpu.memory_space<vmem>>, vector<1x1x128x128xbf16>
    %138 = vector.shape_cast %137 : vector<1x1x128x128xbf16> to vector<128x128xbf16>
    "tpu.trace_start"() <{level = 10 : i32, message = "hwk,ko->hwo"}> : () -> ()
    %cst_96 = arith.constant dense<0.000000e+00> : vector<16x16x128xf32>
    %139 = tpu.matmul %136, %138, %cst_96 {dimension_numbers = #tpu.dot_dimension_numbers<[2], [0], [0, 1], [1], [0, 0, 0, 1, 1, 1], [], []>} : vector<16x16x128xbf16>, vector<128x128xbf16>, vector<16x16x128xf32> -> vector<16x16x128xf32>
    "tpu.trace_stop"() : () -> ()
    %140 = arith.addf %135, %139 : vector<16x16x128xf32>
    %141 = tpu.iota {dimensions = array<i32: 1>} : vector<1x16x1xi32>
    %142 = vector.extract_strided_slice %112 {offsets = [0, 0, 0], sizes = [16, 1, 128], strides = [1, 1, 1]} : vector<16x16x128xf32> to vector<16x1x128xf32>
    %143 = vector.extract_strided_slice %112 {offsets = [0, 0, 0], sizes = [16, 15, 128], strides = [1, 1, 1]} : vector<16x16x128xf32> to vector<16x15x128xf32>
    %144 = tpu.concatenate %142, %143 in 1 : vector<16x1x128xf32>, vector<16x15x128xf32> -> vector<16x16x128xf32>
    %c0_i32_97 = arith.constant 0 : i32
    %145 = vector.broadcast %c0_i32_97 : i32 to vector<1x16x1xi32>
    %146 = arith.cmpi eq, %141, %145 : vector<1x16x1xi32>
    %147 = vector.extract_strided_slice %112 {offsets = [0, 1, 0], sizes = [16, 1, 128], strides = [1, 1, 1]} : vector<16x16x128xf32> to vector<16x1x128xf32>
    %148 = vector.shape_cast %146 : vector<1x16x1xi1> to vector<1x16x1xi1>
    %149 = vector.broadcast %148 : vector<1x16x1xi1> to vector<16x16x128xi1>
    %150 = vector.shape_cast %147 : vector<16x1x128xf32> to vector<16x1x128xf32>
    %151 = vector.broadcast %150 : vector<16x1x128xf32> to vector<16x16x128xf32>
    %152 = arith.select %149, %151, %144 : vector<16x16x128xi1>, vector<16x16x128xf32>
    %153 = vector.extract_strided_slice %140 {offsets = [0, 1, 0], sizes = [16, 15, 128], strides = [1, 1, 1]} : vector<16x16x128xf32> to vector<16x15x128xf32>
    %154 = vector.extract_strided_slice %140 {offsets = [0, 15, 0], sizes = [16, 1, 128], strides = [1, 1, 1]} : vector<16x16x128xf32> to vector<16x1x128xf32>
    %155 = tpu.concatenate %153, %154 in 1 : vector<16x15x128xf32>, vector<16x1x128xf32> -> vector<16x16x128xf32>
    %c15_i32_98 = arith.constant 15 : i32
    %156 = vector.broadcast %c15_i32_98 : i32 to vector<1x16x1xi32>
    %157 = arith.cmpi eq, %141, %156 : vector<1x16x1xi32>
    %158 = vector.extract_strided_slice %140 {offsets = [0, 14, 0], sizes = [16, 1, 128], strides = [1, 1, 1]} : vector<16x16x128xf32> to vector<16x1x128xf32>
    %159 = vector.shape_cast %157 : vector<1x16x1xi1> to vector<1x16x1xi1>
    %160 = vector.broadcast %159 : vector<1x16x1xi1> to vector<16x16x128xi1>
    %161 = vector.shape_cast %158 : vector<16x1x128xf32> to vector<16x1x128xf32>
    %162 = vector.broadcast %161 : vector<16x1x128xf32> to vector<16x16x128xf32>
    %163 = arith.select %160, %162, %155 : vector<16x16x128xi1>, vector<16x16x128xf32>
    %164 = arith.addf %126, %152 : vector<16x16x128xf32>
    %165 = arith.addf %164, %163 : vector<16x16x128xf32>
    %cst_99 = arith.constant dense<0.000000e+00> : vector<128xf32>
    %166 = vector.multi_reduction <add>, %165, %cst_99 [0, 1] : vector<16x16x128xf32> to vector<128xf32>
    %167 = vector.shape_cast %166 : vector<128xf32> to vector<1x1x128xf32>
    %cst_100 = arith.constant 3.906250e-03 : f32
    %168 = vector.broadcast %cst_100 : f32 to vector<1x1x128xf32>
    %169 = arith.mulf %167, %168 : vector<1x1x128xf32>
    %170 = arith.mulf %165, %165 : vector<16x16x128xf32>
    %cst_101 = arith.constant dense<0.000000e+00> : vector<128xf32>
    %171 = vector.multi_reduction <add>, %170, %cst_101 [0, 1] : vector<16x16x128xf32> to vector<128xf32>
    %172 = vector.shape_cast %171 : vector<128xf32> to vector<1x1x128xf32>
    %cst_102 = arith.constant 3.906250e-03 : f32
    %173 = vector.broadcast %cst_102 : f32 to vector<1x1x128xf32>
    %174 = arith.mulf %172, %173 : vector<1x1x128xf32>
    %175 = arith.mulf %169, %169 : vector<1x1x128xf32>
    %176 = arith.subf %174, %175 : vector<1x1x128xf32>
    %177 = vector.broadcast %169 : vector<1x1x128xf32> to vector<16x16x128xf32>
    %178 = arith.subf %165, %177 : vector<16x16x128xf32>
    %cst_103 = arith.constant 0.000000e+00 : f32
    %179 = vector.broadcast %cst_103 : f32 to vector<1x1x128xf32>
    %180 = arith.maximumf %176, %179 : vector<1x1x128xf32>
    %cst_104 = arith.constant 9.99999974E-6 : f32
    %181 = vector.broadcast %cst_104 : f32 to vector<1x1x128xf32>
    %182 = arith.addf %180, %181 : vector<1x1x128xf32>
    %183 = math.rsqrt %182 : vector<1x1x128xf32>
    %184 = vector.broadcast %183 : vector<1x1x128xf32> to vector<16x16x128xf32>
    %185 = arith.mulf %178, %184 : vector<16x16x128xf32>
    %c0_105 = arith.constant 0 : index
    %c0_106 = arith.constant 0 : index
    %c0_107 = arith.constant 0 : index
    %c0_108 = arith.constant 0 : index
    %186 = vector.load %arg1[%c0_105, %c0_106, %c0_107, %c0_108] : memref<1x16x16x128xf32, #tpu.memory_space<vmem>>, vector<1x16x16x128xf32>
    %187 = vector.shape_cast %186 : vector<1x16x16x128xf32> to vector<16x16x128xf32>
    %188 = arith.addf %187, %185 : vector<16x16x128xf32>
    %c0_109 = arith.constant 0 : index
    %c0_110 = arith.constant 0 : index
    %c0_111 = arith.constant 0 : index
    %c0_112 = arith.constant 0 : index
    %189 = vector.load %arg4[%c0_109, %c0_110, %c0_111, %c0_112] : memref<1x16x16x128xf32, #tpu.memory_space<vmem>>, vector<1x16x16x128xf32>
    %190 = vector.shape_cast %189 : vector<1x16x16x128xf32> to vector<16x16x128xf32>
    %191 = vector.shape_cast %188 : vector<16x16x128xf32> to vector<1x16x16x128xf32>
    tpu.vector_store %arg4[%c0_109, %c0_110, %c0_111, %c0_112], %191 {strides = array<i32>} : memref<1x16x16x128xf32, #tpu.memory_space<vmem>>, vector<1x16x16x128xf32>,
    return
  }
  func.func @transform_0(%arg0: i32) -> (i32, i32, i32, i32) {
    %c0_i32 = arith.constant 0 : i32
    %c0_i32_0 = arith.constant 0 : i32
    %c0_i32_1 = arith.constant 0 : i32
    %c0_i32_2 = arith.constant 0 : i32
    return %arg0, %c0_i32, %c0_i32_0, %c0_i32_1 : i32, i32, i32, i32
  }
  func.func @transform_1(%arg0: i32) -> (i32, i32, i32, i32) {
    %c0_i32 = arith.constant 0 : i32
    %c0_i32_0 = arith.constant 0 : i32
    %c0_i32_1 = arith.constant 0 : i32
    %c0_i32_2 = arith.constant 0 : i32
    %c0_i32_3 = arith.constant 0 : i32
    return %c0_i32, %c0_i32_0, %c0_i32_1, %c0_i32_2 : i32, i32, i32, i32
  }
  func.func @transform_2(%arg0: i32) -> (i32, i32, i32, i32) {
    %c0_i32 = arith.constant 0 : i32
    %c0_i32_0 = arith.constant 0 : i32
    %c0_i32_1 = arith.constant 0 : i32
    %c0_i32_2 = arith.constant 0 : i32
    %c0_i32_3 = arith.constant 0 : i32
    return %c0_i32, %c0_i32_0, %c0_i32_1, %c0_i32_2 : i32, i32, i32, i32
  }
  func.func @transform_3(%arg0: i32) -> (i32, i32, i32, i32) {
    %c0_i32 = arith.constant 0 : i32
    %c0_i32_0 = arith.constant 0 : i32
    %c0_i32_1 = arith.constant 0 : i32
    %c0_i32_2 = arith.constant 0 : i32
    return %arg0, %c0_i32, %c0_i32_0, %c0_i32_1 : i32, i32, i32, i32
  }
}

</mosaic_0001>

<bundles_post_ra>
// kernel: tpu_custom_call.1
= control target key start
LH: loop header
LB: loop body
LE: loop exit
PB: predicated region body
PF: predicated region fallthrough
CT: control target
= control target key end

     0   :  { %6 = vsyncpa [#allocation3], 0  ;;  %s119_s0 = inlined_call_operand.hbm [shape: f32[16,128], index: 0, kind: input, shape index: {}]   ;;  %s120_s1 = inlined_call_operand.hbm [shape: f32[16,128], index: 1, kind: output, shape index: {}]  }
   0x1   :  { %7 = vsyncpa [#allocation4], 0  ;;  %s99_s6 = smov [#allocation2]  }
   0x2   :  { %s13_s7 = sshll.u32 %s99_s6, 4  ;;  %s14_s7 = int_to_ptr.vmem [resolvable:$true] %s13_s7 }
   0x3   :  { %s63_s8 = scalar_lea.vmem %s14_s7, 256  ;;  %p68_p1 = scmp.lt.s32.totalorder %s14_s7, %s14_s7 }
   0x4   :  { %p64_p0 = scmp.ne.s32.totalorder %s14_s7, %s63_s8  ;;  %p69_p2 = scmp.lt.s32.totalorder %s63_s8, %s63_s8 }
   0x6   :  { %p70_p3 = por %p69_p2, %p68_p1 }
   0x8   :  { %p71_p4 = pnand %p70_p3, %p64_p0 }
   0xa   :  { %74 = shalt.err (!%p71_p4)
}
   0xb   :  { %s100_s9 = smov 128   ;;  %s101_s10 = smov 8  }
   0xc   :  { %19 = dma.hbm_to_vmem [thread:$0]  %s119_s0, 256, %s14_s7, [#allocation3], %s100_s9, %s100_s9, %s101_s10  }
   0xd   :  { %95 = dma.done.wait [#allocation3], 256  }
   0xe   :  { %96 = vsyncadd [#allocation3], 4294967040  ;;  %v27_v0 = vlaneseq  ;;  %s102_s13 = smov [#allocation5]   ;;  %v23_v2 = vld [vmem:[#allocation2] sm:$0xff]  ;;  %v24_v3 = vld [vmem:[#allocation2 + $0x8] sm:$0xff] }
   0xf   :  { %s39_s14 = sshll.u32 %s102_s13, 4  ;;  %v25_v4 = vrot.slane %v23_v2, 7  ;;  %v26_v5 = vrot.slane %v24_v3, 7  ;;  %s40_s14 = int_to_ptr.vmem [resolvable:$true] %s39_s14 }
  0x10   :  { %v28_v1 = vshrl.u32 %v27_v0, 7  ;;  %s75_s15 = scalar_lea.vmem %s40_s14, 256  ;;  %p80_p6 = scmp.lt.s32.totalorder %s40_s14, %s40_s14 }
  0x11   :  { %p76_p5 = scmp.ne.s32.totalorder %s40_s14, %s75_s15  ;;  %p81_p7 = scmp.lt.s32.totalorder %s75_s15, %s75_s15 }
  0x12   :  { %vm29_vm0 = vcmp.lt.s32.totalorder %v28_v1, 1 }
  0x13   :  { %v31_v6 = vsel %vm29_vm0, %v26_v5, %v25_v4  ;;  %v30_v7 = vsel %vm29_vm0, %v25_v4, %v26_v5  ;;  %p82_p8 = por %p81_p7, %p80_p6 }
  0x14   :  { %32 = vst [vmem:[#allocation5] sm:$0xff] %v31_v6  ;;  %33 = vst [vmem:[#allocation5 + $0x8] sm:$0xff] %v30_v7 }
  0x15   :  { %p83_p9 = pnand %p82_p8, %p76_p5 }
  0x17   :  { %86 = shalt.err (!%p83_p9)
}
  0x18   :  { %45 = dma.vmem_to_hbm [thread:$0]  %s40_s14, 256, %s120_s1, [#allocation4], %s100_s9, %s100_s9, %s101_s10  }
  0x19   :  { %97 = dma.done.wait [#allocation4], 256  }
  0x1a   :  { %98 = vsyncadd [#allocation4], 4294967040 }
  0x1b   :  { %49 = vsyncpa [#allocation3], 1 }
  0x1c   :  { %50 = vsyncpa [#allocation4], 1 }

// kernel: tpu_custom_call.1
= control target key start
LH: loop header
LB: loop body
LE: loop exit
PB: predicated region body
PF: predicated region fallthrough
CT: control target
= control target key end

     0   :  { %8 = vsyncpa [#allocation3], 0  ;;  %s10893_s0 = inlined_call_operand.hbm [shape: f32[2,16,16,128], index: 0, kind: input, shape index: {}]   ;;  %s10894_s1 = inlined_call_operand.hbm [shape: bf16[3,3,128,128], index: 1, kind: input, shape index: {}]   ;;  %s10895_s2 = inlined_call_operand.hbm [shape: bf16[3,3,128,128], index: 2, kind: input, shape index: {}]   ;;  %s10896_s3 = inlined_call_operand.hbm [shape: f32[2,16,16,128], index: 3, kind: output, shape index: {}]  }
   0x1   :  { %10 = vsyncpa [#allocation3 + $0x1], 0 }
   0x2   :  { %11 = vsyncpa [#allocation6], 0 }
   0x3   :  { %12 = vsyncpa [#allocation4], 0 }
   0x4   :  { %14 = vsyncpa [#allocation4 + $0x1], 0  ;;  %s8031_s12 = smov 0   ;;  %s8033_s13 = smov 0  }
   0x5   :  { %s8035_s14 = smov 0   ;;  %s8037_s15 = smov 0  }
   0x6 LB: > { %s8052_s16 = sadd.s32 4294967295, %s7999_s15   ;;  %s6170_s17 = sadd.s32 4294967294, %s7999_s15   ;;  %s7999_s15 = sphi %s8037_s15, %s11232_s15   ;;  %s7995_s14 = sphi %s8035_s14, %s11231_s14   ;;  %s7991_s13 = sphi %s8033_s13, %s11230_s13   ;;  %s7987_s12 = sphi %s8031_s12, %s11229_s12  }
   0x7   : > { %p40_p0 = scmp.ne.s32.totalorder %s7991_s13, %s7987_s12  ;;  %p10897_p1 = scmp.eq.s32.totalorder %s8052_s16, 0 }
   0x8   : > { %p112_p3 = scmp.eq.s32.totalorder %s6170_s17, 1  ;;  %p6171_p5 = scmp.ge.s32.totalorder %s7999_s15, 1 }
   0x9   : > { %p8061_p4 = por %p10897_p1, %p40_p0  ;;  %p119_p7 = scmp.lt.s32.totalorder %s7999_s15, 3 }
   0xa   : > { %p8066_p6 = por %p112_p3, %p40_p0  ;;  %s8001_s21 = smov [#allocation5]  }
   0xb   : > { %s10941_s18 = scalar_select %p8061_p4, 1, 0 }
   0xc   : > { %s10942_s19 = scalar_select %p8066_p6, 1, 0 }
   0xd   : > { %p8071_p8 = pnand %p6171_p5, %p119_p7  ;;  %s131_s22 = sshll.u32 %s8001_s21, 4  ;;  %s132_s22 = int_to_ptr.vmem [resolvable:$true] %s131_s22 }
   0xe   : > { %s8002_s24 = smov [#allocation7]   ;;  %s7862_s26 = scalar_lea.vmem %s132_s22, 9216 }
   0xf   : > { %s10943_s20 = scalar_select %p8071_p8, 1, 0 }
  0x10   : > { %p7642_p9 = pneg %p8071_p8  ;;  %s144_s25 = sshll.u32 %s8002_s24, 4  ;;  %s145_s25 = int_to_ptr.vmem [resolvable:$true] %s144_s25 }
  0x11   : > { %p7863_p13 = scmp.ne.s32.totalorder %s132_s22, %s7862_s26  ;;  %p7870_p5 = scmp.lt.s32.totalorder %s132_s22, %s132_s22 }
  0x12   : > { %p8080_p11 = pnand %p7642_p9, %p10897_p1  ;;  %p7871_p7 = scmp.lt.s32.totalorder %s7862_s26, %s7862_s26 }
  0x14   : > { %p7853_p12 = pneg %p8080_p11  ;;  %p7872_p10 = por %p7871_p7, %p7870_p5 }
  0x16   : > { %p7865_p0 = pnand %p7863_p13, %p7853_p12 }
  0x18   : > { %p7866_p3 = pneg %p7865_p0 }
  0x1a   : > { %p7873_p9 = pnand %p7872_p10, %p7866_p3 }
  0x1c   : > { %7876 = shalt.err (!%p7873_p9)
}
  0x1d   : > { %s8003_s27 = smov 64   ;;  %s8004_s28 = smov 4  }
  0x1e   : > { %7645 = dma.hbm_to_vmem [thread:$0]  (!%p8080_p11), %s10894_s1, 9216, %s132_s22, [#allocation6], %s8003_s27, %s8003_s27, %s8004_s28  }
  0x1f   : > { %s7888_s4 = scalar_lea.vmem %s145_s25, 9216  ;;  %p7896_p2 = scmp.lt.s32.totalorder %s145_s25, %s145_s25 }
  0x20   : > { %p7889_p1 = scmp.ne.s32.totalorder %s145_s25, %s7888_s4  ;;  %p7897_p6 = scmp.lt.s32.totalorder %s7888_s4, %s7888_s4 }
  0x22   : > { %p7891_p13 = pnand %p7889_p1, %p7853_p12  ;;  %p7898_p5 = por %p7897_p6, %p7896_p2 }
  0x24   : > { %p7892_p0 = pneg %p7891_p13 }
  0x26   : > { %p7899_p10 = pnand %p7898_p5, %p7892_p0 }
  0x28   : > { %7902 = shalt.err (!%p7899_p10)
}
  0x29   : > { %7648 = dma.hbm_to_vmem [thread:$0]  (!%p8080_p11), %s10895_s2, 9216, %s145_s25, [#allocation6], %s8003_s27, %s8003_s27, %s8004_s28  }
  0x2a   : > { %s8103_s7 = sadd.s32 1, %s7999_s15   ;;  %s27_s8 = sadd.s32 1, %s7995_s14 }
  0x2b   : > { %s24_s9 = ssub.s32 %s7999_s15, %s8103_s7  ;;  %p34_p1 = scmp.ne.s32.totalorder %s7995_s14, %s7991_s13 }
  0x2c   : > { %p25_p2 = scmp.eq.s32.totalorder %s24_s9, 0  ;;  %p35_p6 = scmp.eq.s32.totalorder %s7999_s15, 0 }
  0x2d   : > { %p10945_p12 = scmp.eq.s32.totalorder %s8052_s16, 1  ;;  %p7659_p7 = scmp.lt.s32.totalorder %s7999_s15, 2 }
  0x2e   : > { %s8119_s11 = scalar_select %p25_p2, %s7995_s14, %s27_s8  }
  0x2f   : > { %p8113_p3 = por %p10945_p12, %p34_p1  ;;  %p36_p9 = por %p35_p6, %p34_p1 }
  0x30   : > { %s158_s17 = sand.u32 1, %s7995_s14   ;;  %s6332_s22 = sshll.u32 %s7999_s15, 12 }
  0x31   : > { %s10946_s10 = scalar_select %p8113_p3, 1, 0 }
  0x32   : > { %s6175_s21 = sshll.u32 %s158_s17, 8  ;;  %s8126_s25 = scalar_lea.hbm %s10893_s0, %s6332_s22 }
  0x33   : > { %s162_s26 = scalar_lea.vmem [#allocation2], %s6175_s21  ;;  %p8130_p11 = pnand %p7659_p7, %p36_p9 }
  0x34   : > { %s169_s27 = sshll.u32 %s162_s26, 4  ;;  %s8134_s29 = scalar_lea.sflag [#allocation3], %s158_s17  ;;  %s8128_s27 = int_to_ptr.vmem [resolvable:$true] %s169_s27 }
  0x35   : > { %s7903_s30 = scalar_lea.hbm %s8126_s25, 4096  ;;  %p7905_p0 = pneg %p8130_p11 }
  0x36   : > { %p7904_p13 = scmp.ne.s32.totalorder %s8126_s25, %s7903_s30  ;;  %s7908_s6 = scalar_lea.hbm %s10893_s0, 8192 }
  0x37   : > { %p7909_p1 = scmp.lt.s32.totalorder %s8126_s25, %s10893_s0  ;;  %p7910_p2 = scmp.lt.s32.totalorder %s7908_s6, %s7903_s30 }
  0x38   : > { %p7906_p5 = pnand %p7905_p0, %p7904_p13 }
  0x39   : > { %p7911_p6 = por %p7910_p2, %p7909_p1 }
  0x3a   : > { %p7907_p10 = pneg %p7906_p5 }
  0x3c   : > { %p7912_p12 = pnand %p7911_p6, %p7907_p10 }
  0x3e   : > { %7915 = shalt.err (!%p7912_p12)
}
  0x3f   : > { %s7916_s17 = scalar_lea.vmem %s8128_s27, 4096  ;;  %s8005_s21 = smov [#allocation2]  }
  0x40   : > { %p7917_p7 = scmp.ne.s32.totalorder %s8128_s27, %s7916_s17  ;;  %s7921_s22 = sshll.u32 %s8005_s21, 4  ;;  %s7922_s22 = int_to_ptr.vmem [resolvable:$false] %s7921_s22 }
  0x41   : > { %s7923_s23 = scalar_lea.vmem %s7922_s22, 8192  ;;  %p7924_p5 = scmp.lt.s32.totalorder %s8128_s27, %s7922_s22 }
  0x42   : > { %p7919_p9 = pnand %p7917_p7, %p7905_p0  ;;  %p7925_p3 = scmp.lt.s32.totalorder %s7923_s23, %s7916_s17 }
  0x44   : > { %p7920_p13 = pneg %p7919_p9  ;;  %p7926_p4 = por %p7925_p3, %p7924_p5 }
  0x46   : > { %p7927_p8 = pnand %p7926_p4, %p7920_p13 }
  0x48   : > { %7930 = shalt.err (!%p7927_p8)
}
  0x49   : > { %s8006_s24 = smov 128   ;;  %s8007_s26 = smov 8  }
  0x4a   : > { %7652 = dma.hbm_to_vmem [thread:$0]  (!%p8130_p11), %s8126_s25, 4096, %s8128_s27, %s8134_s29, %s8006_s24, %s8006_s24, %s8007_s26  }
  0x4b   : > { %p10948_p0 = scmp.ne.s32.totalorder %s10943_s20, 0 }
  0x4d   : > { %181 = sbr.rel (%p10948_p0) target bundleno = 1313 (0x521), region = 32 }
  0x52   : > { %s8158_s30 = sand.u32 1, %s7991_s13   ;;  %p10949_p4 = scmp.ne.s32.totalorder %s10941_s18, 0 }
  0x53   : > { %s6179_s4 = sshll.u32 %s8158_s30, 8  ;;  %s184_s5 = scalar_lea.sflag [#allocation3], %s8158_s30 }
  0x54   : > { %s8164_s6 = scalar_lea.vmem [#allocation2], %s6179_s4 }
  0x55   : > { %7974 = dma.done.wait (%p10949_p4), %s184_s5, 4096  }
  0x56   : > { %7976 = vsyncadd (%p10949_p4), %s184_s5, 4294963200  ;;  %p10950_p8 = scmp.eq.s32.totalorder %s8052_s16, 0 }
  0x58   : > { %7978 = dma.done.wait (%p10950_p8), [#allocation6], 18432   ;;  %p10951_p3 = pmov %p10950_p8 }
  0x59   : > { %v7703_v0 = vld [vmem:[#allocation5 + $0xf8] sm:$0xff]   ;;  %v7705_v2 = vld [vmem:[#allocation5 + $0xf0] sm:$0xff]   ;;  %v7707_v4 = vld [vmem:[#allocation5 + $0xe8] sm:$0xff]   ;;  %vm2431_vm0 = vcmask 1040384   ;;  %vm2662_vm2 = vcmask 1046528   ;;  %s10719_s18 = scalar_lea.vmem [#allocation8], %s6179_s4 }
  0x5a   : > { %7980 = vsyncadd (%p10951_p3), [#allocation6], 4294948864  ;;  %v7704_v1 = vld [vmem:[#allocation5 + $0x38] sm:$0xff]   ;;  %6766 = vmatprep.subr.bf16.mxu0 %v7703_v0  ;;  %v7706_v3 = vld [vmem:[#allocation5 + $0x30] sm:$0xff]   ;;  %s6333_s20 = sshll.u32 %s8052_s16, 12  ;;  %s6078_s25 = sshll.u32 %s10719_s18, 4  ;;  %s10834_s25 = int_to_ptr.vmem [resolvable:$true] %s6078_s25 }
  0x5b   : > { %6814 = vmatprep.subr.bf16.mxu1 %v7704_v1  ;;  %6767 = vmatpush3.bf16.msra.mxu0 %v7703_v0  ;;  %v7708_v5 = vld [vmem:[#allocation5 + $0x28] sm:$0xff]   ;;  %v7709_v6 = vld [vmem:[#allocation5 + $0xe0] sm:$0xff]   ;;  %v7711_v8 = vld [vmem:[#allocation5 + $0xd8] sm:$0xff]   ;;  %s10830_s29 = scalar_lea.hbm %s10896_s3, %s6333_s20  ;;  %s6065_s16 = scalar_lea.sflag [#allocation4], %s8158_s30 }
  0x5c   : > { %6815 = vmatpush3.bf16.msra.mxu1 %v7704_v1  ;;  %6768 = vmatprep.subr.bf16.mxu0 %v7705_v2  ;;  %v7710_v7 = vld [vmem:[#allocation5 + $0x20] sm:$0xff]   ;;  %v7712_v9 = vld [vmem:[#allocation5 + $0x18] sm:$0xff]   ;;  %v7713_v10 = vld [vmem:[#allocation5 + $0xd0] sm:$0xff]   ;;  %s7931_s8 = scalar_lea.vmem %s10834_s25, 4096  ;;  %p11226_p10 = scmp.ne.s32.totalorder %s10946_s10, 0 }
  0x5d   : > { %6816 = vmatprep.subr.bf16.mxu1 %v7706_v3  ;;  %v7714_v11 = vld [vmem:[#allocation5 + $0x10] sm:$0xff]   ;;  %v219_v12 = vld [vmem:[%s8164_s6] sm:$0xff]  ;;  %v220_v13 = vld [vmem:[%s8164_s6 + $0x8] sm:$0xff]  ;;  %p7932_p11 = scmp.ne.s32.totalorder %s10834_s25, %s7931_s8  ;;  %s8008_s9 = smov [#allocation8]  }
  0x5e   : > { %v221_v14 = vld [vmem:[%s8164_s6 + $0x10] sm:$0xff]  ;;  %v8177_v15 = vpack.c.bf16 %v220_v13, %v219_v12  ;;  %v222_v16 = vld [vmem:[%s8164_s6 + $0x18] sm:$0xff]  ;;  %v7715_v18 = vld [vmem:[#allocation5 + $0xc8] sm:$0xff]   ;;  %s7935_s17 = sshll.u32 %s8008_s9, 4  ;;  %s7936_s17 = int_to_ptr.vmem [resolvable:$false] %s7935_s17 }
  0x5f   : > { %6769 = vmatpush3.bf16.msra.mxu0 %v7705_v2  ;;  %v8180_v17 = vpack.c.bf16 %v222_v16, %v221_v14  ;;  %v7716_v19 = vld [vmem:[#allocation5 + $0x8] sm:$0xff]   ;;  %v7717_v20 = vld [vmem:[#allocation5 + $0xc0] sm:$0xff]   ;;  %v7719_v22 = vld [vmem:[#allocation5 + $0x1b8] sm:$0xff]   ;;  %p7933_p1 = pnand %p7932_p11, %p11226_p10  ;;  %s7937_s21 = scalar_lea.vmem %s7936_s17, 8192 }
  0x60   : > { %6817 = vmatpush3.bf16.msra.mxu1 %v7706_v3  ;;  %6770 = vmatprep.subr.bf16.mxu0 %v7707_v4  ;;  %v7718_v21 = vld [vmem:[#allocation5] sm:$0xff]   ;;  %v224_v24 = vld [vmem:[%s8164_s6 + $0x28] sm:$0xff]  ;;  %v7724_v25 = vld [vmem:[#allocation5 + $0x138] sm:$0xff]   ;;  %p7938_p6 = scmp.lt.s32.totalorder %s10834_s25, %s7936_s17  ;;  %p7939_p12 = scmp.lt.s32.totalorder %s7937_s21, %s7931_s8 }
  0x61   : > { %6818 = vmatprep.subr.bf16.mxu1 %v7708_v5  ;;  %6782 = vmatprep.mubr.bf16.mxu0 %v8177_v15  ;;  %v223_v23 = vld [vmem:[%s8164_s6 + $0x20] sm:$0xff]  ;;  %v225_v27 = vld [vmem:[%s8164_s6 + $0x30] sm:$0xff]  ;;  %v226_v29 = vld [vmem:[%s8164_s6 + $0x38] sm:$0xff]  ;;  %p7934_p2 = pneg %p7933_p1 }
  0x62   : > { %6830 = vmatprep.mubr.bf16.mxu1 %v8180_v17  ;;  %v8186_v26 = vpack.c.bf16 %v224_v24, %v223_v23  ;;  %v7720_v28 = vld [vmem:[#allocation5 + $0x1b0] sm:$0xff]   ;;  %v227_v30 = vld [vmem:[%s8164_s6 + $0x40] sm:$0xff]  ;;  %v228_v32 = vld [vmem:[%s8164_s6 + $0x48] sm:$0xff]  ;;  %v8196_v34 = vpack.c.bf16 %v226_v29, %v225_v27  ;;  %p7940_p7 = por %p7939_p12, %p7938_p6 }
  0x63   : > { %6771 = vmatpush3.bf16.msra.mxu0 %v7707_v4  ;;  %v7725_v31 = vld [vmem:[#allocation5 + $0x130] sm:$0xff]   ;;  %v7721_v33 = vld [vmem:[#allocation5 + $0x1a8] sm:$0xff]   ;;  %v8198_v36 = vpack.c.bf16 %v228_v32, %v227_v30  ;;  %v230_v38 = vld [vmem:[%s8164_s6 + $0x58] sm:$0xff] }
  0x64   : > { %6819 = vmatpush3.bf16.msra.mxu1 %v7708_v5  ;;  %6772 = vmatprep.subr.bf16.mxu0 %v7709_v6  ;;  %v7727_v35 = vld [vmem:[#allocation5 + $0x128] sm:$0xff]   ;;  %v229_v37 = vld [vmem:[%s8164_s6 + $0x50] sm:$0xff]  ;;  %v7722_v39 = vld [vmem:[#allocation5 + $0x1a0] sm:$0xff]   ;;  %p7941_p9 = pnand %p7940_p7, %p7934_p2 }
  0x65   : > { %6820 = vmatprep.subr.bf16.mxu1 %v7710_v7  ;;  %v7728_v40 = vld [vmem:[#allocation5 + $0x120] sm:$0xff]   ;;  %v232_v42 = vld [vmem:[%s8164_s6 + $0x68] sm:$0xff]  ;;  %v7723_v43 = vld [vmem:[#allocation5 + $0x198] sm:$0xff]   ;;  %v8208_v44 = vpack.c.bf16 %v230_v38, %v229_v37 }
  0x66   : > { %v231_v41 = vld [vmem:[%s8164_s6 + $0x60] sm:$0xff]  ;;  %v7730_v45 = vld [vmem:[#allocation5 + $0x118] sm:$0xff]   ;;  %v233_v47 = vld [vmem:[%s8164_s6 + $0x70] sm:$0xff] }
  0x67   : > { %6773 = vmatpush3.bf16.msra.mxu0 %v7709_v6  ;;  %v8210_v46 = vpack.c.bf16 %v232_v42, %v231_v41  ;;  %v234_v48 = vld [vmem:[%s8164_s6 + $0x78] sm:$0xff]  ;;  %v7726_v49 = vld [vmem:[#allocation5 + $0x190] sm:$0xff]   ;;  %v235_v51 = vld [vmem:[%s8164_s6 + $0x80] sm:$0xff] }
  0x68   : > { %6821 = vmatpush3.bf16.msra.mxu1 %v7710_v7  ;;  %6774 = vmatprep.subr.bf16.mxu0 %v7711_v8  ;;  %v7731_v50 = vld [vmem:[#allocation5 + $0x110] sm:$0xff]   ;;  %v236_v52 = vld [vmem:[%s8164_s6 + $0x88] sm:$0xff]  ;;  %v8220_v54 = vpack.c.bf16 %v234_v48, %v233_v47  ;;  %v238_v58 = vld [vmem:[%s8164_s6 + $0x98] sm:$0xff] }
  0x69   : > { %6822 = vmatprep.subr.bf16.mxu1 %v7712_v9  ;;  %v7729_v53 = vld [vmem:[#allocation5 + $0x188] sm:$0xff]   ;;  %v8222_v56 = vpack.c.bf16 %v236_v52, %v235_v51  ;;  %v237_v57 = vld [vmem:[%s8164_s6 + $0x90] sm:$0xff]  ;;  %v7732_v59 = vld [vmem:[#allocation5 + $0x180] sm:$0xff]  }
  0x6a   : > { %v7733_v55 = vld [vmem:[#allocation5 + $0x108] sm:$0xff]   ;;  %v7734_v60 = vld [vmem:[#allocation5 + $0x100] sm:$0xff]   ;;  %v7735_v63 = vld [vmem:[#allocation5 + $0x78] sm:$0xff]   ;;  %v8232_v0 = vpack.c.bf16 %v238_v58, %v237_v57 }
  0x6b   : > { %6775 = vmatpush3.bf16.msra.mxu0 %v7711_v8  ;;  %v239_v61 = vld [vmem:[%s8164_s6 + $0xa0] sm:$0xff]  ;;  %v240_v62 = vld [vmem:[%s8164_s6 + $0xa8] sm:$0xff]  ;;  %v7740_v1 = vld [vmem:[#allocation5 + $0x1f8] sm:$0xff]  }
  0x6c   : > { %6823 = vmatpush3.bf16.msra.mxu1 %v7712_v9  ;;  %6776 = vmatprep.subr.bf16.mxu0 %v7713_v10  ;;  %v8234_v2 = vpack.c.bf16 %v240_v62, %v239_v61  ;;  %v241_v3 = vld [vmem:[%s8164_s6 + $0xb0] sm:$0xff]  ;;  %v242_v4 = vld [vmem:[%s8164_s6 + $0xb8] sm:$0xff]  ;;  %v243_v5 = vld [vmem:[%s8164_s6 + $0xc0] sm:$0xff] }
  0x6d   : > { %6824 = vmatprep.subr.bf16.mxu1 %v7714_v11  ;;  %v244_v6 = vld [vmem:[%s8164_s6 + $0xc8] sm:$0xff]  ;;  %v8244_v7 = vpack.c.bf16 %v242_v4, %v241_v3  ;;  %v245_v9 = vld [vmem:[%s8164_s6 + $0xd0] sm:$0xff]  ;;  %v7738_v24 = vld [vmem:[#allocation5 + $0x60] sm:$0xff]  }
  0x6e   : > { %v8246_v8 = vpack.c.bf16 %v244_v6, %v243_v5  ;;  %v248_v12 = vld [vmem:[%s8164_s6 + $0xe8] sm:$0xff]  ;;  %v249_v16 = vld [vmem:[%s8164_s6 + $0xf0] sm:$0xff]  ;;  %v7739_v27 = vld [vmem:[#allocation5 + $0x58] sm:$0xff]  }
  0x6f   : > { %6777 = vmatpush3.bf16.msra.mxu0 %v7713_v10  ;;  %v246_v10 = vld [vmem:[%s8164_s6 + $0xd8] sm:$0xff]  ;;  %v7743_v23 = vld [vmem:[#allocation5 + $0x1e8] sm:$0xff]   ;;  %v7742_v29 = vld [vmem:[#allocation5 + $0x50] sm:$0xff]  }
  0x70   : > { %6825 = vmatpush3.bf16.msra.mxu1 %v7714_v11  ;;  %6778 = vmatprep.subr.bf16.mxu0 %v7715_v18  ;;  %v247_v11 = vld [vmem:[%s8164_s6 + $0xe0] sm:$0xff]  ;;  %v8256_v13 = vpack.c.bf16 %v246_v10, %v245_v9  ;;  %v7747_v30 = vld [vmem:[#allocation5 + $0x1d0] sm:$0xff]   ;;  %v7749_v32 = vld [vmem:[#allocation5 + $0x1c8] sm:$0xff]  }
  0x71   : > { %6826 = vmatprep.subr.bf16.mxu1 %v7716_v19  ;;  %v8258_v14 = vpack.c.bf16 %v248_v12, %v247_v11  ;;  %v7751_v37 = vld [vmem:[#allocation5 + $0x178] sm:$0xff]   ;;  %v7753_v41 = vld [vmem:[#allocation5 + $0x168] sm:$0xff]   ;;  %v7768_v58 = vld [vmem:[#allocation5 + $0x230] sm:$0xff]  }
  0x72   : > { %v7756_v38 = vld [vmem:[#allocation5 + $0xb8] sm:$0xff]   ;;  %v7759_v42 = vld [vmem:[#allocation5 + $0xa8] sm:$0xff]   ;;  %v7770_v10 = vld [vmem:[#allocation5 + $0x220] sm:$0xff]  }
  0x73   : > { %6779 = vmatpush3.bf16.msra.mxu0 %v7715_v18  ;;  %v250_v18 = vld [vmem:[%s8164_s6 + $0xf8] sm:$0xff]  ;;  %v7761_v51 = vld [vmem:[#allocation5 + $0x148] sm:$0xff]  }
  0x74   : > { %6827 = vmatpush3.bf16.msra.mxu1 %v7716_v19  ;;  %6780 = vmatprep.subr.bf16.mxu0 %v7717_v20  ;;  %v8266_v19 = vpack.c.bf16 %v250_v18, %v249_v16  ;;  %v7755_v47 = vld [vmem:[#allocation5 + $0x158] sm:$0xff]   ;;  %v7765_v52 = vld [vmem:[#allocation5 + $0x88] sm:$0xff]  }
  0x75   : > { %6828 = vmatprep.subr.bf16.mxu1 %v7718_v21  ;;  %v7762_v48 = vld [vmem:[#allocation5 + $0x98] sm:$0xff]  }
  0x76   : > { %v7767_v57 = vld [vmem:[#allocation5 + $0x238] sm:$0xff]  }
  0x77   : > { %6781 = vmatpush3.bf16.msra.mxu0 %v7717_v20  ;;  %v7736_v20 = vld [vmem:[#allocation5 + $0x70] sm:$0xff]  }
  0x78   : > { %6829 = vmatpush3.bf16.msra.mxu1 %v7718_v21  ;;  %6862 = vmatprep.subr.bf16.mxu0 %v7719_v22  ;;  %v7741_v21 = vld [vmem:[#allocation5 + $0x1f0] sm:$0xff]  }
  0x79   : > { %6910 = vmatprep.subr.bf16.mxu1 %v7724_v25 }
  0x7a   : > { %6783 = vmatmul.mubr.bf16.vlgmr.msra.gmra.mxu0 %v8180_v17 }
  0x7b   : > { %6831 = vmatmul.mubr.bf16.vlgmr.msra.gmra.mxu1 %v8177_v15  ;;  %6863 = vmatpush3.bf16.msra.mxu0 %v7719_v22  ;;  %v7737_v22 = vld [vmem:[#allocation5 + $0x68] sm:$0xff]  }
  0x7c   : > { %6786 = vmatprep.mubr.bf16.mxu0 %v8186_v26  ;;  %6834 = vmatprep.mubr.bf16.mxu1 %v8180_v17 }
  0x7d   : > { %6864 = vmatprep.subr.bf16.mxu0 %v7720_v28  ;;  %6911 = vmatpush3.bf16.msra.mxu1 %v7724_v25  ;;  %v7744_v25 = vld [vmem:[#allocation5 + $0x1e0] sm:$0xff]  }
  0x7e   : > { %6912 = vmatprep.subr.bf16.mxu1 %v7725_v31 }
  0x7f   : > { %6865 = vmatpush3.bf16.msra.mxu0 %v7720_v28  ;;  %v7746_v28 = vld [vmem:[#allocation5 + $0x1d8] sm:$0xff]  }
  0x80   : > { %6866 = vmatprep.subr.bf16.mxu0 %v7721_v33 }
  0x81   : > { %6913 = vmatpush3.bf16.msra.mxu1 %v7725_v31  ;;  %v7745_v31 = vld [vmem:[#allocation5 + $0x48] sm:$0xff]  }
  0x82   : > { %6787 = vmatmul.mubr.bf16.gmra.mxu0 %v8196_v34  ;;  %6914 = vmatprep.subr.bf16.mxu1 %v7727_v35 }
  0x83   : > { %6835 = vmatmul.mubr.bf16.gmra.mxu1 %v8186_v26  ;;  %6790 = vmatprep.mubr.bf16.mxu0 %v8198_v36 }
  0x84   : > { %6838 = vmatprep.mubr.bf16.mxu1 %v8196_v34  ;;  %6867 = vmatpush3.bf16.msra.mxu0 %v7721_v33  ;;  %v7748_v33 = vld [vmem:[#allocation5 + $0x40] sm:$0xff]  }
  0x85   : > { %6868 = vmatprep.subr.bf16.mxu0 %v7722_v39  ;;  %6915 = vmatpush3.bf16.msra.mxu1 %v7727_v35  ;;  %v7750_v35 = vld [vmem:[#allocation5 + $0x1c0] sm:$0xff]  }
  0x86   : > { %6916 = vmatprep.subr.bf16.mxu1 %v7728_v40 }
  0x88   : > { %6869 = vmatpush3.bf16.msra.mxu0 %v7722_v39  ;;  %v7752_v39 = vld [vmem:[#allocation5 + $0x170] sm:$0xff]  }
  0x89   : > { %6870 = vmatprep.subr.bf16.mxu0 %v7723_v43  ;;  %6917 = vmatpush3.bf16.msra.mxu1 %v7728_v40  ;;  %v7757_v40 = vld [vmem:[#allocation5 + $0xb0] sm:$0xff]  }
  0x8a   : > { %6791 = vmatmul.mubr.bf16.gmra.mxu0 %v8208_v44  ;;  %6918 = vmatprep.subr.bf16.mxu1 %v7730_v45 }
  0x8b   : > { %6839 = vmatmul.mubr.bf16.gmra.mxu1 %v8198_v36  ;;  %6794 = vmatprep.mubr.bf16.mxu0 %v8210_v46 }
  0x8c   : > { %6842 = vmatprep.mubr.bf16.mxu1 %v8208_v44  ;;  %6871 = vmatpush3.bf16.msra.mxu0 %v7723_v43  ;;  %v7754_v43 = vld [vmem:[#allocation5 + $0x160] sm:$0xff]  }
  0x8d   : > { %6872 = vmatprep.subr.bf16.mxu0 %v7726_v49  ;;  %6919 = vmatpush3.bf16.msra.mxu1 %v7730_v45  ;;  %v7760_v45 = vld [vmem:[#allocation5 + $0xa0] sm:$0xff]  }
  0x8e   : > { %6920 = vmatprep.subr.bf16.mxu1 %v7731_v50 }
  0x90   : > { %6873 = vmatpush3.bf16.msra.mxu0 %v7726_v49  ;;  %v7758_v49 = vld [vmem:[#allocation5 + $0x150] sm:$0xff]  }
  0x91   : > { %6874 = vmatprep.subr.bf16.mxu0 %v7729_v53  ;;  %6921 = vmatpush3.bf16.msra.mxu1 %v7731_v50  ;;  %v7763_v50 = vld [vmem:[#allocation5 + $0x90] sm:$0xff]  }
  0x92   : > { %6795 = vmatmul.mubr.bf16.gmra.mxu0 %v8220_v54  ;;  %6922 = vmatprep.subr.bf16.mxu1 %v7733_v55 }
  0x93   : > { %6843 = vmatmul.mubr.bf16.gmra.mxu1 %v8210_v46  ;;  %6798 = vmatprep.mubr.bf16.mxu0 %v8222_v56 }
  0x94   : > { %6846 = vmatprep.mubr.bf16.mxu1 %v8220_v54  ;;  %6875 = vmatpush3.bf16.msra.mxu0 %v7729_v53  ;;  %v7764_v53 = vld [vmem:[#allocation5 + $0x140] sm:$0xff]  }
  0x95   : > { %6876 = vmatprep.subr.bf16.mxu0 %v7732_v59  ;;  %6923 = vmatpush3.bf16.msra.mxu1 %v7733_v55  ;;  %v7766_v55 = vld [vmem:[#allocation5 + $0x80] sm:$0xff]  }
  0x96   : > { %6924 = vmatprep.subr.bf16.mxu1 %v7734_v60 }
  0x98   : > { %6877 = vmatpush3.bf16.msra.mxu0 %v7732_v59 }
  0x99   : > { %6925 = vmatpush3.bf16.msra.mxu1 %v7734_v60  ;;  %6958 = vmatprep.subr.bf16.mxu0 %v7735_v63 }
  0x9a   : > { %6799 = vmatmul.mubr.bf16.gmra.mxu0 %v8232_v0  ;;  %7006 = vmatprep.subr.bf16.mxu1 %v7740_v1 }
  0x9b   : > { %6847 = vmatmul.mubr.bf16.gmra.mxu1 %v8222_v56  ;;  %6802 = vmatprep.mubr.bf16.mxu0 %v8234_v2 }
  0x9c   : > { %6850 = vmatprep.mubr.bf16.mxu1 %v8232_v0 }
  0xa2   : > { %6803 = vmatmul.mubr.bf16.gmra.mxu0 %v8244_v7 }
  0xa3   : > { %6851 = vmatmul.mubr.bf16.gmra.mxu1 %v8234_v2  ;;  %6806 = vmatprep.mubr.bf16.mxu0 %v8246_v8 }
  0xa4   : > { %6854 = vmatprep.mubr.bf16.mxu1 %v8244_v7 }
  0xaa   : > { %6807 = vmatmul.mubr.bf16.gmra.mxu0 %v8256_v13 }
  0xab   : > { %6855 = vmatmul.mubr.bf16.gmra.mxu1 %v8246_v8  ;;  %6810 = vmatprep.mubr.bf16.mxu0 %v8258_v14 }
  0xac   : > { %6858 = vmatprep.mubr.bf16.mxu1 %v8256_v13 }
  0xb2   : > { %6811 = vmatmul.mubr.bf16.gmra.mxu0 %v8266_v19 }
  0xb3   : > { %6859 = vmatmul.mubr.bf16.gmra.mxu1 %v8258_v14  ;;  %6878 = vmatprep.mubr.bf16.mxu0 %v8180_v17 }
  0xb4   : > { %6926 = vmatprep.mubr.bf16.mxu1 %v8177_v15 }
  0xba   : > { %6879 = vmatmul.mubr.bf16.vlgmr.msra.gmra.mxu0 %v8186_v26 }
  0xbb   : > { %6927 = vmatmul.mubr.bf16.vlgmr.msra.gmra.mxu1 %v8180_v17  ;;  %6959 = vmatpush3.bf16.msra.mxu0 %v7735_v63  ;;  %v7769_v63 = vld [vmem:[#allocation5 + $0x228] sm:$0xff]  }
  0xbc   : > { %6882 = vmatprep.mubr.bf16.mxu0 %v8196_v34  ;;  %6930 = vmatprep.mubr.bf16.mxu1 %v8186_v26 }
  0xbd   : > { %6960 = vmatprep.subr.bf16.mxu0 %v7736_v20  ;;  %7007 = vmatpush3.bf16.msra.mxu1 %v7740_v1 }
  0xbe   : > { %7008 = vmatprep.subr.bf16.mxu1 %v7741_v21 }
  0xbf   : > { %6961 = vmatpush3.bf16.msra.mxu0 %v7736_v20 }
  0xc0   : > { %6962 = vmatprep.subr.bf16.mxu0 %v7737_v22 }
  0xc1   : > { %7009 = vmatpush3.bf16.msra.mxu1 %v7741_v21 }
  0xc2   : > { %6883 = vmatmul.mubr.bf16.gmra.mxu0 %v8198_v36  ;;  %7010 = vmatprep.subr.bf16.mxu1 %v7743_v23 }
  0xc3   : > { %6931 = vmatmul.mubr.bf16.gmra.mxu1 %v8196_v34  ;;  %6886 = vmatprep.mubr.bf16.mxu0 %v8208_v44 }
  0xc4   : > { %6934 = vmatprep.mubr.bf16.mxu1 %v8198_v36  ;;  %6963 = vmatpush3.bf16.msra.mxu0 %v7737_v22  ;;  %v7771_v22 = vld [vmem:[#allocation5 + $0x218] sm:$0xff]  }
  0xc5   : > { %6964 = vmatprep.subr.bf16.mxu0 %v7738_v24  ;;  %7011 = vmatpush3.bf16.msra.mxu1 %v7743_v23 }
  0xc6   : > { %7012 = vmatprep.subr.bf16.mxu1 %v7744_v25 }
  0xc8   : > { %6965 = vmatpush3.bf16.msra.mxu0 %v7738_v24 }
  0xc9   : > { %6966 = vmatprep.subr.bf16.mxu0 %v7739_v27  ;;  %7013 = vmatpush3.bf16.msra.mxu1 %v7744_v25 }
  0xca   : > { %6887 = vmatmul.mubr.bf16.gmra.mxu0 %v8210_v46  ;;  %7014 = vmatprep.subr.bf16.mxu1 %v7746_v28 }
  0xcb   : > { %6935 = vmatmul.mubr.bf16.gmra.mxu1 %v8208_v44  ;;  %6890 = vmatprep.mubr.bf16.mxu0 %v8220_v54 }
  0xcc   : > { %6938 = vmatprep.mubr.bf16.mxu1 %v8210_v46  ;;  %6967 = vmatpush3.bf16.msra.mxu0 %v7739_v27 }
  0xcd   : > { %6968 = vmatprep.subr.bf16.mxu0 %v7742_v29  ;;  %7015 = vmatpush3.bf16.msra.mxu1 %v7746_v28 }
  0xce   : > { %7016 = vmatprep.subr.bf16.mxu1 %v7747_v30 }
  0xd0   : > { %6969 = vmatpush3.bf16.msra.mxu0 %v7742_v29 }
  0xd1   : > { %6970 = vmatprep.subr.bf16.mxu0 %v7745_v31  ;;  %7017 = vmatpush3.bf16.msra.mxu1 %v7747_v30  ;;  %v7772_v30 = vld [vmem:[#allocation5 + $0x210] sm:$0xff]  }
  0xd2   : > { %6891 = vmatmul.mubr.bf16.gmra.mxu0 %v8222_v56  ;;  %7018 = vmatprep.subr.bf16.mxu1 %v7749_v32 }
  0xd3   : > { %6939 = vmatmul.mubr.bf16.gmra.mxu1 %v8220_v54  ;;  %6894 = vmatprep.mubr.bf16.mxu0 %v8232_v0 }
  0xd4   : > { %6942 = vmatprep.mubr.bf16.mxu1 %v8222_v56  ;;  %6971 = vmatpush3.bf16.msra.mxu0 %v7745_v31 }
  0xd5   : > { %6972 = vmatprep.subr.bf16.mxu0 %v7748_v33  ;;  %7019 = vmatpush3.bf16.msra.mxu1 %v7749_v32 }
  0xd6   : > { %7020 = vmatprep.subr.bf16.mxu1 %v7750_v35 }
  0xd8   : > { %6973 = vmatpush3.bf16.msra.mxu0 %v7748_v33 }
  0xd9   : > { %7021 = vmatpush3.bf16.msra.mxu1 %v7750_v35  ;;  %7054 = vmatprep.subr.bf16.mxu0 %v7751_v37 }
  0xda   : > { %6895 = vmatmul.mubr.bf16.gmra.mxu0 %v8234_v2  ;;  %7102 = vmatprep.subr.bf16.mxu1 %v7756_v38 }
  0xdb   : > { %6943 = vmatmul.mubr.bf16.gmra.mxu1 %v8232_v0  ;;  %6898 = vmatprep.mubr.bf16.mxu0 %v8244_v7 }
  0xdc   : > { %6946 = vmatprep.mubr.bf16.mxu1 %v8234_v2 }
  0xe2   : > { %6899 = vmatmul.mubr.bf16.gmra.mxu0 %v8246_v8 }
  0xe3   : > { %6947 = vmatmul.mubr.bf16.gmra.mxu1 %v8244_v7  ;;  %6902 = vmatprep.mubr.bf16.mxu0 %v8256_v13 }
  0xe4   : > { %6950 = vmatprep.mubr.bf16.mxu1 %v8246_v8 }
  0xea   : > { %6903 = vmatmul.mubr.bf16.gmra.mxu0 %v8258_v14 }
  0xeb   : > { %6951 = vmatmul.mubr.bf16.gmra.mxu1 %v8256_v13  ;;  %6906 = vmatprep.mubr.bf16.mxu0 %v8266_v19 }
  0xec   : > { %6954 = vmatprep.mubr.bf16.mxu1 %v8258_v14 }
  0xf2   : > { %6907 = vmatmul.mubr.bf16.gmra.mxu0 %v8258_v14 }
  0xf3   : > { %6955 = vmatmul.mubr.bf16.gmra.mxu1 %v8266_v19  ;;  %6974 = vmatprep.mubr.bf16.mxu0 %v8180_v17 }
  0xf4   : > { %7022 = vmatprep.mubr.bf16.mxu1 %v8180_v17 }
  0xfa   : > { %6975 = vmatmul.mubr.bf16.vlgmr.msra.gmra.mxu0 %v8177_v15 }
  0xfb   : > { %7023 = vmatmul.mubr.bf16.vlgmr.msra.gmra.mxu1 %v8186_v26  ;;  %7055 = vmatpush3.bf16.msra.mxu0 %v7751_v37 }
  0xfc   : > { %6978 = vmatprep.mubr.bf16.mxu0 %v8180_v17  ;;  %7026 = vmatprep.mubr.bf16.mxu1 %v8196_v34 }
  0xfd   : > { %7056 = vmatprep.subr.bf16.mxu0 %v7752_v39  ;;  %7103 = vmatpush3.bf16.msra.mxu1 %v7756_v38 }
  0xfe   : > { %7104 = vmatprep.subr.bf16.mxu1 %v7757_v40 }
  0xff   : > { %7057 = vmatpush3.bf16.msra.mxu0 %v7752_v39  ;;  %v7773_v39 = vld [vmem:[#allocation5 + $0x208] sm:$0xff]  }
 0x100   : > { %7058 = vmatprep.subr.bf16.mxu0 %v7753_v41 }
 0x101   : > { %7105 = vmatpush3.bf16.msra.mxu1 %v7757_v40 }
 0x102   : > { %6979 = vmatmul.mubr.bf16.gmra.mxu0 %v8186_v26  ;;  %7106 = vmatprep.subr.bf16.mxu1 %v7759_v42 }
 0x103   : > { %7027 = vmatmul.mubr.bf16.gmra.mxu1 %v8198_v36  ;;  %6982 = vmatprep.mubr.bf16.mxu0 %v8196_v34 }
 0x104   : > { %7030 = vmatprep.mubr.bf16.mxu1 %v8208_v44  ;;  %7059 = vmatpush3.bf16.msra.mxu0 %v7753_v41 }
 0x105   : > { %7060 = vmatprep.subr.bf16.mxu0 %v7754_v43  ;;  %7107 = vmatpush3.bf16.msra.mxu1 %v7759_v42 }
 0x106   : > { %7108 = vmatprep.subr.bf16.mxu1 %v7760_v45 }
 0x108   : > { %7061 = vmatpush3.bf16.msra.mxu0 %v7754_v43 }
 0x109   : > { %7062 = vmatprep.subr.bf16.mxu0 %v7755_v47  ;;  %7109 = vmatpush3.bf16.msra.mxu1 %v7760_v45 }
 0x10a   : > { %6983 = vmatmul.mubr.bf16.gmra.mxu0 %v8198_v36  ;;  %7110 = vmatprep.subr.bf16.mxu1 %v7762_v48 }
 0x10b   : > { %7031 = vmatmul.mubr.bf16.gmra.mxu1 %v8210_v46  ;;  %6986 = vmatprep.mubr.bf16.mxu0 %v8208_v44 }
 0x10c   : > { %7034 = vmatprep.mubr.bf16.mxu1 %v8220_v54  ;;  %7063 = vmatpush3.bf16.msra.mxu0 %v7755_v47 }
 0x10d   : > { %7064 = vmatprep.subr.bf16.mxu0 %v7758_v49  ;;  %7111 = vmatpush3.bf16.msra.mxu1 %v7762_v48  ;;  %v7774_v48 = vld [vmem:[#allocation5 + $0x200] sm:$0xff]  }
 0x10e   : > { %7112 = vmatprep.subr.bf16.mxu1 %v7763_v50 }
 0x110   : > { %7065 = vmatpush3.bf16.msra.mxu0 %v7758_v49 }
 0x111   : > { %7066 = vmatprep.subr.bf16.mxu0 %v7761_v51  ;;  %7113 = vmatpush3.bf16.msra.mxu1 %v7763_v50 }
 0x112   : > { %6987 = vmatmul.mubr.bf16.gmra.mxu0 %v8210_v46  ;;  %7114 = vmatprep.subr.bf16.mxu1 %v7765_v52 }
 0x113   : > { %7035 = vmatmul.mubr.bf16.gmra.mxu1 %v8222_v56  ;;  %6990 = vmatprep.mubr.bf16.mxu0 %v8220_v54 }
 0x114   : > { %7038 = vmatprep.mubr.bf16.mxu1 %v8232_v0  ;;  %7067 = vmatpush3.bf16.msra.mxu0 %v7761_v51 }
 0x115   : > { %7068 = vmatprep.subr.bf16.mxu0 %v7764_v53  ;;  %7115 = vmatpush3.bf16.msra.mxu1 %v7765_v52 }
 0x116   : > { %7116 = vmatprep.subr.bf16.mxu1 %v7766_v55 }
 0x118   : > { %7069 = vmatpush3.bf16.msra.mxu0 %v7764_v53 }
 0x119   : > { %7117 = vmatpush3.bf16.msra.mxu1 %v7766_v55  ;;  %7150 = vmatprep.subr.bf16.mxu0 %v7767_v57 }
 0x11a   : > { %6991 = vmatmul.mubr.bf16.gmra.mxu0 %v8222_v56 }
 0x11b   : > { %7039 = vmatmul.mubr.bf16.gmra.mxu1 %v8234_v2  ;;  %6994 = vmatprep.mubr.bf16.mxu0 %v8232_v0 }
 0x11c   : > { %7042 = vmatprep.mubr.bf16.mxu1 %v8244_v7 }
 0x122   : > { %6995 = vmatmul.mubr.bf16.gmra.mxu0 %v8234_v2 }
 0x123   : > { %7043 = vmatmul.mubr.bf16.gmra.mxu1 %v8246_v8  ;;  %6998 = vmatprep.mubr.bf16.mxu0 %v8244_v7 }
 0x124   : > { %7046 = vmatprep.mubr.bf16.mxu1 %v8256_v13 }
 0x12a   : > { %6999 = vmatmul.mubr.bf16.gmra.mxu0 %v8246_v8 }
 0x12b   : > { %7047 = vmatmul.mubr.bf16.gmra.mxu1 %v8258_v14  ;;  %7002 = vmatprep.mubr.bf16.mxu0 %v8256_v13 }
 0x12c   : > { %7050 = vmatprep.mubr.bf16.mxu1 %v8266_v19 }
 0x132   : > { %7003 = vmatmul.mubr.bf16.gmra.mxu0 %v8258_v14 }
 0x133   : > { %7051 = vmatmul.mubr.bf16.gmra.mxu1 %v8258_v14  ;;  %7070 = vmatprep.mubr.bf16.mxu0 %v8177_v15 }
 0x134   : > { %7118 = vmatprep.mubr.bf16.mxu1 %v8180_v17 }
 0x13a   : > { %v6784_v59 = vpop.f32.mrf.mxu0  ;;  %7071 = vmatmul.mubr.bf16.vlgmr.msra.gmra.mxu0 %v8180_v17 }
 0x13b   : > { %v6832_v60 = vpop.f32.mrf.mxu1  ;;  %7119 = vmatmul.mubr.bf16.vlgmr.msra.gmra.mxu1 %v8177_v15  ;;  %7151 = vmatpush3.bf16.msra.mxu0 %v7767_v57 }
 0x13c   : > { %v8338_v61 = vadd.f32 %v6832_v60, %v6784_v59  ;;  %v382_v62 = vpop.f32.mrf.mxu0  ;;  %7074 = vmatprep.mubr.bf16.mxu0 %v8186_v26  ;;  %7122 = vmatprep.mubr.bf16.mxu1 %v8180_v17 }
 0x13d   : > { %v591_v1 = vpop.f32.mrf.mxu1  ;;  %7152 = vmatprep.subr.bf16.mxu0 %v7768_v58 }
 0x13e   : > { %v8342_v3 = vadd.f32 %v591_v1, %v382_v62  ;;  %v6785_v4 = vpop.f32.mrf.mxu0 }
 0x13f   : > { %v6833_v5 = vpop.f32.mrf.mxu1  ;;  %7153 = vmatpush3.bf16.msra.mxu0 %v7768_v58 }
 0x140   : > { %v8344_v6 = vadd.f32 %v6833_v5, %v6785_v4  ;;  %v385_v9 = vpop.f32.mrf.mxu0  ;;  %7154 = vmatprep.subr.bf16.mxu0 %v7769_v63 }
 0x141   : > { %v594_v15 = vpop.f32.mrf.mxu1 }
 0x142   : > { %v8346_v11 = vadd.f32 %v594_v15, %v385_v9  ;;  %v6788_v12 = vpop.f32.mrf.mxu0  ;;  %7075 = vmatmul.mubr.bf16.gmra.mxu0 %v8196_v34 }
 0x143   : > { %v6836_v16 = vpop.f32.mrf.mxu1  ;;  %7123 = vmatmul.mubr.bf16.gmra.mxu1 %v8186_v26  ;;  %7078 = vmatprep.mubr.bf16.mxu0 %v8198_v36 }
 0x144   : > { %v8351_v18 = vadd.f32 %v6836_v16, %v6788_v12  ;;  %v398_v20 = vpop.f32.mrf.mxu0  ;;  %7126 = vmatprep.mubr.bf16.mxu1 %v8196_v34  ;;  %7155 = vmatpush3.bf16.msra.mxu0 %v7769_v63 }
 0x145   : > { %v607_v21 = vpop.f32.mrf.mxu1  ;;  %7156 = vmatprep.subr.bf16.mxu0 %v7770_v10 }
 0x146   : > { %v8354_v23 = vadd.f32 %v607_v21, %v398_v20  ;;  %v6789_v24 = vpop.f32.mrf.mxu0 }
 0x147   : > { %v6837_v25 = vpop.f32.mrf.mxu1 }
 0x148   : > { %v8356_v27 = vadd.f32 %v6837_v25, %v6789_v24  ;;  %v401_v28 = vpop.f32.mrf.mxu0  ;;  %7157 = vmatpush3.bf16.msra.mxu0 %v7770_v10 }
 0x149   : > { %v610_v29 = vpop.f32.mrf.mxu1  ;;  %7158 = vmatprep.subr.bf16.mxu0 %v7771_v22 }
 0x14a   : > { %v8358_v31 = vadd.f32 %v610_v29, %v401_v28  ;;  %v6792_v32 = vpop.f32.mrf.mxu0  ;;  %7079 = vmatmul.mubr.bf16.gmra.mxu0 %v8208_v44 }
 0x14b   : > { %v6840_v33 = vpop.f32.mrf.mxu1  ;;  %7127 = vmatmul.mubr.bf16.gmra.mxu1 %v8198_v36  ;;  %7082 = vmatprep.mubr.bf16.mxu0 %v8210_v46 }
 0x14c   : > { %v8363_v35 = vadd.f32 %v6840_v33, %v6792_v32  ;;  %v414_v37 = vpop.f32.mrf.mxu0  ;;  %7130 = vmatprep.mubr.bf16.mxu1 %v8208_v44  ;;  %7159 = vmatpush3.bf16.msra.mxu0 %v7771_v22 }
 0x14d   : > { %v623_v38 = vpop.f32.mrf.mxu1  ;;  %7160 = vmatprep.subr.bf16.mxu0 %v7772_v30 }
 0x14e   : > { %v8366_v40 = vadd.f32 %v623_v38, %v414_v37  ;;  %v6793_v41 = vpop.f32.mrf.mxu0 }
 0x14f   : > { %v6841_v42 = vpop.f32.mrf.mxu1 }
 0x150   : > { %v8368_v43 = vadd.f32 %v6841_v42, %v6793_v41  ;;  %v417_v45 = vpop.f32.mrf.mxu0  ;;  %7161 = vmatpush3.bf16.msra.mxu0 %v7772_v30 }
 0x151   : > { %v626_v47 = vpop.f32.mrf.mxu1  ;;  %7162 = vmatprep.subr.bf16.mxu0 %v7773_v39 }
 0x152   : > { %v8370_v49 = vadd.f32 %v626_v47, %v417_v45  ;;  %v6796_v50 = vpop.f32.mrf.mxu0  ;;  %7083 = vmatmul.mubr.bf16.gmra.mxu0 %v8220_v54 }
 0x153   : > { %v6844_v51 = vpop.f32.mrf.mxu1  ;;  %7131 = vmatmul.mubr.bf16.gmra.mxu1 %v8210_v46  ;;  %7086 = vmatprep.mubr.bf16.mxu0 %v8222_v56 }
 0x154   : > { %v8375_v52 = vadd.f32 %v6844_v51, %v6796_v50  ;;  %v430_v53 = vpop.f32.mrf.mxu0  ;;  %7134 = vmatprep.mubr.bf16.mxu1 %v8220_v54  ;;  %7163 = vmatpush3.bf16.msra.mxu0 %v7773_v39 }
 0x155   : > { %v639_v55 = vpop.f32.mrf.mxu1  ;;  %7164 = vmatprep.subr.bf16.mxu0 %v7774_v48 }
 0x156   : > { %v8378_v57 = vadd.f32 %v639_v55, %v430_v53  ;;  %v6797_v58 = vpop.f32.mrf.mxu0 }
 0x157   : > { %v6845_v59 = vpop.f32.mrf.mxu1 }
 0x158   : > { %v8380_v60 = vadd.f32 %v6845_v59, %v6797_v58  ;;  %v433_v62 = vpop.f32.mrf.mxu0  ;;  %7165 = vmatpush3.bf16.msra.mxu0 %v7774_v48 }
 0x159   : > { %v642_v63 = vpop.f32.mrf.mxu1 }
 0x15a   : > { %v8382_v1 = vadd.f32 %v642_v63, %v433_v62  ;;  %v6800_v4 = vpop.f32.mrf.mxu0  ;;  %7087 = vmatmul.mubr.bf16.gmra.mxu0 %v8232_v0 }
 0x15b   : > { %v6848_v5 = vpop.f32.mrf.mxu1  ;;  %7135 = vmatmul.mubr.bf16.gmra.mxu1 %v8222_v56  ;;  %7090 = vmatprep.mubr.bf16.mxu0 %v8234_v2 }
 0x15c   : > { %v8387_v9 = vadd.f32 %v6848_v5, %v6800_v4  ;;  %v446_v15 = vpop.f32.mrf.mxu0  ;;  %7138 = vmatprep.mubr.bf16.mxu1 %v8232_v0 }
 0x15d   : > { %v655_v10 = vpop.f32.mrf.mxu1 }
 0x15e   : > { %v8390_v12 = vadd.f32 %v655_v10, %v446_v15  ;;  %v6801_v16 = vpop.f32.mrf.mxu0 }
 0x15f   : > { %v6849_v20 = vpop.f32.mrf.mxu1 }
 0x160   : > { %v8392_v21 = vadd.f32 %v6849_v20, %v6801_v16  ;;  %v8394_v22 = vpop.f32.mrf.mxu0 }
 0x161   : > { %v8396_v24 = vpop.f32.mrf.mxu1 }
 0x162   : > { %v6804_v25 = vpop.f32.mrf.mxu0  ;;  %7091 = vmatmul.mubr.bf16.gmra.mxu0 %v8244_v7 }
 0x163   : > { %v6852_v28 = vpop.f32.mrf.mxu1  ;;  %7139 = vmatmul.mubr.bf16.gmra.mxu1 %v8234_v2  ;;  %7094 = vmatprep.mubr.bf16.mxu0 %v8246_v8 }
 0x164   : > { %v8401_v29 = vadd.f32 %v6852_v28, %v6804_v25  ;;  %v462_v30 = vpop.f32.mrf.mxu0  ;;  %7142 = vmatprep.mubr.bf16.mxu1 %v8244_v7 }
 0x165   : > { %v671_v32 = vpop.f32.mrf.mxu1 }
 0x166   : > { %v8404_v33 = vadd.f32 %v671_v32, %v462_v30  ;;  %v6805_v37 = vpop.f32.mrf.mxu0 }
 0x167   : > { %v6853_v38 = vpop.f32.mrf.mxu1 }
 0x168   : > { %v8406_v39 = vadd.f32 %v6853_v38, %v6805_v37  ;;  %v8408_v41 = vpop.f32.mrf.mxu0 }
 0x169   : > { %v8410_v42 = vpop.f32.mrf.mxu1 }
 0x16a   : > { %v6808_v45 = vpop.f32.mrf.mxu0  ;;  %7095 = vmatmul.mubr.bf16.gmra.mxu0 %v8256_v13 }
 0x16b   : > { %v6856_v47 = vpop.f32.mrf.mxu1  ;;  %7143 = vmatmul.mubr.bf16.gmra.mxu1 %v8246_v8  ;;  %7098 = vmatprep.mubr.bf16.mxu0 %v8258_v14 }
 0x16c   : > { %v8415_v48 = vadd.f32 %v6856_v47, %v6808_v45  ;;  %v478_v50 = vpop.f32.mrf.mxu0  ;;  %7146 = vmatprep.mubr.bf16.mxu1 %v8256_v13 }
 0x16d   : > { %v687_v51 = vpop.f32.mrf.mxu1 }
 0x16e   : > { %v8418_v53 = vadd.f32 %v687_v51, %v478_v50  ;;  %v6809_v55 = vpop.f32.mrf.mxu0 }
 0x16f   : > { %v6857_v58 = vpop.f32.mrf.mxu1 }
 0x170   : > { %v8420_v59 = vadd.f32 %v6857_v58, %v6809_v55  ;;  %v8422_v62 = vpop.f32.mrf.mxu0 }
 0x171   : > { %v8424_v63 = vpop.f32.mrf.mxu1 }
 0x172   : > { %v6812_v4 = vpop.f32.mrf.mxu0  ;;  %7099 = vmatmul.mubr.bf16.gmra.mxu0 %v8266_v19 }
 0x173   : > { %v6860_v5 = vpop.f32.mrf.mxu1  ;;  %7147 = vmatmul.mubr.bf16.gmra.mxu1 %v8258_v14  ;;  %7166 = vmatprep.mubr.bf16.mxu0 %v8180_v17 }
 0x174   : > { %v8429_v15 = vadd.f32 %v6860_v5, %v6812_v4  ;;  %v494_v10 = vpop.f32.mrf.mxu0 }
 0x175   : > { %v703_v16 = vpop.f32.mrf.mxu1 }
 0x176   : > { %v8431_v20 = vadd.f32 %v703_v16, %v494_v10  ;;  %v6813_v25 = vpop.f32.mrf.mxu0 }
 0x177   : > { %v6861_v28 = vpop.f32.mrf.mxu1 }
 0x178   : > { %v8433_v30 = vadd.f32 %v6861_v28, %v6813_v25  ;;  %v8435_v32 = vpop.f32.mrf.mxu0 }
 0x179   : > { %v8437_v37 = vpop.f32.mrf.mxu1 }
 0x17a   : > { %v6880_v38 = vpop.f32.mrf.mxu0  ;;  %7167 = vmatmul.mubr.bf16.vlgmr.msra.gmra.mxu0 %v8186_v26 }
 0x17b   : > { %v8441_v45 = vadd.f32 %v6880_v38, %v8338_v61  ;;  %v8443_v17 = vpop.f32.mrf.mxu1  ;;  %7170 = vmatprep.mubr.bf16.mxu0 %v8196_v34 }
 0x17c   : > { %v817_v47 = vpop.f32.mrf.mxu0 }
 0x17d   : > { %v8447_v50 = vadd.f32 %v817_v47, %v8342_v3  ;;  %v8449_v51 = vpop.f32.mrf.mxu1  ;;  %v10901_v26 = vrot.slane %v8441_v45, 7 }
 0x17e   : > { %v6881_v55 = vpop.f32.mrf.mxu0 }
 0x17f   : > { %v947_v58 = vadd.f32 %v6881_v55, %v8344_v6  ;;  %v8452_v4 = vpop.f32.mrf.mxu1  ;;  %v10902_v3 = vrot.slane %v8447_v50, 7 }
 0x180   : > { %v820_v5 = vpop.f32.mrf.mxu0 }
 0x181   : > { %v2436_v61 = vrot.slane %v947_v58, 7  ;;  %v945_v10 = vadd.f32 %v820_v5, %v8346_v11  ;;  %v8456_v16 = vpop.f32.mrf.mxu1 }
 0x182   : > { %10952 = vst [vmem:[#allocation12_spill] sm:$0xff] %v8456_v16  ;;  %v6884_v34 = vpop.f32.mrf.mxu0  ;;  %7171 = vmatmul.mubr.bf16.gmra.mxu0 %v8198_v36 }
 0x183   : > { %v2433_v25 = vrot.slane %v945_v10, 7  ;;  %v8461_v28 = vadd.f32 %v6884_v34, %v8351_v18  ;;  %v8463_v6 = vpop.f32.mrf.mxu1  ;;  %7174 = vmatprep.mubr.bf16.mxu0 %v8208_v44  ;;  %v8469_v11 = vsel %vm2431_vm0, %v10901_v26, %v2436_v61 }
 0x184   : > { %v833_v38 = vpop.f32.mrf.mxu0 }
 0x185   : > { %v8472_v47 = vadd.f32 %v833_v38, %v8354_v23  ;;  %v8474_v36 = vpop.f32.mrf.mxu1  ;;  %v8479_v18 = vsel %vm2431_vm0, %v10902_v3, %v2433_v25  ;;  %v10903_v61 = vrot.slane %v8461_v28, 7 }
 0x186   : > { %10953 = vst [vmem:[#allocation13_spill] sm:$0xff] %v8479_v18  ;;  %v6885_v55 = vpop.f32.mrf.mxu0 }
 0x187   : > { %v951_v58 = vadd.f32 %v6885_v55, %v8356_v27  ;;  %v8482_v44 = vpop.f32.mrf.mxu1  ;;  %v10904_v26 = vrot.slane %v8472_v47, 7 }
 0x188   : > { %v836_v5 = vpop.f32.mrf.mxu0 }
 0x189   : > { %v2442_v10 = vrot.slane %v951_v58, 7  ;;  %v949_v34 = vadd.f32 %v836_v5, %v8358_v31  ;;  %v8486_v23 = vpop.f32.mrf.mxu1 }
 0x18a   : > { %10954 = vst [vmem:[#allocation14_spill] sm:$0xff] %v8486_v23  ;;  %v6888_v38 = vpop.f32.mrf.mxu0  ;;  %7175 = vmatmul.mubr.bf16.gmra.mxu0 %v8210_v46 }
 0x18b   : > { %v2439_v25 = vrot.slane %v949_v34, 7  ;;  %v8491_v3 = vadd.f32 %v6888_v38, %v8363_v35  ;;  %v8493_v27 = vpop.f32.mrf.mxu1  ;;  %7178 = vmatprep.mubr.bf16.mxu0 %v8220_v54  ;;  %v8499_v55 = vsel %vm2431_vm0, %v10903_v61, %v2442_v10 }
 0x18c   : > { %v849_v31 = vpop.f32.mrf.mxu0 }
 0x18d   : > { %v8502_v58 = vadd.f32 %v849_v31, %v8366_v40  ;;  %v8504_v46 = vpop.f32.mrf.mxu1  ;;  %v8509_v35 = vsel %vm2431_vm0, %v10904_v26, %v2439_v25  ;;  %v10905_v10 = vrot.slane %v8491_v3, 7 }
 0x18e   : > { %10955 = vst [vmem:[#allocation15_spill] sm:$0xff] %v8509_v35  ;;  %v6889_v5 = vpop.f32.mrf.mxu0 }
 0x18f   : > { %v955_v34 = vadd.f32 %v6889_v5, %v8368_v43  ;;  %v8512_v54 = vpop.f32.mrf.mxu1  ;;  %v10906_v23 = vrot.slane %v8502_v58, 7 }
 0x190   : > { %v852_v38 = vpop.f32.mrf.mxu0 }
 0x191   : > { %v2448_v61 = vrot.slane %v955_v34, 7  ;;  %v953_v18 = vadd.f32 %v852_v38, %v8370_v49  ;;  %v8516_v40 = vpop.f32.mrf.mxu1 }
 0x192   : > { %10956 = vst [vmem:[#allocation16_spill] sm:$0xff] %v8516_v40  ;;  %v6892_v31 = vpop.f32.mrf.mxu0  ;;  %7179 = vmatmul.mubr.bf16.gmra.mxu0 %v8222_v56 }
 0x193   : > { %v2445_v25 = vrot.slane %v953_v18, 7  ;;  %v8521_v26 = vadd.f32 %v6892_v31, %v8375_v52  ;;  %v8523_v43 = vpop.f32.mrf.mxu1  ;;  %7182 = vmatprep.mubr.bf16.mxu0 %v8232_v0  ;;  %v8529_v5 = vsel %vm2431_vm0, %v10905_v10, %v2448_v61 }
 0x194   : > { %v865_v49 = vpop.f32.mrf.mxu0 }
 0x195   : > { %v8532_v34 = vadd.f32 %v865_v49, %v8378_v57  ;;  %v8534_v56 = vpop.f32.mrf.mxu1  ;;  %v8539_v52 = vsel %vm2431_vm0, %v10906_v23, %v2445_v25  ;;  %v10907_v61 = vrot.slane %v8521_v26, 7 }
 0x196   : > { %10957 = vst [vmem:[#allocation17_spill] sm:$0xff] %v8539_v52  ;;  %v6893_v18 = vpop.f32.mrf.mxu0 }
 0x197   : > { %v959_v38 = vadd.f32 %v6893_v18, %v8380_v60  ;;  %v8542_v0 = vpop.f32.mrf.mxu1  ;;  %v10908_v40 = vrot.slane %v8532_v34, 7 }
 0x198   : > { %v868_v31 = vpop.f32.mrf.mxu0 }
 0x199   : > { %v2454_v10 = vrot.slane %v959_v38, 7  ;;  %v957_v35 = vadd.f32 %v868_v31, %v8382_v1  ;;  %v8546_v57 = vpop.f32.mrf.mxu1 }
 0x19a   : > { %10958 = vst [vmem:[#allocation18_spill] sm:$0xff] %v8546_v57  ;;  %v6896_v49 = vpop.f32.mrf.mxu0  ;;  %7183 = vmatmul.mubr.bf16.gmra.mxu0 %v8234_v2 }
 0x19b   : > { %v2451_v25 = vrot.slane %v957_v35, 7  ;;  %v8551_v23 = vadd.f32 %v6896_v49, %v8387_v9  ;;  %v8553_v60 = vpop.f32.mrf.mxu1  ;;  %7186 = vmatprep.mubr.bf16.mxu0 %v8244_v7  ;;  %v8559_v18 = vsel %vm2431_vm0, %v10907_v61, %v2454_v10  ;;  %v659_v7 = vadd.f32 %v8396_v24, %v8394_v22 }
 0x19c   : > { %v881_v1 = vpop.f32.mrf.mxu0 }
 0x19d   : > { %v8562_v38 = vadd.f32 %v881_v1, %v8390_v12  ;;  %v8564_v2 = vpop.f32.mrf.mxu1  ;;  %v8569_v9 = vsel %vm2431_vm0, %v10908_v40, %v2451_v25  ;;  %v10909_v61 = vrot.slane %v8551_v23, 7 }
 0x19e   : > { %10959 = vst [vmem:[#allocation19_spill] sm:$0xff] %v8569_v9  ;;  %v6897_v35 = vpop.f32.mrf.mxu0 }
 0x19f   : > { %v963_v31 = vadd.f32 %v6897_v35, %v8392_v21  ;;  %v8574_v49 = vpop.f32.mrf.mxu1  ;;  %v10910_v25 = vrot.slane %v8562_v38, 7 }
 0x1a0   : > { %v884_v10 = vpop.f32.mrf.mxu0 }
 0x1a1   : > { %v2460_v12 = vrot.slane %v963_v31, 7  ;;  %v961_v1 = vadd.f32 %v884_v10, %v659_v7  ;;  %v8577_v52 = vpop.f32.mrf.mxu1 }
 0x1a2   : > { %10960 = vst [vmem:[#allocation20_spill] sm:$0xff] %v8577_v52  ;;  %v6900_v57 = vpop.f32.mrf.mxu0  ;;  %7187 = vmatmul.mubr.bf16.gmra.mxu0 %v8246_v8 }
 0x1a3   : > { %v2457_v40 = vrot.slane %v961_v1, 7  ;;  %v8582_v9 = vadd.f32 %v6900_v57, %v8401_v29  ;;  %v8584_v22 = vpop.f32.mrf.mxu1  ;;  %7190 = vmatprep.mubr.bf16.mxu0 %v8256_v13  ;;  %v8590_v21 = vsel %vm2431_vm0, %v10909_v61, %v2460_v12  ;;  %v675_v13 = vadd.f32 %v8410_v42, %v8408_v41 }
 0x1a4   : > { %v897_v24 = vpop.f32.mrf.mxu0 }
 0x1a5   : > { %v8593_v35 = vadd.f32 %v897_v24, %v8404_v33  ;;  %v8595_v8 = vpop.f32.mrf.mxu1  ;;  %v8600_v29 = vsel %vm2431_vm0, %v10910_v25, %v2457_v40  ;;  %v10911_v12 = vrot.slane %v8582_v9, 7 }
 0x1a6   : > { %10961 = vst [vmem:[#allocation21_spill] sm:$0xff] %v8600_v29  ;;  %v6901_v57 = vpop.f32.mrf.mxu0 }
 0x1a7   : > { %v967_v7 = vadd.f32 %v6901_v57, %v8406_v39  ;;  %v8605_v31 = vpop.f32.mrf.mxu1  ;;  %v10912_v40 = vrot.slane %v8593_v35, 7 }
 0x1a8   : > { %v900_v10 = vpop.f32.mrf.mxu0 }
 0x1a9   : > { %v2466_v33 = vrot.slane %v967_v7, 7  ;;  %v965_v1 = vadd.f32 %v900_v10, %v675_v13  ;;  %v8608_v24 = vpop.f32.mrf.mxu1 }
 0x1aa   : > { %10962 = vst [vmem:[#allocation22_spill] sm:$0xff] %v8608_v24  ;;  %v6904_v61 = vpop.f32.mrf.mxu0  ;;  %7191 = vmatmul.mubr.bf16.gmra.mxu0 %v8258_v14 }
 0x1ab   : > { %v2463_v25 = vrot.slane %v965_v1, 7  ;;  %v8613_v29 = vadd.f32 %v6904_v61, %v8415_v48  ;;  %v8615_v41 = vpop.f32.mrf.mxu1  ;;  %7194 = vmatprep.mubr.bf16.mxu0 %v8266_v19  ;;  %v8621_v39 = vsel %vm2431_vm0, %v10911_v12, %v2466_v33  ;;  %v2396_v61 = vlaneseq }
 0x1ac   : > { %v913_v42 = vpop.f32.mrf.mxu0  ;;  %v691_v19 = vadd.f32 %v8424_v63, %v8422_v62 }
 0x1ad   : > { %v8624_v57 = vadd.f32 %v913_v42, %v8418_v53  ;;  %v8626_v13 = vpop.f32.mrf.mxu1  ;;  %v8631_v48 = vsel %vm2431_vm0, %v10912_v40, %v2463_v25  ;;  %v10913_v53 = vrot.slane %v8613_v29, 7  ;;  %v8641_v52 = vshrl.u32 %v2396_v61, 7 }
 0x1ae   : > { %10963 = vst [vmem:[#allocation23_spill] sm:$0xff] %v8631_v48  ;;  %v6905_v7 = vpop.f32.mrf.mxu0 }
 0x1af   : > { %v971_v10 = vadd.f32 %v6905_v7, %v8420_v59  ;;  %v8636_v33 = vpop.f32.mrf.mxu1  ;;  %v10914_v40 = vrot.slane %v8624_v57, 7  ;;  %vm2528_vm1 = vcmp.eq.s32.totalorder %v8641_v52, 0 }
 0x1b0   : > { %v916_v1 = vpop.f32.mrf.mxu0 }
 0x1b1   : > { %v2472_v42 = vrot.slane %v971_v10, 7  ;;  %v969_v12 = vadd.f32 %v916_v1, %v691_v19  ;;  %v8639_v24 = vpop.f32.mrf.mxu1  ;;  %v707_v10 = vadd.f32 %v8437_v37, %v8435_v32 }
 0x1b2   : > { %10964 = vst [vmem:[#allocation24_spill] sm:$0xff] %v8639_v24  ;;  %v6908_v25 = vpop.f32.mrf.mxu0  ;;  %7195 = vmatmul.mubr.bf16.gmra.mxu0 %v8258_v14 }
 0x1b3   : > { %v2469_v48 = vrot.slane %v969_v12, 7  ;;  %v8646_v62 = vadd.f32 %v6908_v25, %v8429_v15  ;;  %v8648_v59 = vpop.f32.mrf.mxu1  ;;  %v8653_v63 = vsel %vm2431_vm0, %v10913_v53, %v2472_v42  ;;  %v8666_v15 = vsub.s32 1, %v8641_v52 }
 0x1b4   : > { %10965 = vst [vmem:[#allocation25_spill] sm:$0xff] %v8648_v59  ;;  %v929_v7 = vpop.f32.mrf.mxu0 }
 0x1b5   : > { %v8656_v61 = vadd.f32 %v929_v7, %v8431_v20  ;;  %v8658_v19 = vpop.f32.mrf.mxu1  ;;  %v8663_v14 = vsel %vm2431_vm0, %v10914_v40, %v2469_v48  ;;  %10968 = vst [vmem:[#allocation28_spill] sm:$0xff] %v8666_v15  ;;  %v10915_v25 = vrot.slane %v8646_v62, 7  ;;  %v10971_v48 = vrot.slane %v8441_v45, 7 }
 0x1b6   : > { %10966 = vst [vmem:[#allocation26_spill] sm:$0xff] %v8658_v19  ;;  %10967 = vst [vmem:[#allocation27_spill] sm:$0xff] %v8663_v14  ;;  %v6909_v12 = vpop.f32.mrf.mxu0  ;;  %v2541_v14 = vrot.slane %v8441_v45, %v8666_v15 }
 0x1b7   : > { %v975_v1 = vadd.f32 %v6909_v12, %v8433_v30  ;;  %v8671_v42 = vpop.f32.mrf.mxu1  ;;  %v2513_v40 = vsel %vm2431_vm0, %v8441_v45, %v10971_v48  ;;  %v10973_v45 = vrot.slane %v8447_v50, 7 }
 0x1b8   : > { %10969 = vst [vmem:[#allocation29_spill] sm:$0xff] %v8671_v42  ;;  %v932_v20 = vpop.f32.mrf.mxu0 }
 0x1b9   : > { %v2478_v7 = vrot.slane %v975_v1, 7  ;;  %v973_v53 = vadd.f32 %v932_v20, %v707_v10  ;;  %v8674_v24 = vpop.f32.mrf.mxu1  ;;  %v2537_v20 = vrot.slane %v8447_v50, %v8666_v15 }
 0x1ba   : > { %10970 = vst [vmem:[#allocation30_spill] sm:$0xff] %v8674_v24  ;;  %v6976_v32 = vpop.f32.mrf.mxu0  ;;  %v2512_v24 = vsel %vm2431_vm0, %v8447_v50, %v10973_v45 }
 0x1bb   : > { %v2475_v37 = vrot.slane %v973_v53, 7  ;;  %v1310_v12 = vadd.f32 %v6976_v32, %v8443_v17  ;;  %v7024_v1 = vpop.f32.mrf.mxu1  ;;  %v8688_v10 = vsel %vm2431_vm0, %v10915_v25, %v2478_v7  ;;  %v10974_v17 = vrot.slane %v8656_v61, 7 }
 0x1bc   : > { %10972 = vst [vmem:[#allocation31_spill] sm:$0xff] %v8688_v10  ;;  %v1301_v48 = vpop.f32.mrf.mxu0  ;;  %v2600_v7 = vsel %vm2528_vm1, %v2541_v14, %v2513_v40  ;;  %v2598_v50 = vsel %vm2528_vm1, %v2537_v20, %v2512_v24  ;;  %v2549_v40 = vrot.slane %v8461_v28, %v8666_v15 }
 0x1bd   : > { %v1656_v16 = vadd.f32 %v7024_v1, %v1310_v12  ;;  %v1302_v53 = vadd.f32 %v1301_v48, %v8449_v51  ;;  %v1527_v30 = vpop.f32.mrf.mxu1  ;;  %v8700_v32 = vsel %vm2431_vm0, %v10974_v17, %v2475_v37 }
 0x1be   : > { %10975 = vst [vmem:[#allocation32_spill] sm:$0xff] %v8700_v32  ;;  %v6977_v25 = vpop.f32.mrf.mxu0 }
 0x1bf   : > { %v8704_v10 = vadd.f32 %v2600_v7, %v1656_v16  ;;  %v1654_v42 = vadd.f32 %v1527_v30, %v1302_v53  ;;  %v1313_v19 = vadd.f32 %v6977_v25, %v8452_v4  ;;  %v7025_v59 = vpop.f32.mrf.mxu1  ;;  %v10977_v16 = vrot.slane %v8461_v28, 7 }
 0x1c0   : > { %v8709_v51 = vpop.f32.mrf.mxu0 }
 0x1c1   : > { %v8711_v12 = vadd.f32 %v2598_v50, %v1654_v42  ;;  %v1657_v1 = vadd.f32 %v7025_v59, %v1313_v19  ;;  %v8713_v37 = vpop.f32.mrf.mxu1  ;;  %v2515_v4 = vsel %vm2431_vm0, %v8461_v28, %v10977_v16  ;;  %v2545_v59 = vrot.slane %v8472_v47, %v8666_v15 }
 0x1c2   : > { %v6980_v14 = vpop.f32.mrf.mxu0  ;;  %v10979_v42 = vrot.slane %v8472_v47, 7  ;;  %v2604_v28 = vsel %vm2528_vm1, %v2549_v40, %v2515_v4  ;;  %v2557_v40 = vrot.slane %v8491_v3, %v8666_v15 }
 0x1c3   : > { %10976 = vst [vmem:[#allocation33_spill] sm:$0xff] %v8711_v12  ;;  %v8722_v25 = vadd.f32 %v8469_v11, %v1657_v1  ;;  %v1326_v24 = vadd.f32 %v6980_v14, %v8463_v6  ;;  %v7028_v30 = vpop.f32.mrf.mxu1 }
 0x1c4   : > { %v1317_v19 = vpop.f32.mrf.mxu0  ;;  %v2514_v20 = vsel %vm2431_vm0, %v8472_v47, %v10979_v42  ;;  %v2553_v42 = vrot.slane %v8502_v58, %v8666_v15 }
 0x1c5   : > { %10978 = vst [vmem:[#allocation34_spill] sm:$0xff] %v8722_v25  ;;  %v1660_v48 = vadd.f32 %v7028_v30, %v1326_v24  ;;  %v1318_v45 = vadd.f32 %v1317_v19, %v8474_v36  ;;  %v1543_v53 = vpop.f32.mrf.mxu1  ;;  %v2602_v1 = vsel %vm2528_vm1, %v2545_v59, %v2514_v20  ;;  %v10982_v24 = vrot.slane %v8491_v3, 7  ;;  %v11037_v25 = vld [vmem:[#allocation20_spill] sm:$0xff] }
 0x1c6   : > { %v6981_v11 = vpop.f32.mrf.mxu0 }
 0x1c7   : > { %v8734_v17 = vadd.f32 %v2604_v28, %v1660_v48  ;;  %v1658_v6 = vadd.f32 %v1543_v53, %v1318_v45  ;;  %v1329_v7 = vadd.f32 %v6981_v11, %v8482_v44  ;;  %v7029_v50 = vpop.f32.mrf.mxu1  ;;  %v2517_v44 = vsel %vm2431_vm0, %v8491_v3, %v10982_v24 }
 0x1c8   : > { %v8739_v14 = vpop.f32.mrf.mxu0  ;;  %v10984_v48 = vrot.slane %v8502_v58, 7  ;;  %v2608_v3 = vsel %vm2528_vm1, %v2557_v40, %v2517_v44  ;;  %v2565_v40 = vrot.slane %v8521_v26, %v8666_v15  ;;  %v10987_v44 = vrot.slane %v8521_v26, 7 }
 0x1c9   : > { %10980 = vst [vmem:[#allocation35_spill] sm:$0xff] %v8734_v17  ;;  %v8741_v47 = vadd.f32 %v2602_v1, %v1658_v6  ;;  %v1661_v16 = vadd.f32 %v7029_v50, %v1329_v7  ;;  %v8743_v36 = vpop.f32.mrf.mxu1 }
 0x1ca   : > { %v6984_v4 = vpop.f32.mrf.mxu0  ;;  %v2516_v45 = vsel %vm2431_vm0, %v8502_v58, %v10984_v48 }
 0x1cb   : > { %10981 = vst [vmem:[#allocation36_spill] sm:$0xff] %v8741_v47  ;;  %v8752_v30 = vadd.f32 %v8499_v55, %v1661_v16  ;;  %v1342_v59 = vadd.f32 %v6984_v4, %v8493_v27  ;;  %v7032_v19 = vpop.f32.mrf.mxu1  ;;  %v2606_v1 = vsel %vm2528_vm1, %v2553_v42, %v2516_v45  ;;  %v10989_v45 = vrot.slane %v8532_v34, 7 }
 0x1cc   : > { %v1333_v20 = vpop.f32.mrf.mxu0 }
 0x1cd   : > { %10983 = vst [vmem:[#allocation37_spill] sm:$0xff] %v8752_v30  ;;  %v1664_v53 = vadd.f32 %v7032_v19, %v1342_v59  ;;  %v1334_v28 = vadd.f32 %v1333_v20, %v8504_v46  ;;  %v1559_v11 = vpop.f32.mrf.mxu1  ;;  %v2561_v20 = vrot.slane %v8532_v34, %v8666_v15 }
 0x1ce   : > { %v6985_v55 = vpop.f32.mrf.mxu0 }
 0x1cf   : > { %v8764_v6 = vadd.f32 %v2608_v3, %v1664_v53  ;;  %v1662_v27 = vadd.f32 %v1559_v11, %v1334_v28  ;;  %v1345_v7 = vadd.f32 %v6985_v55, %v8512_v54  ;;  %v7033_v50 = vpop.f32.mrf.mxu1  ;;  %v2519_v54 = vsel %vm2431_vm0, %v8521_v26, %v10987_v44 }
 0x1d0   : > { %v8769_v16 = vpop.f32.mrf.mxu0  ;;  %v2518_v53 = vsel %vm2431_vm0, %v8532_v34, %v10989_v45  ;;  %v2612_v26 = vsel %vm2528_vm1, %v2565_v40, %v2519_v54  ;;  %v2573_v40 = vrot.slane %v8551_v23, %v8666_v15  ;;  %v10992_v44 = vrot.slane %v8551_v23, 7 }
 0x1d1   : > { %10985 = vst [vmem:[#allocation38_spill] sm:$0xff] %v8764_v6  ;;  %v8771_v58 = vadd.f32 %v2606_v1, %v1662_v27  ;;  %v1665_v4 = vadd.f32 %v7033_v50, %v1345_v7  ;;  %v8773_v46 = vpop.f32.mrf.mxu1  ;;  %v2610_v50 = vsel %vm2528_vm1, %v2561_v20, %v2518_v53  ;;  %v2569_v20 = vrot.slane %v8562_v38, %v8666_v15  ;;  %v7781_v6 = vld [vmem:[#allocation7 + $0x30] sm:$0xff]  }
 0x1d2   : > { %v6988_v24 = vpop.f32.mrf.mxu0  ;;  %v10994_v45 = vrot.slane %v8562_v38, 7 }
 0x1d3   : > { %10986 = vst [vmem:[#allocation39_spill] sm:$0xff] %v8771_v58  ;;  %v8782_v59 = vadd.f32 %v8529_v5, %v1665_v4  ;;  %v1358_v19 = vadd.f32 %v6988_v24, %v8523_v43  ;;  %v7036_v42 = vpop.f32.mrf.mxu1 }
 0x1d4   : > { %v1349_v48 = vpop.f32.mrf.mxu0  ;;  %v2520_v53 = vsel %vm2431_vm0, %v8562_v38, %v10994_v45 }
 0x1d5   : > { %10988 = vst [vmem:[#allocation40_spill] sm:$0xff] %v8782_v59  ;;  %v1668_v28 = vadd.f32 %v7036_v42, %v1358_v19  ;;  %v1350_v11 = vadd.f32 %v1349_v48, %v8534_v56  ;;  %v1575_v3 = vpop.f32.mrf.mxu1  ;;  %v7776_v59 = vld [vmem:[#allocation7 + $0xf0] sm:$0xff]  }
 0x1d6   : > { %v6989_v5 = vpop.f32.mrf.mxu0 }
 0x1d7   : > { %v8794_v55 = vadd.f32 %v2612_v26, %v1668_v28  ;;  %v1666_v43 = vadd.f32 %v1575_v3, %v1350_v11  ;;  %v1361_v27 = vadd.f32 %v6989_v5, %v8542_v0  ;;  %v7037_v7 = vpop.f32.mrf.mxu1  ;;  %v2521_v0 = vsel %vm2431_vm0, %v8551_v23, %v10992_v44 }
 0x1d8   : > { %v8799_v1 = vpop.f32.mrf.mxu0  ;;  %v2616_v23 = vsel %vm2528_vm1, %v2573_v40, %v2521_v0 }
 0x1d9   : > { %10990 = vst [vmem:[#allocation41_spill] sm:$0xff] %v8794_v55  ;;  %v8801_v34 = vadd.f32 %v2610_v50, %v1666_v43  ;;  %v1669_v4 = vadd.f32 %v7037_v7, %v1361_v27  ;;  %v8803_v56 = vpop.f32.mrf.mxu1  ;;  %v2614_v27 = vsel %vm2528_vm1, %v2569_v20, %v2520_v53 }
 0x1da   : > { %v6992_v24 = vpop.f32.mrf.mxu0 }
 0x1db   : > { %10991 = vst [vmem:[#allocation42_spill] sm:$0xff] %v8801_v34  ;;  %v8812_v54 = vadd.f32 %v8559_v18, %v1669_v4  ;;  %v1374_v19 = vadd.f32 %v6992_v24, %v8553_v60  ;;  %v7040_v42 = vpop.f32.mrf.mxu1  ;;  %v2581_v4 = vrot.slane %v8582_v9, %v8666_v15  ;;  %v10997_v24 = vrot.slane %v8582_v9, 7  ;;  %v7780_v34 = vld [vmem:[#allocation7 + $0x38] sm:$0xff]  }
 0x1dc   : > { %v1365_v48 = vpop.f32.mrf.mxu0  ;;  %7246 = vmatprep.subr.bf16.mxu0 %v7780_v34 }
 0x1dd   : > { %10993 = vst [vmem:[#allocation43_spill] sm:$0xff] %v8812_v54  ;;  %v1672_v28 = vadd.f32 %v7040_v42, %v1374_v19  ;;  %v1366_v11 = vadd.f32 %v1365_v48, %v8564_v2  ;;  %v1591_v3 = vpop.f32.mrf.mxu1  ;;  %v2577_v42 = vrot.slane %v8593_v35, %v8666_v15  ;;  %v10999_v48 = vrot.slane %v8593_v35, 7  ;;  %7247 = vmatpush3.bf16.msra.mxu0 %v7780_v34 }
 0x1de   : > { %v6993_v18 = vpop.f32.mrf.mxu0  ;;  %7248 = vmatprep.subr.bf16.mxu0 %v7781_v6 }
 0x1df   : > { %v8824_v26 = vadd.f32 %v2616_v23, %v1672_v28  ;;  %v1670_v60 = vadd.f32 %v1591_v3, %v1366_v11  ;;  %v1377_v5 = vadd.f32 %v6993_v18, %v8574_v49  ;;  %v7041_v43 = vpop.f32.mrf.mxu1  ;;  %v2523_v49 = vsel %vm2431_vm0, %v8582_v9, %v10997_v24 }
 0x1e0   : > { %v8829_v7 = vpop.f32.mrf.mxu0  ;;  %v2522_v45 = vsel %vm2431_vm0, %v8593_v35, %v10999_v48  ;;  %v2620_v9 = vsel %vm2528_vm1, %v2581_v4, %v2523_v49  ;;  %v11002_v4 = vrot.slane %v8613_v29, 7 }
 0x1e1   : > { %10995 = vst [vmem:[#allocation44_spill] sm:$0xff] %v8824_v26  ;;  %v8831_v38 = vadd.f32 %v2614_v27, %v1670_v60  ;;  %v1673_v50 = vadd.f32 %v7041_v43, %v1377_v5  ;;  %v8833_v2 = vpop.f32.mrf.mxu1  ;;  %v2618_v60 = vsel %vm2528_vm1, %v2577_v42, %v2522_v45  ;;  %v2589_v27 = vrot.slane %v8613_v29, %v8666_v15 }
 0x1e2   : > { %v6996_v40 = vpop.f32.mrf.mxu0  ;;  %v11004_v42 = vrot.slane %v8624_v57, 7  ;;  %7249 = vmatpush3.bf16.msra.mxu0 %v7781_v6 }
 0x1e3   : > { %10996 = vst [vmem:[#allocation45_spill] sm:$0xff] %v8831_v38  ;;  %v8842_v44 = vadd.f32 %v8590_v21, %v1673_v50  ;;  %v1390_v0 = vadd.f32 %v6996_v40, %v8584_v22  ;;  %v7044_v19 = vpop.f32.mrf.mxu1 }
 0x1e4   : > { %v1381_v20 = vpop.f32.mrf.mxu0 }
 0x1e5   : > { %10998 = vst [vmem:[#allocation46_spill] sm:$0xff] %v8842_v44  ;;  %v1676_v53 = vadd.f32 %v7044_v19, %v1390_v0  ;;  %v1382_v28 = vadd.f32 %v1381_v20, %v8595_v8  ;;  %v1607_v11 = vpop.f32.mrf.mxu1  ;;  %v2585_v0 = vrot.slane %v8624_v57, %v8666_v15  ;;  %v2524_v20 = vsel %vm2431_vm0, %v8624_v57, %v11004_v42 }
 0x1e6   : > { %v6997_v21 = vpop.f32.mrf.mxu0 }
 0x1e7   : > { %v8854_v3 = vadd.f32 %v2620_v9, %v1676_v53  ;;  %v1674_v22 = vadd.f32 %v1607_v11, %v1382_v28  ;;  %v1393_v23 = vadd.f32 %v6997_v21, %v8605_v31  ;;  %v7045_v18 = vpop.f32.mrf.mxu1  ;;  %v2525_v31 = vsel %vm2431_vm0, %v8613_v29, %v11002_v4 }
 0x1e8   : > { %v8859_v5 = vpop.f32.mrf.mxu0  ;;  %v2624_v29 = vsel %vm2528_vm1, %v2589_v27, %v2525_v31  ;;  %v2622_v21 = vsel %vm2528_vm1, %v2585_v0, %v2524_v20  ;;  %v11010_v0 = vrot.slane %v8656_v61, 7  ;;  %v11011_v20 = vld [vmem:[#allocation26_spill] sm:$0xff] }
 0x1e9   : > { %11000 = vst [vmem:[#allocation47_spill] sm:$0xff] %v8854_v3  ;;  %v8861_v35 = vadd.f32 %v2618_v60, %v1674_v22  ;;  %v1677_v43 = vadd.f32 %v7045_v18, %v1393_v23  ;;  %v8863_v8 = vpop.f32.mrf.mxu1  ;;  %v2597_v18 = vrot.slane %v8646_v62, %v8666_v15 }
 0x1ea   : > { %v7000_v50 = vpop.f32.mrf.mxu0 }
 0x1eb   : > { %11001 = vst [vmem:[#allocation48_spill] sm:$0xff] %v8861_v35  ;;  %v8872_v40 = vadd.f32 %v8621_v39, %v1677_v43  ;;  %v1406_v24 = vadd.f32 %v7000_v50, %v8615_v41  ;;  %v7048_v49 = vpop.f32.mrf.mxu1  ;;  %v11007_v43 = vrot.slane %v8646_v62, 7  ;;  %v11009_v50 = vld [vmem:[#allocation25_spill] sm:$0xff] }
 0x1ec   : > { %v1397_v19 = vpop.f32.mrf.mxu0 }
 0x1ed   : > { %11003 = vst [vmem:[#allocation49_spill] sm:$0xff] %v8872_v40  ;;  %v1680_v48 = vadd.f32 %v7048_v49, %v1406_v24  ;;  %v1398_v45 = vadd.f32 %v1397_v19, %v8626_v13  ;;  %v1623_v53 = vpop.f32.mrf.mxu1  ;;  %v2593_v24 = vrot.slane %v8656_v61, %v8666_v15  ;;  %v2526_v19 = vsel %vm2431_vm0, %v8656_v61, %v11010_v0 }
 0x1ee   : > { %v7001_v39 = vpop.f32.mrf.mxu0 }
 0x1ef   : > { %v8884_v28 = vadd.f32 %v2624_v29, %v1680_v48  ;;  %v1678_v41 = vadd.f32 %v1623_v53, %v1398_v45  ;;  %v1409_v11 = vadd.f32 %v7001_v39, %v8636_v33  ;;  %v7049_v9 = vpop.f32.mrf.mxu1  ;;  %v2527_v33 = vsel %vm2431_vm0, %v8646_v62, %v11007_v43  ;;  %v11013_v39 = vld [vmem:[#allocation29_spill] sm:$0xff] }
 0x1f0   : > { %v8889_v22 = vpop.f32.mrf.mxu0  ;;  %v2628_v62 = vsel %vm2528_vm1, %v2597_v18, %v2527_v33  ;;  %v11015_v18 = vld [vmem:[#allocation31_spill] sm:$0xff] }
 0x1f1   : > { %11005 = vst [vmem:[#allocation50_spill] sm:$0xff] %v8884_v28  ;;  %v8891_v57 = vadd.f32 %v2622_v21, %v1678_v41  ;;  %v1681_v23 = vadd.f32 %v7049_v9, %v1409_v11  ;;  %v8893_v13 = vpop.f32.mrf.mxu1  ;;  %v2626_v9 = vsel %vm2528_vm1, %v2593_v24, %v2526_v19  ;;  %v7775_v19 = vld [vmem:[#allocation7 + $0xf8] sm:$0xff]  }
 0x1f2   : > { %v7004_v60 = vpop.f32.mrf.mxu0  ;;  %7198 = vmatprep.subr.bf16.mxu1 %v7775_v19 }
 0x1f3   : > { %11006 = vst [vmem:[#allocation51_spill] sm:$0xff] %v8891_v57  ;;  %v8902_v27 = vadd.f32 %v8653_v63, %v1681_v23  ;;  %v1422_v4 = vadd.f32 %v7004_v60, %v11009_v50  ;;  %v7052_v31 = vpop.f32.mrf.mxu1  ;;  %7199 = vmatpush3.bf16.msra.mxu1 %v7775_v19 }
 0x1f4   : > { %v1413_v49 = vpop.f32.mrf.mxu0  ;;  %7200 = vmatprep.subr.bf16.mxu1 %v7776_v59 }
 0x1f5   : > { %11008 = vst [vmem:[#allocation52_spill] sm:$0xff] %v8902_v27  ;;  %v1684_v42 = vadd.f32 %v7052_v31, %v1422_v4  ;;  %v1414_v48 = vadd.f32 %v1413_v49, %v11011_v20  ;;  %v1639_v45 = vpop.f32.mrf.mxu1 }
 0x1f6   : > { %v7005_v63 = vpop.f32.mrf.mxu0 }
 0x1f7   : > { %v8914_v53 = vadd.f32 %v2628_v62, %v1684_v42  ;;  %v1682_v29 = vadd.f32 %v1639_v45, %v1414_v48  ;;  %v1425_v41 = vadd.f32 %v7005_v63, %v11013_v39  ;;  %v7053_v11 = vpop.f32.mrf.mxu1  ;;  %7201 = vmatpush3.bf16.msra.mxu1 %v7776_v59  ;;  %v11033_v59 = vld [vmem:[#allocation12_spill] sm:$0xff] }
 0x1f8   : > { %v8919_v21 = vpop.f32.mrf.mxu0 }
 0x1f9   : > { %11012 = vst [vmem:[#allocation25_spill] sm:$0xff] %v8914_v53  ;;  %v8921_v61 = vadd.f32 %v2626_v9, %v1682_v29  ;;  %v1685_v23 = vadd.f32 %v7053_v11, %v1425_v41  ;;  %v8923_v60 = vpop.f32.mrf.mxu1 }
 0x1fa   : > { %v8925_v43 = vpop.f32.mrf.mxu0 }
 0x1fb   : > { %11014 = vst [vmem:[#allocation26_spill] sm:$0xff] %v8921_v61  ;;  %v8928_v33 = vadd.f32 %v11015_v18, %v1685_v23  ;;  %v8930_v50 = vpop.f32.mrf.mxu1 }
 0x1fc   : > { %v8932_v4 = vpop.f32.mrf.mxu0 }
 0x1fd   : > { %11016 = vst [vmem:[#allocation29_spill] sm:$0xff] %v8928_v33  ;;  %v8934_v31 = vpop.f32.mrf.mxu1 }
 0x1fe   : > { %v8936_v49 = vpop.f32.mrf.mxu0 }
 0x1ff   : > { %v8938_v24 = vpop.f32.mrf.mxu1 }
 0x200   : > { %v8940_v0 = vpop.f32.mrf.mxu0 }
 0x201   : > { %v8942_v42 = vpop.f32.mrf.mxu1 }
 0x202   : > { %v8944_v20 = vpop.f32.mrf.mxu0 }
 0x203   : > { %v8946_v48 = vpop.f32.mrf.mxu1 }
 0x204   : > { %v8948_v45 = vpop.f32.mrf.mxu0 }
 0x205   : > { %v8950_v62 = vpop.f32.mrf.mxu1 }
 0x206   : > { %v8952_v63 = vpop.f32.mrf.mxu0 }
 0x207   : > { %v8954_v29 = vpop.f32.mrf.mxu1 }
 0x208   : > { %v8956_v39 = vpop.f32.mrf.mxu0 }
 0x209   : > { %v8958_v41 = vpop.f32.mrf.mxu1 }
 0x20a   : > { %v8960_v11 = vpop.f32.mrf.mxu0 }
 0x20b   : > { %v8964_v23 = vpop.f32.mrf.mxu1 }
 0x20c   : > { %v8962_v9 = vpop.f32.mrf.mxu0 }
 0x20d   : > { %v8970_v15 = vpop.f32.mrf.mxu1 }
 0x20e   : > { %v8966_v18 = vpop.f32.mrf.mxu0 }
 0x20f   : > { %v8976_v53 = vpop.f32.mrf.mxu1 }
 0x210   : > { %v8968_v19 = vpop.f32.mrf.mxu0 }
 0x211   : > { %v8982_v27 = vpop.f32.mrf.mxu1 }
 0x212   : > { %v8972_v61 = vpop.f32.mrf.mxu0 }
 0x213   : > { %v8988_v40 = vpop.f32.mrf.mxu1 }
 0x214   : > { %v8974_v33 = vpop.f32.mrf.mxu0 }
 0x215   : > { %v8994_v44 = vpop.f32.mrf.mxu1 }
 0x216   : > { %v8978_v32 = vpop.f32.mrf.mxu0 }
 0x217   : > { %v9000_v55 = vpop.f32.mrf.mxu1 }
 0x218   : > { %v8980_v57 = vpop.f32.mrf.mxu0 }
 0x219   : > { %v9006_v30 = vpop.f32.mrf.mxu1 }
 0x21a   : > { %v8984_v28 = vpop.f32.mrf.mxu0  ;;  %11025 = vst [vmem:[#allocation60_spill] sm:$0xff] %v9006_v30  ;;  %v1369_v30 = vadd.f32 %v8829_v7, %v11037_v25  ;;  %v7782_v7 = vld [vmem:[#allocation7 + $0xd0] sm:$0xff]  }
 0x21b   : > { %11017 = vst [vmem:[#allocation31_spill] sm:$0xff] %v8984_v28  ;;  %v7786_v28 = vld [vmem:[#allocation7 + $0x18] sm:$0xff]  }
 0x21c   : > { %v8986_v35 = vpop.f32.mrf.mxu0 }
 0x21d   : > { %11018 = vst [vmem:[#allocation53_spill] sm:$0xff] %v8986_v35 }
 0x21e   : > { %v8990_v3 = vpop.f32.mrf.mxu0 }
 0x21f   : > { %11019 = vst [vmem:[#allocation54_spill] sm:$0xff] %v8990_v3  ;;  %v9012_v3 = vpop.f32.mrf.mxu1 }
 0x220   : > { %v8992_v38 = vpop.f32.mrf.mxu0  ;;  %11028 = vst [vmem:[#allocation63_spill] sm:$0xff] %v9012_v3  ;;  %v7779_v3 = vld [vmem:[#allocation7 + $0xd8] sm:$0xff]  }
 0x221   : > { %11020 = vst [vmem:[#allocation55_spill] sm:$0xff] %v8992_v38  ;;  %v9018_v12 = vpop.f32.mrf.mxu1 }
 0x222   : > { %v8996_v26 = vpop.f32.mrf.mxu0  ;;  %11031 = vst [vmem:[#allocation66_spill] sm:$0xff] %v9018_v12 }
 0x223   : > { %11021 = vst [vmem:[#allocation56_spill] sm:$0xff] %v8996_v26  ;;  %v7777_v26 = vld [vmem:[#allocation7 + $0xe8] sm:$0xff]  }
 0x224   : > { %v8998_v54 = vpop.f32.mrf.mxu0  ;;  %7202 = vmatprep.subr.bf16.mxu1 %v7777_v26 }
 0x225   : > { %11022 = vst [vmem:[#allocation57_spill] sm:$0xff] %v8998_v54  ;;  %v7783_v54 = vld [vmem:[#allocation7 + $0x28] sm:$0xff]   ;;  %7203 = vmatpush3.bf16.msra.mxu1 %v7777_v26  ;;  %v11035_v26 = vld [vmem:[#allocation16_spill] sm:$0xff] }
 0x226   : > { %v9002_v58 = vpop.f32.mrf.mxu0  ;;  %7250 = vmatprep.subr.bf16.mxu0 %v7783_v54 }
 0x227   : > { %11023 = vst [vmem:[#allocation58_spill] sm:$0xff] %v9002_v58  ;;  %7251 = vmatpush3.bf16.msra.mxu0 %v7783_v54  ;;  %v7784_v58 = vld [vmem:[#allocation7 + $0x20] sm:$0xff]   ;;  %v1337_v54 = vadd.f32 %v8769_v16, %v11035_v26 }
 0x228   : > { %v9004_v47 = vpop.f32.mrf.mxu0  ;;  %7252 = vmatprep.subr.bf16.mxu0 %v7784_v58 }
 0x229   : > { %11024 = vst [vmem:[#allocation59_spill] sm:$0xff] %v9004_v47  ;;  %v7778_v47 = vld [vmem:[#allocation7 + $0xe0] sm:$0xff]  }
 0x22a   : > { %v9008_v17 = vpop.f32.mrf.mxu0  ;;  %7204 = vmatprep.subr.bf16.mxu1 %v7778_v47 }
 0x22b   : > { %11026 = vst [vmem:[#allocation61_spill] sm:$0xff] %v9008_v17  ;;  %7205 = vmatpush3.bf16.msra.mxu1 %v7778_v47  ;;  %7253 = vmatpush3.bf16.msra.mxu0 %v7784_v58  ;;  %v11034_v17 = vld [vmem:[#allocation14_spill] sm:$0xff] }
 0x22c   : > { %v9010_v38 = vpop.f32.mrf.mxu0  ;;  %7206 = vmatprep.subr.bf16.mxu1 %v7779_v3  ;;  %7254 = vmatprep.subr.bf16.mxu0 %v7786_v28 }
 0x22d   : > { %11027 = vst [vmem:[#allocation62_spill] sm:$0xff] %v9010_v38  ;;  %v1305_v38 = vadd.f32 %v8709_v51, %v11033_v59  ;;  %v11039_v51 = vld [vmem:[#allocation24_spill] sm:$0xff] }
 0x22e   : > { %v9014_v34 = vpop.f32.mrf.mxu0  ;;  %v1401_v59 = vadd.f32 %v8889_v22, %v11039_v51  ;;  %v1671_v22 = vadd.f32 %v8833_v2, %v1369_v30 }
 0x22f   : > { %11029 = vst [vmem:[#allocation64_spill] sm:$0xff] %v9014_v34  ;;  %v1321_v34 = vadd.f32 %v8739_v14, %v11034_v17  ;;  %v9038_v17 = vpop.f32.mrf.mxu1  ;;  %7207 = vmatpush3.bf16.msra.mxu1 %v7779_v3  ;;  %7255 = vmatpush3.bf16.msra.mxu0 %v7786_v28  ;;  %v1655_v16 = vadd.f32 %v8713_v37, %v1305_v38  ;;  %v11040_v37 = vld [vmem:[#allocation30_spill] sm:$0xff]  ;;  %v9056_v38 = vadd.s32 8, %v8641_v52 }
 0x230   : > { %v9016_v35 = vpop.f32.mrf.mxu0  ;;  %v1679_v51 = vadd.f32 %v8893_v13, %v1401_v59  ;;  %7208 = vmatprep.subr.bf16.mxu1 %v7782_v7  ;;  %v2020_v13 = vadd.f32 %v8930_v50, %v8925_v43  ;;  %v11046_v59 = vld [vmem:[#allocation21_spill] sm:$0xff]  ;;  %v2023_v43 = vadd.f32 %v8938_v24, %v8936_v49  ;;  %v2036_v49 = vadd.f32 %v8946_v48, %v8944_v20 }
 0x231   : > { %11030 = vst [vmem:[#allocation65_spill] sm:$0xff] %v9016_v35  ;;  %v11036_v35 = vld [vmem:[#allocation18_spill] sm:$0xff]  ;;  %v1659_v25 = vadd.f32 %v8743_v36, %v1321_v34  ;;  %v9051_v3 = vpop.f32.mrf.mxu1  ;;  %v1417_v36 = vadd.f32 %v8919_v21, %v11040_v37  ;;  %11041 = vst [vmem:[#allocation12_spill] sm:$0xff] %v9056_v38  ;;  %v7785_v21 = vld [vmem:[#allocation7 + $0xc8] sm:$0xff]   ;;  %vm2760_vm3 = vcmp.eq.s32.totalorder %v9056_v38, 15  ;;  %v2028_v24 = vadd.f32 %v8950_v62, %v8948_v45 }
 0x232   : > { %v9020_v6 = vpop.f32.mrf.mxu0  ;;  %v1353_v12 = vadd.f32 %v8799_v1, %v11036_v35  ;;  %v1663_v1 = vadd.f32 %v8773_v46, %v1337_v54  ;;  %v7789_v34 = vld [vmem:[#allocation7 + $0x8] sm:$0xff]   ;;  %v11045_v54 = vld [vmem:[#allocation19_spill] sm:$0xff]  ;;  %v9114_v20 = vadd.f32 %v8976_v53, %v8966_v18  ;;  %v9127_v53 = vadd.f32 %v8994_v44, %v8974_v33 }
 0x233   : > { %11032 = vst [vmem:[#allocation67_spill] sm:$0xff] %v9020_v6  ;;  %v11038_v6 = vld [vmem:[#allocation22_spill] sm:$0xff]  ;;  %7209 = vmatpush3.bf16.msra.mxu1 %v7782_v7  ;;  %v9073_v7 = vadd.f32 %v11046_v59, %v1671_v22  ;;  %v9085_v50 = vpop.f32.mrf.mxu1  ;;  %v9091_v22 = vadd.f32 %v8923_v60, %v1417_v36  ;;  %v7788_v36 = vld [vmem:[#allocation7 + $0xc0] sm:$0xff]  }
 0x234   : > { %v1385_v47 = vadd.f32 %v8859_v5, %v11038_v6  ;;  %v9034_v58 = vpop.f32.mrf.mxu0  ;;  %v7787_v5 = vld [vmem:[#allocation7 + $0x10] sm:$0xff]   ;;  %v1667_v35 = vadd.f32 %v8803_v56, %v1353_v12  ;;  %v11042_v12 = vld [vmem:[#allocation13_spill] sm:$0xff]  ;;  %v11043_v56 = vld [vmem:[#allocation15_spill] sm:$0xff]  ;;  %7210 = vmatprep.subr.bf16.mxu1 %v7785_v21 }
 0x235   : > { %7256 = vmatprep.subr.bf16.mxu0 %v7787_v5  ;;  %v9059_v30 = vadd.f32 %v11042_v12, %v1655_v16  ;;  %v9062_v2 = vadd.f32 %v11043_v56, %v1659_v25  ;;  %v2012_v25 = vadd.f32 %v8934_v31, %v8932_v4  ;;  %v9088_v56 = vsub.s32 6, %v8641_v52  ;;  %v2091_v45 = vpop.f32.mrf.mxu1  ;;  %v11051_v59 = vld [vmem:[#allocation34_spill] sm:$0xff] }
 0x236   : > { %v9040_v14 = vpop.f32.mrf.mxu0  ;;  %v1675_v6 = vadd.f32 %v8863_v8, %v1385_v47  ;;  %7257 = vmatpush3.bf16.msra.mxu0 %v7787_v5  ;;  %v11044_v8 = vld [vmem:[#allocation17_spill] sm:$0xff]  ;;  %v9070_v47 = vadd.f32 %v11045_v54, %v1667_v35  ;;  %v11047_v5 = vld [vmem:[#allocation23_spill] sm:$0xff]  ;;  %v2015_v4 = vadd.f32 %v8942_v42, %v8940_v0  ;;  %v2031_v0 = vadd.f32 %v8958_v41, %v8956_v39 }
 0x237   : > { %v9065_v28 = vadd.f32 %v11044_v8, %v1663_v1  ;;  %v11048_v1 = vld [vmem:[#allocation27_spill] sm:$0xff]  ;;  %11049 = vst [vmem:[#allocation14_spill] sm:$0xff] %v9088_v56  ;;  %7258 = vmatprep.subr.bf16.mxu0 %v7789_v34  ;;  %7211 = vmatpush3.bf16.msra.mxu1 %v7785_v21  ;;  %v9106_v42 = vadd.f32 %v8964_v23, %v8960_v11  ;;  %v11050_v21 = vld [vmem:[#allocation60_spill] sm:$0xff]  ;;  %v7141_v54 = vpop.f32.mrf.mxu1 }
 0x238   : > { %v9048_v26 = vpop.f32.mrf.mxu0  ;;  %v9076_v16 = vadd.f32 %v11047_v5, %v1675_v6  ;;  %v9081_v12 = vadd.f32 %v11048_v1, %v1679_v51  ;;  %v2039_v51 = vadd.f32 %v8954_v29, %v8952_v63  ;;  %v9110_v8 = vadd.f32 %v8970_v15, %v8962_v9  ;;  %7212 = vmatprep.subr.bf16.mxu1 %v7788_v36  ;;  %v11053_v1 = vld [vmem:[#allocation63_spill] sm:$0xff] }
 0x239   : > { %v9119_v39 = vadd.f32 %v8982_v27, %v8968_v19  ;;  %v9123_v15 = vadd.f32 %v8988_v40, %v8972_v61  ;;  %v9134_v19 = vadd.f32 %v9000_v55, %v8978_v32  ;;  %v9150_v55 = vld [vmem:[#allocation7 + $0x1b8] sm:$0xff]  }
 0x23a   : > { %v7168_v46 = vpop.f32.mrf.mxu0  ;;  %7259 = vmatpush3.bf16.msra.mxu0 %v7789_v34  ;;  %v9143_v34 = vadd.f32 %v11050_v21, %v8980_v57 }
 0x23b   : > { %v2366_v35 = vadd.f32 %v7168_v46, %v2020_v13  ;;  %v7790_v46 = vld [vmem:[#allocation7] sm:$0xff]   ;;  %7213 = vmatpush3.bf16.msra.mxu1 %v7788_v36  ;;  %v11057_v36 = vld [vmem:[#allocation54_spill] sm:$0xff] }
 0x23c   : > { %v2237_v37 = vpop.f32.mrf.mxu0  ;;  %7260 = vmatprep.subr.bf16.mxu0 %v7790_v46  ;;  %7294 = vmatprep.subr.bf16.mxu1 %v9150_v55 }
 0x23d   : > { %v2364_v31 = vadd.f32 %v2237_v37, %v2012_v25  ;;  %v2666_v62 = vrot.slane %v2366_v35, 1  ;;  %v11052_v37 = vld [vmem:[#allocation31_spill] sm:$0xff]  ;;  %v11054_v35 = vld [vmem:[#allocation33_spill] sm:$0xff] }
 0x23e   : > { %v7169_v6 = vpop.f32.mrf.mxu0  ;;  %7261 = vmatpush3.bf16.msra.mxu0 %v7790_v46  ;;  %v9167_v46 = vadd.f32 %v9038_v17, %v11057_v36 }
 0x23f   : > { %v2367_v60 = vadd.f32 %v7169_v6, %v2023_v43  ;;  %v2663_v41 = vrot.slane %v2364_v31, 1  ;;  %v11055_v6 = vld [vmem:[#allocation53_spill] sm:$0xff] }
 0x240   : > { %v2240_v48 = vpop.f32.mrf.mxu0 }
 0x241   : > { %v2667_v63 = vrot.slane %v2367_v60, 1  ;;  %v2772_v29 = vrot.slane %v2367_v60, %v9088_v56  ;;  %v2365_v13 = vadd.f32 %v2240_v48, %v2015_v4 }
 0x242   : > { %v7172_v11 = vpop.f32.mrf.mxu0 }
 0x243   : > { %v2668_v9 = vsel %vm2662_vm2, %v2666_v62, %v2667_v63  ;;  %v2744_v23 = vsel %vm2662_vm2, %v2667_v63, %v2367_v60  ;;  %v2664_v18 = vrot.slane %v2365_v13, 1  ;;  %v2768_v27 = vrot.slane %v2365_v13, %v9088_v56  ;;  %v11058_v63 = vld [vmem:[#allocation55_spill] sm:$0xff] }
 0x244   : > { %v2832_v40 = vsel %vm2760_vm3, %v2772_v29, %v2744_v23  ;;  %v9139_v44 = vadd.f32 %v8704_v10, %v2668_v9  ;;  %v2370_v61 = vadd.f32 %v7172_v11, %v2036_v49  ;;  %v2253_v33 = vpop.f32.mrf.mxu0  ;;  %v9154_v10 = vadd.f32 %v11053_v1, %v11052_v37  ;;  %v11056_v49 = vld [vmem:[#allocation66_spill] sm:$0xff]  ;;  %v2094_v9 = vpop.f32.mrf.mxu1  ;;  %v11061_v1 = vld [vmem:[#allocation35_spill] sm:$0xff] }
 0x245   : > { %v9146_v5 = vadd.f32 %v11051_v59, %v2832_v40  ;;  %v2665_v25 = vsel %vm2662_vm2, %v2663_v41, %v2664_v18  ;;  %v2743_v32 = vsel %vm2662_vm2, %v2664_v18, %v2365_v13  ;;  %v2368_v4 = vadd.f32 %v2253_v33, %v2028_v24  ;;  %v11059_v24 = vld [vmem:[#allocation56_spill] sm:$0xff]  ;;  %v11060_v18 = vld [vmem:[#allocation57_spill] sm:$0xff] }
 0x246   : > { %v2830_v43 = vsel %vm2760_vm3, %v2768_v27, %v2743_v32  ;;  %v9159_v57 = vadd.f32 %v11054_v35, %v2665_v25  ;;  %v7173_v31 = vpop.f32.mrf.mxu0  ;;  %v9163_v60 = vadd.f32 %v11056_v49, %v11055_v6  ;;  %v9175_v29 = vadd.f32 %v9051_v3, %v11058_v63  ;;  %v11062_v49 = vld [vmem:[#allocation37_spill] sm:$0xff]  ;;  %v11063_v63 = vld [vmem:[#allocation58_spill] sm:$0xff] }
 0x247   : > { %v9170_v48 = vadd.f32 %v9059_v30, %v2830_v43  ;;  %v2371_v62 = vadd.f32 %v7173_v31, %v2039_v51  ;;  %v9179_v13 = vadd.f32 %v9085_v50, %v11059_v24  ;;  %v2672_v11 = vrot.slane %v2370_v61, 1 }
 0x248   : > { %v2963_v41 = vmul.f32 %v9159_v57, %v9159_v57  ;;  %v2256_v17 = vpop.f32.mrf.mxu0  ;;  %v9189_v27 = vadd.f32 %v2091_v45, %v11060_v18  ;;  %v2965_v50 = vmul.f32 %v9139_v44, %v9139_v44  ;;  %v2669_v40 = vrot.slane %v2368_v4, 1  ;;  %v7144_v4 = vpop.f32.mrf.mxu1  ;;  %v11065_v18 = vld [vmem:[#allocation36_spill] sm:$0xff] }
 0x249   : > { %v2925_v30 = vadd.f32 %v9170_v48, %v9159_v57  ;;  %v2964_v51 = vmul.f32 %v9170_v48, %v9170_v48  ;;  %v2673_v23 = vrot.slane %v2371_v62, 1  ;;  %v2780_v3 = vrot.slane %v2371_v62, %v9088_v56 }
 0x24a   : > { %v2369_v33 = vadd.f32 %v2256_v17, %v2031_v0  ;;  %v7176_v61 = vpop.f32.mrf.mxu0  ;;  %v2966_v0 = vmul.f32 %v9146_v5, %v9146_v5  ;;  %v9209_v24 = vadd.f32 %v7141_v54, %v11063_v63 }
 0x24b   : > { %v2926_v21 = vadd.f32 %v2925_v30, %v9139_v44  ;;  %v2995_v59 = vadd.f32 %v2964_v51, %v2963_v41  ;;  %v2674_v25 = vsel %vm2662_vm2, %v2672_v11, %v2673_v23  ;;  %v2746_v32 = vsel %vm2662_vm2, %v2673_v23, %v2371_v62  ;;  %v11064_v51 = vld [vmem:[#allocation59_spill] sm:$0xff] }
 0x24c   : > { %v2836_v37 = vsel %vm2760_vm3, %v2780_v3, %v2746_v32  ;;  %v9199_v43 = vadd.f32 %v11061_v1, %v2674_v25  ;;  %v2670_v45 = vrot.slane %v2369_v33, 1  ;;  %v2776_v35 = vrot.slane %v2369_v33, %v9088_v56  ;;  %v2269_v31 = vpop.f32.mrf.mxu0 }
 0x24d   : > { %v2996_v6 = vadd.f32 %v2995_v59, %v2965_v50  ;;  %v9205_v36 = vadd.f32 %v11062_v49, %v2836_v37  ;;  %v2927_v62 = vadd.f32 %v2926_v21, %v9146_v5  ;;  %v2374_v17 = vadd.f32 %v7176_v61, %v9106_v42  ;;  %v11066_v59 = vld [vmem:[#allocation61_spill] sm:$0xff] }
 0x24e   : > { %v2671_v41 = vsel %vm2662_vm2, %v2669_v40, %v2670_v45  ;;  %v2745_v11 = vsel %vm2662_vm2, %v2670_v45, %v2369_v33  ;;  %v7177_v30 = vpop.f32.mrf.mxu0  ;;  %v9215_v23 = vadd.f32 %v2094_v9, %v11064_v51  ;;  %v9223_v54 = vadd.f32 %v7144_v4, %v11066_v59  ;;  %v11067_v51 = vld [vmem:[#allocation38_spill] sm:$0xff]  ;;  %v11069_v59 = vld [vmem:[#allocation40_spill] sm:$0xff] }
 0x24f   : > { %v2834_v3 = vsel %vm2760_vm3, %v2776_v35, %v2745_v11  ;;  %v9220_v50 = vadd.f32 %v11065_v18, %v2671_v41  ;;  %v2997_v21 = vadd.f32 %v2996_v6, %v2966_v0  ;;  %v2372_v33 = vadd.f32 %v2269_v31, %v9110_v8  ;;  %v11068_v18 = vld [vmem:[#allocation62_spill] sm:$0xff] }
 0x250   : > { %v9226_v40 = vadd.f32 %v9062_v2, %v2834_v3  ;;  %v2375_v42 = vadd.f32 %v7177_v30, %v9114_v20  ;;  %v2272_v61 = vpop.f32.mrf.mxu0  ;;  %v2969_v9 = vmul.f32 %v9199_v43, %v9199_v43  ;;  %v2678_v2 = vrot.slane %v2374_v17, 1  ;;  %v2107_v20 = vpop.f32.mrf.mxu1 }
 0x251   : > { %v2928_v25 = vadd.f32 %v2927_v62, %v9220_v50  ;;  %v2967_v32 = vmul.f32 %v9220_v50, %v9220_v50  ;;  %v2373_v37 = vadd.f32 %v2272_v61, %v9119_v39  ;;  %v2675_v49 = vrot.slane %v2372_v33, 1 }
 0x252   : > { %v2968_v1 = vmul.f32 %v9226_v40, %v9226_v40  ;;  %v2679_v45 = vrot.slane %v2375_v42, 1  ;;  %v2788_v8 = vrot.slane %v2375_v42, %v9088_v56  ;;  %v7180_v35 = vpop.f32.mrf.mxu0 }
 0x253   : > { %v2929_v31 = vadd.f32 %v2928_v25, %v9226_v40  ;;  %v2998_v4 = vadd.f32 %v2997_v21, %v2967_v32  ;;  %v2676_v0 = vrot.slane %v2373_v37, 1  ;;  %v2784_v6 = vrot.slane %v2373_v37, %v9088_v56 }
 0x254   : > { %v2680_v62 = vsel %vm2662_vm2, %v2678_v2, %v2679_v45  ;;  %v2748_v39 = vsel %vm2662_vm2, %v2679_v45, %v2375_v42  ;;  %v2378_v63 = vadd.f32 %v7180_v35, %v9123_v15  ;;  %v2285_v41 = vpop.f32.mrf.mxu0  ;;  %v9251_v21 = vadd.f32 %v2107_v20, %v11068_v18  ;;  %v11070_v2 = vld [vmem:[#allocation39_spill] sm:$0xff] }
 0x255   : > { %v2930_v11 = vadd.f32 %v2929_v31, %v9199_v43  ;;  %v2999_v17 = vadd.f32 %v2998_v4, %v2968_v1  ;;  %v2840_v30 = vsel %vm2760_vm3, %v2788_v8, %v2748_v39  ;;  %v9248_v3 = vadd.f32 %v11067_v51, %v2680_v62  ;;  %v7145_v4 = vpop.f32.mrf.mxu1 }
 0x256   : > { %v9254_v33 = vadd.f32 %v11069_v59, %v2840_v30  ;;  %v2677_v42 = vsel %vm2662_vm2, %v2675_v49, %v2676_v0  ;;  %v2747_v15 = vsel %vm2662_vm2, %v2676_v0, %v2373_v37  ;;  %v7181_v61 = vpop.f32.mrf.mxu0  ;;  %v2970_v25 = vmul.f32 %v9205_v36, %v9205_v36 }
 0x257   : > { %v3000_v32 = vadd.f32 %v2999_v17, %v2969_v9  ;;  %v2838_v1 = vsel %vm2760_vm3, %v2784_v6, %v2747_v15  ;;  %v9263_v45 = vadd.f32 %v11070_v2, %v2677_v42  ;;  %v2931_v35 = vadd.f32 %v2930_v11, %v9205_v36  ;;  %v2110_v42 = vpop.f32.mrf.mxu1 }
 0x258   : > { %v9266_v8 = vadd.f32 %v9065_v28, %v2838_v1  ;;  %v2684_v20 = vrot.slane %v2378_v63, 1  ;;  %v2376_v31 = vadd.f32 %v2285_v41, %v9127_v53  ;;  %v2288_v37 = vpop.f32.mrf.mxu0  ;;  %v2379_v49 = vadd.f32 %v7181_v61, %v9134_v19 }
 0x259   : > { %v2971_v0 = vmul.f32 %v9263_v45, %v9263_v45  ;;  %v3001_v9 = vadd.f32 %v3000_v32, %v2970_v25  ;;  %v2377_v6 = vadd.f32 %v2288_v37, %v9143_v34  ;;  %v2973_v62 = vmul.f32 %v9248_v3, %v9248_v3 }
 0x25a   : > { %v2932_v28 = vadd.f32 %v2931_v35, %v9263_v45  ;;  %v2972_v39 = vmul.f32 %v9266_v8, %v9266_v8  ;;  %v2681_v63 = vrot.slane %v2376_v31, 1  ;;  %v7184_v53 = vpop.f32.mrf.mxu0  ;;  %v2685_v11 = vrot.slane %v2379_v49, 1  ;;  %v11071_v35 = vld [vmem:[#allocation41_spill] sm:$0xff] }
 0x25b   : > { %v3002_v41 = vadd.f32 %v3001_v9, %v2971_v0  ;;  %v2796_v17 = vrot.slane %v2379_v49, %v9088_v56  ;;  %v2682_v30 = vrot.slane %v2377_v6, 1  ;;  %v2974_v19 = vmul.f32 %v9254_v33, %v9254_v33  ;;  %v11072_v9 = vld [vmem:[#allocation43_spill] sm:$0xff] }
 0x25c   : > { %v2933_v34 = vadd.f32 %v2932_v28, %v9266_v8  ;;  %v2792_v51 = vrot.slane %v2377_v6, %v9088_v56  ;;  %v2382_v18 = vadd.f32 %v7184_v53, %v9154_v10  ;;  %v2301_v59 = vpop.f32.mrf.mxu0  ;;  %v2686_v61 = vsel %vm2662_vm2, %v2684_v20, %v2685_v11 }
 0x25d   : > { %v3003_v15 = vadd.f32 %v3002_v41, %v2972_v39  ;;  %v2750_v25 = vsel %vm2662_vm2, %v2685_v11, %v2379_v49  ;;  %v2683_v32 = vsel %vm2662_vm2, %v2681_v63, %v2682_v30  ;;  %v9292_v31 = vadd.f32 %v11071_v35, %v2686_v61  ;;  %v11073_v49 = vld [vmem:[#allocation42_spill] sm:$0xff]  ;;  %v11074_v63 = vld [vmem:[#allocation64_spill] sm:$0xff]  ;;  %v11075_v41 = vld [vmem:[#allocation65_spill] sm:$0xff] }
 0x25e   : > { %v2934_v1 = vadd.f32 %v2933_v34, %v9248_v3  ;;  %v2844_v2 = vsel %vm2760_vm3, %v2796_v17, %v2750_v25  ;;  %v2749_v37 = vsel %vm2662_vm2, %v2682_v30, %v2377_v6  ;;  %v7185_v10 = vpop.f32.mrf.mxu0  ;;  %v9301_v39 = vadd.f32 %v11073_v49, %v2683_v32 }
 0x25f   : > { %v3004_v0 = vadd.f32 %v3003_v15, %v2973_v62  ;;  %v9296_v28 = vadd.f32 %v11072_v9, %v2844_v2  ;;  %v2842_v20 = vsel %vm2760_vm3, %v2792_v51, %v2749_v37  ;;  %v9304_v53 = vadd.f32 %v7145_v4, %v11074_v63  ;;  %v9325_v37 = vld [vmem:[#allocation7 + $0x138] sm:$0xff]  }
 0x260   : > { %v9307_v11 = vadd.f32 %v2110_v42, %v11075_v41  ;;  %v9310_v17 = vadd.f32 %v9070_v47, %v2842_v20  ;;  %v2935_v6 = vadd.f32 %v2934_v1, %v9254_v33  ;;  %v2304_v62 = vpop.f32.mrf.mxu0  ;;  %v2977_v30 = vmul.f32 %v9292_v31, %v9292_v31  ;;  %7342 = vmatprep.subr.bf16.mxu0 %v9325_v37 }
 0x261   : > { %v2975_v34 = vmul.f32 %v9301_v39, %v9301_v39  ;;  %v3005_v51 = vadd.f32 %v3004_v0, %v2974_v19  ;;  %v2380_v15 = vadd.f32 %v2301_v59, %v9163_v60  ;;  %v2383_v47 = vadd.f32 %v7185_v10, %v9167_v46 }
 0x262   : > { %v2936_v4 = vadd.f32 %v2935_v6, %v9301_v39  ;;  %v2976_v42 = vmul.f32 %v9310_v17, %v9310_v17  ;;  %v2381_v61 = vadd.f32 %v2304_v62, %v9175_v29  ;;  %v7188_v25 = vpop.f32.mrf.mxu0  ;;  %v2978_v32 = vmul.f32 %v9296_v28, %v9296_v28 }
 0x263   : > { %v3006_v1 = vadd.f32 %v3005_v51, %v2975_v34  ;;  %v2690_v2 = vrot.slane %v2382_v18, 1  ;;  %v2687_v35 = vrot.slane %v2380_v15, 1  ;;  %v2691_v19 = vrot.slane %v2383_v47, 1  ;;  %v7148_v18 = vpop.f32.mrf.mxu1  ;;  %v11076_v15 = vld [vmem:[#allocation44_spill] sm:$0xff] }
 0x264   : > { %v2937_v60 = vadd.f32 %v2936_v4, %v9310_v17  ;;  %v2804_v59 = vrot.slane %v2383_v47, %v9088_v56  ;;  %v2688_v0 = vrot.slane %v2381_v61, 1  ;;  %v2317_v9 = vpop.f32.mrf.mxu0  ;;  %v2800_v46 = vrot.slane %v2381_v61, %v9088_v56  ;;  %v11077_v4 = vld [vmem:[#allocation46_spill] sm:$0xff] }
 0x265   : > { %v3007_v20 = vadd.f32 %v3006_v1, %v2976_v42  ;;  %v2386_v29 = vadd.f32 %v7188_v25, %v9179_v13  ;;  %v2384_v10 = vadd.f32 %v2317_v9, %v9189_v27  ;;  %v2692_v63 = vsel %vm2662_vm2, %v2690_v2, %v2691_v19  ;;  %v11078_v1 = vld [vmem:[#allocation45_spill] sm:$0xff] }
 0x266   : > { %v2938_v49 = vadd.f32 %v2937_v60, %v9292_v31  ;;  %v2752_v41 = vsel %vm2662_vm2, %v2691_v19, %v2383_v47  ;;  %v2689_v6 = vsel %vm2662_vm2, %v2687_v35, %v2688_v0  ;;  %v7189_v62 = vpop.f32.mrf.mxu0  ;;  %v9340_v13 = vadd.f32 %v11076_v15, %v2692_v63  ;;  %v11079_v35 = vld [vmem:[#allocation67_spill] sm:$0xff] }
 0x267   : > { %v3008_v34 = vadd.f32 %v3007_v20, %v2977_v30  ;;  %v2848_v51 = vsel %vm2760_vm3, %v2804_v59, %v2752_v41  ;;  %v2751_v27 = vsel %vm2662_vm2, %v2688_v0, %v2381_v61  ;;  %v9349_v47 = vadd.f32 %v11078_v1, %v2689_v6 }
 0x268   : > { %v9344_v42 = vadd.f32 %v11077_v4, %v2848_v51  ;;  %v2846_v25 = vsel %vm2760_vm3, %v2800_v46, %v2751_v27  ;;  %v2939_v2 = vadd.f32 %v2938_v49, %v9296_v28  ;;  %v2320_v30 = vpop.f32.mrf.mxu0  ;;  %v2132_v60 = vadd.f32 %v7148_v18, %v11079_v35  ;;  %v2123_v4 = vpop.f32.mrf.mxu1  ;;  %v11080_v35 = vld [vmem:[#allocation47_spill] sm:$0xff] }
 0x269   : > { %v9354_v19 = vadd.f32 %v9073_v7, %v2846_v25  ;;  %v3009_v59 = vadd.f32 %v3008_v34, %v2978_v32  ;;  %v2696_v9 = vrot.slane %v2386_v29, 1  ;;  %v2981_v61 = vmul.f32 %v9340_v13, %v9340_v13 }
 0x26a   : > { %v2940_v0 = vadd.f32 %v2939_v2, %v9349_v47  ;;  %v2979_v20 = vmul.f32 %v9349_v47, %v9349_v47  ;;  %v2387_v46 = vadd.f32 %v7189_v62, %v9209_v24  ;;  %v7192_v63 = vpop.f32.mrf.mxu0  ;;  %v2982_v49 = vmul.f32 %v9344_v42, %v9344_v42 }
 0x26b   : > { %v2980_v7 = vmul.f32 %v9354_v19, %v9354_v19  ;;  %v2693_v18 = vrot.slane %v2384_v10, 1  ;;  %v2385_v32 = vadd.f32 %v2320_v30, %v9215_v23  ;;  %v2390_v62 = vadd.f32 %v7192_v63, %v9223_v54 }
 0x26c   : > { %v2941_v29 = vadd.f32 %v2940_v0, %v9354_v19  ;;  %v3010_v41 = vadd.f32 %v3009_v59, %v2979_v20  ;;  %v2697_v6 = vrot.slane %v2387_v46, 1  ;;  %v2812_v34 = vrot.slane %v2387_v46, %v9088_v56  ;;  %v2333_v51 = vpop.f32.mrf.mxu0  ;;  %v11081_v20 = vld [vmem:[#allocation49_spill] sm:$0xff] }
 0x26d   : > { %v2694_v15 = vrot.slane %v2385_v32, 1  ;;  %v2808_v24 = vrot.slane %v2385_v32, %v9088_v56  ;;  %v2388_v27 = vadd.f32 %v2333_v51, %v9251_v21 }
 0x26e   : > { %v2942_v25 = vadd.f32 %v2941_v29, %v9340_v13  ;;  %v3011_v10 = vadd.f32 %v3010_v41, %v2980_v7  ;;  %v2698_v23 = vsel %vm2662_vm2, %v2696_v9, %v2697_v6  ;;  %v2754_v1 = vsel %vm2662_vm2, %v2697_v6, %v2387_v46  ;;  %v7193_v2 = vpop.f32.mrf.mxu0  ;;  %v11082_v7 = vld [vmem:[#allocation48_spill] sm:$0xff] }
 0x26f   : > { %v2852_v30 = vsel %vm2760_vm3, %v2812_v34, %v2754_v1  ;;  %v9378_v59 = vadd.f32 %v11080_v35, %v2698_v23  ;;  %v2695_v0 = vsel %vm2662_vm2, %v2693_v18, %v2694_v15  ;;  %v2753_v54 = vsel %vm2662_vm2, %v2694_v15, %v2385_v32  ;;  %v7149_v32 = vpop.f32.mrf.mxu1 }
 0x270   : > { %v3012_v21 = vadd.f32 %v3011_v10, %v2981_v61  ;;  %v9383_v63 = vadd.f32 %v11081_v20, %v2852_v30  ;;  %v2850_v9 = vsel %vm2760_vm3, %v2808_v24, %v2753_v54  ;;  %v9388_v46 = vadd.f32 %v11082_v7, %v2695_v0  ;;  %v2336_v29 = vpop.f32.mrf.mxu0 }
 0x271   : > { %v2124_v41 = vadd.f32 %v2123_v4, %v9034_v58  ;;  %v9392_v6 = vadd.f32 %v9076_v16, %v2850_v9  ;;  %v2943_v18 = vadd.f32 %v2942_v25, %v9344_v42  ;;  %v2702_v34 = vrot.slane %v2390_v62, 1  ;;  %v2126_v54 = vpop.f32.mrf.mxu1 }
 0x272   : > { %v2985_v61 = vmul.f32 %v9378_v59, %v9378_v59  ;;  %v2983_v51 = vmul.f32 %v9388_v46, %v9388_v46  ;;  %v3013_v15 = vadd.f32 %v3012_v21, %v2982_v49  ;;  %v2391_v24 = vadd.f32 %v7193_v2, %v9304_v53  ;;  %v7196_v10 = vpop.f32.mrf.mxu0 }
 0x273   : > { %v2944_v23 = vadd.f32 %v2943_v18, %v9388_v46  ;;  %v2984_v58 = vmul.f32 %v9392_v6, %v9392_v6  ;;  %v2699_v16 = vrot.slane %v2388_v27, 1  ;;  %v2389_v4 = vadd.f32 %v2336_v29, %v9307_v11  ;;  %v11083_v18 = vld [vmem:[#allocation50_spill] sm:$0xff] }
 0x274   : > { %v2986_v62 = vmul.f32 %v9383_v63, %v9383_v63  ;;  %v3014_v25 = vadd.f32 %v3013_v15, %v2983_v51  ;;  %v2703_v1 = vrot.slane %v2391_v24, 1  ;;  %v2820_v30 = vrot.slane %v2391_v24, %v9088_v56  ;;  %v2349_v35 = vpop.f32.mrf.mxu0 }
 0x275   : > { %v2945_v49 = vadd.f32 %v2944_v23, %v9392_v6  ;;  %v2700_v53 = vrot.slane %v2389_v4, 1  ;;  %v2816_v2 = vrot.slane %v2389_v4, %v9088_v56  ;;  %v2394_v0 = vadd.f32 %v7196_v10, %v2132_v60  ;;  %v11084_v60 = vld [vmem:[#allocation52_spill] sm:$0xff] }
 0x276   : > { %v3015_v21 = vadd.f32 %v3014_v25, %v2984_v58  ;;  %v2704_v27 = vsel %vm2662_vm2, %v2702_v34, %v2703_v1  ;;  %v2756_v11 = vsel %vm2662_vm2, %v2703_v1, %v2391_v24  ;;  %v2392_v20 = vadd.f32 %v2349_v35, %v2124_v41  ;;  %v7197_v9 = vpop.f32.mrf.mxu0  ;;  %v11085_v58 = vld [vmem:[#allocation51_spill] sm:$0xff] }
 0x277   : > { %v2946_v7 = vadd.f32 %v2945_v49, %v9378_v59  ;;  %v2856_v29 = vsel %vm2760_vm3, %v2820_v30, %v2756_v11  ;;  %v9415_v51 = vadd.f32 %v11083_v18, %v2704_v27  ;;  %v2701_v15 = vsel %vm2662_vm2, %v2699_v16, %v2700_v53  ;;  %v11086_v49 = vld [vmem:[#allocation32_spill] sm:$0xff] }
 0x278   : > { %v3016_v23 = vadd.f32 %v3015_v21, %v2985_v61  ;;  %v9419_v10 = vadd.f32 %v11084_v60, %v2856_v29  ;;  %v2755_v34 = vsel %vm2662_vm2, %v2700_v53, %v2389_v4  ;;  %v9423_v24 = vadd.f32 %v11085_v58, %v2701_v15  ;;  %v2352_v41 = vpop.f32.mrf.mxu0  ;;  %v11087_v58 = vld [vmem:[#allocation25_spill] sm:$0xff] }
 0x279   : > { %v2135_v25 = vadd.f32 %v7149_v32, %v9040_v14  ;;  %v2127_v1 = vadd.f32 %v2126_v54, %v9048_v26  ;;  %v2854_v30 = vsel %vm2760_vm3, %v2816_v2, %v2755_v34  ;;  %v2947_v35 = vadd.f32 %v2946_v7, %v9383_v63 }
 0x27a   : > { %v9431_v61 = vadd.f32 %v9081_v12, %v2854_v30  ;;  %v2987_v16 = vmul.f32 %v9423_v24, %v9423_v24  ;;  %v3017_v4 = vadd.f32 %v3016_v23, %v2986_v62  ;;  %v2890_v53 = vadd.f32 %v11086_v49, %v9091_v22 }
 0x27b   : > { %v2948_v21 = vadd.f32 %v2947_v35, %v9423_v24  ;;  %v2395_v14 = vadd.f32 %v7197_v9, %v2135_v25  ;;  %v2393_v32 = vadd.f32 %v2352_v41, %v2127_v1  ;;  %v2708_v54 = vrot.slane %v2394_v0, 1  ;;  %v11088_v1 = vld [vmem:[#allocation29_spill] sm:$0xff] }
 0x27c   : > { %v2988_v26 = vmul.f32 %v9431_v61, %v9431_v61  ;;  %v3018_v2 = vadd.f32 %v3017_v4, %v2987_v16  ;;  %v2705_v27 = vrot.slane %v2392_v20, 1  ;;  %v2989_v62 = vmul.f32 %v9415_v51, %v9415_v51  ;;  %v11089_v16 = vld [vmem:[#allocation26_spill] sm:$0xff] }
 0x27d   : > { %v2949_v12 = vadd.f32 %v2948_v21, %v9431_v61  ;;  %v2709_v11 = vrot.slane %v2395_v14, 1  ;;  %v2828_v7 = vrot.slane %v2395_v14, %v9088_v56  ;;  %v2706_v29 = vrot.slane %v2393_v32, 1 }
 0x27e   : > { %v2990_v22 = vmul.f32 %v9419_v10, %v9419_v10  ;;  %v3019_v9 = vadd.f32 %v3018_v2, %v2988_v26  ;;  %v2824_v18 = vrot.slane %v2393_v32, %v9088_v56 }
 0x27f   : > { %v2950_v15 = vadd.f32 %v2949_v12, %v9415_v51  ;;  %v2710_v0 = vsel %vm2662_vm2, %v2708_v54, %v2709_v11  ;;  %v2758_v20 = vsel %vm2662_vm2, %v2709_v11, %v2395_v14  ;;  %v2707_v23 = vsel %vm2662_vm2, %v2705_v27, %v2706_v29 }
 0x280   : > { %v3020_v60 = vadd.f32 %v3019_v9, %v2989_v62  ;;  %v2860_v34 = vsel %vm2760_vm3, %v2828_v7, %v2758_v20  ;;  %v9454_v41 = vadd.f32 %v11087_v58, %v2710_v0  ;;  %v2757_v25 = vsel %vm2662_vm2, %v2706_v29, %v2393_v32 }
 0x281   : > { %v9458_v30 = vadd.f32 %v11088_v1, %v2860_v34  ;;  %v2858_v35 = vsel %vm2760_vm3, %v2824_v18, %v2757_v25  ;;  %v9463_v4 = vadd.f32 %v11089_v16, %v2707_v23  ;;  %v2951_v49 = vadd.f32 %v2950_v15, %v9419_v10 }
 0x282   : > { %v9466_v21 = vadd.f32 %v2890_v53, %v2858_v35  ;;  %v3021_v14 = vadd.f32 %v3020_v60, %v2990_v22  ;;  %v2993_v12 = vmul.f32 %v9454_v41, %v9454_v41 }
 0x283   : > { %v2952_v26 = vadd.f32 %v2951_v49, %v9463_v4  ;;  %v2991_v2 = vmul.f32 %v9463_v4, %v9463_v4  ;;  %v2994_v53 = vmul.f32 %v9458_v30, %v9458_v30 }
 0x284   : > { %v2992_v32 = vmul.f32 %v9466_v21, %v9466_v21 }
 0x285   : > { %v2953_v54 = vadd.f32 %v2952_v26, %v9466_v21  ;;  %v3022_v27 = vadd.f32 %v3021_v14, %v2991_v2 }
 0x287   : > { %v2954_v11 = vadd.f32 %v2953_v54, %v9454_v41  ;;  %v3023_v7 = vadd.f32 %v3022_v27, %v2992_v32 }
 0x289   : > { %v2955_v29 = vadd.f32 %v2954_v11, %v9458_v30  ;;  %v3024_v62 = vadd.f32 %v3023_v7, %v2993_v12 }
 0x28b   : > { %v2956_v22 = vrot.slane %v2955_v29, 4  ;;  %v3025_v9 = vadd.f32 %v3024_v62, %v2994_v53 }
 0x28d   : > { %v2957_v18 = vadd.f32 %v2956_v22, %v2955_v29  ;;  %v3026_v15 = vrot.slane %v3025_v9, 4 }
 0x28f   : > { %v2958_v0 = vrot.slane %v2957_v18, 2  ;;  %v3027_v20 = vadd.f32 %v3026_v15, %v3025_v9 }
 0x291   : > { %v2959_v23 = vadd.f32 %v2958_v0, %v2957_v18  ;;  %v3028_v60 = vrot.slane %v3027_v20, 2 }
 0x293   : > { %v2960_v34 = vrot.slane %v2959_v23, 1  ;;  %v3029_v58 = vadd.f32 %v3028_v60, %v3027_v20 }
 0x295   : > { %v2961_v25 = vadd.f32 %v2960_v34, %v2959_v23  ;;  %v3030_v1 = vrot.slane %v3029_v58, 1 }
 0x297   : > { %v9480_v35 = vmul.f32 0.00390625, %v2961_v25  ;;  %v3031_v16 = vadd.f32 %v3030_v1, %v3029_v58 }
 0x299   : > { %v3032_v49 = vmul.f32 0.00390625, %v3031_v16  ;;  %v3033_v14 = vmul.f32 %v9480_v35, %v9480_v35  ;;  %v3063_v26 = vsub.f32 %v9463_v4, %v9480_v35  ;;  %v3064_v2 = vsub.f32 %v9466_v21, %v9480_v35 }
 0x29a   : > { %v3047_v27 = vsub.f32 %v9301_v39, %v9480_v35  ;;  %v3048_v12 = vsub.f32 %v9310_v17, %v9480_v35  ;;  %v3049_v11 = vsub.f32 %v9292_v31, %v9480_v35  ;;  %v3050_v7 = vsub.f32 %v9296_v28, %v9480_v35 }
 0x29b   : > { %v3034_v32 = vsub.f32 %v3032_v49, %v3033_v14  ;;  %v3051_v4 = vsub.f32 %v9349_v47, %v9480_v35  ;;  %v3052_v21 = vsub.f32 %v9354_v19, %v9480_v35  ;;  %v3053_v29 = vsub.f32 %v9340_v13, %v9480_v35 }
 0x29c   : > { %v3054_v39 = vsub.f32 %v9344_v42, %v9480_v35  ;;  %v3055_v17 = vsub.f32 %v9388_v46, %v9480_v35  ;;  %v3056_v31 = vsub.f32 %v9392_v6, %v9480_v35  ;;  %v3057_v28 = vsub.f32 %v9378_v59, %v9480_v35 }
 0x29d   : > { %v3067_v54 = vmax.f32 %v3034_v32, 0.0  ;;  %v3058_v47 = vsub.f32 %v9383_v63, %v9480_v35  ;;  %v3059_v19 = vsub.f32 %v9423_v24, %v9480_v35  ;;  %v3060_v13 = vsub.f32 %v9431_v61, %v9480_v35 }
 0x29e   : > { %v3061_v42 = vsub.f32 %v9415_v51, %v9480_v35  ;;  %v3062_v46 = vsub.f32 %v9419_v10, %v9480_v35  ;;  %v3065_v6 = vsub.f32 %v9454_v41, %v9480_v35  ;;  %v3066_v59 = vsub.f32 %v9458_v30, %v9480_v35 }
 0x29f   : > { %v3068_v53 = vadd.f32 1e-05, %v3067_v54  ;;  %v3035_v63 = vsub.f32 %v9159_v57, %v9480_v35  ;;  %v3036_v24 = vsub.f32 %v9170_v48, %v9480_v35  ;;  %v3037_v61 = vsub.f32 %v9139_v44, %v9480_v35 }
 0x2a0   : > { %v3038_v51 = vsub.f32 %v9146_v5, %v9480_v35  ;;  %v3039_v10 = vsub.f32 %v9220_v50, %v9480_v35  ;;  %v3040_v41 = vsub.f32 %v9226_v40, %v9480_v35  ;;  %v3041_v30 = vsub.f32 %v9199_v43, %v9480_v35 }
 0x2a1   : > { %7847 = vrsqrt.f32 %v3068_v53  ;;  %v3042_v57 = vsub.f32 %v9205_v36, %v9480_v35  ;;  %v3043_v48 = vsub.f32 %v9263_v45, %v9480_v35  ;;  %v3044_v44 = vsub.f32 %v9266_v8, %v9480_v35 }
 0x2a2   : > { %v3045_v5 = vsub.f32 %v9248_v3, %v9480_v35  ;;  %v3046_v50 = vsub.f32 %v9254_v33, %v9480_v35 }
 0x2ae   : > { %v7848_v62 = vpop.eup %7847 }
 0x2af   : > { %v3098_v40 = vmul.f32 %v7848_v62, %v3063_v26  ;;  %v3099_v22 = vmul.f32 %v7848_v62, %v3064_v2  ;;  %v9548_v9 = vmul.f32 %v7848_v62, %v3035_v63  ;;  %v9550_v43 = vmul.f32 %v7848_v62, %v3036_v24 }
 0x2b0   : > { %v3072_v36 = vmul.f32 %v7848_v62, %v3037_v61  ;;  %v3073_v18 = vmul.f32 %v7848_v62, %v3038_v51  ;;  %v3074_v15 = vmul.f32 %v7848_v62, %v3039_v10  ;;  %v3075_v0 = vmul.f32 %v7848_v62, %v3040_v41 }
 0x2b1   : > { %v3130_v45 = vmax.f32 %v3098_v40, 0.0  ;;  %v3131_v20 = vmax.f32 %v3099_v22, 0.0  ;;  %v3076_v23 = vmul.f32 %v7848_v62, %v3041_v30  ;;  %v3077_v8 = vmul.f32 %v7848_v62, %v3042_v57 }
 0x2b2   : > { %v3078_v60 = vmul.f32 %v7848_v62, %v3043_v48  ;;  %v3079_v34 = vmul.f32 %v7848_v62, %v3044_v44  ;;  %v3080_v3 = vmul.f32 %v7848_v62, %v3045_v5  ;;  %v3081_v58 = vmul.f32 %v7848_v62, %v3046_v50 }
 0x2b3   : > { %v9552_v25 = vpack.c.bf16 %v3131_v20, %v3130_v45  ;;  %v3082_v33 = vmul.f32 %v7848_v62, %v3047_v27  ;;  %v3083_v1 = vmul.f32 %v7848_v62, %v3048_v12  ;;  %v3084_v35 = vmul.f32 %v7848_v62, %v3049_v11 }
 0x2b4   : > { %v3085_v16 = vmul.f32 %v7848_v62, %v3050_v7  ;;  %v3086_v49 = vmul.f32 %v7848_v62, %v3051_v4  ;;  %v3087_v14 = vmul.f32 %v7848_v62, %v3052_v21  ;;  %v3088_v26 = vmul.f32 %v7848_v62, %v3053_v29 }
 0x2b5   : > { %v3089_v2 = vmul.f32 %v7848_v62, %v3054_v39  ;;  %v3090_v32 = vmul.f32 %v7848_v62, %v3055_v17  ;;  %v3091_v54 = vmul.f32 %v7848_v62, %v3056_v31  ;;  %v3092_v53 = vmul.f32 %v7848_v62, %v3057_v28 }
 0x2b6   : > { %v3093_v63 = vmul.f32 %v7848_v62, %v3058_v47  ;;  %v3094_v24 = vmul.f32 %v7848_v62, %v3059_v19  ;;  %v3095_v61 = vmul.f32 %v7848_v62, %v3060_v13  ;;  %v3096_v51 = vmul.f32 %v7848_v62, %v3061_v42 }
 0x2b7   : > { %v3097_v10 = vmul.f32 %v7848_v62, %v3062_v46  ;;  %v3100_v41 = vmul.f32 %v7848_v62, %v3065_v6  ;;  %v3101_v30 = vmul.f32 %v7848_v62, %v3066_v59  ;;  %v3102_v57 = vmax.f32 %v9548_v9, 0.0 }
 0x2b8   : > { %v3103_v27 = vmax.f32 %v9550_v43, 0.0  ;;  %v3104_v12 = vmax.f32 %v3072_v36, 0.0  ;;  %v3105_v11 = vmax.f32 %v3073_v18, 0.0  ;;  %v3106_v7 = vmax.f32 %v3074_v15, 0.0 }
 0x2b9   : > { %v3107_v4 = vmax.f32 %v3075_v0, 0.0  ;;  %v3108_v21 = vmax.f32 %v3076_v23, 0.0  ;;  %v3109_v29 = vmax.f32 %v3077_v8, 0.0  ;;  %v3110_v39 = vmax.f32 %v3078_v60, 0.0 }
 0x2ba   : > { %v3111_v17 = vmax.f32 %v3079_v34, 0.0  ;;  %v3112_v31 = vmax.f32 %v3080_v3, 0.0  ;;  %v3113_v28 = vmax.f32 %v3081_v58, 0.0  ;;  %v3114_v47 = vmax.f32 %v3082_v33, 0.0 }
 0x2bb   : > { %v3115_v19 = vmax.f32 %v3083_v1, 0.0  ;;  %v3116_v13 = vmax.f32 %v3084_v35, 0.0  ;;  %v3117_v42 = vmax.f32 %v3085_v16, 0.0  ;;  %v3118_v46 = vmax.f32 %v3086_v49, 0.0 }
 0x2bc   : > { %v3119_v6 = vmax.f32 %v3087_v14, 0.0  ;;  %v3120_v59 = vmax.f32 %v3088_v26, 0.0  ;;  %v3121_v62 = vmax.f32 %v3089_v2, 0.0  ;;  %v3122_v48 = vmax.f32 %v3090_v32, 0.0  ;;  %v7792_v14 = vld [vmem:[#allocation7 + $0x1b0] sm:$0xff]   ;;  %v7793_v2 = vld [vmem:[#allocation7 + $0x1a8] sm:$0xff]  }
 0x2bd   : > { %v3123_v44 = vmax.f32 %v3091_v54, 0.0  ;;  %v3124_v5 = vmax.f32 %v3092_v53, 0.0  ;;  %v3125_v50 = vmax.f32 %v3093_v63, 0.0  ;;  %v3126_v40 = vmax.f32 %v3094_v24, 0.0  ;;  %v7797_v26 = vld [vmem:[#allocation7 + $0x130] sm:$0xff]   ;;  %v7799_v32 = vld [vmem:[#allocation7 + $0x128] sm:$0xff]  }
 0x2be   : > { %v3127_v22 = vmax.f32 %v3095_v61, 0.0  ;;  %v3128_v9 = vmax.f32 %v3096_v51, 0.0  ;;  %v3129_v43 = vmax.f32 %v3097_v10, 0.0  ;;  %v3132_v36 = vmax.f32 %v3100_v41, 0.0  ;;  %v7794_v54 = vld [vmem:[#allocation7 + $0x1a0] sm:$0xff]   ;;  %v7798_v63 = vld [vmem:[#allocation7 + $0x190] sm:$0xff]  }
 0x2bf   : > { %v3133_v18 = vmax.f32 %v3101_v30, 0.0  ;;  %v9556_v15 = vpack.c.bf16 %v3105_v11, %v3104_v12  ;;  %v9558_v0 = vpack.c.bf16 %v3107_v4, %v3106_v7  ;;  %v9560_v45 = vpack.c.bf16 %v3109_v29, %v3108_v21  ;;  %v7800_v53 = vld [vmem:[#allocation7 + $0x120] sm:$0xff]   ;;  %v7803_v24 = vld [vmem:[#allocation7 + $0x110] sm:$0xff]   ;;  %v7801_v61 = vld [vmem:[#allocation7 + $0x188] sm:$0xff]  }
 0x2c0   : > { %v9562_v20 = vpack.c.bf16 %v3111_v17, %v3110_v39  ;;  %v9564_v23 = vpack.c.bf16 %v3113_v28, %v3112_v31  ;;  %v9566_v8 = vpack.c.bf16 %v3115_v19, %v3114_v47  ;;  %v9568_v60 = vpack.c.bf16 %v3117_v42, %v3116_v13  ;;  %v7805_v51 = vld [vmem:[#allocation7 + $0x108] sm:$0xff]   ;;  %v7804_v10 = vld [vmem:[#allocation7 + $0x180] sm:$0xff]   ;;  %v7807_v30 = vld [vmem:[#allocation7 + $0x78] sm:$0xff]  }
 0x2c1   : > { %v9570_v34 = vpack.c.bf16 %v3119_v6, %v3118_v46  ;;  %v9572_v3 = vpack.c.bf16 %v3121_v62, %v3120_v59  ;;  %v9574_v58 = vpack.c.bf16 %v3123_v44, %v3122_v48  ;;  %v9576_v33 = vpack.c.bf16 %v3125_v50, %v3124_v5  ;;  %7262 = vmatprep.mubr.bf16.mxu0 %v9556_v15  ;;  %v7806_v41 = vld [vmem:[#allocation7 + $0x100] sm:$0xff]   ;;  %v7813_v12 = vld [vmem:[#allocation7 + $0x1f0] sm:$0xff]   ;;  %v7809_v11 = vld [vmem:[#allocation7 + $0x68] sm:$0xff]  }
 0x2c2   : > { %v9579_v1 = vpack.c.bf16 %v3127_v22, %v3126_v40  ;;  %v9581_v35 = vpack.c.bf16 %v3129_v43, %v3128_v9  ;;  %v9583_v16 = vpack.c.bf16 %v3133_v18, %v3132_v36  ;;  %v9585_v49 = vpack.c.bf16 %v3103_v27, %v3102_v57  ;;  %v7812_v57 = vld [vmem:[#allocation7 + $0x1f8] sm:$0xff]   ;;  %v7808_v27 = vld [vmem:[#allocation7 + $0x70] sm:$0xff]   ;;  %v7815_v7 = vld [vmem:[#allocation7 + $0x1e8] sm:$0xff]  }
 0x2c3   : > { %v7810_v4 = vld [vmem:[#allocation7 + $0x60] sm:$0xff]   ;;  %v7811_v29 = vld [vmem:[#allocation7 + $0x58] sm:$0xff]   ;;  %v7814_v17 = vld [vmem:[#allocation7 + $0x50] sm:$0xff]  }
 0x2c4   : > { %7214 = vmatprep.mubr.bf16.mxu1 %v9585_v49  ;;  %7263 = vmatmul.mubr.bf16.vlgmr.msra.gmra.mxu0 %v9585_v49  ;;  %v7816_v21 = vld [vmem:[#allocation7 + $0x1e0] sm:$0xff]   ;;  %v7818_v39 = vld [vmem:[#allocation7 + $0x1d8] sm:$0xff]   ;;  %v7819_v31 = vld [vmem:[#allocation7 + $0x1d0] sm:$0xff]  }
 0x2c5   : > { %7215 = vmatmul.mubr.bf16.vlgmr.msra.gmra.mxu1 %v9556_v15  ;;  %7266 = vmatprep.mubr.bf16.mxu0 %v9556_v15  ;;  %v7817_v28 = vld [vmem:[#allocation7 + $0x48] sm:$0xff]   ;;  %v7820_v19 = vld [vmem:[#allocation7 + $0x40] sm:$0xff]   ;;  %v7823_v42 = vld [vmem:[#allocation7 + $0x178] sm:$0xff]  }
 0x2c6   : > { %7218 = vmatprep.mubr.bf16.mxu1 %v9558_v0  ;;  %7295 = vmatpush3.bf16.msra.mxu1 %v9150_v55  ;;  %v7795_v55 = vld [vmem:[#allocation7 + $0x198] sm:$0xff]   ;;  %v7821_v47 = vld [vmem:[#allocation7 + $0x1c8] sm:$0xff]   ;;  %v7822_v13 = vld [vmem:[#allocation7 + $0x1c0] sm:$0xff]  }
 0x2c7   : > { %7296 = vmatprep.subr.bf16.mxu1 %v7792_v14  ;;  %7343 = vmatpush3.bf16.msra.mxu0 %v9325_v37  ;;  %v7802_v37 = vld [vmem:[#allocation7 + $0x118] sm:$0xff]   ;;  %v7824_v6 = vld [vmem:[#allocation7 + $0x170] sm:$0xff]   ;;  %v7825_v62 = vld [vmem:[#allocation7 + $0x168] sm:$0xff]  }
 0x2c8   : > { %7344 = vmatprep.subr.bf16.mxu0 %v7797_v26  ;;  %v7828_v46 = vld [vmem:[#allocation7 + $0xb8] sm:$0xff]   ;;  %v7829_v59 = vld [vmem:[#allocation7 + $0xb0] sm:$0xff]   ;;  %v7831_v48 = vld [vmem:[#allocation7 + $0xa8] sm:$0xff]  }
 0x2c9   : > { %v7826_v44 = vld [vmem:[#allocation7 + $0x160] sm:$0xff]   ;;  %v7827_v50 = vld [vmem:[#allocation7 + $0x158] sm:$0xff]   ;;  %v7830_v22 = vld [vmem:[#allocation7 + $0x150] sm:$0xff]  }
 0x2ca   : > { %7297 = vmatpush3.bf16.msra.mxu1 %v7792_v14  ;;  %v7832_v5 = vld [vmem:[#allocation7 + $0xa0] sm:$0xff]   ;;  %v7834_v40 = vld [vmem:[#allocation7 + $0x98] sm:$0xff]   ;;  %v7835_v9 = vld [vmem:[#allocation7 + $0x90] sm:$0xff]  }
 0x2cb   : > { %7298 = vmatprep.subr.bf16.mxu1 %v7793_v2  ;;  %7345 = vmatpush3.bf16.msra.mxu0 %v7797_v26  ;;  %v7833_v43 = vld [vmem:[#allocation7 + $0x148] sm:$0xff]   ;;  %v7836_v18 = vld [vmem:[#allocation7 + $0x140] sm:$0xff]   ;;  %v7839_v26 = vld [vmem:[#allocation7 + $0x238] sm:$0xff]  }
 0x2cc   : > { %7267 = vmatmul.mubr.bf16.gmra.mxu0 %v9558_v0  ;;  %7346 = vmatprep.subr.bf16.mxu0 %v7799_v32  ;;  %v7837_v36 = vld [vmem:[#allocation7 + $0x88] sm:$0xff]   ;;  %v7838_v14 = vld [vmem:[#allocation7 + $0x80] sm:$0xff]  }
 0x2cd   : > { %7219 = vmatmul.mubr.bf16.gmra.mxu1 %v9560_v45  ;;  %7270 = vmatprep.mubr.bf16.mxu0 %v9560_v45 }
 0x2ce   : > { %7222 = vmatprep.mubr.bf16.mxu1 %v9562_v20  ;;  %7299 = vmatpush3.bf16.msra.mxu1 %v7793_v2  ;;  %v7840_v2 = vld [vmem:[#allocation7 + $0x230] sm:$0xff]  }
 0x2cf   : > { %7300 = vmatprep.subr.bf16.mxu1 %v7794_v54  ;;  %7347 = vmatpush3.bf16.msra.mxu0 %v7799_v32 }
 0x2d0   : > { %7348 = vmatprep.subr.bf16.mxu0 %v7800_v53 }
 0x2d2   : > { %7301 = vmatpush3.bf16.msra.mxu1 %v7794_v54 }
 0x2d3   : > { %7302 = vmatprep.subr.bf16.mxu1 %v7795_v55  ;;  %7349 = vmatpush3.bf16.msra.mxu0 %v7800_v53 }
 0x2d4   : > { %7271 = vmatmul.mubr.bf16.gmra.mxu0 %v9562_v20  ;;  %7350 = vmatprep.subr.bf16.mxu0 %v7802_v37 }
 0x2d5   : > { %7223 = vmatmul.mubr.bf16.gmra.mxu1 %v9564_v23  ;;  %7274 = vmatprep.mubr.bf16.mxu0 %v9564_v23 }
 0x2d6   : > { %7226 = vmatprep.mubr.bf16.mxu1 %v9566_v8  ;;  %7303 = vmatpush3.bf16.msra.mxu1 %v7795_v55 }
 0x2d7   : > { %7304 = vmatprep.subr.bf16.mxu1 %v7798_v63  ;;  %7351 = vmatpush3.bf16.msra.mxu0 %v7802_v37 }
 0x2d8   : > { %7352 = vmatprep.subr.bf16.mxu0 %v7803_v24 }
 0x2da   : > { %7305 = vmatpush3.bf16.msra.mxu1 %v7798_v63  ;;  %v7841_v63 = vld [vmem:[#allocation7 + $0x228] sm:$0xff]  }
 0x2db   : > { %7306 = vmatprep.subr.bf16.mxu1 %v7801_v61  ;;  %7353 = vmatpush3.bf16.msra.mxu0 %v7803_v24 }
 0x2dc   : > { %7275 = vmatmul.mubr.bf16.gmra.mxu0 %v9566_v8  ;;  %7354 = vmatprep.subr.bf16.mxu0 %v7805_v51 }
 0x2dd   : > { %7227 = vmatmul.mubr.bf16.gmra.mxu1 %v9568_v60  ;;  %7278 = vmatprep.mubr.bf16.mxu0 %v9568_v60 }
 0x2de   : > { %7230 = vmatprep.mubr.bf16.mxu1 %v9570_v34  ;;  %7307 = vmatpush3.bf16.msra.mxu1 %v7801_v61 }
 0x2df   : > { %7308 = vmatprep.subr.bf16.mxu1 %v7804_v10  ;;  %7355 = vmatpush3.bf16.msra.mxu0 %v7805_v51 }
 0x2e0   : > { %7356 = vmatprep.subr.bf16.mxu0 %v7806_v41 }
 0x2e2   : > { %7309 = vmatpush3.bf16.msra.mxu1 %v7804_v10 }
 0x2e3   : > { %7357 = vmatpush3.bf16.msra.mxu0 %v7806_v41  ;;  %7390 = vmatprep.subr.bf16.mxu1 %v7807_v30 }
 0x2e4   : > { %7279 = vmatmul.mubr.bf16.gmra.mxu0 %v9570_v34  ;;  %7438 = vmatprep.subr.bf16.mxu0 %v7812_v57 }
 0x2e5   : > { %7231 = vmatmul.mubr.bf16.gmra.mxu1 %v9572_v3  ;;  %7282 = vmatprep.mubr.bf16.mxu0 %v9572_v3 }
 0x2e6   : > { %7234 = vmatprep.mubr.bf16.mxu1 %v9574_v58 }
 0x2ec   : > { %7283 = vmatmul.mubr.bf16.gmra.mxu0 %v9574_v58 }
 0x2ed   : > { %7235 = vmatmul.mubr.bf16.gmra.mxu1 %v9576_v33  ;;  %7286 = vmatprep.mubr.bf16.mxu0 %v9576_v33 }
 0x2ee   : > { %7238 = vmatprep.mubr.bf16.mxu1 %v9579_v1 }
 0x2f4   : > { %7287 = vmatmul.mubr.bf16.gmra.mxu0 %v9579_v1 }
 0x2f5   : > { %7239 = vmatmul.mubr.bf16.gmra.mxu1 %v9581_v35  ;;  %7290 = vmatprep.mubr.bf16.mxu0 %v9581_v35 }
 0x2f6   : > { %7242 = vmatprep.mubr.bf16.mxu1 %v9552_v25 }
 0x2fc   : > { %7291 = vmatmul.mubr.bf16.gmra.mxu0 %v9552_v25 }
 0x2fd   : > { %7243 = vmatmul.mubr.bf16.gmra.mxu1 %v9583_v16  ;;  %7358 = vmatprep.mubr.bf16.mxu0 %v9585_v49 }
 0x2fe   : > { %7310 = vmatprep.mubr.bf16.mxu1 %v9556_v15 }
 0x304   : > { %7359 = vmatmul.mubr.bf16.vlgmr.msra.gmra.mxu0 %v9556_v15 }
 0x305   : > { %7311 = vmatmul.mubr.bf16.vlgmr.msra.gmra.mxu1 %v9558_v0  ;;  %7362 = vmatprep.mubr.bf16.mxu0 %v9558_v0 }
 0x306   : > { %7314 = vmatprep.mubr.bf16.mxu1 %v9560_v45  ;;  %7391 = vmatpush3.bf16.msra.mxu1 %v7807_v30  ;;  %v7842_v30 = vld [vmem:[#allocation7 + $0x220] sm:$0xff]  }
 0x307   : > { %7392 = vmatprep.subr.bf16.mxu1 %v7808_v27  ;;  %7439 = vmatpush3.bf16.msra.mxu0 %v7812_v57 }
 0x308   : > { %7440 = vmatprep.subr.bf16.mxu0 %v7813_v12 }
 0x30a   : > { %7393 = vmatpush3.bf16.msra.mxu1 %v7808_v27 }
 0x30b   : > { %7394 = vmatprep.subr.bf16.mxu1 %v7809_v11  ;;  %7441 = vmatpush3.bf16.msra.mxu0 %v7813_v12 }
 0x30c   : > { %7363 = vmatmul.mubr.bf16.gmra.mxu0 %v9560_v45  ;;  %7442 = vmatprep.subr.bf16.mxu0 %v7815_v7 }
 0x30d   : > { %7315 = vmatmul.mubr.bf16.gmra.mxu1 %v9562_v20  ;;  %7366 = vmatprep.mubr.bf16.mxu0 %v9562_v20 }
 0x30e   : > { %7318 = vmatprep.mubr.bf16.mxu1 %v9564_v23  ;;  %7395 = vmatpush3.bf16.msra.mxu1 %v7809_v11 }
 0x30f   : > { %7396 = vmatprep.subr.bf16.mxu1 %v7810_v4  ;;  %7443 = vmatpush3.bf16.msra.mxu0 %v7815_v7 }
 0x310   : > { %7444 = vmatprep.subr.bf16.mxu0 %v7816_v21 }
 0x312   : > { %7397 = vmatpush3.bf16.msra.mxu1 %v7810_v4 }
 0x313   : > { %7398 = vmatprep.subr.bf16.mxu1 %v7811_v29  ;;  %7445 = vmatpush3.bf16.msra.mxu0 %v7816_v21  ;;  %v7843_v21 = vld [vmem:[#allocation7 + $0x218] sm:$0xff]  }
 0x314   : > { %7367 = vmatmul.mubr.bf16.gmra.mxu0 %v9564_v23  ;;  %7446 = vmatprep.subr.bf16.mxu0 %v7818_v39 }
 0x315   : > { %7319 = vmatmul.mubr.bf16.gmra.mxu1 %v9566_v8  ;;  %7370 = vmatprep.mubr.bf16.mxu0 %v9566_v8 }
 0x316   : > { %7322 = vmatprep.mubr.bf16.mxu1 %v9568_v60  ;;  %7399 = vmatpush3.bf16.msra.mxu1 %v7811_v29 }
 0x317   : > { %7400 = vmatprep.subr.bf16.mxu1 %v7814_v17  ;;  %7447 = vmatpush3.bf16.msra.mxu0 %v7818_v39 }
 0x318   : > { %7448 = vmatprep.subr.bf16.mxu0 %v7819_v31 }
 0x31a   : > { %7401 = vmatpush3.bf16.msra.mxu1 %v7814_v17 }
 0x31b   : > { %7402 = vmatprep.subr.bf16.mxu1 %v7817_v28  ;;  %7449 = vmatpush3.bf16.msra.mxu0 %v7819_v31 }
 0x31c   : > { %7371 = vmatmul.mubr.bf16.gmra.mxu0 %v9568_v60  ;;  %7450 = vmatprep.subr.bf16.mxu0 %v7821_v47 }
 0x31d   : > { %7323 = vmatmul.mubr.bf16.gmra.mxu1 %v9570_v34  ;;  %7374 = vmatprep.mubr.bf16.mxu0 %v9570_v34 }
 0x31e   : > { %7326 = vmatprep.mubr.bf16.mxu1 %v9572_v3  ;;  %7403 = vmatpush3.bf16.msra.mxu1 %v7817_v28 }
 0x31f   : > { %7404 = vmatprep.subr.bf16.mxu1 %v7820_v19  ;;  %7451 = vmatpush3.bf16.msra.mxu0 %v7821_v47 }
 0x320   : > { %7452 = vmatprep.subr.bf16.mxu0 %v7822_v13 }
 0x322   : > { %7405 = vmatpush3.bf16.msra.mxu1 %v7820_v19  ;;  %v7844_v19 = vld [vmem:[#allocation7 + $0x210] sm:$0xff]  }
 0x323   : > { %7453 = vmatpush3.bf16.msra.mxu0 %v7822_v13  ;;  %7486 = vmatprep.subr.bf16.mxu1 %v7823_v42 }
 0x324   : > { %7375 = vmatmul.mubr.bf16.gmra.mxu0 %v9572_v3  ;;  %7534 = vmatprep.subr.bf16.mxu0 %v7828_v46 }
 0x325   : > { %7327 = vmatmul.mubr.bf16.gmra.mxu1 %v9574_v58  ;;  %7378 = vmatprep.mubr.bf16.mxu0 %v9574_v58 }
 0x326   : > { %7330 = vmatprep.mubr.bf16.mxu1 %v9576_v33 }
 0x32c   : > { %7379 = vmatmul.mubr.bf16.gmra.mxu0 %v9576_v33 }
 0x32d   : > { %7331 = vmatmul.mubr.bf16.gmra.mxu1 %v9579_v1  ;;  %7382 = vmatprep.mubr.bf16.mxu0 %v9579_v1 }
 0x32e   : > { %7334 = vmatprep.mubr.bf16.mxu1 %v9581_v35 }
 0x334   : > { %7383 = vmatmul.mubr.bf16.gmra.mxu0 %v9581_v35 }
 0x335   : > { %7335 = vmatmul.mubr.bf16.gmra.mxu1 %v9552_v25  ;;  %7386 = vmatprep.mubr.bf16.mxu0 %v9552_v25 }
 0x336   : > { %7338 = vmatprep.mubr.bf16.mxu1 %v9583_v16 }
 0x33c   : > { %7387 = vmatmul.mubr.bf16.gmra.mxu0 %v9583_v16 }
 0x33d   : > { %7339 = vmatmul.mubr.bf16.gmra.mxu1 %v9552_v25  ;;  %7454 = vmatprep.mubr.bf16.mxu0 %v9556_v15 }
 0x33e   : > { %7406 = vmatprep.mubr.bf16.mxu1 %v9556_v15 }
 0x344   : > { %7455 = vmatmul.mubr.bf16.vlgmr.msra.gmra.mxu0 %v9558_v0 }
 0x345   : > { %7407 = vmatmul.mubr.bf16.vlgmr.msra.gmra.mxu1 %v9585_v49  ;;  %7458 = vmatprep.mubr.bf16.mxu0 %v9560_v45 }
 0x346   : > { %7410 = vmatprep.mubr.bf16.mxu1 %v9556_v15  ;;  %7487 = vmatpush3.bf16.msra.mxu1 %v7823_v42 }
 0x347   : > { %7488 = vmatprep.subr.bf16.mxu1 %v7824_v6  ;;  %7535 = vmatpush3.bf16.msra.mxu0 %v7828_v46 }
 0x348   : > { %7536 = vmatprep.subr.bf16.mxu0 %v7829_v59 }
 0x34a   : > { %7489 = vmatpush3.bf16.msra.mxu1 %v7824_v6 }
 0x34b   : > { %7490 = vmatprep.subr.bf16.mxu1 %v7825_v62  ;;  %7537 = vmatpush3.bf16.msra.mxu0 %v7829_v59 }
 0x34c   : > { %7459 = vmatmul.mubr.bf16.gmra.mxu0 %v9562_v20  ;;  %7538 = vmatprep.subr.bf16.mxu0 %v7831_v48 }
 0x34d   : > { %7411 = vmatmul.mubr.bf16.gmra.mxu1 %v9558_v0  ;;  %7462 = vmatprep.mubr.bf16.mxu0 %v9564_v23 }
 0x34e   : > { %7414 = vmatprep.mubr.bf16.mxu1 %v9560_v45  ;;  %7491 = vmatpush3.bf16.msra.mxu1 %v7825_v62 }
 0x34f   : > { %7492 = vmatprep.subr.bf16.mxu1 %v7826_v44  ;;  %7539 = vmatpush3.bf16.msra.mxu0 %v7831_v48  ;;  %v7845_v48 = vld [vmem:[#allocation7 + $0x208] sm:$0xff]  }
 0x350   : > { %7540 = vmatprep.subr.bf16.mxu0 %v7832_v5 }
 0x352   : > { %7493 = vmatpush3.bf16.msra.mxu1 %v7826_v44 }
 0x353   : > { %7494 = vmatprep.subr.bf16.mxu1 %v7827_v50  ;;  %7541 = vmatpush3.bf16.msra.mxu0 %v7832_v5 }
 0x354   : > { %7463 = vmatmul.mubr.bf16.gmra.mxu0 %v9566_v8  ;;  %7542 = vmatprep.subr.bf16.mxu0 %v7834_v40 }
 0x355   : > { %7415 = vmatmul.mubr.bf16.gmra.mxu1 %v9562_v20  ;;  %7466 = vmatprep.mubr.bf16.mxu0 %v9568_v60 }
 0x356   : > { %7418 = vmatprep.mubr.bf16.mxu1 %v9564_v23  ;;  %7495 = vmatpush3.bf16.msra.mxu1 %v7827_v50 }
 0x357   : > { %7496 = vmatprep.subr.bf16.mxu1 %v7830_v22  ;;  %7543 = vmatpush3.bf16.msra.mxu0 %v7834_v40 }
 0x358   : > { %7544 = vmatprep.subr.bf16.mxu0 %v7835_v9 }
 0x35a   : > { %7497 = vmatpush3.bf16.msra.mxu1 %v7830_v22 }
 0x35b   : > { %7498 = vmatprep.subr.bf16.mxu1 %v7833_v43  ;;  %7545 = vmatpush3.bf16.msra.mxu0 %v7835_v9 }
 0x35c   : > { %7467 = vmatmul.mubr.bf16.gmra.mxu0 %v9570_v34  ;;  %7546 = vmatprep.subr.bf16.mxu0 %v7837_v36 }
 0x35d   : > { %7419 = vmatmul.mubr.bf16.gmra.mxu1 %v9566_v8  ;;  %7470 = vmatprep.mubr.bf16.mxu0 %v9572_v3 }
 0x35e   : > { %7422 = vmatprep.mubr.bf16.mxu1 %v9568_v60  ;;  %7499 = vmatpush3.bf16.msra.mxu1 %v7833_v43  ;;  %v7846_v43 = vld [vmem:[#allocation7 + $0x200] sm:$0xff]  }
 0x35f   : > { %7500 = vmatprep.subr.bf16.mxu1 %v7836_v18  ;;  %7547 = vmatpush3.bf16.msra.mxu0 %v7837_v36 }
 0x360   : > { %7548 = vmatprep.subr.bf16.mxu0 %v7838_v14 }
 0x362   : > { %7501 = vmatpush3.bf16.msra.mxu1 %v7836_v18 }
 0x363   : > { %7549 = vmatpush3.bf16.msra.mxu0 %v7838_v14  ;;  %7582 = vmatprep.subr.bf16.mxu1 %v7839_v26 }
 0x364   : > { %7471 = vmatmul.mubr.bf16.gmra.mxu0 %v9574_v58 }
 0x365   : > { %7423 = vmatmul.mubr.bf16.gmra.mxu1 %v9570_v34  ;;  %7474 = vmatprep.mubr.bf16.mxu0 %v9576_v33 }
 0x366   : > { %7426 = vmatprep.mubr.bf16.mxu1 %v9572_v3 }
 0x36c   : > { %7475 = vmatmul.mubr.bf16.gmra.mxu0 %v9579_v1 }
 0x36d   : > { %7427 = vmatmul.mubr.bf16.gmra.mxu1 %v9574_v58  ;;  %7478 = vmatprep.mubr.bf16.mxu0 %v9581_v35 }
 0x36e   : > { %7430 = vmatprep.mubr.bf16.mxu1 %v9576_v33 }
 0x374   : > { %7479 = vmatmul.mubr.bf16.gmra.mxu0 %v9552_v25 }
 0x375   : > { %7431 = vmatmul.mubr.bf16.gmra.mxu1 %v9579_v1  ;;  %7482 = vmatprep.mubr.bf16.mxu0 %v9583_v16 }
 0x376   : > { %7434 = vmatprep.mubr.bf16.mxu1 %v9581_v35 }
 0x37c   : > { %7483 = vmatmul.mubr.bf16.gmra.mxu0 %v9552_v25 }
 0x37d   : > { %7435 = vmatmul.mubr.bf16.gmra.mxu1 %v9552_v25  ;;  %7550 = vmatprep.mubr.bf16.mxu0 %v9556_v15 }
 0x37e   : > { %7502 = vmatprep.mubr.bf16.mxu1 %v9585_v49 }
 0x384   : > { %v7264_v32 = vpop.f32.mrf.mxu0  ;;  %7551 = vmatmul.mubr.bf16.vlgmr.msra.gmra.mxu0 %v9585_v49 }
 0x385   : > { %v7216_v54 = vpop.f32.mrf.mxu1  ;;  %7503 = vmatmul.mubr.bf16.vlgmr.msra.gmra.mxu1 %v9556_v15  ;;  %7554 = vmatprep.mubr.bf16.mxu0 %v9556_v15 }
 0x386   : > { %v9689_v53 = vadd.f32 %v7264_v32, %v7216_v54  ;;  %7506 = vmatprep.mubr.bf16.mxu1 %v9558_v0  ;;  %7583 = vmatpush3.bf16.msra.mxu1 %v7839_v26  ;;  %v3474_v55 = vpop.f32.mrf.mxu0 }
 0x387   : > { %v3265_v37 = vpop.f32.mrf.mxu1  ;;  %7584 = vmatprep.subr.bf16.mxu1 %v7840_v2 }
 0x388   : > { %v9692_v24 = vadd.f32 %v3474_v55, %v3265_v37  ;;  %v7265_v61 = vpop.f32.mrf.mxu0 }
 0x389   : > { %v7217_v51 = vpop.f32.mrf.mxu1 }
 0x38a   : > { %v9694_v10 = vadd.f32 %v7265_v61, %v7217_v51  ;;  %v3477_v49 = vpop.f32.mrf.mxu0  ;;  %7585 = vmatpush3.bf16.msra.mxu1 %v7840_v2 }
 0x38b   : > { %v3268_v41 = vpop.f32.mrf.mxu1  ;;  %7586 = vmatprep.subr.bf16.mxu1 %v7841_v63 }
 0x38c   : > { %v9696_v57 = vadd.f32 %v3477_v49, %v3268_v41  ;;  %v7268_v27 = vpop.f32.mrf.mxu0  ;;  %7555 = vmatmul.mubr.bf16.gmra.mxu0 %v9558_v0 }
 0x38d   : > { %v7220_v12 = vpop.f32.mrf.mxu1  ;;  %7507 = vmatmul.mubr.bf16.gmra.mxu1 %v9560_v45  ;;  %7558 = vmatprep.mubr.bf16.mxu0 %v9560_v45 }
 0x38e   : > { %v9701_v11 = vadd.f32 %v7268_v27, %v7220_v12  ;;  %7510 = vmatprep.mubr.bf16.mxu1 %v9562_v20  ;;  %v3490_v7 = vpop.f32.mrf.mxu0  ;;  %7587 = vmatpush3.bf16.msra.mxu1 %v7841_v63 }
 0x38f   : > { %v3281_v4 = vpop.f32.mrf.mxu1  ;;  %7588 = vmatprep.subr.bf16.mxu1 %v7842_v30 }
 0x390   : > { %v9704_v29 = vadd.f32 %v3490_v7, %v3281_v4  ;;  %v7269_v39 = vpop.f32.mrf.mxu0 }
 0x391   : > { %v7221_v17 = vpop.f32.mrf.mxu1 }
 0x392   : > { %v9706_v31 = vadd.f32 %v7269_v39, %v7221_v17  ;;  %v3493_v28 = vpop.f32.mrf.mxu0  ;;  %7589 = vmatpush3.bf16.msra.mxu1 %v7842_v30 }
 0x393   : > { %v3284_v47 = vpop.f32.mrf.mxu1  ;;  %7590 = vmatprep.subr.bf16.mxu1 %v7843_v21 }
 0x394   : > { %v9708_v13 = vadd.f32 %v3493_v28, %v3284_v47  ;;  %v7272_v42 = vpop.f32.mrf.mxu0  ;;  %7559 = vmatmul.mubr.bf16.gmra.mxu0 %v9562_v20 }
 0x395   : > { %v7224_v46 = vpop.f32.mrf.mxu1  ;;  %7511 = vmatmul.mubr.bf16.gmra.mxu1 %v9564_v23  ;;  %7562 = vmatprep.mubr.bf16.mxu0 %v9564_v23 }
 0x396   : > { %v9713_v6 = vadd.f32 %v7272_v42, %v7224_v46  ;;  %7514 = vmatprep.mubr.bf16.mxu1 %v9566_v8  ;;  %v3506_v59 = vpop.f32.mrf.mxu0  ;;  %7591 = vmatpush3.bf16.msra.mxu1 %v7843_v21 }
 0x397   : > { %v3297_v62 = vpop.f32.mrf.mxu1  ;;  %7592 = vmatprep.subr.bf16.mxu1 %v7844_v19 }
 0x398   : > { %v9716_v44 = vadd.f32 %v3506_v59, %v3297_v62  ;;  %v7273_v5 = vpop.f32.mrf.mxu0 }
 0x399   : > { %v7225_v50 = vpop.f32.mrf.mxu1 }
 0x39a   : > { %v9718_v40 = vadd.f32 %v7273_v5, %v7225_v50  ;;  %v3509_v22 = vpop.f32.mrf.mxu0  ;;  %7593 = vmatpush3.bf16.msra.mxu1 %v7844_v19 }
 0x39b   : > { %v3300_v9 = vpop.f32.mrf.mxu1  ;;  %7594 = vmatprep.subr.bf16.mxu1 %v7845_v48 }
 0x39c   : > { %v9720_v36 = vadd.f32 %v3509_v22, %v3300_v9  ;;  %v7276_v18 = vpop.f32.mrf.mxu0  ;;  %7563 = vmatmul.mubr.bf16.gmra.mxu0 %v9566_v8 }
 0x39d   : > { %v7228_v14 = vpop.f32.mrf.mxu1  ;;  %7515 = vmatmul.mubr.bf16.gmra.mxu1 %v9568_v60  ;;  %7566 = vmatprep.mubr.bf16.mxu0 %v9568_v60 }
 0x39e   : > { %v9725_v26 = vadd.f32 %v7276_v18, %v7228_v14  ;;  %7518 = vmatprep.mubr.bf16.mxu1 %v9570_v34  ;;  %v3522_v2 = vpop.f32.mrf.mxu0  ;;  %7595 = vmatpush3.bf16.msra.mxu1 %v7845_v48 }
 0x39f   : > { %v3313_v32 = vpop.f32.mrf.mxu1  ;;  %7596 = vmatprep.subr.bf16.mxu1 %v7846_v43 }
 0x3a0   : > { %v9728_v54 = vadd.f32 %v3522_v2, %v3313_v32  ;;  %v7277_v55 = vpop.f32.mrf.mxu0 }
 0x3a1   : > { %v7229_v37 = vpop.f32.mrf.mxu1 }
 0x3a2   : > { %v9730_v63 = vadd.f32 %v7277_v55, %v7229_v37  ;;  %v3525_v61 = vpop.f32.mrf.mxu0  ;;  %7597 = vmatpush3.bf16.msra.mxu1 %v7846_v43 }
 0x3a3   : > { %v3316_v51 = vpop.f32.mrf.mxu1 }
 0x3a4   : > { %v9732_v49 = vadd.f32 %v3525_v61, %v3316_v51  ;;  %v7280_v41 = vpop.f32.mrf.mxu0  ;;  %7567 = vmatmul.mubr.bf16.gmra.mxu0 %v9570_v34 }
 0x3a5   : > { %v7232_v30 = vpop.f32.mrf.mxu1  ;;  %7519 = vmatmul.mubr.bf16.gmra.mxu1 %v9572_v3  ;;  %7570 = vmatprep.mubr.bf16.mxu0 %v9572_v3 }
 0x3a6   : > { %v9737_v27 = vadd.f32 %v7280_v41, %v7232_v30  ;;  %7522 = vmatprep.mubr.bf16.mxu1 %v9574_v58  ;;  %v3538_v12 = vpop.f32.mrf.mxu0 }
 0x3a7   : > { %v3329_v7 = vpop.f32.mrf.mxu1 }
 0x3a8   : > { %v9740_v4 = vadd.f32 %v3538_v12, %v3329_v7  ;;  %v7281_v21 = vpop.f32.mrf.mxu0 }
 0x3a9   : > { %v7233_v39 = vpop.f32.mrf.mxu1 }
 0x3aa   : > { %v9742_v17 = vadd.f32 %v7281_v21, %v7233_v39  ;;  %v3541_v28 = vpop.f32.mrf.mxu0 }
 0x3ab   : > { %v3332_v47 = vpop.f32.mrf.mxu1 }
 0x3ac   : > { %v9744_v19 = vadd.f32 %v3541_v28, %v3332_v47  ;;  %v7284_v42 = vpop.f32.mrf.mxu0  ;;  %7571 = vmatmul.mubr.bf16.gmra.mxu0 %v9574_v58 }
 0x3ad   : > { %v7236_v46 = vpop.f32.mrf.mxu1  ;;  %7523 = vmatmul.mubr.bf16.gmra.mxu1 %v9576_v33  ;;  %7574 = vmatprep.mubr.bf16.mxu0 %v9576_v33 }
 0x3ae   : > { %v9749_v59 = vadd.f32 %v7284_v42, %v7236_v46  ;;  %7526 = vmatprep.mubr.bf16.mxu1 %v9579_v1  ;;  %v3554_v62 = vpop.f32.mrf.mxu0 }
 0x3af   : > { %v3345_v48 = vpop.f32.mrf.mxu1 }
 0x3b0   : > { %v9752_v5 = vadd.f32 %v3554_v62, %v3345_v48  ;;  %v7285_v50 = vpop.f32.mrf.mxu0 }
 0x3b1   : > { %v7237_v22 = vpop.f32.mrf.mxu1 }
 0x3b2   : > { %v9754_v9 = vadd.f32 %v7285_v50, %v7237_v22  ;;  %v3557_v43 = vpop.f32.mrf.mxu0 }
 0x3b3   : > { %v3348_v18 = vpop.f32.mrf.mxu1 }
 0x3b4   : > { %v9756_v14 = vadd.f32 %v3557_v43, %v3348_v18  ;;  %v7288_v2 = vpop.f32.mrf.mxu0  ;;  %7575 = vmatmul.mubr.bf16.gmra.mxu0 %v9579_v1 }
 0x3b5   : > { %v7240_v32 = vpop.f32.mrf.mxu1  ;;  %7527 = vmatmul.mubr.bf16.gmra.mxu1 %v9581_v35  ;;  %7578 = vmatprep.mubr.bf16.mxu0 %v9581_v35 }
 0x3b6   : > { %v9761_v55 = vadd.f32 %v7288_v2, %v7240_v32  ;;  %7530 = vmatprep.mubr.bf16.mxu1 %v9552_v25  ;;  %v3570_v37 = vpop.f32.mrf.mxu0 }
 0x3b7   : > { %v3361_v61 = vpop.f32.mrf.mxu1 }
 0x3b8   : > { %v9764_v51 = vadd.f32 %v3570_v37, %v3361_v61  ;;  %v7289_v41 = vpop.f32.mrf.mxu0 }
 0x3b9   : > { %v7241_v30 = vpop.f32.mrf.mxu1 }
 0x3ba   : > { %v9766_v12 = vadd.f32 %v7289_v41, %v7241_v30  ;;  %v3573_v7 = vpop.f32.mrf.mxu0 }
 0x3bb   : > { %v3364_v21 = vpop.f32.mrf.mxu1 }
 0x3bc   : > { %v9768_v39 = vadd.f32 %v3573_v7, %v3364_v21  ;;  %v7292_v28 = vpop.f32.mrf.mxu0  ;;  %7579 = vmatmul.mubr.bf16.gmra.mxu0 %v9552_v25 }
 0x3bd   : > { %v7244_v47 = vpop.f32.mrf.mxu1  ;;  %7531 = vmatmul.mubr.bf16.gmra.mxu1 %v9583_v16 }
 0x3be   : > { %v9772_v42 = vadd.f32 %v7292_v28, %v7244_v47  ;;  %7598 = vmatprep.mubr.bf16.mxu1 %v9556_v15  ;;  %v3586_v46 = vpop.f32.mrf.mxu0 }
 0x3bf   : > { %v3377_v62 = vpop.f32.mrf.mxu1 }
 0x3c0   : > { %v9775_v48 = vadd.f32 %v3586_v46, %v3377_v62  ;;  %v7293_v50 = vpop.f32.mrf.mxu0 }
 0x3c1   : > { %v7245_v22 = vpop.f32.mrf.mxu1 }
 0x3c2   : > { %v9777_v43 = vadd.f32 %v7293_v50, %v7245_v22  ;;  %v3589_v18 = vpop.f32.mrf.mxu0 }
 0x3c3   : > { %v3380_v2 = vpop.f32.mrf.mxu1 }
 0x3c4   : > { %v9779_v32 = vadd.f32 %v3589_v18, %v3380_v2  ;;  %v9781_v37 = vpop.f32.mrf.mxu0 }
 0x3c5   : > { %v7312_v61 = vpop.f32.mrf.mxu1  ;;  %7599 = vmatmul.mubr.bf16.vlgmr.msra.gmra.mxu1 %v9558_v0 }
 0x3c6   : > { %v9785_v41 = vadd.f32 %v7312_v61, %v9689_v53  ;;  %7602 = vmatprep.mubr.bf16.mxu1 %v9560_v45  ;;  %v9788_v15 = vpop.f32.mrf.mxu0 }
 0x3c7   : > { %v3700_v30 = vpop.f32.mrf.mxu1 }
 0x3c8   : > { %v9791_v7 = vadd.f32 %v3700_v30, %v9692_v24  ;;  %v9793_v21 = vpop.f32.mrf.mxu0  ;;  %v10918_v0 = vrot.slane %v9785_v41, 7 }
 0x3c9   : > { %v7313_v28 = vpop.f32.mrf.mxu1 }
 0x3ca   : > { %v3830_v47 = vadd.f32 %v7313_v28, %v9694_v10  ;;  %v9796_v46 = vpop.f32.mrf.mxu0  ;;  %v10919_v24 = vrot.slane %v9791_v7, 7 }
 0x3cb   : > { %v3703_v62 = vpop.f32.mrf.mxu1 }
 0x3cc   : > { %v5315_v53 = vrot.slane %v3830_v47, 7  ;;  %v3828_v50 = vadd.f32 %v3703_v62, %v9696_v57  ;;  %v9800_v45 = vpop.f32.mrf.mxu0 }
 0x3cd   : > { %v7316_v22 = vpop.f32.mrf.mxu1  ;;  %7603 = vmatmul.mubr.bf16.gmra.mxu1 %v9562_v20 }
 0x3ce   : > { %v5312_v18 = vrot.slane %v3828_v50, 7  ;;  %v9805_v2 = vadd.f32 %v7316_v22, %v9701_v11  ;;  %7606 = vmatprep.mubr.bf16.mxu1 %v9564_v23  ;;  %v9808_v10 = vpop.f32.mrf.mxu0  ;;  %v9813_v61 = vsel %vm2431_vm0, %v10918_v0, %v5315_v53 }
 0x3cf   : > { %v3716_v57 = vpop.f32.mrf.mxu1 }
 0x3d0   : > { %v9816_v30 = vadd.f32 %v3716_v57, %v9704_v29  ;;  %v9818_v20 = vpop.f32.mrf.mxu0  ;;  %v9823_v11 = vsel %vm2431_vm0, %v10919_v24, %v5312_v18  ;;  %v10920_v53 = vrot.slane %v9805_v2, 7 }
 0x3d1   : > { %v7317_v28 = vpop.f32.mrf.mxu1 }
 0x3d2   : > { %v3834_v23 = vadd.f32 %v7317_v28, %v9706_v31  ;;  %v9826_v47 = vpop.f32.mrf.mxu0  ;;  %v10925_v0 = vrot.slane %v9816_v30, 7 }
 0x3d3   : > { %v3719_v62 = vpop.f32.mrf.mxu1 }
 0x3d4   : > { %v5321_v50 = vrot.slane %v3834_v23, 7  ;;  %v3832_v22 = vadd.f32 %v3719_v62, %v9708_v13  ;;  %v9830_v29 = vpop.f32.mrf.mxu0 }
 0x3d5   : > { %v7320_v57 = vpop.f32.mrf.mxu1  ;;  %7607 = vmatmul.mubr.bf16.gmra.mxu1 %v9566_v8 }
 0x3d6   : > { %v5318_v18 = vrot.slane %v3832_v22, 7  ;;  %v9835_v24 = vadd.f32 %v7320_v57, %v9713_v6  ;;  %7610 = vmatprep.mubr.bf16.mxu1 %v9568_v60  ;;  %v9838_v31 = vpop.f32.mrf.mxu0  ;;  %v9843_v28 = vsel %vm2431_vm0, %v10920_v53, %v5321_v50 }
 0x3d7   : > { %v3732_v13 = vpop.f32.mrf.mxu1 }
 0x3d8   : > { %v9846_v23 = vadd.f32 %v3732_v13, %v9716_v44  ;;  %v9848_v8 = vpop.f32.mrf.mxu0  ;;  %v9853_v6 = vsel %vm2431_vm0, %v10925_v0, %v5318_v18  ;;  %v10926_v50 = vrot.slane %v9835_v24, 7 }
 0x3d9   : > { %v7321_v62 = vpop.f32.mrf.mxu1 }
 0x3da   : > { %v3838_v60 = vadd.f32 %v7321_v62, %v9718_v40  ;;  %v9856_v22 = vpop.f32.mrf.mxu0  ;;  %v10927_v56 = vrot.slane %v9846_v23, 7 }
 0x3db   : > { %v3735_v57 = vpop.f32.mrf.mxu1 }
 0x3dc   : > { %v5327_v53 = vrot.slane %v3838_v60, 7  ;;  %v3836_v38 = vadd.f32 %v3735_v57, %v9720_v36  ;;  %v9860_v44 = vpop.f32.mrf.mxu0 }
 0x3dd   : > { %v7324_v13 = vpop.f32.mrf.mxu1  ;;  %7611 = vmatmul.mubr.bf16.gmra.mxu1 %v9570_v34 }
 0x3de   : > { %v5324_v18 = vrot.slane %v3836_v38, 7  ;;  %v9865_v0 = vadd.f32 %v7324_v13, %v9725_v26  ;;  %7614 = vmatprep.mubr.bf16.mxu1 %v9572_v3  ;;  %v9868_v40 = vpop.f32.mrf.mxu0  ;;  %v9873_v62 = vsel %vm2431_vm0, %v10926_v50, %v5327_v53 }
 0x3df   : > { %11090 = vst [vmem:[#allocation16_spill] sm:$0xff] %v9868_v40  ;;  %v3748_v36 = vpop.f32.mrf.mxu1 }
 0x3e0   : > { %v9876_v60 = vadd.f32 %v3748_v36, %v9728_v54  ;;  %v9878_v34 = vpop.f32.mrf.mxu0  ;;  %v9883_v38 = vsel %vm2431_vm0, %v10927_v56, %v5324_v18  ;;  %v10928_v53 = vrot.slane %v9865_v0, 7 }
 0x3e1   : > { %11091 = vst [vmem:[#allocation18_spill] sm:$0xff] %v9878_v34  ;;  %v7325_v26 = vpop.f32.mrf.mxu1 }
 0x3e2   : > { %v3842_v3 = vadd.f32 %v7325_v26, %v9730_v63  ;;  %v9886_v57 = vpop.f32.mrf.mxu0  ;;  %v10929_v34 = vrot.slane %v9876_v60, 7 }
 0x3e3   : > { %v3751_v13 = vpop.f32.mrf.mxu1 }
 0x3e4   : > { %v5333_v50 = vrot.slane %v3842_v3, 7  ;;  %v3840_v40 = vadd.f32 %v3751_v13, %v9732_v49  ;;  %v9890_v54 = vpop.f32.mrf.mxu0 }
 0x3e5   : > { %v7328_v36 = vpop.f32.mrf.mxu1  ;;  %7615 = vmatmul.mubr.bf16.gmra.mxu1 %v9574_v58 }
 0x3e6   : > { %v5330_v18 = vrot.slane %v3840_v40, 7  ;;  %v9895_v56 = vadd.f32 %v7328_v36, %v9737_v27  ;;  %7618 = vmatprep.mubr.bf16.mxu1 %v9576_v33  ;;  %v9898_v63 = vpop.f32.mrf.mxu0  ;;  %v9903_v26 = vsel %vm2431_vm0, %v10928_v53, %v5333_v50 }
 0x3e7   : > { %11092 = vst [vmem:[#allocation20_spill] sm:$0xff] %v9898_v63  ;;  %v3764_v49 = vpop.f32.mrf.mxu1 }
 0x3e8   : > { %v9906_v3 = vadd.f32 %v3764_v49, %v9740_v4  ;;  %v9908_v58 = vpop.f32.mrf.mxu0  ;;  %v9913_v27 = vsel %vm2431_vm0, %v10929_v34, %v5330_v18  ;;  %v10930_v50 = vrot.slane %v9895_v56, 7 }
 0x3e9   : > { %11093 = vst [vmem:[#allocation22_spill] sm:$0xff] %v9908_v58  ;;  %v7329_v40 = vpop.f32.mrf.mxu1 }
 0x3ea   : > { %v3846_v33 = vadd.f32 %v7329_v40, %v9742_v17  ;;  %v9916_v13 = vpop.f32.mrf.mxu0  ;;  %v10931_v58 = vrot.slane %v9906_v3, 7 }
 0x3eb   : > { %v3767_v36 = vpop.f32.mrf.mxu1 }
 0x3ec   : > { %v5339_v53 = vrot.slane %v3846_v33, 7  ;;  %v3844_v63 = vadd.f32 %v3767_v36, %v9744_v19  ;;  %v9920_v4 = vpop.f32.mrf.mxu0 }
 0x3ed   : > { %v7332_v49 = vpop.f32.mrf.mxu1  ;;  %7619 = vmatmul.mubr.bf16.gmra.mxu1 %v9579_v1 }
 0x3ee   : > { %v5336_v18 = vrot.slane %v3844_v63, 7  ;;  %v9925_v34 = vadd.f32 %v7332_v49, %v9749_v59  ;;  %7622 = vmatprep.mubr.bf16.mxu1 %v9581_v35  ;;  %v9928_v17 = vpop.f32.mrf.mxu0  ;;  %v9933_v40 = vsel %vm2431_vm0, %v10930_v50, %v5339_v53 }
 0x3ef   : > { %11094 = vst [vmem:[#allocation24_spill] sm:$0xff] %v9928_v17  ;;  %v3780_v19 = vpop.f32.mrf.mxu1 }
 0x3f0   : > { %v9936_v33 = vadd.f32 %v3780_v19, %v9752_v5  ;;  %v9938_v1 = vpop.f32.mrf.mxu0  ;;  %v9943_v59 = vsel %vm2431_vm0, %v10931_v58, %v5336_v18  ;;  %v10932_v53 = vrot.slane %v9925_v34, 7 }
 0x3f1   : > { %11095 = vst [vmem:[#allocation30_spill] sm:$0xff] %v9938_v1  ;;  %v7333_v63 = vpop.f32.mrf.mxu1 }
 0x3f2   : > { %v3850_v35 = vadd.f32 %v7333_v63, %v9754_v9  ;;  %v9946_v36 = vpop.f32.mrf.mxu0  ;;  %v10933_v1 = vrot.slane %v9936_v33, 7 }
 0x3f3   : > { %v3783_v49 = vpop.f32.mrf.mxu1 }
 0x3f4   : > { %v5345_v50 = vrot.slane %v3850_v35, 7  ;;  %v3848_v17 = vadd.f32 %v3783_v49, %v9756_v14  ;;  %v9950_v5 = vpop.f32.mrf.mxu0 }
 0x3f5   : > { %11096 = vst [vmem:[#allocation13_spill] sm:$0xff] %v9950_v5  ;;  %v7336_v19 = vpop.f32.mrf.mxu1  ;;  %7623 = vmatmul.mubr.bf16.gmra.mxu1 %v9552_v25 }
 0x3f6   : > { %v5342_v18 = vrot.slane %v3848_v17, 7  ;;  %v9955_v58 = vadd.f32 %v7336_v19, %v9761_v55  ;;  %7626 = vmatprep.mubr.bf16.mxu1 %v9583_v16  ;;  %v9958_v9 = vpop.f32.mrf.mxu0  ;;  %v9963_v63 = vsel %vm2431_vm0, %v10932_v53, %v5345_v50 }
 0x3f7   : > { %11097 = vst [vmem:[#allocation15_spill] sm:$0xff] %v9958_v9  ;;  %v3796_v14 = vpop.f32.mrf.mxu1 }
 0x3f8   : > { %v9966_v35 = vadd.f32 %v3796_v14, %v9764_v51  ;;  %v9968_v49 = vpop.f32.mrf.mxu0  ;;  %v9973_v55 = vsel %vm2431_vm0, %v10933_v1, %v5342_v18  ;;  %v10934_v50 = vrot.slane %v9955_v58, 7 }
 0x3f9   : > { %11099 = vst [vmem:[#allocation19_spill] sm:$0xff] %v9968_v49  ;;  %11100 = vst [vmem:[#allocation21_spill] sm:$0xff] %v9973_v55  ;;  %v7337_v17 = vpop.f32.mrf.mxu1 }
 0x3fa   : > { %11098 = vst [vmem:[#allocation17_spill] sm:$0xff] %v9966_v35  ;;  %v3854_v16 = vadd.f32 %v7337_v17, %v9766_v12  ;;  %v9976_v19 = vpop.f32.mrf.mxu0  ;;  %v10935_v49 = vrot.slane %v9966_v35, 7 }
 0x3fb   : > { %11101 = vst [vmem:[#allocation23_spill] sm:$0xff] %v9976_v19  ;;  %v3799_v9 = vpop.f32.mrf.mxu1 }
 0x3fc   : > { %v5351_v53 = vrot.slane %v3854_v16, 7  ;;  %v3852_v5 = vadd.f32 %v3799_v9, %v9768_v39  ;;  %v9980_v51 = vpop.f32.mrf.mxu0 }
 0x3fd   : > { %11102 = vst [vmem:[#allocation27_spill] sm:$0xff] %v9980_v51  ;;  %v7340_v14 = vpop.f32.mrf.mxu1  ;;  %7627 = vmatmul.mubr.bf16.gmra.mxu1 %v9552_v25 }
 0x3fe   : > { %v5348_v18 = vrot.slane %v3852_v5, 7  ;;  %v9985_v1 = vadd.f32 %v7340_v14, %v9772_v42  ;;  %v9987_v12 = vpop.f32.mrf.mxu0  ;;  %v9992_v17 = vsel %vm2431_vm0, %v10934_v50, %v5351_v53 }
 0x3ff   : > { %11104 = vst [vmem:[#allocation34_spill] sm:$0xff] %v9987_v12  ;;  %11105 = vst [vmem:[#allocation31_spill] sm:$0xff] %v9992_v17  ;;  %v3812_v16 = vpop.f32.mrf.mxu1  ;;  %v11110_v17 = vld [vmem:[#allocation28_spill] sm:$0xff] }
 0x400   : > { %11103 = vst [vmem:[#allocation60_spill] sm:$0xff] %v9985_v1  ;;  %v9995_v39 = vadd.f32 %v3812_v16, %v9775_v48  ;;  %v9997_v9 = vpop.f32.mrf.mxu0  ;;  %v10002_v25 = vsel %vm2431_vm0, %v10935_v49, %v5348_v18  ;;  %v10936_v53 = vrot.slane %v9985_v1, 7  ;;  %v11109_v16 = vrot.slane %v9785_v41, 7 }
 0x401   : > { %11106 = vst [vmem:[#allocation63_spill] sm:$0xff] %v9997_v9  ;;  %11107 = vst [vmem:[#allocation33_spill] sm:$0xff] %v10002_v25  ;;  %v7341_v42 = vpop.f32.mrf.mxu1  ;;  %v5414_v18 = vrot.slane %v9785_v41, %v11110_v17 }
 0x402   : > { %v3858_v5 = vadd.f32 %v7341_v42, %v9777_v43  ;;  %v10005_v14 = vpop.f32.mrf.mxu0  ;;  %v5392_v9 = vsel %vm2431_vm0, %v9785_v41, %v11109_v16  ;;  %v11112_v16 = vrot.slane %v9791_v7, 7 }
 0x403   : > { %11108 = vst [vmem:[#allocation53_spill] sm:$0xff] %v10005_v14  ;;  %v3815_v12 = vpop.f32.mrf.mxu1 }
 0x404   : > { %v5357_v50 = vrot.slane %v3858_v5, 7  ;;  %v3856_v51 = vadd.f32 %v3815_v12, %v9779_v32  ;;  %v7456_v48 = vpop.f32.mrf.mxu0  ;;  %v5410_v12 = vrot.slane %v9791_v7, %v11110_v17  ;;  %v5391_v41 = vsel %vm2431_vm0, %v9791_v7, %v11112_v16 }
 0x405   : > { %v7408_v49 = vpop.f32.mrf.mxu1 }
 0x406   : > { %v5354_v42 = vrot.slane %v3856_v51, 7  ;;  %v4193_v14 = vadd.f32 %v7408_v49, %v9781_v37  ;;  %v4410_v25 = vpop.f32.mrf.mxu0  ;;  %v10020_v32 = vsel %vm2431_vm0, %v10936_v53, %v5357_v50  ;;  %v11113_v37 = vrot.slane %v9995_v39, 7 }
 0x407   : > { %11111 = vst [vmem:[#allocation66_spill] sm:$0xff] %v10020_v32  ;;  %v4184_v5 = vpop.f32.mrf.mxu1  ;;  %v5473_v50 = vsel %vm2528_vm1, %v5414_v18, %v5392_v9  ;;  %v5471_v7 = vsel %vm2528_vm1, %v5410_v12, %v5391_v41  ;;  %v5422_v9 = vrot.slane %v9805_v2, %v11110_v17 }
 0x408   : > { %v4539_v19 = vadd.f32 %v7456_v48, %v4193_v14  ;;  %v4185_v51 = vadd.f32 %v4184_v5, %v9788_v15  ;;  %v7457_v43 = vpop.f32.mrf.mxu0  ;;  %v10032_v49 = vsel %vm2431_vm0, %v11113_v37, %v5354_v42 }
 0x409   : > { %v7409_v53 = vpop.f32.mrf.mxu1 }
 0x40a   : > { %v10036_v32 = vadd.f32 %v5473_v50, %v4539_v19  ;;  %v4537_v1 = vadd.f32 %v4410_v25, %v4185_v51  ;;  %v4196_v55 = vadd.f32 %v7409_v53, %v9793_v21  ;;  %v4413_v35 = vpop.f32.mrf.mxu0  ;;  %v11114_v19 = vrot.slane %v9805_v2, 7 }
 0x40b   : > { %v4187_v15 = vpop.f32.mrf.mxu1 }
 0x40c   : > { %v10041_v14 = vadd.f32 %v5471_v7, %v4537_v1  ;;  %v4540_v48 = vadd.f32 %v7457_v43, %v4196_v55  ;;  %v4188_v42 = vadd.f32 %v4187_v15, %v9796_v46  ;;  %v7460_v5 = vpop.f32.mrf.mxu0  ;;  %v5394_v21 = vsel %vm2431_vm0, %v9805_v2, %v11114_v19 }
 0x40d   : > { %v7412_v18 = vpop.f32.mrf.mxu1  ;;  %v5418_v46 = vrot.slane %v9816_v30, %v11110_v17  ;;  %v11115_v43 = vrot.slane %v9816_v30, 7  ;;  %v11118_v19 = vrot.slane %v9835_v24, 7 }
 0x40e   : > { %v10051_v25 = vadd.f32 %v9813_v61, %v4540_v48  ;;  %v4538_v53 = vadd.f32 %v4413_v35, %v4188_v42  ;;  %v4209_v1 = vadd.f32 %v7412_v18, %v9800_v45  ;;  %v4426_v12 = vpop.f32.mrf.mxu0  ;;  %v5477_v45 = vsel %vm2528_vm1, %v5422_v9, %v5394_v21 }
 0x40f   : > { %v4200_v55 = vpop.f32.mrf.mxu1  ;;  %v5393_v16 = vsel %vm2431_vm0, %v9816_v30, %v11115_v43  ;;  %v5430_v9 = vrot.slane %v9835_v24, %v11110_v17 }
 0x410   : > { %v10061_v41 = vadd.f32 %v9823_v11, %v4538_v53  ;;  %v4543_v2 = vadd.f32 %v7460_v5, %v4209_v1  ;;  %v4201_v61 = vadd.f32 %v4200_v55, %v9808_v10  ;;  %v7461_v51 = vpop.f32.mrf.mxu0  ;;  %v5475_v30 = vsel %vm2528_vm1, %v5418_v46, %v5393_v16 }
 0x411   : > { %v7413_v35 = vpop.f32.mrf.mxu1  ;;  %v11120_v55 = vrot.slane %v9846_v23, 7 }
 0x412   : > { %v10066_v37 = vadd.f32 %v5477_v45, %v4543_v2  ;;  %v4541_v50 = vadd.f32 %v4426_v12, %v4201_v61  ;;  %v4212_v7 = vadd.f32 %v7413_v35, %v9818_v20  ;;  %v4429_v15 = vpop.f32.mrf.mxu0  ;;  %v5396_v20 = vsel %vm2431_vm0, %v9835_v24, %v11118_v19 }
 0x413   : > { %v4203_v48 = vpop.f32.mrf.mxu1  ;;  %v5395_v43 = vsel %vm2431_vm0, %v9846_v23, %v11120_v55 }
 0x414   : > { %11116 = vst [vmem:[#allocation54_spill] sm:$0xff] %v10066_v37  ;;  %v10071_v11 = vadd.f32 %v5475_v30, %v4541_v50  ;;  %v4544_v42 = vadd.f32 %v7461_v51, %v4212_v7  ;;  %v4204_v10 = vadd.f32 %v4203_v48, %v9826_v47  ;;  %v7464_v5 = vpop.f32.mrf.mxu0  ;;  %v5426_v47 = vrot.slane %v9846_v23, %v11110_v17 }
 0x415   : > { %v7416_v18 = vpop.f32.mrf.mxu1  ;;  %v5438_v48 = vrot.slane %v9865_v0, %v11110_v17 }
 0x416   : > { %11117 = vst [vmem:[#allocation55_spill] sm:$0xff] %v10071_v11  ;;  %v10081_v21 = vadd.f32 %v9843_v28, %v4544_v42  ;;  %v4542_v53 = vadd.f32 %v4429_v15, %v4204_v10  ;;  %v4225_v1 = vadd.f32 %v7416_v18, %v9830_v29  ;;  %v4442_v12 = vpop.f32.mrf.mxu0  ;;  %v5481_v29 = vsel %vm2528_vm1, %v5430_v9, %v5396_v20 }
 0x417   : > { %v4216_v46 = vpop.f32.mrf.mxu1  ;;  %v5479_v23 = vsel %vm2528_vm1, %v5426_v47, %v5395_v43  ;;  %v11124_v10 = vrot.slane %v9865_v0, 7  ;;  %v11128_v47 = vld [vmem:[#allocation16_spill] sm:$0xff] }
 0x418   : > { %11119 = vst [vmem:[#allocation56_spill] sm:$0xff] %v10081_v21  ;;  %v10091_v16 = vadd.f32 %v9853_v6, %v4542_v53  ;;  %v4547_v24 = vadd.f32 %v7464_v5, %v4225_v1  ;;  %v4217_v28 = vadd.f32 %v4216_v46, %v9838_v31  ;;  %v7465_v2 = vpop.f32.mrf.mxu0  ;;  %v11126_v53 = vrot.slane %v9876_v60, 7 }
 0x419   : > { %v7417_v61 = vpop.f32.mrf.mxu1 }
 0x41a   : > { %11121 = vst [vmem:[#allocation57_spill] sm:$0xff] %v10091_v16  ;;  %v10096_v51 = vadd.f32 %v5481_v29, %v4547_v24  ;;  %v4545_v45 = vadd.f32 %v4442_v12, %v4217_v28  ;;  %v4228_v35 = vadd.f32 %v7417_v61, %v9848_v8  ;;  %v4445_v50 = vpop.f32.mrf.mxu0  ;;  %v5398_v8 = vsel %vm2431_vm0, %v9865_v0, %v11124_v10  ;;  %v11130_v28 = vld [vmem:[#allocation18_spill] sm:$0xff] }
 0x41b   : > { %v4219_v7 = vpop.f32.mrf.mxu1  ;;  %v5397_v1 = vsel %vm2431_vm0, %v9876_v60, %v11126_v53 }
 0x41c   : > { %11122 = vst [vmem:[#allocation35_spill] sm:$0xff] %v10096_v51  ;;  %v10101_v6 = vadd.f32 %v5479_v23, %v4545_v45  ;;  %v4548_v15 = vadd.f32 %v7465_v2, %v4228_v35  ;;  %v4220_v31 = vadd.f32 %v4219_v7, %v9856_v22  ;;  %v7468_v30 = vpop.f32.mrf.mxu0  ;;  %v5434_v22 = vrot.slane %v9876_v60, %v11110_v17 }
 0x41d   : > { %v7420_v42 = vpop.f32.mrf.mxu1  ;;  %v5446_v23 = vrot.slane %v9895_v56, %v11110_v17 }
 0x41e   : > { %11123 = vst [vmem:[#allocation37_spill] sm:$0xff] %v10101_v6  ;;  %v10111_v5 = vadd.f32 %v9873_v62, %v4548_v15  ;;  %v4546_v9 = vadd.f32 %v4445_v50, %v4220_v31  ;;  %v4241_v18 = vadd.f32 %v7420_v42, %v9860_v44  ;;  %v4458_v19 = vpop.f32.mrf.mxu0  ;;  %v5485_v44 = vsel %vm2528_vm1, %v5438_v48, %v5398_v8 }
 0x41f   : > { %v4232_v20 = vpop.f32.mrf.mxu1  ;;  %v5483_v60 = vsel %vm2528_vm1, %v5434_v22, %v5397_v1  ;;  %v11132_v15 = vrot.slane %v9895_v56, 7  ;;  %v11136_v22 = vld [vmem:[#allocation20_spill] sm:$0xff] }
 0x420   : > { %11125 = vst [vmem:[#allocation58_spill] sm:$0xff] %v10111_v5  ;;  %v10121_v12 = vadd.f32 %v9883_v38, %v4546_v9  ;;  %v4551_v0 = vadd.f32 %v7468_v30, %v4241_v18  ;;  %v4233_v62 = vadd.f32 %v4232_v20, %v11128_v47  ;;  %v7469_v46 = vpop.f32.mrf.mxu0  ;;  %v11134_v9 = vrot.slane %v9906_v3, 7  ;;  %v11138_v47 = vld [vmem:[#allocation22_spill] sm:$0xff] }
 0x421   : > { %v7421_v55 = vpop.f32.mrf.mxu1  ;;  %v5400_v31 = vsel %vm2431_vm0, %v9895_v56, %v11132_v15  ;;  %v11142_v15 = vrot.slane %v9936_v33, 7 }
 0x422   : > { %11127 = vst [vmem:[#allocation59_spill] sm:$0xff] %v10121_v12  ;;  %v10126_v43 = vadd.f32 %v5485_v44, %v4551_v0  ;;  %v4549_v24 = vadd.f32 %v4458_v19, %v4233_v62  ;;  %v4244_v2 = vadd.f32 %v7421_v55, %v11130_v28  ;;  %v4461_v29 = vpop.f32.mrf.mxu0  ;;  %v5399_v18 = vsel %vm2431_vm0, %v9906_v3, %v11134_v9 }
 0x423   : > { %v4235_v61 = vpop.f32.mrf.mxu1 }
 0x424   : > { %11129 = vst [vmem:[#allocation36_spill] sm:$0xff] %v10126_v43  ;;  %v10131_v38 = vadd.f32 %v5483_v60, %v4549_v24  ;;  %v4552_v45 = vadd.f32 %v7469_v46, %v4244_v2  ;;  %v4236_v35 = vadd.f32 %v4235_v61, %v9886_v57  ;;  %v7472_v50 = vpop.f32.mrf.mxu0  ;;  %v5442_v57 = vrot.slane %v9906_v3, %v11110_v17 }
 0x425   : > { %v7424_v7 = vpop.f32.mrf.mxu1  ;;  %v5454_v2 = vrot.slane %v9925_v34, %v11110_v17  ;;  %v11140_v60 = vrot.slane %v9925_v34, 7 }
 0x426   : > { %11131 = vst [vmem:[#allocation61_spill] sm:$0xff] %v10131_v38  ;;  %v10141_v30 = vadd.f32 %v9903_v26, %v4552_v45  ;;  %v4550_v48 = vadd.f32 %v4461_v29, %v4236_v35  ;;  %v4257_v42 = vadd.f32 %v7424_v7, %v9890_v54  ;;  %v4474_v10 = vpop.f32.mrf.mxu0  ;;  %v5489_v54 = vsel %vm2528_vm1, %v5446_v23, %v5400_v31 }
 0x427   : > { %v4248_v8 = vpop.f32.mrf.mxu1  ;;  %v5487_v3 = vsel %vm2528_vm1, %v5442_v57, %v5399_v18  ;;  %v5402_v61 = vsel %vm2431_vm0, %v9925_v34, %v11140_v60  ;;  %v5401_v31 = vsel %vm2431_vm0, %v9936_v33, %v11142_v15  ;;  %v11146_v18 = vld [vmem:[#allocation30_spill] sm:$0xff] }
 0x428   : > { %11133 = vst [vmem:[#allocation38_spill] sm:$0xff] %v10141_v30  ;;  %v10151_v19 = vadd.f32 %v9913_v27, %v4550_v48  ;;  %v4555_v56 = vadd.f32 %v7472_v50, %v4257_v42  ;;  %v4249_v26 = vadd.f32 %v4248_v8, %v11136_v22  ;;  %v7473_v20 = vpop.f32.mrf.mxu0  ;;  %v11144_v42 = vld [vmem:[#allocation24_spill] sm:$0xff] }
 0x429   : > { %v7425_v53 = vpop.f32.mrf.mxu1 }
 0x42a   : > { %11135 = vst [vmem:[#allocation62_spill] sm:$0xff] %v10151_v19  ;;  %v10156_v1 = vadd.f32 %v5489_v54, %v4555_v56  ;;  %v4553_v0 = vadd.f32 %v4474_v10, %v4249_v26  ;;  %v4260_v62 = vadd.f32 %v7425_v53, %v11138_v47  ;;  %v4477_v46 = vpop.f32.mrf.mxu0 }
 0x42b   : > { %v4251_v44 = vpop.f32.mrf.mxu1 }
 0x42c   : > { %11137 = vst [vmem:[#allocation40_spill] sm:$0xff] %v10156_v1  ;;  %v10161_v27 = vadd.f32 %v5487_v3, %v4553_v0  ;;  %v4556_v55 = vadd.f32 %v7473_v20, %v4260_v62  ;;  %v4252_v24 = vadd.f32 %v4251_v44, %v9916_v13  ;;  %v7476_v28 = vpop.f32.mrf.mxu0  ;;  %v5450_v13 = vrot.slane %v9936_v33, %v11110_v17 }
 0x42d   : > { %v7428_v29 = vpop.f32.mrf.mxu1  ;;  %v5462_v0 = vrot.slane %v9955_v58, %v11110_v17  ;;  %v11148_v62 = vrot.slane %v9955_v58, 7 }
 0x42e   : > { %11139 = vst [vmem:[#allocation39_spill] sm:$0xff] %v10161_v27  ;;  %v10171_v45 = vadd.f32 %v9933_v40, %v4556_v55  ;;  %v4554_v35 = vadd.f32 %v4477_v46, %v4252_v24  ;;  %v4273_v50 = vadd.f32 %v7428_v29, %v9920_v4  ;;  %v4490_v23 = vpop.f32.mrf.mxu0  ;;  %v5493_v4 = vsel %vm2528_vm1, %v5454_v2, %v5402_v61  ;;  %v11150_v55 = vld [vmem:[#allocation13_spill] sm:$0xff] }
 0x42f   : > { %v4264_v7 = vpop.f32.mrf.mxu1  ;;  %v5491_v33 = vsel %vm2528_vm1, %v5450_v13, %v5401_v31  ;;  %v5404_v46 = vsel %vm2431_vm0, %v9955_v58, %v11148_v62  ;;  %v11151_v2 = vld [vmem:[#allocation17_spill] sm:$0xff] }
 0x430   : > { %11141 = vst [vmem:[#allocation41_spill] sm:$0xff] %v10171_v45  ;;  %v10181_v48 = vadd.f32 %v9943_v59, %v4554_v35  ;;  %v4559_v34 = vadd.f32 %v7476_v28, %v4273_v50  ;;  %v4265_v40 = vadd.f32 %v4264_v7, %v11144_v42  ;;  %v7477_v10 = vpop.f32.mrf.mxu0  ;;  %v11152_v60 = vrot.slane %v11151_v2, 7  ;;  %v11153_v35 = vld [vmem:[#allocation21_spill] sm:$0xff]  ;;  %v11157_v42 = vld [vmem:[#allocation19_spill] sm:$0xff] }
 0x431   : > { %v7429_v57 = vpop.f32.mrf.mxu1  ;;  %v5497_v7 = vsel %vm2528_vm1, %v5462_v0, %v5404_v46 }
 0x432   : > { %11143 = vst [vmem:[#allocation43_spill] sm:$0xff] %v10181_v48  ;;  %v10186_v8 = vadd.f32 %v5493_v4, %v4559_v34  ;;  %v4557_v9 = vadd.f32 %v4490_v23, %v4265_v40  ;;  %v4276_v56 = vadd.f32 %v7429_v57, %v11146_v18  ;;  %v4493_v22 = vpop.f32.mrf.mxu0  ;;  %v5403_v61 = vsel %vm2431_vm0, %v11151_v2, %v11152_v60  ;;  %v11155_v23 = vld [vmem:[#allocation15_spill] sm:$0xff]  ;;  %v11166_v60 = vld [vmem:[#allocation33_spill] sm:$0xff] }
 0x433   : > { %v4267_v26 = vpop.f32.mrf.mxu1 }
 0x434   : > { %11145 = vst [vmem:[#allocation42_spill] sm:$0xff] %v10186_v8  ;;  %v10191_v59 = vadd.f32 %v5491_v33, %v4557_v9  ;;  %v4560_v20 = vadd.f32 %v7477_v10, %v4276_v56  ;;  %v4268_v54 = vadd.f32 %v4267_v26, %v9946_v36  ;;  %v7480_v53 = vpop.f32.mrf.mxu0  ;;  %v5458_v36 = vrot.slane %v11151_v2, %v11110_v17  ;;  %v11159_v56 = vld [vmem:[#allocation23_spill] sm:$0xff]  ;;  %v11160_v26 = vld [vmem:[#allocation60_spill] sm:$0xff] }
 0x435   : > { %v7432_v47 = vpop.f32.mrf.mxu1 }
 0x436   : > { %11147 = vst [vmem:[#allocation64_spill] sm:$0xff] %v10191_v59  ;;  %v10201_v3 = vadd.f32 %v9963_v63, %v4560_v20  ;;  %v4558_v44 = vadd.f32 %v4493_v22, %v4268_v54  ;;  %v4289_v24 = vadd.f32 %v7432_v47, %v11150_v55  ;;  %v4506_v28 = vpop.f32.mrf.mxu0  ;;  %v5495_v4 = vsel %vm2528_vm1, %v5458_v36, %v5403_v61  ;;  %v11162_v47 = vld [vmem:[#allocation31_spill] sm:$0xff] }
 0x437   : > { %v4280_v29 = vpop.f32.mrf.mxu1  ;;  %v5470_v20 = vrot.slane %v11160_v26, %v11110_v17  ;;  %v11165_v36 = vrot.slane %v9995_v39, 7 }
 0x438   : > { %11149 = vst [vmem:[#allocation65_spill] sm:$0xff] %v10201_v3  ;;  %v10211_v50 = vadd.f32 %v11153_v35, %v4558_v44  ;;  %v4563_v58 = vadd.f32 %v7480_v53, %v4289_v24  ;;  %v4281_v63 = vadd.f32 %v4280_v29, %v11155_v23  ;;  %v7481_v13 = vpop.f32.mrf.mxu0  ;;  %v11161_v53 = vrot.slane %v11160_v26, 7  ;;  %v11164_v44 = vld [vmem:[#allocation27_spill] sm:$0xff] }
 0x439   : > { %v7433_v15 = vpop.f32.mrf.mxu1  ;;  %v5405_v29 = vsel %vm2431_vm0, %v9995_v39, %v11165_v36 }
 0x43a   : > { %11154 = vst [vmem:[#allocation44_spill] sm:$0xff] %v10211_v50  ;;  %v10216_v31 = vadd.f32 %v5497_v7, %v4563_v58  ;;  %v4561_v34 = vadd.f32 %v4506_v28, %v4281_v63  ;;  %v4292_v40 = vadd.f32 %v7433_v15, %v11157_v42  ;;  %v4509_v10 = vpop.f32.mrf.mxu0  ;;  %v5406_v0 = vsel %vm2431_vm0, %v11160_v26, %v11161_v53  ;;  %v11168_v58 = vld [vmem:[#allocation34_spill] sm:$0xff] }
 0x43b   : > { %v4283_v57 = vpop.f32.mrf.mxu1  ;;  %v5466_v28 = vrot.slane %v9995_v39, %v11110_v17  ;;  %v11173_v26 = vld [vmem:[#allocation66_spill] sm:$0xff] }
 0x43c   : > { %11156 = vst [vmem:[#allocation46_spill] sm:$0xff] %v10216_v31  ;;  %v10221_v9 = vadd.f32 %v5495_v4, %v4561_v34  ;;  %v4564_v18 = vadd.f32 %v7481_v13, %v4292_v40  ;;  %v4284_v22 = vadd.f32 %v4283_v57, %v11159_v56  ;;  %v7484_v33 = vpop.f32.mrf.mxu0  ;;  %v5501_v13 = vsel %vm2528_vm1, %v5470_v20, %v5406_v0  ;;  %v11170_v34 = vld [vmem:[#allocation63_spill] sm:$0xff] }
 0x43d   : > { %v7436_v54 = vpop.f32.mrf.mxu1  ;;  %v5499_v39 = vsel %vm2528_vm1, %v5466_v28, %v5405_v29 }
 0x43e   : > { %11158 = vst [vmem:[#allocation45_spill] sm:$0xff] %v10221_v9  ;;  %v10231_v62 = vadd.f32 %v11162_v47, %v4564_v18  ;;  %v4562_v46 = vadd.f32 %v4509_v10, %v4284_v22  ;;  %v4305_v55 = vadd.f32 %v7436_v54, %v11164_v44  ;;  %v4522_v24 = vpop.f32.mrf.mxu0  ;;  %v11172_v18 = vld [vmem:[#allocation53_spill] sm:$0xff] }
 0x43f   : > { %v4296_v2 = vpop.f32.mrf.mxu1 }
 0x440   : > { %11163 = vst [vmem:[#allocation67_spill] sm:$0xff] %v10231_v62  ;;  %v10241_v61 = vadd.f32 %v11166_v60, %v4562_v46  ;;  %v4567_v35 = vadd.f32 %v7484_v33, %v4305_v55  ;;  %v4297_v23 = vadd.f32 %v4296_v2, %v11168_v58  ;;  %v7485_v63 = vpop.f32.mrf.mxu0 }
 0x441   : > { %v7437_v7 = vpop.f32.mrf.mxu1 }
 0x442   : > { %11167 = vst [vmem:[#allocation47_spill] sm:$0xff] %v10241_v61  ;;  %v10246_v15 = vadd.f32 %v5501_v13, %v4567_v35  ;;  %v4565_v17 = vadd.f32 %v4522_v24, %v4297_v23  ;;  %v4308_v42 = vadd.f32 %v7437_v7, %v11170_v34  ;;  %v4525_v40 = vpop.f32.mrf.mxu0 }
 0x443   : > { %v4299_v10 = vpop.f32.mrf.mxu1 }
 0x444   : > { %11169 = vst [vmem:[#allocation49_spill] sm:$0xff] %v10246_v15  ;;  %v10251_v4 = vadd.f32 %v5499_v39, %v4565_v17  ;;  %v4568_v57 = vadd.f32 %v7485_v63, %v4308_v42  ;;  %v4300_v56 = vadd.f32 %v4299_v10, %v11172_v18  ;;  %v7552_v22 = vpop.f32.mrf.mxu0 }
 0x445   : > { %v7504_v33 = vpop.f32.mrf.mxu1 }
 0x446   : > { %11171 = vst [vmem:[#allocation48_spill] sm:$0xff] %v10251_v4  ;;  %v10255_v20 = vadd.f32 %v11173_v26, %v4568_v57  ;;  %v4566_v54 = vadd.f32 %v4525_v40, %v4300_v56  ;;  %v4894_v53 = vpop.f32.mrf.mxu0  ;;  %v4903_v6 = vadd.f32 %v7552_v22, %v7504_v33 }
 0x447   : > { %v4685_v0 = vpop.f32.mrf.mxu1 }
 0x448   : > { %11174 = vst [vmem:[#allocation50_spill] sm:$0xff] %v10255_v20  ;;  %v10258_v47 = vadd.f32 %v10032_v49, %v4566_v54  ;;  %v7553_v46 = vpop.f32.mrf.mxu0  ;;  %v4895_v5 = vadd.f32 %v4894_v53, %v4685_v0 }
 0x449   : > { %v7505_v52 = vpop.f32.mrf.mxu1 }
 0x44a   : > { %11175 = vst [vmem:[#allocation52_spill] sm:$0xff] %v10258_v47  ;;  %v4897_v44 = vpop.f32.mrf.mxu0  ;;  %v4906_v51 = vadd.f32 %v7553_v46, %v7505_v52  ;;  %v11186_v46 = vld [vmem:[#allocation14_spill] sm:$0xff] }
 0x44b   : > { %v4688_v55 = vpop.f32.mrf.mxu1 }
 0x44c   : > { %v7556_v24 = vpop.f32.mrf.mxu0 }
 0x44d   : > { %v7508_v28 = vpop.f32.mrf.mxu1 }
 0x44e   : > { %v4910_v2 = vpop.f32.mrf.mxu0 }
 0x44f   : > { %v4701_v36 = vpop.f32.mrf.mxu1 }
 0x450   : > { %v7557_v29 = vpop.f32.mrf.mxu0 }
 0x451   : > { %v7509_v60 = vpop.f32.mrf.mxu1 }
 0x452   : > { %v4913_v58 = vpop.f32.mrf.mxu0 }
 0x453   : > { %v4704_v35 = vpop.f32.mrf.mxu1 }
 0x454   : > { %v7560_v13 = vpop.f32.mrf.mxu0  ;;  %v4914_v21 = vadd.f32 %v4913_v58, %v4704_v35 }
 0x455   : > { %v7512_v23 = vpop.f32.mrf.mxu1 }
 0x456   : > { %v4926_v34 = vpop.f32.mrf.mxu0  ;;  %v10294_v37 = vadd.f32 %v7560_v13, %v7512_v23 }
 0x457   : > { %v4717_v63 = vpop.f32.mrf.mxu1 }
 0x458   : > { %v7561_v40 = vpop.f32.mrf.mxu0 }
 0x459   : > { %v7513_v7 = vpop.f32.mrf.mxu1 }
 0x45a   : > { %v4929_v57 = vpop.f32.mrf.mxu0 }
 0x45b   : > { %v4720_v17 = vpop.f32.mrf.mxu1 }
 0x45c   : > { %v7564_v26 = vpop.f32.mrf.mxu0 }
 0x45d   : > { %v7516_v49 = vpop.f32.mrf.mxu1 }
 0x45e   : > { %v4942_v4 = vpop.f32.mrf.mxu0 }
 0x45f   : > { %v4733_v42 = vpop.f32.mrf.mxu1 }
 0x460   : > { %v7565_v61 = vpop.f32.mrf.mxu0  ;;  %v10305_v52 = vadd.f32 %v4942_v4, %v4733_v42 }
 0x461   : > { %v7517_v39 = vpop.f32.mrf.mxu1 }
 0x462   : > { %v4945_v31 = vpop.f32.mrf.mxu0 }
 0x463   : > { %v10260_v10 = vpop.f32.mrf.mxu1 }
 0x464   : > { %v7568_v3 = vpop.f32.mrf.mxu0 }
 0x465   : > { %v10262_v18 = vpop.f32.mrf.mxu1 }
 0x466   : > { %v4958_v27 = vpop.f32.mrf.mxu0  ;;  %v10326_v58 = vadd.f32 %v7568_v3, %v10262_v18 }
 0x467   : > { %v10264_v56 = vpop.f32.mrf.mxu1 }
 0x468   : > { %v7569_v19 = vpop.f32.mrf.mxu0 }
 0x469   : > { %v10266_v54 = vpop.f32.mrf.mxu1 }
 0x46a   : > { %v4961_v43 = vpop.f32.mrf.mxu0 }
 0x46b   : > { %v10268_v47 = vpop.f32.mrf.mxu1 }
 0x46c   : > { %v7572_v16 = vpop.f32.mrf.mxu0  ;;  %v10343_v3 = vadd.f32 %v4961_v43, %v10268_v47 }
 0x46d   : > { %v10270_v20 = vpop.f32.mrf.mxu1 }
 0x46e   : > { %v4974_v33 = vpop.f32.mrf.mxu0 }
 0x46f   : > { %v10272_v15 = vpop.f32.mrf.mxu1 }
 0x470   : > { %v10356_v43 = vadd.f32 %v4974_v33, %v10272_v15 }
 0x471   : > { %v10274_v9 = vpop.f32.mrf.mxu1 }
 0x472   : > { %11176 = vst [vmem:[#allocation51_spill] sm:$0xff] %v10274_v9  ;;  %v4922_v9 = vadd.f32 %v7557_v29, %v7509_v60  ;;  %v7573_v60 = vpop.f32.mrf.mxu0 }
 0x473   : > { %v10276_v62 = vpop.f32.mrf.mxu1 }
 0x474   : > { %11177 = vst [vmem:[#allocation32_spill] sm:$0xff] %v10276_v62  ;;  %v4919_v62 = vadd.f32 %v7556_v24, %v7508_v28 }
 0x475   : > { %v10278_v50 = vpop.f32.mrf.mxu1 }
 0x476   : > { %11178 = vst [vmem:[#allocation25_spill] sm:$0xff] %v10278_v50  ;;  %v4898_v50 = vadd.f32 %v4897_v44, %v4688_v55 }
 0x477   : > { %v10280_v59 = vpop.f32.mrf.mxu1 }
 0x478   : > { %11179 = vst [vmem:[#allocation29_spill] sm:$0xff] %v10280_v59 }
 0x479   : > { %v10282_v8 = vpop.f32.mrf.mxu1 }
 0x47a   : > { %11180 = vst [vmem:[#allocation26_spill] sm:$0xff] %v10282_v8 }
 0x47b   : > { %v10284_v48 = vpop.f32.mrf.mxu1 }
 0x47c   : > { %11181 = vst [vmem:[#allocation28_spill] sm:$0xff] %v10284_v48 }
 0x47d   : > { %v10286_v45 = vpop.f32.mrf.mxu1 }
 0x47e   : > { %11182 = vst [vmem:[#allocation16_spill] sm:$0xff] %v10286_v45  ;;  %v4911_v45 = vadd.f32 %v4910_v2, %v4701_v36 }
 0x47f   : > { %v10288_v1 = vpop.f32.mrf.mxu1 }
 0x480   : > { %11183 = vst [vmem:[#allocation18_spill] sm:$0xff] %v10288_v1 }
 0x481   : > { %v10290_v38 = vpop.f32.mrf.mxu1 }
 0x482   : > { %11184 = vst [vmem:[#allocation20_spill] sm:$0xff] %v10290_v38  ;;  %v10296_v38 = vadd.f32 %v4926_v34, %v4717_v63  ;;  %v10334_v63 = vadd.f32 %v4958_v27, %v10264_v56  ;;  %v4977_v27 = vpop.f32.mrf.mxu0  ;;  %v11188_v56 = vld [vmem:[#allocation54_spill] sm:$0xff] }
 0x483   : > { %v10292_v30 = vpop.f32.mrf.mxu1 }
 0x484   : > { %11185 = vst [vmem:[#allocation22_spill] sm:$0xff] %v10292_v30  ;;  %v10298_v30 = vadd.f32 %v7561_v40, %v7513_v7  ;;  %v7576_v33 = vpop.f32.mrf.mxu0 }
 0x485   : > { %v7600_v12 = vpop.f32.mrf.mxu1 }
 0x486   : > { %v5249_v8 = vadd.f32 %v7600_v12, %v4903_v6 }
 0x487   : > { %v5120_v59 = vpop.f32.mrf.mxu1 }
 0x488   : > { %v5247_v48 = vadd.f32 %v5120_v59, %v4895_v5  ;;  %v5538_v53 = vrot.slane %v5249_v8, 1  ;;  %v10301_v5 = vadd.f32 %v4929_v57, %v4720_v17  ;;  %v10303_v59 = vadd.f32 %v7564_v26, %v7516_v49 }
 0x489   : > { %v7601_v11 = vpop.f32.mrf.mxu1  ;;  %v10310_v8 = vadd.f32 %v7565_v61, %v7517_v39  ;;  %v10346_v17 = vadd.f32 %v7572_v16, %v10270_v20 }
 0x48a   : > { %v5250_v1 = vadd.f32 %v7601_v11, %v4906_v51  ;;  %v5535_v11 = vrot.slane %v5247_v48, 1  ;;  %v10318_v48 = vadd.f32 %v4945_v31, %v10260_v10 }
 0x48b   : > { %v5123_v22 = vpop.f32.mrf.mxu1 }
 0x48c   : > { %v5539_v0 = vrot.slane %v5250_v1, 1  ;;  %v5638_v6 = vrot.slane %v5250_v1, %v11186_v46  ;;  %v5248_v12 = vadd.f32 %v5123_v22, %v4898_v50 }
 0x48d   : > { %v7604_v51 = vpop.f32.mrf.mxu1 }
 0x48e   : > { %v5540_v44 = vsel %vm2662_vm2, %v5538_v53, %v5539_v0  ;;  %v5616_v55 = vsel %vm2662_vm2, %v5539_v0, %v5250_v1  ;;  %v5536_v24 = vrot.slane %v5248_v12, 1  ;;  %v5634_v28 = vrot.slane %v5248_v12, %v11186_v46  ;;  %v11189_v0 = vld [vmem:[#allocation56_spill] sm:$0xff] }
 0x48f   : > { %v5698_v50 = vsel %vm2760_vm3, %v5638_v6, %v5616_v55  ;;  %v10315_v36 = vadd.f32 %v10036_v32, %v5540_v44  ;;  %v5253_v29 = vadd.f32 %v7604_v51, %v4919_v62  ;;  %v5136_v4 = vpop.f32.mrf.mxu1 }
 0x490   : > { %v10321_v35 = vadd.f32 %v10051_v25, %v5698_v50  ;;  %v5537_v1 = vsel %vm2662_vm2, %v5535_v11, %v5536_v24  ;;  %v5615_v61 = vsel %vm2662_vm2, %v5536_v24, %v5248_v12  ;;  %v5251_v23 = vadd.f32 %v5136_v4, %v4911_v45  ;;  %v11190_v11 = vld [vmem:[#allocation51_spill] sm:$0xff]  ;;  %v11191_v50 = vld [vmem:[#allocation32_spill] sm:$0xff] }
 0x491   : > { %v5696_v32 = vsel %vm2760_vm3, %v5634_v28, %v5615_v61  ;;  %v10331_v62 = vadd.f32 %v10041_v14, %v5537_v1  ;;  %v7605_v31 = vpop.f32.mrf.mxu1  ;;  %v10337_v25 = vadd.f32 %v7569_v19, %v10266_v54  ;;  %v5544_v45 = vrot.slane %v5253_v29, 1  ;;  %v11192_v1 = vld [vmem:[#allocation55_spill] sm:$0xff] }
 0x492   : > { %v10340_v13 = vadd.f32 %v10061_v41, %v5696_v32  ;;  %v5254_v7 = vadd.f32 %v7605_v31, %v4922_v9  ;;  %v5831_v16 = vmul.f32 %v10315_v36, %v10315_v36  ;;  %v5541_v20 = vrot.slane %v5251_v23, 1  ;;  %v11193_v23 = vld [vmem:[#allocation25_spill] sm:$0xff] }
 0x493   : > { %v5829_v14 = vmul.f32 %v10331_v62, %v10331_v62  ;;  %v5139_v34 = vpop.f32.mrf.mxu1  ;;  %v10376_v51 = vadd.f32 %v7573_v60, %v11190_v11  ;;  %v10382_v29 = vadd.f32 %v4977_v27, %v11191_v50  ;;  %v10390_v60 = vadd.f32 %v7576_v33, %v11193_v23  ;;  %v11194_v31 = vld [vmem:[#allocation57_spill] sm:$0xff]  ;;  %v11195_v33 = vld [vmem:[#allocation35_spill] sm:$0xff] }
 0x494   : > { %v5791_v19 = vadd.f32 %v10340_v13, %v10331_v62  ;;  %v5830_v41 = vmul.f32 %v10340_v13, %v10340_v13  ;;  %v5545_v49 = vrot.slane %v5254_v7, 1  ;;  %v5646_v9 = vrot.slane %v5254_v7, %v11186_v46 }
 0x495   : > { %v5252_v47 = vadd.f32 %v5139_v34, %v4914_v21  ;;  %v7608_v42 = vpop.f32.mrf.mxu1  ;;  %v5832_v21 = vmul.f32 %v10321_v35, %v10321_v35 }
 0x496   : > { %v5792_v40 = vadd.f32 %v5791_v19, %v10315_v36  ;;  %v5861_v39 = vadd.f32 %v5830_v41, %v5829_v14  ;;  %v5546_v10 = vsel %vm2662_vm2, %v5544_v45, %v5545_v49  ;;  %v5618_v57 = vsel %vm2662_vm2, %v5545_v49, %v5254_v7 }
 0x497   : > { %v5702_v18 = vsel %vm2760_vm3, %v5646_v9, %v5618_v57  ;;  %v10366_v26 = vadd.f32 %v11188_v56, %v5546_v10  ;;  %v5542_v15 = vrot.slane %v5252_v47, 1  ;;  %v5642_v54 = vrot.slane %v5252_v47, %v11186_v46  ;;  %v5152_v22 = vpop.f32.mrf.mxu1 }
 0x498   : > { %v5862_v53 = vadd.f32 %v5861_v39, %v5831_v16  ;;  %v10372_v6 = vadd.f32 %v11189_v0, %v5702_v18  ;;  %v5793_v12 = vadd.f32 %v5792_v40, %v10321_v35  ;;  %v5257_v24 = vadd.f32 %v7608_v42, %v10294_v37 }
 0x499   : > { %v5543_v44 = vsel %vm2662_vm2, %v5541_v20, %v5542_v15  ;;  %v5617_v55 = vsel %vm2662_vm2, %v5542_v15, %v5252_v47  ;;  %v7609_v28 = vpop.f32.mrf.mxu1  ;;  %v5255_v14 = vadd.f32 %v5152_v22, %v10296_v38  ;;  %v5835_v34 = vmul.f32 %v10366_v26, %v10366_v26 }
 0x49a   : > { %v5700_v4 = vsel %vm2760_vm3, %v5642_v54, %v5617_v55  ;;  %v10387_v61 = vadd.f32 %v11192_v1, %v5543_v44  ;;  %v5863_v32 = vadd.f32 %v5862_v53, %v5832_v21  ;;  %v5258_v37 = vadd.f32 %v7609_v28, %v10298_v30  ;;  %v4990_v30 = vpop.f32.mrf.mxu0  ;;  %v11196_v53 = vld [vmem:[#allocation29_spill] sm:$0xff] }
 0x49b   : > { %v10393_v7 = vadd.f32 %v11194_v31, %v5700_v4  ;;  %v5155_v45 = vpop.f32.mrf.mxu1  ;;  %v5550_v9 = vrot.slane %v5257_v24, 1  ;;  %v5547_v10 = vrot.slane %v5255_v14, 1  ;;  %v10418_v0 = vadd.f32 %v4990_v30, %v11196_v53  ;;  %v11198_v4 = vld [vmem:[#allocation37_spill] sm:$0xff]  ;;  %v11200_v53 = vld [vmem:[#allocation36_spill] sm:$0xff] }
 0x49c   : > { %v5794_v27 = vadd.f32 %v5793_v12, %v10387_v61  ;;  %v5833_v19 = vmul.f32 %v10387_v61, %v10387_v61  ;;  %v5256_v41 = vadd.f32 %v5155_v45, %v10301_v5  ;;  %v5551_v16 = vrot.slane %v5258_v37, 1  ;;  %v11197_v12 = vld [vmem:[#allocation58_spill] sm:$0xff] }
 0x49d   : > { %v5834_v49 = vmul.f32 %v10393_v7, %v10393_v7  ;;  %v5654_v38 = vrot.slane %v5258_v37, %v11186_v46  ;;  %v7612_v20 = vpop.f32.mrf.mxu1  ;;  %v5836_v24 = vmul.f32 %v10372_v6, %v10372_v6 }
 0x49e   : > { %v5795_v47 = vadd.f32 %v5794_v27, %v10393_v7  ;;  %v5864_v42 = vadd.f32 %v5863_v32, %v5833_v19  ;;  %v5548_v40 = vrot.slane %v5256_v41, 1  ;;  %v5650_v39 = vrot.slane %v5256_v41, %v11186_v46  ;;  %v11199_v32 = vld [vmem:[#allocation59_spill] sm:$0xff]  ;;  %v7577_v27 = vpop.f32.mrf.mxu0 }
 0x49f   : > { %v5552_v57 = vsel %vm2662_vm2, %v5550_v9, %v5551_v16  ;;  %v5620_v5 = vsel %vm2662_vm2, %v5551_v16, %v5258_v37  ;;  %v5261_v18 = vadd.f32 %v7612_v20, %v10303_v59  ;;  %v5168_v56 = vpop.f32.mrf.mxu1 }
 0x4a0   : > { %v5796_v15 = vadd.f32 %v5795_v47, %v10366_v26  ;;  %v5865_v54 = vadd.f32 %v5864_v42, %v5834_v49  ;;  %v5706_v22 = vsel %vm2760_vm3, %v5654_v38, %v5620_v5  ;;  %v10415_v21 = vadd.f32 %v11195_v33, %v5552_v57  ;;  %v4993_v5 = vpop.f32.mrf.mxu0 }
 0x4a1   : > { %v10421_v11 = vadd.f32 %v11197_v12, %v5706_v22  ;;  %v5549_v44 = vsel %vm2662_vm2, %v5547_v10, %v5548_v40  ;;  %v5619_v59 = vsel %vm2662_vm2, %v5548_v40, %v5256_v41  ;;  %v7613_v55 = vpop.f32.mrf.mxu1  ;;  %v5556_v14 = vrot.slane %v5261_v18, 1 }
 0x4a2   : > { %v5866_v28 = vadd.f32 %v5865_v54, %v5835_v34  ;;  %v5704_v50 = vsel %vm2760_vm3, %v5650_v39, %v5619_v59  ;;  %v10430_v1 = vadd.f32 %v11198_v4, %v5549_v44  ;;  %v5797_v31 = vadd.f32 %v5796_v15, %v10372_v6 }
 0x4a3   : > { %v10433_v23 = vadd.f32 %v11199_v32, %v5704_v50  ;;  %v5259_v37 = vadd.f32 %v5168_v56, %v10305_v52  ;;  %v5171_v45 = vpop.f32.mrf.mxu1  ;;  %v5262_v41 = vadd.f32 %v7613_v55, %v10310_v8  ;;  %v5839_v9 = vmul.f32 %v10415_v21, %v10415_v21  ;;  %v11201_v55 = vld [vmem:[#allocation38_spill] sm:$0xff]  ;;  %v11202_v50 = vld [vmem:[#allocation61_spill] sm:$0xff] }
 0x4a4   : > { %v5837_v19 = vmul.f32 %v10430_v1, %v10430_v1  ;;  %v5867_v34 = vadd.f32 %v5866_v28, %v5836_v24  ;;  %v5260_v49 = vadd.f32 %v5171_v45, %v10318_v48  ;;  %v5798_v16 = vadd.f32 %v5797_v31, %v10430_v1  ;;  %v11203_v32 = vld [vmem:[#allocation26_spill] sm:$0xff] }
 0x4a5   : > { %v5838_v38 = vmul.f32 %v10433_v23, %v10433_v23  ;;  %v5553_v20 = vrot.slane %v5259_v37, 1  ;;  %v7616_v52 = vpop.f32.mrf.mxu1  ;;  %v5557_v47 = vrot.slane %v5262_v41, 1  ;;  %v5662_v42 = vrot.slane %v5262_v41, %v11186_v46  ;;  %v11205_v45 = vld [vmem:[#allocation62_spill] sm:$0xff] }
 0x4a6   : > { %v5868_v30 = vadd.f32 %v5867_v34, %v5837_v19  ;;  %v5554_v40 = vrot.slane %v5260_v49, 1  ;;  %v5840_v8 = vmul.f32 %v10421_v11, %v10421_v11  ;;  %v5799_v48 = vadd.f32 %v5798_v16, %v10433_v23 }
 0x4a7   : > { %v5658_v39 = vrot.slane %v5260_v49, %v11186_v46  ;;  %v5265_v10 = vadd.f32 %v7616_v52, %v10326_v58  ;;  %v5184_v57 = vpop.f32.mrf.mxu1  ;;  %v5558_v56 = vsel %vm2662_vm2, %v5556_v14, %v5557_v47  ;;  %v5622_v15 = vsel %vm2662_vm2, %v5557_v47, %v5262_v41  ;;  %v11204_v14 = vld [vmem:[#allocation28_spill] sm:$0xff] }
 0x4a8   : > { %v5869_v18 = vadd.f32 %v5868_v30, %v5838_v38  ;;  %v5555_v54 = vsel %vm2662_vm2, %v5553_v20, %v5554_v40  ;;  %v5800_v22 = vadd.f32 %v5799_v48, %v10415_v21  ;;  %v5710_v33 = vsel %vm2760_vm3, %v5662_v42, %v5622_v15 }
 0x4a9   : > { %v10459_v12 = vadd.f32 %v11200_v53, %v5558_v56  ;;  %v5621_v44 = vsel %vm2662_vm2, %v5554_v40, %v5260_v49  ;;  %v7617_v58 = vpop.f32.mrf.mxu1  ;;  %v10463_v24 = vadd.f32 %v11201_v55, %v5710_v33  ;;  %v10468_v4 = vadd.f32 %v11202_v50, %v5555_v54  ;;  %v7580_v54 = vpop.f32.mrf.mxu0  ;;  %v11206_v55 = vld [vmem:[#allocation40_spill] sm:$0xff] }
 0x4aa   : > { %v5870_v59 = vadd.f32 %v5869_v18, %v5839_v9  ;;  %v5708_v28 = vsel %vm2760_vm3, %v5658_v39, %v5621_v44  ;;  %v10471_v31 = vadd.f32 %v7577_v27, %v11203_v32  ;;  %v10474_v37 = vadd.f32 %v4993_v5, %v11204_v14  ;;  %v11208_v14 = vld [vmem:[#allocation39_spill] sm:$0xff] }
 0x4ab   : > { %v10477_v19 = vadd.f32 %v11205_v45, %v5708_v28  ;;  %v5801_v34 = vadd.f32 %v5800_v22, %v10421_v11  ;;  %v5187_v41 = vpop.f32.mrf.mxu1  ;;  %v5843_v49 = vmul.f32 %v10459_v12, %v10459_v12  ;;  %v5841_v9 = vmul.f32 %v10468_v4, %v10468_v4 }
 0x4ac   : > { %v5871_v16 = vadd.f32 %v5870_v59, %v5840_v8  ;;  %v5263_v38 = vadd.f32 %v5184_v57, %v10334_v63  ;;  %v5266_v52 = vadd.f32 %v7617_v58, %v10337_v25  ;;  %v5264_v30 = vadd.f32 %v5187_v41, %v10343_v3 }
 0x4ad   : > { %v5802_v27 = vadd.f32 %v5801_v34, %v10468_v4  ;;  %v5842_v20 = vmul.f32 %v10477_v19, %v10477_v19  ;;  %v7620_v47 = vpop.f32.mrf.mxu1  ;;  %v5844_v42 = vmul.f32 %v10463_v24, %v10463_v24  ;;  %v5562_v48 = vrot.slane %v5265_v10, 1 }
 0x4ae   : > { %v5872_v40 = vadd.f32 %v5871_v16, %v5841_v9  ;;  %v5559_v39 = vrot.slane %v5263_v38, 1  ;;  %v5563_v5 = vrot.slane %v5266_v52, 1  ;;  %v5670_v63 = vrot.slane %v5266_v52, %v11186_v46  ;;  %v11210_v16 = vld [vmem:[#allocation43_spill] sm:$0xff] }
 0x4af   : > { %v5803_v8 = vadd.f32 %v5802_v27, %v10477_v19  ;;  %v5560_v57 = vrot.slane %v5264_v30, 1  ;;  %v5200_v18 = vpop.f32.mrf.mxu1  ;;  %v5666_v15 = vrot.slane %v5264_v30, %v11186_v46  ;;  %v5269_v25 = vadd.f32 %v7620_v47, %v10346_v17 }
 0x4b0   : > { %v5873_v56 = vadd.f32 %v5872_v40, %v5842_v20  ;;  %v5267_v3 = vadd.f32 %v5200_v18, %v10356_v43  ;;  %v5564_v10 = vsel %vm2662_vm2, %v5562_v48, %v5563_v5  ;;  %v5624_v33 = vsel %vm2662_vm2, %v5563_v5, %v5266_v52  ;;  %v11207_v43 = vld [vmem:[#allocation41_spill] sm:$0xff] }
 0x4b1   : > { %v5804_v22 = vadd.f32 %v5803_v8, %v10459_v12  ;;  %v5561_v53 = vsel %vm2662_vm2, %v5559_v39, %v5560_v57  ;;  %v7621_v44 = vpop.f32.mrf.mxu1  ;;  %v5714_v59 = vsel %vm2760_vm3, %v5670_v63, %v5624_v33  ;;  %v10504_v28 = vadd.f32 %v11206_v55, %v5564_v10  ;;  %v5006_v10 = vpop.f32.mrf.mxu0 }
 0x4b2   : > { %v5874_v58 = vadd.f32 %v5873_v56, %v5843_v49  ;;  %v5623_v17 = vsel %vm2662_vm2, %v5560_v57, %v5264_v30  ;;  %v10508_v50 = vadd.f32 %v11207_v43, %v5714_v59  ;;  %v10513_v45 = vadd.f32 %v11208_v14, %v5561_v53  ;;  %v11209_v49 = vld [vmem:[#allocation16_spill] sm:$0xff]  ;;  %v11211_v59 = vld [vmem:[#allocation42_spill] sm:$0xff]  ;;  %v11212_v43 = vld [vmem:[#allocation65_spill] sm:$0xff] }
 0x4b3   : > { %v5712_v32 = vsel %vm2760_vm3, %v5666_v15, %v5623_v17  ;;  %v5805_v34 = vadd.f32 %v5804_v22, %v10463_v24  ;;  %v5203_v41 = vpop.f32.mrf.mxu1  ;;  %v5015_v9 = vadd.f32 %v7580_v54, %v11209_v49  ;;  %v5568_v20 = vrot.slane %v5269_v25, 1 }
 0x4b4   : > { %v10518_v38 = vadd.f32 %v11210_v16, %v5712_v32  ;;  %v5875_v27 = vadd.f32 %v5874_v58, %v5844_v42  ;;  %v5847_v52 = vmul.f32 %v10504_v28, %v10504_v28  ;;  %v5845_v47 = vmul.f32 %v10513_v45, %v10513_v45  ;;  %v11214_v16 = vld [vmem:[#allocation18_spill] sm:$0xff] }
 0x4b5   : > { %v5806_v30 = vadd.f32 %v5805_v34, %v10513_v45  ;;  %v5270_v40 = vadd.f32 %v7621_v44, %v10376_v51  ;;  %v7624_v48 = vpop.f32.mrf.mxu1  ;;  %v5848_v39 = vmul.f32 %v10508_v50, %v10508_v50  ;;  %v5565_v5 = vrot.slane %v5267_v3, 1  ;;  %v11213_v34 = vld [vmem:[#allocation64_spill] sm:$0xff] }
 0x4b6   : > { %v5846_v8 = vmul.f32 %v10518_v38, %v10518_v38  ;;  %v5268_v42 = vadd.f32 %v5203_v41, %v10382_v29  ;;  %v5876_v57 = vadd.f32 %v5875_v27, %v5845_v47  ;;  %v5273_v54 = vadd.f32 %v7624_v48, %v10390_v60  ;;  %v7581_v48 = vpop.f32.mrf.mxu0 }
 0x4b7   : > { %v5807_v63 = vadd.f32 %v5806_v30, %v10518_v38  ;;  %v5569_v18 = vrot.slane %v5270_v40, 1  ;;  %v5678_v56 = vrot.slane %v5270_v40, %v11186_v46  ;;  %v5216_v15 = vpop.f32.mrf.mxu1  ;;  %v5007_v27 = vadd.f32 %v5006_v10, %v11214_v16 }
 0x4b8   : > { %v5566_v25 = vrot.slane %v5268_v42, 1  ;;  %v5674_v51 = vrot.slane %v5268_v42, %v11186_v46  ;;  %v5271_v22 = vadd.f32 %v5216_v15, %v10418_v0  ;;  %v5877_v3 = vadd.f32 %v5876_v57, %v5846_v8 }
 0x4b9   : > { %v5808_v33 = vadd.f32 %v5807_v63, %v10504_v28  ;;  %v5570_v29 = vsel %vm2662_vm2, %v5568_v20, %v5569_v18  ;;  %v5626_v53 = vsel %vm2662_vm2, %v5569_v18, %v5270_v40  ;;  %v7625_v44 = vpop.f32.mrf.mxu1  ;;  %v11215_v20 = vld [vmem:[#allocation44_spill] sm:$0xff]  ;;  %v5574_v40 = vrot.slane %v5273_v54, 1 }
 0x4ba   : > { %v5718_v58 = vsel %vm2760_vm3, %v5678_v56, %v5626_v53  ;;  %v10542_v55 = vadd.f32 %v11211_v59, %v5570_v29  ;;  %v5567_v17 = vsel %vm2662_vm2, %v5565_v5, %v5566_v25  ;;  %v5625_v60 = vsel %vm2662_vm2, %v5566_v25, %v5268_v42  ;;  %v5009_v53 = vpop.f32.mrf.mxu0 }
 0x4bb   : > { %v5878_v0 = vadd.f32 %v5877_v3, %v5847_v52  ;;  %v10547_v32 = vadd.f32 %v11212_v43, %v5718_v58  ;;  %v5716_v14 = vsel %vm2760_vm3, %v5674_v51, %v5625_v60  ;;  %v10552_v41 = vadd.f32 %v11213_v34, %v5567_v17  ;;  %v5219_v49 = vpop.f32.mrf.mxu1 }
 0x4bc   : > { %v10556_v30 = vadd.f32 %v11215_v20, %v5716_v14  ;;  %v5809_v47 = vadd.f32 %v5808_v33, %v10508_v50  ;;  %v5851_v52 = vmul.f32 %v10542_v55, %v10542_v55  ;;  %v5274_v42 = vadd.f32 %v7625_v44, %v10471_v31  ;;  %v11218_v20 = vld [vmem:[#allocation45_spill] sm:$0xff] }
 0x4bd   : > { %v5849_v8 = vmul.f32 %v10552_v41, %v10552_v41  ;;  %v5879_v5 = vadd.f32 %v5878_v0, %v5848_v39  ;;  %v7628_v63 = vpop.f32.mrf.mxu1  ;;  %v5571_v56 = vrot.slane %v5271_v22, 1  ;;  %v5272_v15 = vadd.f32 %v5219_v49, %v10474_v37  ;;  %v11216_v0 = vld [vmem:[#allocation46_spill] sm:$0xff] }
 0x4be   : > { %v5810_v57 = vadd.f32 %v5809_v47, %v10552_v41  ;;  %v5850_v18 = vmul.f32 %v10556_v30, %v10556_v30  ;;  %v5852_v25 = vmul.f32 %v10547_v32, %v10547_v32  ;;  %v5575_v54 = vrot.slane %v5274_v42, 1 }
 0x4bf   : > { %v5880_v51 = vadd.f32 %v5879_v5, %v5849_v8  ;;  %v5686_v10 = vrot.slane %v5274_v42, %v11186_v46  ;;  %v5232_v33 = vpop.f32.mrf.mxu1  ;;  %v5572_v31 = vrot.slane %v5272_v15, 1  ;;  %v5682_v3 = vrot.slane %v5272_v15, %v11186_v46  ;;  %v11220_v5 = vld [vmem:[#allocation22_spill] sm:$0xff] }
 0x4c0   : > { %v5811_v39 = vadd.f32 %v5810_v57, %v10556_v30  ;;  %v5277_v29 = vadd.f32 %v7628_v63, %v5015_v9  ;;  %v5576_v22 = vsel %vm2662_vm2, %v5574_v40, %v5575_v54  ;;  %v5628_v37 = vsel %vm2662_vm2, %v5575_v54, %v5274_v42  ;;  %v11217_v9 = vld [vmem:[#allocation67_spill] sm:$0xff]  ;;  %v11219_v40 = vld [vmem:[#allocation20_spill] sm:$0xff] }
 0x4c1   : > { %v5881_v44 = vadd.f32 %v5880_v51, %v5850_v18  ;;  %v5275_v58 = vadd.f32 %v5232_v33, %v5007_v27  ;;  %v7629_v59 = vpop.f32.mrf.mxu1  ;;  %v5722_v60 = vsel %vm2760_vm3, %v5686_v10, %v5628_v37  ;;  %v10579_v43 = vadd.f32 %v11216_v0, %v5576_v22  ;;  %v11221_v18 = vld [vmem:[#allocation47_spill] sm:$0xff] }
 0x4c2   : > { %v5812_v17 = vadd.f32 %v5811_v39, %v10542_v55  ;;  %v5573_v14 = vsel %vm2662_vm2, %v5571_v56, %v5572_v31  ;;  %v10583_v49 = vadd.f32 %v11217_v9, %v5722_v60  ;;  %v5627_v16 = vsel %vm2662_vm2, %v5572_v31, %v5272_v15  ;;  %v11222_v9 = vld [vmem:[#allocation49_spill] sm:$0xff] }
 0x4c3   : > { %v5882_v34 = vadd.f32 %v5881_v44, %v5851_v52  ;;  %v10587_v47 = vadd.f32 %v11218_v20, %v5573_v14  ;;  %v5235_v27 = vpop.f32.mrf.mxu1  ;;  %v5018_v8 = vadd.f32 %v7581_v48, %v11219_v40  ;;  %v5010_v42 = vadd.f32 %v5009_v53, %v11220_v5 }
 0x4c4   : > { %v5720_v63 = vsel %vm2760_vm3, %v5682_v3, %v5627_v16  ;;  %v5813_v57 = vadd.f32 %v5812_v17, %v10547_v32  ;;  %v5580_v39 = vrot.slane %v5277_v29, 1  ;;  %v5577_v31 = vrot.slane %v5275_v58, 1 }
 0x4c5   : > { %v10595_v52 = vadd.f32 %v11221_v18, %v5720_v63  ;;  %v5853_v56 = vmul.f32 %v10587_v47, %v10587_v47  ;;  %v5883_v15 = vadd.f32 %v5882_v34, %v5852_v25  ;;  %v5278_v54 = vadd.f32 %v7629_v59, %v5018_v8  ;;  %v11224_v8 = vld [vmem:[#allocation48_spill] sm:$0xff] }
 0x4c6   : > { %v5814_v51 = vadd.f32 %v5813_v57, %v10587_v47  ;;  %v5276_v10 = vadd.f32 %v5235_v27, %v5010_v42  ;;  %v5855_v37 = vmul.f32 %v10579_v43, %v10579_v43  ;;  %v5856_v25 = vmul.f32 %v10583_v49, %v10583_v49  ;;  %v11223_v27 = vld [vmem:[#allocation50_spill] sm:$0xff]  ;;  %v11225_v63 = vld [vmem:[#allocation52_spill] sm:$0xff] }
 0x4c7   : > { %v5854_v48 = vmul.f32 %v10595_v52, %v10595_v52  ;;  %v5884_v33 = vadd.f32 %v5883_v15, %v5853_v56  ;;  %v5581_v53 = vrot.slane %v5278_v54, 1  ;;  %v5694_v44 = vrot.slane %v5278_v54, %v11186_v46 }
 0x4c8   : > { %v5815_v3 = vadd.f32 %v5814_v51, %v10595_v52  ;;  %v5578_v22 = vrot.slane %v5276_v10, 1  ;;  %v5690_v17 = vrot.slane %v5276_v10, %v11186_v46 }
 0x4c9   : > { %v5885_v59 = vadd.f32 %v5884_v33, %v5854_v48  ;;  %v5582_v29 = vsel %vm2662_vm2, %v5580_v39, %v5581_v53  ;;  %v5630_v58 = vsel %vm2662_vm2, %v5581_v53, %v5278_v54 }
 0x4ca   : > { %v5816_v60 = vadd.f32 %v5815_v3, %v10579_v43  ;;  %v5579_v0 = vsel %vm2662_vm2, %v5577_v31, %v5578_v22  ;;  %v5726_v34 = vsel %vm2760_vm3, %v5694_v44, %v5630_v58  ;;  %v10616_v16 = vadd.f32 %v11222_v9, %v5582_v29 }
 0x4cb   : > { %v5886_v14 = vadd.f32 %v5885_v59, %v5855_v37  ;;  %v5629_v20 = vsel %vm2662_vm2, %v5578_v22, %v5276_v10  ;;  %v10620_v40 = vadd.f32 %v11223_v27, %v5726_v34  ;;  %v10625_v5 = vadd.f32 %v11224_v8, %v5579_v0 }
 0x4cc   : > { %v5724_v46 = vsel %vm2760_vm3, %v5690_v17, %v5629_v20  ;;  %v5817_v42 = vadd.f32 %v5816_v60, %v10583_v49  ;;  %v5859_v10 = vmul.f32 %v10616_v16, %v10616_v16 }
 0x4cd   : > { %v10629_v57 = vadd.f32 %v11225_v63, %v5724_v46  ;;  %v5887_v18 = vadd.f32 %v5886_v14, %v5856_v25  ;;  %v5857_v15 = vmul.f32 %v10625_v5, %v10625_v5  ;;  %v5860_v39 = vmul.f32 %v10620_v40, %v10620_v40 }
 0x4ce   : > { %v5818_v56 = vadd.f32 %v5817_v42, %v10625_v5 }
 0x4cf   : > { %v5858_v51 = vmul.f32 %v10629_v57, %v10629_v57  ;;  %v5888_v54 = vadd.f32 %v5887_v18, %v5857_v15 }
 0x4d0   : > { %v5819_v2 = vadd.f32 %v5818_v56, %v10629_v57 }
 0x4d1   : > { %v5889_v33 = vadd.f32 %v5888_v54, %v5858_v51 }
 0x4d2   : > { %v5820_v48 = vadd.f32 %v5819_v2, %v10616_v16 }
 0x4d3   : > { %v5890_v3 = vadd.f32 %v5889_v33, %v5859_v10 }
 0x4d4   : > { %v5821_v31 = vadd.f32 %v5820_v48, %v10620_v40 }
 0x4d5   : > { %v5891_v44 = vadd.f32 %v5890_v3, %v5860_v39 }
 0x4d6   : > { %v5822_v53 = vrot.slane %v5821_v31, 4 }
 0x4d7   : > { %v5892_v37 = vrot.slane %v5891_v44, 4 }
 0x4d8   : > { %v5823_v22 = vadd.f32 %v5822_v53, %v5821_v31 }
 0x4d9   : > { %v5893_v59 = vadd.f32 %v5892_v37, %v5891_v44 }
 0x4da   : > { %v5824_v25 = vrot.slane %v5823_v22, 2 }
 0x4db   : > { %v5894_v60 = vrot.slane %v5893_v59, 2 }
 0x4dc   : > { %v5825_v17 = vadd.f32 %v5824_v25, %v5823_v22 }
 0x4dd   : > { %v5895_v58 = vadd.f32 %v5894_v60, %v5893_v59  ;;  %v5997_v59 = vld [vmem:[%s8164_s6 + $0xe8] sm:$0xff] }
 0x4de   : > { %v5826_v29 = vrot.slane %v5825_v17, 1 }
 0x4df   : > { %v5896_v14 = vrot.slane %v5895_v58, 1 }
 0x4e0   : > { %v5827_v0 = vadd.f32 %v5826_v29, %v5825_v17 }
 0x4e1   : > { %v5897_v9 = vadd.f32 %v5896_v14, %v5895_v58 }
 0x4e2   : > { %v10643_v34 = vmul.f32 0.00390625, %v5827_v0 }
 0x4e3   : > { %v5898_v20 = vmul.f32 0.00390625, %v5897_v9 }
 0x4e4   : > { %v5899_v27 = vmul.f32 %v10643_v34, %v10643_v34  ;;  %v5929_v46 = vsub.f32 %v10625_v5, %v10643_v34  ;;  %v5930_v8 = vsub.f32 %v10629_v57, %v10643_v34  ;;  %v5913_v18 = vsub.f32 %v10468_v4, %v10643_v34 }
 0x4e5   : > { %v5914_v56 = vsub.f32 %v10477_v19, %v10643_v34  ;;  %v5915_v15 = vsub.f32 %v10459_v12, %v10643_v34  ;;  %v5916_v51 = vsub.f32 %v10463_v24, %v10643_v34  ;;  %v5917_v5 = vsub.f32 %v10513_v45, %v10643_v34 }
 0x4e6   : > { %v5900_v42 = vsub.f32 %v5898_v20, %v5899_v27  ;;  %v5918_v57 = vsub.f32 %v10518_v38, %v10643_v34  ;;  %v5919_v54 = vsub.f32 %v10504_v28, %v10643_v34  ;;  %v5920_v4 = vsub.f32 %v10508_v50, %v10643_v34 }
 0x4e7   : > { %v5921_v19 = vsub.f32 %v10552_v41, %v10643_v34  ;;  %v5922_v12 = vsub.f32 %v10556_v30, %v10643_v34  ;;  %v5923_v24 = vsub.f32 %v10542_v55, %v10643_v34  ;;  %v5924_v45 = vsub.f32 %v10547_v32, %v10643_v34  ;;  %v5983_v41 = vld [vmem:[%s8164_s6 + $0x78] sm:$0xff] }
 0x4e8   : > { %v5933_v63 = vmax.f32 %v5900_v42, 0.0  ;;  %v5925_v38 = vsub.f32 %v10587_v47, %v10643_v34  ;;  %v5926_v28 = vsub.f32 %v10595_v52, %v10643_v34  ;;  %v5927_v50 = vsub.f32 %v10579_v43, %v10643_v34  ;;  %v5971_v42 = vld [vmem:[%s8164_s6 + $0x18] sm:$0xff]  ;;  %v5986_v47 = vld [vmem:[%s8164_s6 + $0x90] sm:$0xff] }
 0x4e9   : > { %v5928_v10 = vsub.f32 %v10583_v49, %v10643_v34  ;;  %v5931_v48 = vsub.f32 %v10616_v16, %v10643_v34  ;;  %v5932_v33 = vsub.f32 %v10620_v40, %v10643_v34  ;;  %v5901_v39 = vsub.f32 %v10331_v62, %v10643_v34  ;;  %v5989_v40 = vld [vmem:[%s8164_s6 + $0xa8] sm:$0xff] }
 0x4ea   : > { %v5934_v2 = vadd.f32 1e-05, %v5933_v63  ;;  %v5902_v31 = vsub.f32 %v10340_v13, %v10643_v34  ;;  %v5903_v3 = vsub.f32 %v10315_v36, %v10643_v34  ;;  %v5904_v53 = vsub.f32 %v10321_v35, %v10643_v34  ;;  %v5996_v13 = vld [vmem:[%s8164_s6 + $0xe0] sm:$0xff] }
 0x4eb   : > { %v5905_v44 = vsub.f32 %v10387_v61, %v10643_v34  ;;  %v5906_v22 = vsub.f32 %v10393_v7, %v10643_v34  ;;  %v5907_v37 = vsub.f32 %v10366_v26, %v10643_v34  ;;  %v5908_v62 = vsub.f32 %v10372_v6, %v10643_v34  ;;  %v5968_v63 = vld [vmem:[%s8164_s6] sm:$0xff] }
 0x4ec   : > { %7849 = vrsqrt.f32 %v5934_v2  ;;  %v5909_v36 = vsub.f32 %v10430_v1, %v10643_v34  ;;  %v5910_v35 = vsub.f32 %v10433_v23, %v10643_v34  ;;  %v5911_v61 = vsub.f32 %v10415_v21, %v10643_v34  ;;  %v5969_v2 = vld [vmem:[%s8164_s6 + $0x8] sm:$0xff] }
 0x4ed   : > { %v5912_v7 = vsub.f32 %v10421_v11, %v10643_v34 }
 0x4f9   : > { %v7850_v25 = vpop.eup %7849 }
 0x4fa   : > { %v5964_v17 = vmul.f32 %v7850_v25, %v5929_v46  ;;  %v5965_v26 = vmul.f32 %v7850_v25, %v5930_v8  ;;  %v5936_v6 = vmul.f32 %v7850_v25, %v5901_v39  ;;  %v5937_v60 = vmul.f32 %v7850_v25, %v5902_v31  ;;  %v5970_v8 = vld [vmem:[%s8164_s6 + $0x10] sm:$0xff] }
 0x4fb   : > { %v5938_v29 = vmul.f32 %v7850_v25, %v5903_v3  ;;  %v5939_v1 = vmul.f32 %v7850_v25, %v5904_v53  ;;  %v5940_v58 = vmul.f32 %v7850_v25, %v5905_v44  ;;  %v5941_v0 = vmul.f32 %v7850_v25, %v5906_v22  ;;  %v5974_v44 = vld [vmem:[%s8164_s6 + $0x30] sm:$0xff]  ;;  %v5975_v22 = vld [vmem:[%s8164_s6 + $0x38] sm:$0xff] }
 0x4fc   : > { %v6028_v23 = vadd.f32 %v5996_v13, %v5964_v17  ;;  %v6029_v14 = vadd.f32 %v5997_v59, %v5965_v26  ;;  %v5942_v9 = vmul.f32 %v7850_v25, %v5907_v37  ;;  %v5943_v21 = vmul.f32 %v7850_v25, %v5908_v62  ;;  %v5972_v37 = vld [vmem:[%s8164_s6 + $0x20] sm:$0xff]  ;;  %v5973_v62 = vld [vmem:[%s8164_s6 + $0x28] sm:$0xff]  ;;  %v5991_v26 = vld [vmem:[%s8164_s6 + $0xb8] sm:$0xff] }
 0x4fd   : > { %v5944_v20 = vmul.f32 %v7850_v25, %v5909_v36  ;;  %v5945_v11 = vmul.f32 %v7850_v25, %v5910_v35  ;;  %v5946_v27 = vmul.f32 %v7850_v25, %v5911_v61  ;;  %v5947_v46 = vmul.f32 %v7850_v25, %v5912_v7 }
 0x4fe   : > { %6060 = vst [vmem:[%s10719_s18 + $0xe0] sm:$0xff] %v6028_v23  ;;  %6061 = vst [vmem:[%s10719_s18 + $0xe8] sm:$0xff] %v6029_v14  ;;  %v5948_v39 = vmul.f32 %v7850_v25, %v5913_v18  ;;  %v5949_v31 = vmul.f32 %v7850_v25, %v5914_v56  ;;  %v10723_v3 = vmul.f32 %v7850_v25, %v5915_v15  ;;  %v5978_v18 = vld [vmem:[%s8164_s6 + $0x50] sm:$0xff]  ;;  %v5979_v56 = vld [vmem:[%s8164_s6 + $0x58] sm:$0xff] }
 0x4ff   : > { %v10725_v53 = vmul.f32 %v7850_v25, %v5916_v51  ;;  %v5952_v13 = vmul.f32 %v7850_v25, %v5917_v5  ;;  %v5953_v59 = vmul.f32 %v7850_v25, %v5918_v57  ;;  %v10731_v36 = vmul.f32 %v7850_v25, %v5919_v54  ;;  %v5976_v15 = vld [vmem:[%s8164_s6 + $0x40] sm:$0xff]  ;;  %v5977_v51 = vld [vmem:[%s8164_s6 + $0x48] sm:$0xff] }
 0x500   : > { %v10733_v35 = vmul.f32 %v7850_v25, %v5920_v4  ;;  %v5956_v61 = vmul.f32 %v7850_v25, %v5921_v19  ;;  %v5957_v5 = vmul.f32 %v7850_v25, %v5922_v12  ;;  %v10748_v57 = vmul.f32 %v7850_v25, %v5923_v24  ;;  %v5982_v4 = vld [vmem:[%s8164_s6 + $0x70] sm:$0xff]  ;;  %v5980_v19 = vld [vmem:[%s8164_s6 + $0x60] sm:$0xff]  ;;  %v5981_v24 = vld [vmem:[%s8164_s6 + $0x68] sm:$0xff] }
 0x501   : > { %v10753_v54 = vmul.f32 %v7850_v25, %v5924_v45  ;;  %v5960_v30 = vmul.f32 %v7850_v25, %v5925_v38  ;;  %v5961_v55 = vmul.f32 %v7850_v25, %v5926_v28  ;;  %v10767_v32 = vmul.f32 %v7850_v25, %v5927_v50  ;;  %v5987_v45 = vld [vmem:[%s8164_s6 + $0x98] sm:$0xff]  ;;  %v5984_v28 = vld [vmem:[%s8164_s6 + $0x80] sm:$0xff]  ;;  %v5985_v50 = vld [vmem:[%s8164_s6 + $0x88] sm:$0xff] }
 0x502   : > { %v10772_v12 = vmul.f32 %v7850_v25, %v5928_v10  ;;  %v10780_v52 = vmul.f32 %v7850_v25, %v5931_v48  ;;  %v10785_v43 = vmul.f32 %v7850_v25, %v5932_v33  ;;  %v6000_v38 = vadd.f32 %v5968_v63, %v5936_v6  ;;  %v5990_v10 = vld [vmem:[%s8164_s6 + $0xb0] sm:$0xff]  ;;  %v5988_v23 = vld [vmem:[%s8164_s6 + $0xa0] sm:$0xff] }
 0x503   : > { %v6001_v49 = vadd.f32 %v5969_v2, %v5937_v60  ;;  %v6002_v7 = vadd.f32 %v5970_v8, %v5938_v29  ;;  %v6003_v17 = vadd.f32 %v5971_v42, %v5939_v1  ;;  %v6004_v16 = vadd.f32 %v5972_v37, %v5940_v58  ;;  %v5994_v60 = vld [vmem:[%s8164_s6 + $0xd0] sm:$0xff]  ;;  %v5992_v29 = vld [vmem:[%s8164_s6 + $0xc0] sm:$0xff]  ;;  %v5993_v1 = vld [vmem:[%s8164_s6 + $0xc8] sm:$0xff] }
 0x504   : > { %v6005_v48 = vadd.f32 %v5973_v62, %v5941_v0  ;;  %v6006_v34 = vadd.f32 %v5974_v44, %v5942_v9  ;;  %v6007_v33 = vadd.f32 %v5975_v22, %v5943_v21  ;;  %v6008_v25 = vadd.f32 %v5976_v15, %v5944_v20  ;;  %6032 = vst [vmem:[%s10719_s18] sm:$0xff] %v6000_v38  ;;  %v5995_v21 = vld [vmem:[%s8164_s6 + $0xd8] sm:$0xff]  ;;  %v5998_v20 = vld [vmem:[%s8164_s6 + $0xf0] sm:$0xff] }
 0x505   : > { %v6009_v6 = vadd.f32 %v5977_v51, %v5945_v11  ;;  %6033 = vst [vmem:[%s10719_s18 + $0x8] sm:$0xff] %v6001_v49  ;;  %v6010_v58 = vadd.f32 %v5978_v18, %v5946_v27  ;;  %v6011_v0 = vadd.f32 %v5979_v56, %v5947_v46  ;;  %v6012_v14 = vadd.f32 %v5980_v19, %v5948_v39  ;;  %v5999_v11 = vld [vmem:[%s8164_s6 + $0xf8] sm:$0xff] }
 0x506   : > { %v6013_v9 = vadd.f32 %v5981_v24, %v5949_v31  ;;  %6034 = vst [vmem:[%s10719_s18 + $0x10] sm:$0xff] %v6002_v7  ;;  %6035 = vst [vmem:[%s10719_s18 + $0x18] sm:$0xff] %v6003_v17  ;;  %v6014_v27 = vadd.f32 %v5982_v4, %v10723_v3  ;;  %v6015_v46 = vadd.f32 %v5983_v41, %v10725_v53 }
 0x507   : > { %6036 = vst [vmem:[%s10719_s18 + $0x20] sm:$0xff] %v6004_v16  ;;  %6037 = vst [vmem:[%s10719_s18 + $0x28] sm:$0xff] %v6005_v48  ;;  %v6016_v8 = vadd.f32 %v5984_v28, %v5952_v13  ;;  %v6017_v42 = vadd.f32 %v5985_v50, %v5953_v59  ;;  %v6018_v63 = vadd.f32 %v5986_v47, %v10731_v36 }
 0x508   : > { %6038 = vst [vmem:[%s10719_s18 + $0x30] sm:$0xff] %v6006_v34  ;;  %6039 = vst [vmem:[%s10719_s18 + $0x38] sm:$0xff] %v6007_v33  ;;  %v6019_v2 = vadd.f32 %v5987_v45, %v10733_v35  ;;  %v6020_v39 = vadd.f32 %v5988_v23, %v5956_v61  ;;  %v6021_v31 = vadd.f32 %v5989_v40, %v5957_v5 }
 0x509   : > { %6040 = vst [vmem:[%s10719_s18 + $0x40] sm:$0xff] %v6008_v25  ;;  %6041 = vst [vmem:[%s10719_s18 + $0x48] sm:$0xff] %v6009_v6  ;;  %v6022_v3 = vadd.f32 %v5990_v10, %v10748_v57  ;;  %v6023_v53 = vadd.f32 %v5991_v26, %v10753_v54  ;;  %v6024_v44 = vadd.f32 %v5992_v29, %v5960_v30 }
 0x50a   : > { %6042 = vst [vmem:[%s10719_s18 + $0x50] sm:$0xff] %v6010_v58  ;;  %6043 = vst [vmem:[%s10719_s18 + $0x58] sm:$0xff] %v6011_v0  ;;  %v6025_v22 = vadd.f32 %v5993_v1, %v5961_v55  ;;  %v6026_v37 = vadd.f32 %v5994_v60, %v10767_v32  ;;  %v6027_v62 = vadd.f32 %v5995_v21, %v10772_v12 }
 0x50b   : > { %6044 = vst [vmem:[%s10719_s18 + $0x60] sm:$0xff] %v6012_v14  ;;  %6045 = vst [vmem:[%s10719_s18 + $0x68] sm:$0xff] %v6013_v9  ;;  %v6030_v13 = vadd.f32 %v5998_v20, %v10780_v52  ;;  %v6031_v59 = vadd.f32 %v5999_v11, %v10785_v43 }
 0x50c   : > { %6046 = vst [vmem:[%s10719_s18 + $0x70] sm:$0xff] %v6014_v27  ;;  %6047 = vst [vmem:[%s10719_s18 + $0x78] sm:$0xff] %v6015_v46 }
 0x50d   : > { %6048 = vst [vmem:[%s10719_s18 + $0x80] sm:$0xff] %v6016_v8  ;;  %6049 = vst [vmem:[%s10719_s18 + $0x88] sm:$0xff] %v6017_v42 }
 0x50e   : > { %6050 = vst [vmem:[%s10719_s18 + $0x90] sm:$0xff] %v6018_v63  ;;  %6051 = vst [vmem:[%s10719_s18 + $0x98] sm:$0xff] %v6019_v2 }
 0x50f   : > { %6052 = vst [vmem:[%s10719_s18 + $0xa0] sm:$0xff] %v6020_v39  ;;  %6053 = vst [vmem:[%s10719_s18 + $0xa8] sm:$0xff] %v6021_v31 }
 0x510   : > { %6054 = vst [vmem:[%s10719_s18 + $0xb0] sm:$0xff] %v6022_v3  ;;  %6055 = vst [vmem:[%s10719_s18 + $0xb8] sm:$0xff] %v6023_v53 }
 0x511   : > { %6056 = vst [vmem:[%s10719_s18 + $0xc0] sm:$0xff] %v6024_v44  ;;  %6057 = vst [vmem:[%s10719_s18 + $0xc8] sm:$0xff] %v6025_v22 }
 0x512   : > { %6058 = vst [vmem:[%s10719_s18 + $0xd0] sm:$0xff] %v6026_v37  ;;  %6059 = vst [vmem:[%s10719_s18 + $0xd8] sm:$0xff] %v6027_v62 }
 0x513   : > { %6062 = vst [vmem:[%s10719_s18 + $0xf0] sm:$0xff] %v6030_v13  ;;  %6063 = vst [vmem:[%s10719_s18 + $0xf8] sm:$0xff] %v6031_v59 }
 0x514   : > { %7944 = shalt.err (!%p7941_p9)
}
 0x515   : > { %s7945_s22 = scalar_lea.hbm %s10830_s29, 4096  ;;  %s7949_s26 = scalar_lea.hbm %s10896_s3, 8192 }
 0x516   : > { %p7946_p13 = scmp.ne.s32.totalorder %s10830_s29, %s7945_s22  ;;  %p7950_p4 = scmp.lt.s32.totalorder %s10830_s29, %s10896_s3 }
 0x517   : > { %p7951_p8 = scmp.lt.s32.totalorder %s7949_s26, %s7945_s22 }
 0x518   : > { %p7947_p5 = pnand %p7946_p13, %p11226_p10 }
 0x519   : > { %p7952_p3 = por %p7951_p8, %p7950_p4 }
 0x51a   : > { %p7948_p0 = pneg %p7947_p5 }
 0x51c   : > { %p7953_p11 = pnand %p7952_p3, %p7948_p0 }
 0x51e   : > { %7956 = shalt.err (!%p7953_p11)
}
 0x51f   : > { %s8009_s6 = smov 128   ;;  %s8010_s18 = smov 8  }
 0x520   : > { %7640 = dma.vmem_to_hbm [thread:$0]  (%p11226_p10), %s10834_s25, 4096, %s10830_s29, %s6065_s16, %s8009_s6, %s8009_s6, %s8010_s18  }
 0x521 PF: > { %s6093_s20 = sand.u32 1, %s7987_s12   ;;  %p11227_p1 = scmp.ne.s32.totalorder %s10942_s19, 0 }
 0x522   : > { %p11228_p2 = scmp.ge.s32.totalorder %s7999_s15, 2  ;;  %s6094_s27 = scalar_lea.sflag [#allocation4], %s6093_s20 }
 0x524   : > { %p7654_p6 = pnand %p11228_p2, %p11227_p1 }
 0x526   : > { %p7655_p12 = pneg %p7654_p6 }
 0x528   : > { %7982 = dma.done.wait (%p7655_p12), %s6094_s27, 4096  }
 0x529   : > { %7984 = vsyncadd (%p7655_p12), %s6094_s27, 4294963200  ;;  %p17_p7 = scmp.ge.s32.totalorder %s8103_s7, 4   ;;  %s11229_s12 = smov %s7991_s13 }
 0x52a   : > { %s11230_s13 = smov %s7995_s14  ;;  %s11231_s14 = smov %s8119_s11 }
 0x52b   : > { %s11232_s15 = smov %s8103_s7  ;;  %19 = sbr.rel (!%p17_p7) target bundleno = 6 (0x6), region = 101 }
 0x530   :  { %6099 = vsyncpa [#allocation3], 1 }
 0x531   :  { %6101 = vsyncpa [#allocation3 + $0x1], 1 }
 0x532   :  { %6102 = vsyncpa [#allocation6], 1 }
 0x533   :  { %6103 = vsyncpa [#allocation4], 1 }
 0x534   :  { %6105 = vsyncpa [#allocation4 + $0x1], 1 }

// kernel: tpu_custom_call.1
= control target key start
LH: loop header
LB: loop body
LE: loop exit
PB: predicated region body
PF: predicated region fallthrough
CT: control target
= control target key end

     0   :  { %8 = vsyncpa [#allocation3], 0  ;;  %s10893_s0 = inlined_call_operand.hbm [shape: f32[2,16,16,128], index: 0, kind: input, shape index: {}]   ;;  %s10894_s1 = inlined_call_operand.hbm [shape: bf16[3,3,128,128], index: 1, kind: input, shape index: {}]   ;;  %s10895_s2 = inlined_call_operand.hbm [shape: bf16[3,3,128,128], index: 2, kind: input, shape index: {}]   ;;  %s10896_s3 = inlined_call_operand.hbm [shape: f32[2,16,16,128], index: 3, kind: output, shape index: {}]  }
   0x1   :  { %10 = vsyncpa [#allocation3 + $0x1], 0 }
   0x2   :  { %11 = vsyncpa [#allocation6], 0 }
   0x3   :  { %12 = vsyncpa [#allocation4], 0 }
   0x4   :  { %14 = vsyncpa [#allocation4 + $0x1], 0  ;;  %s8031_s12 = smov 0   ;;  %s8033_s13 = smov 0  }
   0x5   :  { %s8035_s14 = smov 0   ;;  %s8037_s15 = smov 0  }
   0x6 LB: > { %s8052_s16 = sadd.s32 4294967295, %s7999_s15   ;;  %s6170_s17 = sadd.s32 4294967294, %s7999_s15   ;;  %s7999_s15 = sphi %s8037_s15, %s11232_s15   ;;  %s7995_s14 = sphi %s8035_s14, %s11231_s14   ;;  %s7991_s13 = sphi %s8033_s13, %s11230_s13   ;;  %s7987_s12 = sphi %s8031_s12, %s11229_s12  }
   0x7   : > { %p40_p0 = scmp.ne.s32.totalorder %s7991_s13, %s7987_s12  ;;  %p10897_p1 = scmp.eq.s32.totalorder %s8052_s16, 0 }
   0x8   : > { %p112_p3 = scmp.eq.s32.totalorder %s6170_s17, 1  ;;  %p6171_p5 = scmp.ge.s32.totalorder %s7999_s15, 1 }
   0x9   : > { %p8061_p4 = por %p10897_p1, %p40_p0  ;;  %p119_p7 = scmp.lt.s32.totalorder %s7999_s15, 3 }
   0xa   : > { %p8066_p6 = por %p112_p3, %p40_p0  ;;  %s8001_s21 = smov [#allocation5]  }
   0xb   : > { %s10941_s18 = scalar_select %p8061_p4, 1, 0 }
   0xc   : > { %s10942_s19 = scalar_select %p8066_p6, 1, 0 }
   0xd   : > { %p8071_p8 = pnand %p6171_p5, %p119_p7  ;;  %s131_s22 = sshll.u32 %s8001_s21, 4  ;;  %s132_s22 = int_to_ptr.vmem [resolvable:$true] %s131_s22 }
   0xe   : > { %s8002_s24 = smov [#allocation7]   ;;  %s7862_s26 = scalar_lea.vmem %s132_s22, 9216 }
   0xf   : > { %s10943_s20 = scalar_select %p8071_p8, 1, 0 }
  0x10   : > { %p7642_p9 = pneg %p8071_p8  ;;  %s144_s25 = sshll.u32 %s8002_s24, 4  ;;  %s145_s25 = int_to_ptr.vmem [resolvable:$true] %s144_s25 }
  0x11   : > { %p7863_p13 = scmp.ne.s32.totalorder %s132_s22, %s7862_s26  ;;  %p7870_p5 = scmp.lt.s32.totalorder %s132_s22, %s132_s22 }
  0x12   : > { %p8080_p11 = pnand %p7642_p9, %p10897_p1  ;;  %p7871_p7 = scmp.lt.s32.totalorder %s7862_s26, %s7862_s26 }
  0x14   : > { %p7853_p12 = pneg %p8080_p11  ;;  %p7872_p10 = por %p7871_p7, %p7870_p5 }
  0x16   : > { %p7865_p0 = pnand %p7863_p13, %p7853_p12 }
  0x18   : > { %p7866_p3 = pneg %p7865_p0 }
  0x1a   : > { %p7873_p9 = pnand %p7872_p10, %p7866_p3 }
  0x1c   : > { %7876 = shalt.err (!%p7873_p9)
}
  0x1d   : > { %s8003_s27 = smov 64   ;;  %s8004_s28 = smov 4  }
  0x1e   : > { %7645 = dma.hbm_to_vmem [thread:$0]  (!%p8080_p11), %s10894_s1, 9216, %s132_s22, [#allocation6], %s8003_s27, %s8003_s27, %s8004_s28  }
  0x1f   : > { %s7888_s4 = scalar_lea.vmem %s145_s25, 9216  ;;  %p7896_p2 = scmp.lt.s32.totalorder %s145_s25, %s145_s25 }
  0x20   : > { %p7889_p1 = scmp.ne.s32.totalorder %s145_s25, %s7888_s4  ;;  %p7897_p6 = scmp.lt.s32.totalorder %s7888_s4, %s7888_s4 }
  0x22   : > { %p7891_p13 = pnand %p7889_p1, %p7853_p12  ;;  %p7898_p5 = por %p7897_p6, %p7896_p2 }
  0x24   : > { %p7892_p0 = pneg %p7891_p13 }
  0x26   : > { %p7899_p10 = pnand %p7898_p5, %p7892_p0 }
  0x28   : > { %7902 = shalt.err (!%p7899_p10)
}
  0x29   : > { %7648 = dma.hbm_to_vmem [thread:$0]  (!%p8080_p11), %s10895_s2, 9216, %s145_s25, [#allocation6], %s8003_s27, %s8003_s27, %s8004_s28  }
  0x2a   : > { %s8103_s7 = sadd.s32 1, %s7999_s15   ;;  %s27_s8 = sadd.s32 1, %s7995_s14 }
  0x2b   : > { %s24_s9 = ssub.s32 %s7999_s15, %s8103_s7  ;;  %p34_p1 = scmp.ne.s32.totalorder %s7995_s14, %s7991_s13 }
  0x2c   : > { %p25_p2 = scmp.eq.s32.totalorder %s24_s9, 0  ;;  %p35_p6 = scmp.eq.s32.totalorder %s7999_s15, 0 }
  0x2d   : > { %p10945_p12 = scmp.eq.s32.totalorder %s8052_s16, 1  ;;  %p7659_p7 = scmp.lt.s32.totalorder %s7999_s15, 2 }
  0x2e   : > { %s8119_s11 = scalar_select %p25_p2, %s7995_s14, %s27_s8  }
  0x2f   : > { %p8113_p3 = por %p10945_p12, %p34_p1  ;;  %p36_p9 = por %p35_p6, %p34_p1 }
  0x30   : > { %s158_s17 = sand.u32 1, %s7995_s14   ;;  %s6332_s22 = sshll.u32 %s7999_s15, 12 }
  0x31   : > { %s10946_s10 = scalar_select %p8113_p3, 1, 0 }
  0x32   : > { %s6175_s21 = sshll.u32 %s158_s17, 8  ;;  %s8126_s25 = scalar_lea.hbm %s10893_s0, %s6332_s22 }
  0x33   : > { %s162_s26 = scalar_lea.vmem [#allocation2], %s6175_s21  ;;  %p8130_p11 = pnand %p7659_p7, %p36_p9 }
  0x34   : > { %s169_s27 = sshll.u32 %s162_s26, 4  ;;  %s8134_s29 = scalar_lea.sflag [#allocation3], %s158_s17  ;;  %s8128_s27 = int_to_ptr.vmem [resolvable:$true] %s169_s27 }
  0x35   : > { %s7903_s30 = scalar_lea.hbm %s8126_s25, 4096  ;;  %p7905_p0 = pneg %p8130_p11 }
  0x36   : > { %p7904_p13 = scmp.ne.s32.totalorder %s8126_s25, %s7903_s30  ;;  %s7908_s6 = scalar_lea.hbm %s10893_s0, 8192 }
  0x37   : > { %p7909_p1 = scmp.lt.s32.totalorder %s8126_s25, %s10893_s0  ;;  %p7910_p2 = scmp.lt.s32.totalorder %s7908_s6, %s7903_s30 }
  0x38   : > { %p7906_p5 = pnand %p7905_p0, %p7904_p13 }
  0x39   : > { %p7911_p6 = por %p7910_p2, %p7909_p1 }
  0x3a   : > { %p7907_p10 = pneg %p7906_p5 }
  0x3c   : > { %p7912_p12 = pnand %p7911_p6, %p7907_p10 }
  0x3e   : > { %7915 = shalt.err (!%p7912_p12)
}
  0x3f   : > { %s7916_s17 = scalar_lea.vmem %s8128_s27, 4096  ;;  %s8005_s21 = smov [#allocation2]  }
  0x40   : > { %p7917_p7 = scmp.ne.s32.totalorder %s8128_s27, %s7916_s17  ;;  %s7921_s22 = sshll.u32 %s8005_s21, 4  ;;  %s7922_s22 = int_to_ptr.vmem [resolvable:$false] %s7921_s22 }
  0x41   : > { %s7923_s23 = scalar_lea.vmem %s7922_s22, 8192  ;;  %p7924_p5 = scmp.lt.s32.totalorder %s8128_s27, %s7922_s22 }
  0x42   : > { %p7919_p9 = pnand %p7917_p7, %p7905_p0  ;;  %p7925_p3 = scmp.lt.s32.totalorder %s7923_s23, %s7916_s17 }
  0x44   : > { %p7920_p13 = pneg %p7919_p9  ;;  %p7926_p4 = por %p7925_p3, %p7924_p5 }
  0x46   : > { %p7927_p8 = pnand %p7926_p4, %p7920_p13 }
  0x48   : > { %7930 = shalt.err (!%p7927_p8)
}
  0x49   : > { %s8006_s24 = smov 128   ;;  %s8007_s26 = smov 8  }
  0x4a   : > { %7652 = dma.hbm_to_vmem [thread:$0]  (!%p8130_p11), %s8126_s25, 4096, %s8128_s27, %s8134_s29, %s8006_s24, %s8006_s24, %s8007_s26  }
  0x4b   : > { %p10948_p0 = scmp.ne.s32.totalorder %s10943_s20, 0 }
  0x4d   : > { %181 = sbr.rel (%p10948_p0) target bundleno = 1313 (0x521), region = 32 }
  0x52   : > { %s8158_s30 = sand.u32 1, %s7991_s13   ;;  %p10949_p4 = scmp.ne.s32.totalorder %s10941_s18, 0 }
  0x53   : > { %s6179_s4 = sshll.u32 %s8158_s30, 8  ;;  %s184_s5 = scalar_lea.sflag [#allocation3], %s8158_s30 }
  0x54   : > { %s8164_s6 = scalar_lea.vmem [#allocation2], %s6179_s4 }
  0x55   : > { %7974 = dma.done.wait (%p10949_p4), %s184_s5, 4096  }
  0x56   : > { %7976 = vsyncadd (%p10949_p4), %s184_s5, 4294963200  ;;  %p10950_p8 = scmp.eq.s32.totalorder %s8052_s16, 0 }
  0x58   : > { %7978 = dma.done.wait (%p10950_p8), [#allocation6], 18432   ;;  %p10951_p3 = pmov %p10950_p8 }
  0x59   : > { %v7703_v0 = vld [vmem:[#allocation5 + $0xf8] sm:$0xff]   ;;  %v7705_v2 = vld [vmem:[#allocation5 + $0xf0] sm:$0xff]   ;;  %v7707_v4 = vld [vmem:[#allocation5 + $0xe8] sm:$0xff]   ;;  %vm2431_vm0 = vcmask 1040384   ;;  %vm2662_vm2 = vcmask 1046528   ;;  %s10719_s18 = scalar_lea.vmem [#allocation8], %s6179_s4 }
  0x5a   : > { %7980 = vsyncadd (%p10951_p3), [#allocation6], 4294948864  ;;  %v7704_v1 = vld [vmem:[#allocation5 + $0x38] sm:$0xff]   ;;  %6766 = vmatprep.subr.bf16.mxu0 %v7703_v0  ;;  %v7706_v3 = vld [vmem:[#allocation5 + $0x30] sm:$0xff]   ;;  %s6333_s20 = sshll.u32 %s8052_s16, 12  ;;  %s6078_s25 = sshll.u32 %s10719_s18, 4  ;;  %s10834_s25 = int_to_ptr.vmem [resolvable:$true] %s6078_s25 }
  0x5b   : > { %6814 = vmatprep.subr.bf16.mxu1 %v7704_v1  ;;  %6767 = vmatpush3.bf16.msra.mxu0 %v7703_v0  ;;  %v7708_v5 = vld [vmem:[#allocation5 + $0x28] sm:$0xff]   ;;  %v7709_v6 = vld [vmem:[#allocation5 + $0xe0] sm:$0xff]   ;;  %v7711_v8 = vld [vmem:[#allocation5 + $0xd8] sm:$0xff]   ;;  %s10830_s29 = scalar_lea.hbm %s10896_s3, %s6333_s20  ;;  %s6065_s16 = scalar_lea.sflag [#allocation4], %s8158_s30 }
  0x5c   : > { %6815 = vmatpush3.bf16.msra.mxu1 %v7704_v1  ;;  %6768 = vmatprep.subr.bf16.mxu0 %v7705_v2  ;;  %v7710_v7 = vld [vmem:[#allocation5 + $0x20] sm:$0xff]   ;;  %v7712_v9 = vld [vmem:[#allocation5 + $0x18] sm:$0xff]   ;;  %v7713_v10 = vld [vmem:[#allocation5 + $0xd0] sm:$0xff]   ;;  %s7931_s8 = scalar_lea.vmem %s10834_s25, 4096  ;;  %p11226_p10 = scmp.ne.s32.totalorder %s10946_s10, 0 }
  0x5d   : > { %6816 = vmatprep.subr.bf16.mxu1 %v7706_v3  ;;  %v7714_v11 = vld [vmem:[#allocation5 + $0x10] sm:$0xff]   ;;  %v219_v12 = vld [vmem:[%s8164_s6] sm:$0xff]  ;;  %v220_v13 = vld [vmem:[%s8164_s6 + $0x8] sm:$0xff]  ;;  %p7932_p11 = scmp.ne.s32.totalorder %s10834_s25, %s7931_s8  ;;  %s8008_s9 = smov [#allocation8]  }
  0x5e   : > { %v221_v14 = vld [vmem:[%s8164_s6 + $0x10] sm:$0xff]  ;;  %v8177_v15 = vpack.c.bf16 %v220_v13, %v219_v12  ;;  %v222_v16 = vld [vmem:[%s8164_s6 + $0x18] sm:$0xff]  ;;  %v7715_v18 = vld [vmem:[#allocation5 + $0xc8] sm:$0xff]   ;;  %s7935_s17 = sshll.u32 %s8008_s9, 4  ;;  %s7936_s17 = int_to_ptr.vmem [resolvable:$false] %s7935_s17 }
  0x5f   : > { %6769 = vmatpush3.bf16.msra.mxu0 %v7705_v2  ;;  %v8180_v17 = vpack.c.bf16 %v222_v16, %v221_v14  ;;  %v7716_v19 = vld [vmem:[#allocation5 + $0x8] sm:$0xff]   ;;  %v7717_v20 = vld [vmem:[#allocation5 + $0xc0] sm:$0xff]   ;;  %v7719_v22 = vld [vmem:[#allocation5 + $0x1b8] sm:$0xff]   ;;  %p7933_p1 = pnand %p7932_p11, %p11226_p10  ;;  %s7937_s21 = scalar_lea.vmem %s7936_s17, 8192 }
  0x60   : > { %6817 = vmatpush3.bf16.msra.mxu1 %v7706_v3  ;;  %6770 = vmatprep.subr.bf16.mxu0 %v7707_v4  ;;  %v7718_v21 = vld [vmem:[#allocation5] sm:$0xff]   ;;  %v224_v24 = vld [vmem:[%s8164_s6 + $0x28] sm:$0xff]  ;;  %v7724_v25 = vld [vmem:[#allocation5 + $0x138] sm:$0xff]   ;;  %p7938_p6 = scmp.lt.s32.totalorder %s10834_s25, %s7936_s17  ;;  %p7939_p12 = scmp.lt.s32.totalorder %s7937_s21, %s7931_s8 }
  0x61   : > { %6818 = vmatprep.subr.bf16.mxu1 %v7708_v5  ;;  %6782 = vmatprep.mubr.bf16.mxu0 %v8177_v15  ;;  %v223_v23 = vld [vmem:[%s8164_s6 + $0x20] sm:$0xff]  ;;  %v225_v27 = vld [vmem:[%s8164_s6 + $0x30] sm:$0xff]  ;;  %v226_v29 = vld [vmem:[%s8164_s6 + $0x38] sm:$0xff]  ;;  %p7934_p2 = pneg %p7933_p1 }
  0x62   : > { %6830 = vmatprep.mubr.bf16.mxu1 %v8180_v17  ;;  %v8186_v26 = vpack.c.bf16 %v224_v24, %v223_v23  ;;  %v7720_v28 = vld [vmem:[#allocation5 + $0x1b0] sm:$0xff]   ;;  %v227_v30 = vld [vmem:[%s8164_s6 + $0x40] sm:$0xff]  ;;  %v228_v32 = vld [vmem:[%s8164_s6 + $0x48] sm:$0xff]  ;;  %v8196_v34 = vpack.c.bf16 %v226_v29, %v225_v27  ;;  %p7940_p7 = por %p7939_p12, %p7938_p6 }
  0x63   : > { %6771 = vmatpush3.bf16.msra.mxu0 %v7707_v4  ;;  %v7725_v31 = vld [vmem:[#allocation5 + $0x130] sm:$0xff]   ;;  %v7721_v33 = vld [vmem:[#allocation5 + $0x1a8] sm:$0xff]   ;;  %v8198_v36 = vpack.c.bf16 %v228_v32, %v227_v30  ;;  %v230_v38 = vld [vmem:[%s8164_s6 + $0x58] sm:$0xff] }
  0x64   : > { %6819 = vmatpush3.bf16.msra.mxu1 %v7708_v5  ;;  %6772 = vmatprep.subr.bf16.mxu0 %v7709_v6  ;;  %v7727_v35 = vld [vmem:[#allocation5 + $0x128] sm:$0xff]   ;;  %v229_v37 = vld [vmem:[%s8164_s6 + $0x50] sm:$0xff]  ;;  %v7722_v39 = vld [vmem:[#allocation5 + $0x1a0] sm:$0xff]   ;;  %p7941_p9 = pnand %p7940_p7, %p7934_p2 }
  0x65   : > { %6820 = vmatprep.subr.bf16.mxu1 %v7710_v7  ;;  %v7728_v40 = vld [vmem:[#allocation5 + $0x120] sm:$0xff]   ;;  %v232_v42 = vld [vmem:[%s8164_s6 + $0x68] sm:$0xff]  ;;  %v7723_v43 = vld [vmem:[#allocation5 + $0x198] sm:$0xff]   ;;  %v8208_v44 = vpack.c.bf16 %v230_v38, %v229_v37 }
  0x66   : > { %v231_v41 = vld [vmem:[%s8164_s6 + $0x60] sm:$0xff]  ;;  %v7730_v45 = vld [vmem:[#allocation5 + $0x118] sm:$0xff]   ;;  %v233_v47 = vld [vmem:[%s8164_s6 + $0x70] sm:$0xff] }
  0x67   : > { %6773 = vmatpush3.bf16.msra.mxu0 %v7709_v6  ;;  %v8210_v46 = vpack.c.bf16 %v232_v42, %v231_v41  ;;  %v234_v48 = vld [vmem:[%s8164_s6 + $0x78] sm:$0xff]  ;;  %v7726_v49 = vld [vmem:[#allocation5 + $0x190] sm:$0xff]   ;;  %v235_v51 = vld [vmem:[%s8164_s6 + $0x80] sm:$0xff] }
  0x68   : > { %6821 = vmatpush3.bf16.msra.mxu1 %v7710_v7  ;;  %6774 = vmatprep.subr.bf16.mxu0 %v7711_v8  ;;  %v7731_v50 = vld [vmem:[#allocation5 + $0x110] sm:$0xff]   ;;  %v236_v52 = vld [vmem:[%s8164_s6 + $0x88] sm:$0xff]  ;;  %v8220_v54 = vpack.c.bf16 %v234_v48, %v233_v47  ;;  %v238_v58 = vld [vmem:[%s8164_s6 + $0x98] sm:$0xff] }
  0x69   : > { %6822 = vmatprep.subr.bf16.mxu1 %v7712_v9  ;;  %v7729_v53 = vld [vmem:[#allocation5 + $0x188] sm:$0xff]   ;;  %v8222_v56 = vpack.c.bf16 %v236_v52, %v235_v51  ;;  %v237_v57 = vld [vmem:[%s8164_s6 + $0x90] sm:$0xff]  ;;  %v7732_v59 = vld [vmem:[#allocation5 + $0x180] sm:$0xff]  }
  0x6a   : > { %v7733_v55 = vld [vmem:[#allocation5 + $0x108] sm:$0xff]   ;;  %v7734_v60 = vld [vmem:[#allocation5 + $0x100] sm:$0xff]   ;;  %v7735_v63 = vld [vmem:[#allocation5 + $0x78] sm:$0xff]   ;;  %v8232_v0 = vpack.c.bf16 %v238_v58, %v237_v57 }
  0x6b   : > { %6775 = vmatpush3.bf16.msra.mxu0 %v7711_v8  ;;  %v239_v61 = vld [vmem:[%s8164_s6 + $0xa0] sm:$0xff]  ;;  %v240_v62 = vld [vmem:[%s8164_s6 + $0xa8] sm:$0xff]  ;;  %v7740_v1 = vld [vmem:[#allocation5 + $0x1f8] sm:$0xff]  }
  0x6c   : > { %6823 = vmatpush3.bf16.msra.mxu1 %v7712_v9  ;;  %6776 = vmatprep.subr.bf16.mxu0 %v7713_v10  ;;  %v8234_v2 = vpack.c.bf16 %v240_v62, %v239_v61  ;;  %v241_v3 = vld [vmem:[%s8164_s6 + $0xb0] sm:$0xff]  ;;  %v242_v4 = vld [vmem:[%s8164_s6 + $0xb8] sm:$0xff]  ;;  %v243_v5 = vld [vmem:[%s8164_s6 + $0xc0] sm:$0xff] }
  0x6d   : > { %6824 = vmatprep.subr.bf16.mxu1 %v7714_v11  ;;  %v244_v6 = vld [vmem:[%s8164_s6 + $0xc8] sm:$0xff]  ;;  %v8244_v7 = vpack.c.bf16 %v242_v4, %v241_v3  ;;  %v245_v9 = vld [vmem:[%s8164_s6 + $0xd0] sm:$0xff]  ;;  %v7738_v24 = vld [vmem:[#allocation5 + $0x60] sm:$0xff]  }
  0x6e   : > { %v8246_v8 = vpack.c.bf16 %v244_v6, %v243_v5  ;;  %v248_v12 = vld [vmem:[%s8164_s6 + $0xe8] sm:$0xff]  ;;  %v249_v16 = vld [vmem:[%s8164_s6 + $0xf0] sm:$0xff]  ;;  %v7739_v27 = vld [vmem:[#allocation5 + $0x58] sm:$0xff]  }
  0x6f   : > { %6777 = vmatpush3.bf16.msra.mxu0 %v7713_v10  ;;  %v246_v10 = vld [vmem:[%s8164_s6 + $0xd8] sm:$0xff]  ;;  %v7743_v23 = vld [vmem:[#allocation5 + $0x1e8] sm:$0xff]   ;;  %v7742_v29 = vld [vmem:[#allocation5 + $0x50] sm:$0xff]  }
  0x70   : > { %6825 = vmatpush3.bf16.msra.mxu1 %v7714_v11  ;;  %6778 = vmatprep.subr.bf16.mxu0 %v7715_v18  ;;  %v247_v11 = vld [vmem:[%s8164_s6 + $0xe0] sm:$0xff]  ;;  %v8256_v13 = vpack.c.bf16 %v246_v10, %v245_v9  ;;  %v7747_v30 = vld [vmem:[#allocation5 + $0x1d0] sm:$0xff]   ;;  %v7749_v32 = vld [vmem:[#allocation5 + $0x1c8] sm:$0xff]  }
  0x71   : > { %6826 = vmatprep.subr.bf16.mxu1 %v7716_v19  ;;  %v8258_v14 = vpack.c.bf16 %v248_v12, %v247_v11  ;;  %v7751_v37 = vld [vmem:[#allocation5 + $0x178] sm:$0xff]   ;;  %v7753_v41 = vld [vmem:[#allocation5 + $0x168] sm:$0xff]   ;;  %v7768_v58 = vld [vmem:[#allocation5 + $0x230] sm:$0xff]  }
  0x72   : > { %v7756_v38 = vld [vmem:[#allocation5 + $0xb8] sm:$0xff]   ;;  %v7759_v42 = vld [vmem:[#allocation5 + $0xa8] sm:$0xff]   ;;  %v7770_v10 = vld [vmem:[#allocation5 + $0x220] sm:$0xff]  }
  0x73   : > { %6779 = vmatpush3.bf16.msra.mxu0 %v7715_v18  ;;  %v250_v18 = vld [vmem:[%s8164_s6 + $0xf8] sm:$0xff]  ;;  %v7761_v51 = vld [vmem:[#allocation5 + $0x148] sm:$0xff]  }
  0x74   : > { %6827 = vmatpush3.bf16.msra.mxu1 %v7716_v19  ;;  %6780 = vmatprep.subr.bf16.mxu0 %v7717_v20  ;;  %v8266_v19 = vpack.c.bf16 %v250_v18, %v249_v16  ;;  %v7755_v47 = vld [vmem:[#allocation5 + $0x158] sm:$0xff]   ;;  %v7765_v52 = vld [vmem:[#allocation5 + $0x88] sm:$0xff]  }
  0x75   : > { %6828 = vmatprep.subr.bf16.mxu1 %v7718_v21  ;;  %v7762_v48 = vld [vmem:[#allocation5 + $0x98] sm:$0xff]  }
  0x76   : > { %v7767_v57 = vld [vmem:[#allocation5 + $0x238] sm:$0xff]  }
  0x77   : > { %6781 = vmatpush3.bf16.msra.mxu0 %v7717_v20  ;;  %v7736_v20 = vld [vmem:[#allocation5 + $0x70] sm:$0xff]  }
  0x78   : > { %6829 = vmatpush3.bf16.msra.mxu1 %v7718_v21  ;;  %6862 = vmatprep.subr.bf16.mxu0 %v7719_v22  ;;  %v7741_v21 = vld [vmem:[#allocation5 + $0x1f0] sm:$0xff]  }
  0x79   : > { %6910 = vmatprep.subr.bf16.mxu1 %v7724_v25 }
  0x7a   : > { %6783 = vmatmul.mubr.bf16.vlgmr.msra.gmra.mxu0 %v8180_v17 }
  0x7b   : > { %6831 = vmatmul.mubr.bf16.vlgmr.msra.gmra.mxu1 %v8177_v15  ;;  %6863 = vmatpush3.bf16.msra.mxu0 %v7719_v22  ;;  %v7737_v22 = vld [vmem:[#allocation5 + $0x68] sm:$0xff]  }
  0x7c   : > { %6786 = vmatprep.mubr.bf16.mxu0 %v8186_v26  ;;  %6834 = vmatprep.mubr.bf16.mxu1 %v8180_v17 }
  0x7d   : > { %6864 = vmatprep.subr.bf16.mxu0 %v7720_v28  ;;  %6911 = vmatpush3.bf16.msra.mxu1 %v7724_v25  ;;  %v7744_v25 = vld [vmem:[#allocation5 + $0x1e0] sm:$0xff]  }
  0x7e   : > { %6912 = vmatprep.subr.bf16.mxu1 %v7725_v31 }
  0x7f   : > { %6865 = vmatpush3.bf16.msra.mxu0 %v7720_v28  ;;  %v7746_v28 = vld [vmem:[#allocation5 + $0x1d8] sm:$0xff]  }
  0x80   : > { %6866 = vmatprep.subr.bf16.mxu0 %v7721_v33 }
  0x81   : > { %6913 = vmatpush3.bf16.msra.mxu1 %v7725_v31  ;;  %v7745_v31 = vld [vmem:[#allocation5 + $0x48] sm:$0xff]  }
  0x82   : > { %6787 = vmatmul.mubr.bf16.gmra.mxu0 %v8196_v34  ;;  %6914 = vmatprep.subr.bf16.mxu1 %v7727_v35 }
  0x83   : > { %6835 = vmatmul.mubr.bf16.gmra.mxu1 %v8186_v26  ;;  %6790 = vmatprep.mubr.bf16.mxu0 %v8198_v36 }
  0x84   : > { %6838 = vmatprep.mubr.bf16.mxu1 %v8196_v34  ;;  %6867 = vmatpush3.bf16.msra.mxu0 %v7721_v33  ;;  %v7748_v33 = vld [vmem:[#allocation5 + $0x40] sm:$0xff]  }
  0x85   : > { %6868 = vmatprep.subr.bf16.mxu0 %v7722_v39  ;;  %6915 = vmatpush3.bf16.msra.mxu1 %v7727_v35  ;;  %v7750_v35 = vld [vmem:[#allocation5 + $0x1c0] sm:$0xff]  }
  0x86   : > { %6916 = vmatprep.subr.bf16.mxu1 %v7728_v40 }
  0x88   : > { %6869 = vmatpush3.bf16.msra.mxu0 %v7722_v39  ;;  %v7752_v39 = vld [vmem:[#allocation5 + $0x170] sm:$0xff]  }
  0x89   : > { %6870 = vmatprep.subr.bf16.mxu0 %v7723_v43  ;;  %6917 = vmatpush3.bf16.msra.mxu1 %v7728_v40  ;;  %v7757_v40 = vld [vmem:[#allocation5 + $0xb0] sm:$0xff]  }
  0x8a   : > { %6791 = vmatmul.mubr.bf16.gmra.mxu0 %v8208_v44  ;;  %6918 = vmatprep.subr.bf16.mxu1 %v7730_v45 }
  0x8b   : > { %6839 = vmatmul.mubr.bf16.gmra.mxu1 %v8198_v36  ;;  %6794 = vmatprep.mubr.bf16.mxu0 %v8210_v46 }
  0x8c   : > { %6842 = vmatprep.mubr.bf16.mxu1 %v8208_v44  ;;  %6871 = vmatpush3.bf16.msra.mxu0 %v7723_v43  ;;  %v7754_v43 = vld [vmem:[#allocation5 + $0x160] sm:$0xff]  }
  0x8d   : > { %6872 = vmatprep.subr.bf16.mxu0 %v7726_v49  ;;  %6919 = vmatpush3.bf16.msra.mxu1 %v7730_v45  ;;  %v7760_v45 = vld [vmem:[#allocation5 + $0xa0] sm:$0xff]  }
  0x8e   : > { %6920 = vmatprep.subr.bf16.mxu1 %v7731_v50 }
  0x90   : > { %6873 = vmatpush3.bf16.msra.mxu0 %v7726_v49  ;;  %v7758_v49 = vld [vmem:[#allocation5 + $0x150] sm:$0xff]  }
  0x91   : > { %6874 = vmatprep.subr.bf16.mxu0 %v7729_v53  ;;  %6921 = vmatpush3.bf16.msra.mxu1 %v7731_v50  ;;  %v7763_v50 = vld [vmem:[#allocation5 + $0x90] sm:$0xff]  }
  0x92   : > { %6795 = vmatmul.mubr.bf16.gmra.mxu0 %v8220_v54  ;;  %6922 = vmatprep.subr.bf16.mxu1 %v7733_v55 }
  0x93   : > { %6843 = vmatmul.mubr.bf16.gmra.mxu1 %v8210_v46  ;;  %6798 = vmatprep.mubr.bf16.mxu0 %v8222_v56 }
  0x94   : > { %6846 = vmatprep.mubr.bf16.mxu1 %v8220_v54  ;;  %6875 = vmatpush3.bf16.msra.mxu0 %v7729_v53  ;;  %v7764_v53 = vld [vmem:[#allocation5 + $0x140] sm:$0xff]  }
  0x95   : > { %6876 = vmatprep.subr.bf16.mxu0 %v7732_v59  ;;  %6923 = vmatpush3.bf16.msra.mxu1 %v7733_v55  ;;  %v7766_v55 = vld [vmem:[#allocation5 + $0x80] sm:$0xff]  }
  0x96   : > { %6924 = vmatprep.subr.bf16.mxu1 %v7734_v60 }
  0x98   : > { %6877 = vmatpush3.bf16.msra.mxu0 %v7732_v59 }
  0x99   : > { %6925 = vmatpush3.bf16.msra.mxu1 %v7734_v60  ;;  %6958 = vmatprep.subr.bf16.mxu0 %v7735_v63 }
  0x9a   : > { %6799 = vmatmul.mubr.bf16.gmra.mxu0 %v8232_v0  ;;  %7006 = vmatprep.subr.bf16.mxu1 %v7740_v1 }
  0x9b   : > { %6847 = vmatmul.mubr.bf16.gmra.mxu1 %v8222_v56  ;;  %6802 = vmatprep.mubr.bf16.mxu0 %v8234_v2 }
  0x9c   : > { %6850 = vmatprep.mubr.bf16.mxu1 %v8232_v0 }
  0xa2   : > { %6803 = vmatmul.mubr.bf16.gmra.mxu0 %v8244_v7 }
  0xa3   : > { %6851 = vmatmul.mubr.bf16.gmra.mxu1 %v8234_v2  ;;  %6806 = vmatprep.mubr.bf16.mxu0 %v8246_v8 }
  0xa4   : > { %6854 = vmatprep.mubr.bf16.mxu1 %v8244_v7 }
  0xaa   : > { %6807 = vmatmul.mubr.bf16.gmra.mxu0 %v8256_v13 }
  0xab   : > { %6855 = vmatmul.mubr.bf16.gmra.mxu1 %v8246_v8  ;;  %6810 = vmatprep.mubr.bf16.mxu0 %v8258_v14 }
  0xac   : > { %6858 = vmatprep.mubr.bf16.mxu1 %v8256_v13 }
  0xb2   : > { %6811 = vmatmul.mubr.bf16.gmra.mxu0 %v8266_v19 }
  0xb3   : > { %6859 = vmatmul.mubr.bf16.gmra.mxu1 %v8258_v14  ;;  %6878 = vmatprep.mubr.bf16.mxu0 %v8180_v17 }
  0xb4   : > { %6926 = vmatprep.mubr.bf16.mxu1 %v8177_v15 }
  0xba   : > { %6879 = vmatmul.mubr.bf16.vlgmr.msra.gmra.mxu0 %v8186_v26 }
  0xbb   : > { %6927 = vmatmul.mubr.bf16.vlgmr.msra.gmra.mxu1 %v8180_v17  ;;  %6959 = vmatpush3.bf16.msra.mxu0 %v7735_v63  ;;  %v7769_v63 = vld [vmem:[#allocation5 + $0x228] sm:$0xff]  }
  0xbc   : > { %6882 = vmatprep.mubr.bf16.mxu0 %v8196_v34  ;;  %6930 = vmatprep.mubr.bf16.mxu1 %v8186_v26 }
  0xbd   : > { %6960 = vmatprep.subr.bf16.mxu0 %v7736_v20  ;;  %7007 = vmatpush3.bf16.msra.mxu1 %v7740_v1 }
  0xbe   : > { %7008 = vmatprep.subr.bf16.mxu1 %v7741_v21 }
  0xbf   : > { %6961 = vmatpush3.bf16.msra.mxu0 %v7736_v20 }
  0xc0   : > { %6962 = vmatprep.subr.bf16.mxu0 %v7737_v22 }
  0xc1   : > { %7009 = vmatpush3.bf16.msra.mxu1 %v7741_v21 }
  0xc2   : > { %6883 = vmatmul.mubr.bf16.gmra.mxu0 %v8198_v36  ;;  %7010 = vmatprep.subr.bf16.mxu1 %v7743_v23 }
  0xc3   : > { %6931 = vmatmul.mubr.bf16.gmra.mxu1 %v8196_v34  ;;  %6886 = vmatprep.mubr.bf16.mxu0 %v8208_v44 }
  0xc4   : > { %6934 = vmatprep.mubr.bf16.mxu1 %v8198_v36  ;;  %6963 = vmatpush3.bf16.msra.mxu0 %v7737_v22  ;;  %v7771_v22 = vld [vmem:[#allocation5 + $0x218] sm:$0xff]  }
  0xc5   : > { %6964 = vmatprep.subr.bf16.mxu0 %v7738_v24  ;;  %7011 = vmatpush3.bf16.msra.mxu1 %v7743_v23 }
  0xc6   : > { %7012 = vmatprep.subr.bf16.mxu1 %v7744_v25 }
  0xc8   : > { %6965 = vmatpush3.bf16.msra.mxu0 %v7738_v24 }
  0xc9   : > { %6966 = vmatprep.subr.bf16.mxu0 %v7739_v27  ;;  %7013 = vmatpush3.bf16.msra.mxu1 %v7744_v25 }
  0xca   : > { %6887 = vmatmul.mubr.bf16.gmra.mxu0 %v8210_v46  ;;  %7014 = vmatprep.subr.bf16.mxu1 %v7746_v28 }
  0xcb   : > { %6935 = vmatmul.mubr.bf16.gmra.mxu1 %v8208_v44  ;;  %6890 = vmatprep.mubr.bf16.mxu0 %v8220_v54 }
  0xcc   : > { %6938 = vmatprep.mubr.bf16.mxu1 %v8210_v46  ;;  %6967 = vmatpush3.bf16.msra.mxu0 %v7739_v27 }
  0xcd   : > { %6968 = vmatprep.subr.bf16.mxu0 %v7742_v29  ;;  %7015 = vmatpush3.bf16.msra.mxu1 %v7746_v28 }
  0xce   : > { %7016 = vmatprep.subr.bf16.mxu1 %v7747_v30 }
  0xd0   : > { %6969 = vmatpush3.bf16.msra.mxu0 %v7742_v29 }
  0xd1   : > { %6970 = vmatprep.subr.bf16.mxu0 %v7745_v31  ;;  %7017 = vmatpush3.bf16.msra.mxu1 %v7747_v30  ;;  %v7772_v30 = vld [vmem:[#allocation5 + $0x210] sm:$0xff]  }
  0xd2   : > { %6891 = vmatmul.mubr.bf16.gmra.mxu0 %v8222_v56  ;;  %7018 = vmatprep.subr.bf16.mxu1 %v7749_v32 }
  0xd3   : > { %6939 = vmatmul.mubr.bf16.gmra.mxu1 %v8220_v54  ;;  %6894 = vmatprep.mubr.bf16.mxu0 %v8232_v0 }
  0xd4   : > { %6942 = vmatprep.mubr.bf16.mxu1 %v8222_v56  ;;  %6971 = vmatpush3.bf16.msra.mxu0 %v7745_v31 }
  0xd5   : > { %6972 = vmatprep.subr.bf16.mxu0 %v7748_v33  ;;  %7019 = vmatpush3.bf16.msra.mxu1 %v7749_v32 }
  0xd6   : > { %7020 = vmatprep.subr.bf16.mxu1 %v7750_v35 }
  0xd8   : > { %6973 = vmatpush3.bf16.msra.mxu0 %v7748_v33 }
  0xd9   : > { %7021 = vmatpush3.bf16.msra.mxu1 %v7750_v35  ;;  %7054 = vmatprep.subr.bf16.mxu0 %v7751_v37 }
  0xda   : > { %6895 = vmatmul.mubr.bf16.gmra.mxu0 %v8234_v2  ;;  %7102 = vmatprep.subr.bf16.mxu1 %v7756_v38 }
  0xdb   : > { %6943 = vmatmul.mubr.bf16.gmra.mxu1 %v8232_v0  ;;  %6898 = vmatprep.mubr.bf16.mxu0 %v8244_v7 }
  0xdc   : > { %6946 = vmatprep.mubr.bf16.mxu1 %v8234_v2 }
  0xe2   : > { %6899 = vmatmul.mubr.bf16.gmra.mxu0 %v8246_v8 }
  0xe3   : > { %6947 = vmatmul.mubr.bf16.gmra.mxu1 %v8244_v7  ;;  %6902 = vmatprep.mubr.bf16.mxu0 %v8256_v13 }
  0xe4   : > { %6950 = vmatprep.mubr.bf16.mxu1 %v8246_v8 }
  0xea   : > { %6903 = vmatmul.mubr.bf16.gmra.mxu0 %v8258_v14 }
  0xeb   : > { %6951 = vmatmul.mubr.bf16.gmra.mxu1 %v8256_v13  ;;  %6906 = vmatprep.mubr.bf16.mxu0 %v8266_v19 }
  0xec   : > { %6954 = vmatprep.mubr.bf16.mxu1 %v8258_v14 }
  0xf2   : > { %6907 = vmatmul.mubr.bf16.gmra.mxu0 %v8258_v14 }
  0xf3   : > { %6955 = vmatmul.mubr.bf16.gmra.mxu1 %v8266_v19  ;;  %6974 = vmatprep.mubr.bf16.mxu0 %v8180_v17 }
  0xf4   : > { %7022 = vmatprep.mubr.bf16.mxu1 %v8180_v17 }
  0xfa   : > { %6975 = vmatmul.mubr.bf16.vlgmr.msra.gmra.mxu0 %v8177_v15 }
  0xfb   : > { %7023 = vmatmul.mubr.bf16.vlgmr.msra.gmra.mxu1 %v8186_v26  ;;  %7055 = vmatpush3.bf16.msra.mxu0 %v7751_v37 }
  0xfc   : > { %6978 = vmatprep.mubr.bf16.mxu0 %v8180_v17  ;;  %7026 = vmatprep.mubr.bf16.mxu1 %v8196_v34 }
  0xfd   : > { %7056 = vmatprep.subr.bf16.mxu0 %v7752_v39  ;;  %7103 = vmatpush3.bf16.msra.mxu1 %v7756_v38 }
  0xfe   : > { %7104 = vmatprep.subr.bf16.mxu1 %v7757_v40 }
  0xff   : > { %7057 = vmatpush3.bf16.msra.mxu0 %v7752_v39  ;;  %v7773_v39 = vld [vmem:[#allocation5 + $0x208] sm:$0xff]  }
 0x100   : > { %7058 = vmatprep.subr.bf16.mxu0 %v7753_v41 }
 0x101   : > { %7105 = vmatpush3.bf16.msra.mxu1 %v7757_v40 }
 0x102   : > { %6979 = vmatmul.mubr.bf16.gmra.mxu0 %v8186_v26  ;;  %7106 = vmatprep.subr.bf16.mxu1 %v7759_v42 }
 0x103   : > { %7027 = vmatmul.mubr.bf16.gmra.mxu1 %v8198_v36  ;;  %6982 = vmatprep.mubr.bf16.mxu0 %v8196_v34 }
 0x104   : > { %7030 = vmatprep.mubr.bf16.mxu1 %v8208_v44  ;;  %7059 = vmatpush3.bf16.msra.mxu0 %v7753_v41 }
 0x105   : > { %7060 = vmatprep.subr.bf16.mxu0 %v7754_v43  ;;  %7107 = vmatpush3.bf16.msra.mxu1 %v7759_v42 }
 0x106   : > { %7108 = vmatprep.subr.bf16.mxu1 %v7760_v45 }
 0x108   : > { %7061 = vmatpush3.bf16.msra.mxu0 %v7754_v43 }
 0x109   : > { %7062 = vmatprep.subr.bf16.mxu0 %v7755_v47  ;;  %7109 = vmatpush3.bf16.msra.mxu1 %v7760_v45 }
 0x10a   : > { %6983 = vmatmul.mubr.bf16.gmra.mxu0 %v8198_v36  ;;  %7110 = vmatprep.subr.bf16.mxu1 %v7762_v48 }
 0x10b   : > { %7031 = vmatmul.mubr.bf16.gmra.mxu1 %v8210_v46  ;;  %6986 = vmatprep.mubr.bf16.mxu0 %v8208_v44 }
 0x10c   : > { %7034 = vmatprep.mubr.bf16.mxu1 %v8220_v54  ;;  %7063 = vmatpush3.bf16.msra.mxu0 %v7755_v47 }
 0x10d   : > { %7064 = vmatprep.subr.bf16.mxu0 %v7758_v49  ;;  %7111 = vmatpush3.bf16.msra.mxu1 %v7762_v48  ;;  %v7774_v48 = vld [vmem:[#allocation5 + $0x200] sm:$0xff]  }
 0x10e   : > { %7112 = vmatprep.subr.bf16.mxu1 %v7763_v50 }
 0x110   : > { %7065 = vmatpush3.bf16.msra.mxu0 %v7758_v49 }
 0x111   : > { %7066 = vmatprep.subr.bf16.mxu0 %v7761_v51  ;;  %7113 = vmatpush3.bf16.msra.mxu1 %v7763_v50 }
 0x112   : > { %6987 = vmatmul.mubr.bf16.gmra.mxu0 %v8210_v46  ;;  %7114 = vmatprep.subr.bf16.mxu1 %v7765_v52 }
 0x113   : > { %7035 = vmatmul.mubr.bf16.gmra.mxu1 %v8222_v56  ;;  %6990 = vmatprep.mubr.bf16.mxu0 %v8220_v54 }
 0x114   : > { %7038 = vmatprep.mubr.bf16.mxu1 %v8232_v0  ;;  %7067 = vmatpush3.bf16.msra.mxu0 %v7761_v51 }
 0x115   : > { %7068 = vmatprep.subr.bf16.mxu0 %v7764_v53  ;;  %7115 = vmatpush3.bf16.msra.mxu1 %v7765_v52 }
 0x116   : > { %7116 = vmatprep.subr.bf16.mxu1 %v7766_v55 }
 0x118   : > { %7069 = vmatpush3.bf16.msra.mxu0 %v7764_v53 }
 0x119   : > { %7117 = vmatpush3.bf16.msra.mxu1 %v7766_v55  ;;  %7150 = vmatprep.subr.bf16.mxu0 %v7767_v57 }
 0x11a   : > { %6991 = vmatmul.mubr.bf16.gmra.mxu0 %v8222_v56 }
 0x11b   : > { %7039 = vmatmul.mubr.bf16.gmra.mxu1 %v8234_v2  ;;  %6994 = vmatprep.mubr.bf16.mxu0 %v8232_v0 }
 0x11c   : > { %7042 = vmatprep.mubr.bf16.mxu1 %v8244_v7 }
 0x122   : > { %6995 = vmatmul.mubr.bf16.gmra.mxu0 %v8234_v2 }
 0x123   : > { %7043 = vmatmul.mubr.bf16.gmra.mxu1 %v8246_v8  ;;  %6998 = vmatprep.mubr.bf16.mxu0 %v8244_v7 }
 0x124   : > { %7046 = vmatprep.mubr.bf16.mxu1 %v8256_v13 }
 0x12a   : > { %6999 = vmatmul.mubr.bf16.gmra.mxu0 %v8246_v8 }
 0x12b   : > { %7047 = vmatmul.mubr.bf16.gmra.mxu1 %v8258_v14  ;;  %7002 = vmatprep.mubr.bf16.mxu0 %v8256_v13 }
 0x12c   : > { %7050 = vmatprep.mubr.bf16.mxu1 %v8266_v19 }
 0x132   : > { %7003 = vmatmul.mubr.bf16.gmra.mxu0 %v8258_v14 }
 0x133   : > { %7051 = vmatmul.mubr.bf16.gmra.mxu1 %v8258_v14  ;;  %7070 = vmatprep.mubr.bf16.mxu0 %v8177_v15 }
 0x134   : > { %7118 = vmatprep.mubr.bf16.mxu1 %v8180_v17 }
 0x13a   : > { %v6784_v59 = vpop.f32.mrf.mxu0  ;;  %7071 = vmatmul.mubr.bf16.vlgmr.msra.gmra.mxu0 %v8180_v17 }
 0x13b   : > { %v6832_v60 = vpop.f32.mrf.mxu1  ;;  %7119 = vmatmul.mubr.bf16.vlgmr.msra.gmra.mxu1 %v8177_v15  ;;  %7151 = vmatpush3.bf16.msra.mxu0 %v7767_v57 }
 0x13c   : > { %v8338_v61 = vadd.f32 %v6832_v60, %v6784_v59  ;;  %v382_v62 = vpop.f32.mrf.mxu0  ;;  %7074 = vmatprep.mubr.bf16.mxu0 %v8186_v26  ;;  %7122 = vmatprep.mubr.bf16.mxu1 %v8180_v17 }
 0x13d   : > { %v591_v1 = vpop.f32.mrf.mxu1  ;;  %7152 = vmatprep.subr.bf16.mxu0 %v7768_v58 }
 0x13e   : > { %v8342_v3 = vadd.f32 %v591_v1, %v382_v62  ;;  %v6785_v4 = vpop.f32.mrf.mxu0 }
 0x13f   : > { %v6833_v5 = vpop.f32.mrf.mxu1  ;;  %7153 = vmatpush3.bf16.msra.mxu0 %v7768_v58 }
 0x140   : > { %v8344_v6 = vadd.f32 %v6833_v5, %v6785_v4  ;;  %v385_v9 = vpop.f32.mrf.mxu0  ;;  %7154 = vmatprep.subr.bf16.mxu0 %v7769_v63 }
 0x141   : > { %v594_v15 = vpop.f32.mrf.mxu1 }
 0x142   : > { %v8346_v11 = vadd.f32 %v594_v15, %v385_v9  ;;  %v6788_v12 = vpop.f32.mrf.mxu0  ;;  %7075 = vmatmul.mubr.bf16.gmra.mxu0 %v8196_v34 }
 0x143   : > { %v6836_v16 = vpop.f32.mrf.mxu1  ;;  %7123 = vmatmul.mubr.bf16.gmra.mxu1 %v8186_v26  ;;  %7078 = vmatprep.mubr.bf16.mxu0 %v8198_v36 }
 0x144   : > { %v8351_v18 = vadd.f32 %v6836_v16, %v6788_v12  ;;  %v398_v20 = vpop.f32.mrf.mxu0  ;;  %7126 = vmatprep.mubr.bf16.mxu1 %v8196_v34  ;;  %7155 = vmatpush3.bf16.msra.mxu0 %v7769_v63 }
 0x145   : > { %v607_v21 = vpop.f32.mrf.mxu1  ;;  %7156 = vmatprep.subr.bf16.mxu0 %v7770_v10 }
 0x146   : > { %v8354_v23 = vadd.f32 %v607_v21, %v398_v20  ;;  %v6789_v24 = vpop.f32.mrf.mxu0 }
 0x147   : > { %v6837_v25 = vpop.f32.mrf.mxu1 }
 0x148   : > { %v8356_v27 = vadd.f32 %v6837_v25, %v6789_v24  ;;  %v401_v28 = vpop.f32.mrf.mxu0  ;;  %7157 = vmatpush3.bf16.msra.mxu0 %v7770_v10 }
 0x149   : > { %v610_v29 = vpop.f32.mrf.mxu1  ;;  %7158 = vmatprep.subr.bf16.mxu0 %v7771_v22 }
 0x14a   : > { %v8358_v31 = vadd.f32 %v610_v29, %v401_v28  ;;  %v6792_v32 = vpop.f32.mrf.mxu0  ;;  %7079 = vmatmul.mubr.bf16.gmra.mxu0 %v8208_v44 }
 0x14b   : > { %v6840_v33 = vpop.f32.mrf.mxu1  ;;  %7127 = vmatmul.mubr.bf16.gmra.mxu1 %v8198_v36  ;;  %7082 = vmatprep.mubr.bf16.mxu0 %v8210_v46 }
 0x14c   : > { %v8363_v35 = vadd.f32 %v6840_v33, %v6792_v32  ;;  %v414_v37 = vpop.f32.mrf.mxu0  ;;  %7130 = vmatprep.mubr.bf16.mxu1 %v8208_v44  ;;  %7159 = vmatpush3.bf16.msra.mxu0 %v7771_v22 }
 0x14d   : > { %v623_v38 = vpop.f32.mrf.mxu1  ;;  %7160 = vmatprep.subr.bf16.mxu0 %v7772_v30 }
 0x14e   : > { %v8366_v40 = vadd.f32 %v623_v38, %v414_v37  ;;  %v6793_v41 = vpop.f32.mrf.mxu0 }
 0x14f   : > { %v6841_v42 = vpop.f32.mrf.mxu1 }
 0x150   : > { %v8368_v43 = vadd.f32 %v6841_v42, %v6793_v41  ;;  %v417_v45 = vpop.f32.mrf.mxu0  ;;  %7161 = vmatpush3.bf16.msra.mxu0 %v7772_v30 }
 0x151   : > { %v626_v47 = vpop.f32.mrf.mxu1  ;;  %7162 = vmatprep.subr.bf16.mxu0 %v7773_v39 }
 0x152   : > { %v8370_v49 = vadd.f32 %v626_v47, %v417_v45  ;;  %v6796_v50 = vpop.f32.mrf.mxu0  ;;  %7083 = vmatmul.mubr.bf16.gmra.mxu0 %v8220_v54 }
 0x153   : > { %v6844_v51 = vpop.f32.mrf.mxu1  ;;  %7131 = vmatmul.mubr.bf16.gmra.mxu1 %v8210_v46  ;;  %7086 = vmatprep.mubr.bf16.mxu0 %v8222_v56 }
 0x154   : > { %v8375_v52 = vadd.f32 %v6844_v51, %v6796_v50  ;;  %v430_v53 = vpop.f32.mrf.mxu0  ;;  %7134 = vmatprep.mubr.bf16.mxu1 %v8220_v54  ;;  %7163 = vmatpush3.bf16.msra.mxu0 %v7773_v39 }
 0x155   : > { %v639_v55 = vpop.f32.mrf.mxu1  ;;  %7164 = vmatprep.subr.bf16.mxu0 %v7774_v48 }
 0x156   : > { %v8378_v57 = vadd.f32 %v639_v55, %v430_v53  ;;  %v6797_v58 = vpop.f32.mrf.mxu0 }
 0x157   : > { %v6845_v59 = vpop.f32.mrf.mxu1 }
 0x158   : > { %v8380_v60 = vadd.f32 %v6845_v59, %v6797_v58  ;;  %v433_v62 = vpop.f32.mrf.mxu0  ;;  %7165 = vmatpush3.bf16.msra.mxu0 %v7774_v48 }
 0x159   : > { %v642_v63 = vpop.f32.mrf.mxu1 }
 0x15a   : > { %v8382_v1 = vadd.f32 %v642_v63, %v433_v62  ;;  %v6800_v4 = vpop.f32.mrf.mxu0  ;;  %7087 = vmatmul.mubr.bf16.gmra.mxu0 %v8232_v0 }
 0x15b   : > { %v6848_v5 = vpop.f32.mrf.mxu1  ;;  %7135 = vmatmul.mubr.bf16.gmra.mxu1 %v8222_v56  ;;  %7090 = vmatprep.mubr.bf16.mxu0 %v8234_v2 }
 0x15c   : > { %v8387_v9 = vadd.f32 %v6848_v5, %v6800_v4  ;;  %v446_v15 = vpop.f32.mrf.mxu0  ;;  %7138 = vmatprep.mubr.bf16.mxu1 %v8232_v0 }
 0x15d   : > { %v655_v10 = vpop.f32.mrf.mxu1 }
 0x15e   : > { %v8390_v12 = vadd.f32 %v655_v10, %v446_v15  ;;  %v6801_v16 = vpop.f32.mrf.mxu0 }
 0x15f   : > { %v6849_v20 = vpop.f32.mrf.mxu1 }
 0x160   : > { %v8392_v21 = vadd.f32 %v6849_v20, %v6801_v16  ;;  %v8394_v22 = vpop.f32.mrf.mxu0 }
 0x161   : > { %v8396_v24 = vpop.f32.mrf.mxu1 }
 0x162   : > { %v6804_v25 = vpop.f32.mrf.mxu0  ;;  %7091 = vmatmul.mubr.bf16.gmra.mxu0 %v8244_v7 }
 0x163   : > { %v6852_v28 = vpop.f32.mrf.mxu1  ;;  %7139 = vmatmul.mubr.bf16.gmra.mxu1 %v8234_v2  ;;  %7094 = vmatprep.mubr.bf16.mxu0 %v8246_v8 }
 0x164   : > { %v8401_v29 = vadd.f32 %v6852_v28, %v6804_v25  ;;  %v462_v30 = vpop.f32.mrf.mxu0  ;;  %7142 = vmatprep.mubr.bf16.mxu1 %v8244_v7 }
 0x165   : > { %v671_v32 = vpop.f32.mrf.mxu1 }
 0x166   : > { %v8404_v33 = vadd.f32 %v671_v32, %v462_v30  ;;  %v6805_v37 = vpop.f32.mrf.mxu0 }
 0x167   : > { %v6853_v38 = vpop.f32.mrf.mxu1 }
 0x168   : > { %v8406_v39 = vadd.f32 %v6853_v38, %v6805_v37  ;;  %v8408_v41 = vpop.f32.mrf.mxu0 }
 0x169   : > { %v8410_v42 = vpop.f32.mrf.mxu1 }
 0x16a   : > { %v6808_v45 = vpop.f32.mrf.mxu0  ;;  %7095 = vmatmul.mubr.bf16.gmra.mxu0 %v8256_v13 }
 0x16b   : > { %v6856_v47 = vpop.f32.mrf.mxu1  ;;  %7143 = vmatmul.mubr.bf16.gmra.mxu1 %v8246_v8  ;;  %7098 = vmatprep.mubr.bf16.mxu0 %v8258_v14 }
 0x16c   : > { %v8415_v48 = vadd.f32 %v6856_v47, %v6808_v45  ;;  %v478_v50 = vpop.f32.mrf.mxu0  ;;  %7146 = vmatprep.mubr.bf16.mxu1 %v8256_v13 }
 0x16d   : > { %v687_v51 = vpop.f32.mrf.mxu1 }
 0x16e   : > { %v8418_v53 = vadd.f32 %v687_v51, %v478_v50  ;;  %v6809_v55 = vpop.f32.mrf.mxu0 }
 0x16f   : > { %v6857_v58 = vpop.f32.mrf.mxu1 }
 0x170   : > { %v8420_v59 = vadd.f32 %v6857_v58, %v6809_v55  ;;  %v8422_v62 = vpop.f32.mrf.mxu0 }
 0x171   : > { %v8424_v63 = vpop.f32.mrf.mxu1 }
 0x172   : > { %v6812_v4 = vpop.f32.mrf.mxu0  ;;  %7099 = vmatmul.mubr.bf16.gmra.mxu0 %v8266_v19 }
 0x173   : > { %v6860_v5 = vpop.f32.mrf.mxu1  ;;  %7147 = vmatmul.mubr.bf16.gmra.mxu1 %v8258_v14  ;;  %7166 = vmatprep.mubr.bf16.mxu0 %v8180_v17 }
 0x174   : > { %v8429_v15 = vadd.f32 %v6860_v5, %v6812_v4  ;;  %v494_v10 = vpop.f32.mrf.mxu0 }
 0x175   : > { %v703_v16 = vpop.f32.mrf.mxu1 }
 0x176   : > { %v8431_v20 = vadd.f32 %v703_v16, %v494_v10  ;;  %v6813_v25 = vpop.f32.mrf.mxu0 }
 0x177   : > { %v6861_v28 = vpop.f32.mrf.mxu1 }
 0x178   : > { %v8433_v30 = vadd.f32 %v6861_v28, %v6813_v25  ;;  %v8435_v32 = vpop.f32.mrf.mxu0 }
 0x179   : > { %v8437_v37 = vpop.f32.mrf.mxu1 }
 0x17a   : > { %v6880_v38 = vpop.f32.mrf.mxu0  ;;  %7167 = vmatmul.mubr.bf16.vlgmr.msra.gmra.mxu0 %v8186_v26 }
 0x17b   : > { %v8441_v45 = vadd.f32 %v6880_v38, %v8338_v61  ;;  %v8443_v17 = vpop.f32.mrf.mxu1  ;;  %7170 = vmatprep.mubr.bf16.mxu0 %v8196_v34 }
 0x17c   : > { %v817_v47 = vpop.f32.mrf.mxu0 }
 0x17d   : > { %v8447_v50 = vadd.f32 %v817_v47, %v8342_v3  ;;  %v8449_v51 = vpop.f32.mrf.mxu1  ;;  %v10901_v26 = vrot.slane %v8441_v45, 7 }
 0x17e   : > { %v6881_v55 = vpop.f32.mrf.mxu0 }
 0x17f   : > { %v947_v58 = vadd.f32 %v6881_v55, %v8344_v6  ;;  %v8452_v4 = vpop.f32.mrf.mxu1  ;;  %v10902_v3 = vrot.slane %v8447_v50, 7 }
 0x180   : > { %v820_v5 = vpop.f32.mrf.mxu0 }
 0x181   : > { %v2436_v61 = vrot.slane %v947_v58, 7  ;;  %v945_v10 = vadd.f32 %v820_v5, %v8346_v11  ;;  %v8456_v16 = vpop.f32.mrf.mxu1 }
 0x182   : > { %10952 = vst [vmem:[#allocation12_spill] sm:$0xff] %v8456_v16  ;;  %v6884_v34 = vpop.f32.mrf.mxu0  ;;  %7171 = vmatmul.mubr.bf16.gmra.mxu0 %v8198_v36 }
 0x183   : > { %v2433_v25 = vrot.slane %v945_v10, 7  ;;  %v8461_v28 = vadd.f32 %v6884_v34, %v8351_v18  ;;  %v8463_v6 = vpop.f32.mrf.mxu1  ;;  %7174 = vmatprep.mubr.bf16.mxu0 %v8208_v44  ;;  %v8469_v11 = vsel %vm2431_vm0, %v10901_v26, %v2436_v61 }
 0x184   : > { %v833_v38 = vpop.f32.mrf.mxu0 }
 0x185   : > { %v8472_v47 = vadd.f32 %v833_v38, %v8354_v23  ;;  %v8474_v36 = vpop.f32.mrf.mxu1  ;;  %v8479_v18 = vsel %vm2431_vm0, %v10902_v3, %v2433_v25  ;;  %v10903_v61 = vrot.slane %v8461_v28, 7 }
 0x186   : > { %10953 = vst [vmem:[#allocation13_spill] sm:$0xff] %v8479_v18  ;;  %v6885_v55 = vpop.f32.mrf.mxu0 }
 0x187   : > { %v951_v58 = vadd.f32 %v6885_v55, %v8356_v27  ;;  %v8482_v44 = vpop.f32.mrf.mxu1  ;;  %v10904_v26 = vrot.slane %v8472_v47, 7 }
 0x188   : > { %v836_v5 = vpop.f32.mrf.mxu0 }
 0x189   : > { %v2442_v10 = vrot.slane %v951_v58, 7  ;;  %v949_v34 = vadd.f32 %v836_v5, %v8358_v31  ;;  %v8486_v23 = vpop.f32.mrf.mxu1 }
 0x18a   : > { %10954 = vst [vmem:[#allocation14_spill] sm:$0xff] %v8486_v23  ;;  %v6888_v38 = vpop.f32.mrf.mxu0  ;;  %7175 = vmatmul.mubr.bf16.gmra.mxu0 %v8210_v46 }
 0x18b   : > { %v2439_v25 = vrot.slane %v949_v34, 7  ;;  %v8491_v3 = vadd.f32 %v6888_v38, %v8363_v35  ;;  %v8493_v27 = vpop.f32.mrf.mxu1  ;;  %7178 = vmatprep.mubr.bf16.mxu0 %v8220_v54  ;;  %v8499_v55 = vsel %vm2431_vm0, %v10903_v61, %v2442_v10 }
 0x18c   : > { %v849_v31 = vpop.f32.mrf.mxu0 }
 0x18d   : > { %v8502_v58 = vadd.f32 %v849_v31, %v8366_v40  ;;  %v8504_v46 = vpop.f32.mrf.mxu1  ;;  %v8509_v35 = vsel %vm2431_vm0, %v10904_v26, %v2439_v25  ;;  %v10905_v10 = vrot.slane %v8491_v3, 7 }
 0x18e   : > { %10955 = vst [vmem:[#allocation15_spill] sm:$0xff] %v8509_v35  ;;  %v6889_v5 = vpop.f32.mrf.mxu0 }
 0x18f   : > { %v955_v34 = vadd.f32 %v6889_v5, %v8368_v43  ;;  %v8512_v54 = vpop.f32.mrf.mxu1  ;;  %v10906_v23 = vrot.slane %v8502_v58, 7 }
 0x190   : > { %v852_v38 = vpop.f32.mrf.mxu0 }
 0x191   : > { %v2448_v61 = vrot.slane %v955_v34, 7  ;;  %v953_v18 = vadd.f32 %v852_v38, %v8370_v49  ;;  %v8516_v40 = vpop.f32.mrf.mxu1 }
 0x192   : > { %10956 = vst [vmem:[#allocation16_spill] sm:$0xff] %v8516_v40  ;;  %v6892_v31 = vpop.f32.mrf.mxu0  ;;  %7179 = vmatmul.mubr.bf16.gmra.mxu0 %v8222_v56 }
 0x193   : > { %v2445_v25 = vrot.slane %v953_v18, 7  ;;  %v8521_v26 = vadd.f32 %v6892_v31, %v8375_v52  ;;  %v8523_v43 = vpop.f32.mrf.mxu1  ;;  %7182 = vmatprep.mubr.bf16.mxu0 %v8232_v0  ;;  %v8529_v5 = vsel %vm2431_vm0, %v10905_v10, %v2448_v61 }
 0x194   : > { %v865_v49 = vpop.f32.mrf.mxu0 }
 0x195   : > { %v8532_v34 = vadd.f32 %v865_v49, %v8378_v57  ;;  %v8534_v56 = vpop.f32.mrf.mxu1  ;;  %v8539_v52 = vsel %vm2431_vm0, %v10906_v23, %v2445_v25  ;;  %v10907_v61 = vrot.slane %v8521_v26, 7 }
 0x196   : > { %10957 = vst [vmem:[#allocation17_spill] sm:$0xff] %v8539_v52  ;;  %v6893_v18 = vpop.f32.mrf.mxu0 }
 0x197   : > { %v959_v38 = vadd.f32 %v6893_v18, %v8380_v60  ;;  %v8542_v0 = vpop.f32.mrf.mxu1  ;;  %v10908_v40 = vrot.slane %v8532_v34, 7 }
 0x198   : > { %v868_v31 = vpop.f32.mrf.mxu0 }
 0x199   : > { %v2454_v10 = vrot.slane %v959_v38, 7  ;;  %v957_v35 = vadd.f32 %v868_v31, %v8382_v1  ;;  %v8546_v57 = vpop.f32.mrf.mxu1 }
 0x19a   : > { %10958 = vst [vmem:[#allocation18_spill] sm:$0xff] %v8546_v57  ;;  %v6896_v49 = vpop.f32.mrf.mxu0  ;;  %7183 = vmatmul.mubr.bf16.gmra.mxu0 %v8234_v2 }
 0x19b   : > { %v2451_v25 = vrot.slane %v957_v35, 7  ;;  %v8551_v23 = vadd.f32 %v6896_v49, %v8387_v9  ;;  %v8553_v60 = vpop.f32.mrf.mxu1  ;;  %7186 = vmatprep.mubr.bf16.mxu0 %v8244_v7  ;;  %v8559_v18 = vsel %vm2431_vm0, %v10907_v61, %v2454_v10  ;;  %v659_v7 = vadd.f32 %v8396_v24, %v8394_v22 }
 0x19c   : > { %v881_v1 = vpop.f32.mrf.mxu0 }
 0x19d   : > { %v8562_v38 = vadd.f32 %v881_v1, %v8390_v12  ;;  %v8564_v2 = vpop.f32.mrf.mxu1  ;;  %v8569_v9 = vsel %vm2431_vm0, %v10908_v40, %v2451_v25  ;;  %v10909_v61 = vrot.slane %v8551_v23, 7 }
 0x19e   : > { %10959 = vst [vmem:[#allocation19_spill] sm:$0xff] %v8569_v9  ;;  %v6897_v35 = vpop.f32.mrf.mxu0 }
 0x19f   : > { %v963_v31 = vadd.f32 %v6897_v35, %v8392_v21  ;;  %v8574_v49 = vpop.f32.mrf.mxu1  ;;  %v10910_v25 = vrot.slane %v8562_v38, 7 }
 0x1a0   : > { %v884_v10 = vpop.f32.mrf.mxu0 }
 0x1a1   : > { %v2460_v12 = vrot.slane %v963_v31, 7  ;;  %v961_v1 = vadd.f32 %v884_v10, %v659_v7  ;;  %v8577_v52 = vpop.f32.mrf.mxu1 }
 0x1a2   : > { %10960 = vst [vmem:[#allocation20_spill] sm:$0xff] %v8577_v52  ;;  %v6900_v57 = vpop.f32.mrf.mxu0  ;;  %7187 = vmatmul.mubr.bf16.gmra.mxu0 %v8246_v8 }
 0x1a3   : > { %v2457_v40 = vrot.slane %v961_v1, 7  ;;  %v8582_v9 = vadd.f32 %v6900_v57, %v8401_v29  ;;  %v8584_v22 = vpop.f32.mrf.mxu1  ;;  %7190 = vmatprep.mubr.bf16.mxu0 %v8256_v13  ;;  %v8590_v21 = vsel %vm2431_vm0, %v10909_v61, %v2460_v12  ;;  %v675_v13 = vadd.f32 %v8410_v42, %v8408_v41 }
 0x1a4   : > { %v897_v24 = vpop.f32.mrf.mxu0 }
 0x1a5   : > { %v8593_v35 = vadd.f32 %v897_v24, %v8404_v33  ;;  %v8595_v8 = vpop.f32.mrf.mxu1  ;;  %v8600_v29 = vsel %vm2431_vm0, %v10910_v25, %v2457_v40  ;;  %v10911_v12 = vrot.slane %v8582_v9, 7 }
 0x1a6   : > { %10961 = vst [vmem:[#allocation21_spill] sm:$0xff] %v8600_v29  ;;  %v6901_v57 = vpop.f32.mrf.mxu0 }
 0x1a7   : > { %v967_v7 = vadd.f32 %v6901_v57, %v8406_v39  ;;  %v8605_v31 = vpop.f32.mrf.mxu1  ;;  %v10912_v40 = vrot.slane %v8593_v35, 7 }
 0x1a8   : > { %v900_v10 = vpop.f32.mrf.mxu0 }
 0x1a9   : > { %v2466_v33 = vrot.slane %v967_v7, 7  ;;  %v965_v1 = vadd.f32 %v900_v10, %v675_v13  ;;  %v8608_v24 = vpop.f32.mrf.mxu1 }
 0x1aa   : > { %10962 = vst [vmem:[#allocation22_spill] sm:$0xff] %v8608_v24  ;;  %v6904_v61 = vpop.f32.mrf.mxu0  ;;  %7191 = vmatmul.mubr.bf16.gmra.mxu0 %v8258_v14 }
 0x1ab   : > { %v2463_v25 = vrot.slane %v965_v1, 7  ;;  %v8613_v29 = vadd.f32 %v6904_v61, %v8415_v48  ;;  %v8615_v41 = vpop.f32.mrf.mxu1  ;;  %7194 = vmatprep.mubr.bf16.mxu0 %v8266_v19  ;;  %v8621_v39 = vsel %vm2431_vm0, %v10911_v12, %v2466_v33  ;;  %v2396_v61 = vlaneseq }
 0x1ac   : > { %v913_v42 = vpop.f32.mrf.mxu0  ;;  %v691_v19 = vadd.f32 %v8424_v63, %v8422_v62 }
 0x1ad   : > { %v8624_v57 = vadd.f32 %v913_v42, %v8418_v53  ;;  %v8626_v13 = vpop.f32.mrf.mxu1  ;;  %v8631_v48 = vsel %vm2431_vm0, %v10912_v40, %v2463_v25  ;;  %v10913_v53 = vrot.slane %v8613_v29, 7  ;;  %v8641_v52 = vshrl.u32 %v2396_v61, 7 }
 0x1ae   : > { %10963 = vst [vmem:[#allocation23_spill] sm:$0xff] %v8631_v48  ;;  %v6905_v7 = vpop.f32.mrf.mxu0 }
 0x1af   : > { %v971_v10 = vadd.f32 %v6905_v7, %v8420_v59  ;;  %v8636_v33 = vpop.f32.mrf.mxu1  ;;  %v10914_v40 = vrot.slane %v8624_v57, 7  ;;  %vm2528_vm1 = vcmp.eq.s32.totalorder %v8641_v52, 0 }
 0x1b0   : > { %v916_v1 = vpop.f32.mrf.mxu0 }
 0x1b1   : > { %v2472_v42 = vrot.slane %v971_v10, 7  ;;  %v969_v12 = vadd.f32 %v916_v1, %v691_v19  ;;  %v8639_v24 = vpop.f32.mrf.mxu1  ;;  %v707_v10 = vadd.f32 %v8437_v37, %v8435_v32 }
 0x1b2   : > { %10964 = vst [vmem:[#allocation24_spill] sm:$0xff] %v8639_v24  ;;  %v6908_v25 = vpop.f32.mrf.mxu0  ;;  %7195 = vmatmul.mubr.bf16.gmra.mxu0 %v8258_v14 }
 0x1b3   : > { %v2469_v48 = vrot.slane %v969_v12, 7  ;;  %v8646_v62 = vadd.f32 %v6908_v25, %v8429_v15  ;;  %v8648_v59 = vpop.f32.mrf.mxu1  ;;  %v8653_v63 = vsel %vm2431_vm0, %v10913_v53, %v2472_v42  ;;  %v8666_v15 = vsub.s32 1, %v8641_v52 }
 0x1b4   : > { %10965 = vst [vmem:[#allocation25_spill] sm:$0xff] %v8648_v59  ;;  %v929_v7 = vpop.f32.mrf.mxu0 }
 0x1b5   : > { %v8656_v61 = vadd.f32 %v929_v7, %v8431_v20  ;;  %v8658_v19 = vpop.f32.mrf.mxu1  ;;  %v8663_v14 = vsel %vm2431_vm0, %v10914_v40, %v2469_v48  ;;  %10968 = vst [vmem:[#allocation28_spill] sm:$0xff] %v8666_v15  ;;  %v10915_v25 = vrot.slane %v8646_v62, 7  ;;  %v10971_v48 = vrot.slane %v8441_v45, 7 }
 0x1b6   : > { %10966 = vst [vmem:[#allocation26_spill] sm:$0xff] %v8658_v19  ;;  %10967 = vst [vmem:[#allocation27_spill] sm:$0xff] %v8663_v14  ;;  %v6909_v12 = vpop.f32.mrf.mxu0  ;;  %v2541_v14 = vrot.slane %v8441_v45, %v8666_v15 }
 0x1b7   : > { %v975_v1 = vadd.f32 %v6909_v12, %v8433_v30  ;;  %v8671_v42 = vpop.f32.mrf.mxu1  ;;  %v2513_v40 = vsel %vm2431_vm0, %v8441_v45, %v10971_v48  ;;  %v10973_v45 = vrot.slane %v8447_v50, 7 }
 0x1b8   : > { %10969 = vst [vmem:[#allocation29_spill] sm:$0xff] %v8671_v42  ;;  %v932_v20 = vpop.f32.mrf.mxu0 }
 0x1b9   : > { %v2478_v7 = vrot.slane %v975_v1, 7  ;;  %v973_v53 = vadd.f32 %v932_v20, %v707_v10  ;;  %v8674_v24 = vpop.f32.mrf.mxu1  ;;  %v2537_v20 = vrot.slane %v8447_v50, %v8666_v15 }
 0x1ba   : > { %10970 = vst [vmem:[#allocation30_spill] sm:$0xff] %v8674_v24  ;;  %v6976_v32 = vpop.f32.mrf.mxu0  ;;  %v2512_v24 = vsel %vm2431_vm0, %v8447_v50, %v10973_v45 }
 0x1bb   : > { %v2475_v37 = vrot.slane %v973_v53, 7  ;;  %v1310_v12 = vadd.f32 %v6976_v32, %v8443_v17  ;;  %v7024_v1 = vpop.f32.mrf.mxu1  ;;  %v8688_v10 = vsel %vm2431_vm0, %v10915_v25, %v2478_v7  ;;  %v10974_v17 = vrot.slane %v8656_v61, 7 }
 0x1bc   : > { %10972 = vst [vmem:[#allocation31_spill] sm:$0xff] %v8688_v10  ;;  %v1301_v48 = vpop.f32.mrf.mxu0  ;;  %v2600_v7 = vsel %vm2528_vm1, %v2541_v14, %v2513_v40  ;;  %v2598_v50 = vsel %vm2528_vm1, %v2537_v20, %v2512_v24  ;;  %v2549_v40 = vrot.slane %v8461_v28, %v8666_v15 }
 0x1bd   : > { %v1656_v16 = vadd.f32 %v7024_v1, %v1310_v12  ;;  %v1302_v53 = vadd.f32 %v1301_v48, %v8449_v51  ;;  %v1527_v30 = vpop.f32.mrf.mxu1  ;;  %v8700_v32 = vsel %vm2431_vm0, %v10974_v17, %v2475_v37 }
 0x1be   : > { %10975 = vst [vmem:[#allocation32_spill] sm:$0xff] %v8700_v32  ;;  %v6977_v25 = vpop.f32.mrf.mxu0 }
 0x1bf   : > { %v8704_v10 = vadd.f32 %v2600_v7, %v1656_v16  ;;  %v1654_v42 = vadd.f32 %v1527_v30, %v1302_v53  ;;  %v1313_v19 = vadd.f32 %v6977_v25, %v8452_v4  ;;  %v7025_v59 = vpop.f32.mrf.mxu1  ;;  %v10977_v16 = vrot.slane %v8461_v28, 7 }
 0x1c0   : > { %v8709_v51 = vpop.f32.mrf.mxu0 }
 0x1c1   : > { %v8711_v12 = vadd.f32 %v2598_v50, %v1654_v42  ;;  %v1657_v1 = vadd.f32 %v7025_v59, %v1313_v19  ;;  %v8713_v37 = vpop.f32.mrf.mxu1  ;;  %v2515_v4 = vsel %vm2431_vm0, %v8461_v28, %v10977_v16  ;;  %v2545_v59 = vrot.slane %v8472_v47, %v8666_v15 }
 0x1c2   : > { %v6980_v14 = vpop.f32.mrf.mxu0  ;;  %v10979_v42 = vrot.slane %v8472_v47, 7  ;;  %v2604_v28 = vsel %vm2528_vm1, %v2549_v40, %v2515_v4  ;;  %v2557_v40 = vrot.slane %v8491_v3, %v8666_v15 }
 0x1c3   : > { %10976 = vst [vmem:[#allocation33_spill] sm:$0xff] %v8711_v12  ;;  %v8722_v25 = vadd.f32 %v8469_v11, %v1657_v1  ;;  %v1326_v24 = vadd.f32 %v6980_v14, %v8463_v6  ;;  %v7028_v30 = vpop.f32.mrf.mxu1 }
 0x1c4   : > { %v1317_v19 = vpop.f32.mrf.mxu0  ;;  %v2514_v20 = vsel %vm2431_vm0, %v8472_v47, %v10979_v42  ;;  %v2553_v42 = vrot.slane %v8502_v58, %v8666_v15 }
 0x1c5   : > { %10978 = vst [vmem:[#allocation34_spill] sm:$0xff] %v8722_v25  ;;  %v1660_v48 = vadd.f32 %v7028_v30, %v1326_v24  ;;  %v1318_v45 = vadd.f32 %v1317_v19, %v8474_v36  ;;  %v1543_v53 = vpop.f32.mrf.mxu1  ;;  %v2602_v1 = vsel %vm2528_vm1, %v2545_v59, %v2514_v20  ;;  %v10982_v24 = vrot.slane %v8491_v3, 7  ;;  %v11037_v25 = vld [vmem:[#allocation20_spill] sm:$0xff] }
 0x1c6   : > { %v6981_v11 = vpop.f32.mrf.mxu0 }
 0x1c7   : > { %v8734_v17 = vadd.f32 %v2604_v28, %v1660_v48  ;;  %v1658_v6 = vadd.f32 %v1543_v53, %v1318_v45  ;;  %v1329_v7 = vadd.f32 %v6981_v11, %v8482_v44  ;;  %v7029_v50 = vpop.f32.mrf.mxu1  ;;  %v2517_v44 = vsel %vm2431_vm0, %v8491_v3, %v10982_v24 }
 0x1c8   : > { %v8739_v14 = vpop.f32.mrf.mxu0  ;;  %v10984_v48 = vrot.slane %v8502_v58, 7  ;;  %v2608_v3 = vsel %vm2528_vm1, %v2557_v40, %v2517_v44  ;;  %v2565_v40 = vrot.slane %v8521_v26, %v8666_v15  ;;  %v10987_v44 = vrot.slane %v8521_v26, 7 }
 0x1c9   : > { %10980 = vst [vmem:[#allocation35_spill] sm:$0xff] %v8734_v17  ;;  %v8741_v47 = vadd.f32 %v2602_v1, %v1658_v6  ;;  %v1661_v16 = vadd.f32 %v7029_v50, %v1329_v7  ;;  %v8743_v36 = vpop.f32.mrf.mxu1 }
 0x1ca   : > { %v6984_v4 = vpop.f32.mrf.mxu0  ;;  %v2516_v45 = vsel %vm2431_vm0, %v8502_v58, %v10984_v48 }
 0x1cb   : > { %10981 = vst [vmem:[#allocation36_spill] sm:$0xff] %v8741_v47  ;;  %v8752_v30 = vadd.f32 %v8499_v55, %v1661_v16  ;;  %v1342_v59 = vadd.f32 %v6984_v4, %v8493_v27  ;;  %v7032_v19 = vpop.f32.mrf.mxu1  ;;  %v2606_v1 = vsel %vm2528_vm1, %v2553_v42, %v2516_v45  ;;  %v10989_v45 = vrot.slane %v8532_v34, 7 }
 0x1cc   : > { %v1333_v20 = vpop.f32.mrf.mxu0 }
 0x1cd   : > { %10983 = vst [vmem:[#allocation37_spill] sm:$0xff] %v8752_v30  ;;  %v1664_v53 = vadd.f32 %v7032_v19, %v1342_v59  ;;  %v1334_v28 = vadd.f32 %v1333_v20, %v8504_v46  ;;  %v1559_v11 = vpop.f32.mrf.mxu1  ;;  %v2561_v20 = vrot.slane %v8532_v34, %v8666_v15 }
 0x1ce   : > { %v6985_v55 = vpop.f32.mrf.mxu0 }
 0x1cf   : > { %v8764_v6 = vadd.f32 %v2608_v3, %v1664_v53  ;;  %v1662_v27 = vadd.f32 %v1559_v11, %v1334_v28  ;;  %v1345_v7 = vadd.f32 %v6985_v55, %v8512_v54  ;;  %v7033_v50 = vpop.f32.mrf.mxu1  ;;  %v2519_v54 = vsel %vm2431_vm0, %v8521_v26, %v10987_v44 }
 0x1d0   : > { %v8769_v16 = vpop.f32.mrf.mxu0  ;;  %v2518_v53 = vsel %vm2431_vm0, %v8532_v34, %v10989_v45  ;;  %v2612_v26 = vsel %vm2528_vm1, %v2565_v40, %v2519_v54  ;;  %v2573_v40 = vrot.slane %v8551_v23, %v8666_v15  ;;  %v10992_v44 = vrot.slane %v8551_v23, 7 }
 0x1d1   : > { %10985 = vst [vmem:[#allocation38_spill] sm:$0xff] %v8764_v6  ;;  %v8771_v58 = vadd.f32 %v2606_v1, %v1662_v27  ;;  %v1665_v4 = vadd.f32 %v7033_v50, %v1345_v7  ;;  %v8773_v46 = vpop.f32.mrf.mxu1  ;;  %v2610_v50 = vsel %vm2528_vm1, %v2561_v20, %v2518_v53  ;;  %v2569_v20 = vrot.slane %v8562_v38, %v8666_v15  ;;  %v7781_v6 = vld [vmem:[#allocation7 + $0x30] sm:$0xff]  }
 0x1d2   : > { %v6988_v24 = vpop.f32.mrf.mxu0  ;;  %v10994_v45 = vrot.slane %v8562_v38, 7 }
 0x1d3   : > { %10986 = vst [vmem:[#allocation39_spill] sm:$0xff] %v8771_v58  ;;  %v8782_v59 = vadd.f32 %v8529_v5, %v1665_v4  ;;  %v1358_v19 = vadd.f32 %v6988_v24, %v8523_v43  ;;  %v7036_v42 = vpop.f32.mrf.mxu1 }
 0x1d4   : > { %v1349_v48 = vpop.f32.mrf.mxu0  ;;  %v2520_v53 = vsel %vm2431_vm0, %v8562_v38, %v10994_v45 }
 0x1d5   : > { %10988 = vst [vmem:[#allocation40_spill] sm:$0xff] %v8782_v59  ;;  %v1668_v28 = vadd.f32 %v7036_v42, %v1358_v19  ;;  %v1350_v11 = vadd.f32 %v1349_v48, %v8534_v56  ;;  %v1575_v3 = vpop.f32.mrf.mxu1  ;;  %v7776_v59 = vld [vmem:[#allocation7 + $0xf0] sm:$0xff]  }
 0x1d6   : > { %v6989_v5 = vpop.f32.mrf.mxu0 }
 0x1d7   : > { %v8794_v55 = vadd.f32 %v2612_v26, %v1668_v28  ;;  %v1666_v43 = vadd.f32 %v1575_v3, %v1350_v11  ;;  %v1361_v27 = vadd.f32 %v6989_v5, %v8542_v0  ;;  %v7037_v7 = vpop.f32.mrf.mxu1  ;;  %v2521_v0 = vsel %vm2431_vm0, %v8551_v23, %v10992_v44 }
 0x1d8   : > { %v8799_v1 = vpop.f32.mrf.mxu0  ;;  %v2616_v23 = vsel %vm2528_vm1, %v2573_v40, %v2521_v0 }
 0x1d9   : > { %10990 = vst [vmem:[#allocation41_spill] sm:$0xff] %v8794_v55  ;;  %v8801_v34 = vadd.f32 %v2610_v50, %v1666_v43  ;;  %v1669_v4 = vadd.f32 %v7037_v7, %v1361_v27  ;;  %v8803_v56 = vpop.f32.mrf.mxu1  ;;  %v2614_v27 = vsel %vm2528_vm1, %v2569_v20, %v2520_v53 }
 0x1da   : > { %v6992_v24 = vpop.f32.mrf.mxu0 }
 0x1db   : > { %10991 = vst [vmem:[#allocation42_spill] sm:$0xff] %v8801_v34  ;;  %v8812_v54 = vadd.f32 %v8559_v18, %v1669_v4  ;;  %v1374_v19 = vadd.f32 %v6992_v24, %v8553_v60  ;;  %v7040_v42 = vpop.f32.mrf.mxu1  ;;  %v2581_v4 = vrot.slane %v8582_v9, %v8666_v15  ;;  %v10997_v24 = vrot.slane %v8582_v9, 7  ;;  %v7780_v34 = vld [vmem:[#allocation7 + $0x38] sm:$0xff]  }
 0x1dc   : > { %v1365_v48 = vpop.f32.mrf.mxu0  ;;  %7246 = vmatprep.subr.bf16.mxu0 %v7780_v34 }
 0x1dd   : > { %10993 = vst [vmem:[#allocation43_spill] sm:$0xff] %v8812_v54  ;;  %v1672_v28 = vadd.f32 %v7040_v42, %v1374_v19  ;;  %v1366_v11 = vadd.f32 %v1365_v48, %v8564_v2  ;;  %v1591_v3 = vpop.f32.mrf.mxu1  ;;  %v2577_v42 = vrot.slane %v8593_v35, %v8666_v15  ;;  %v10999_v48 = vrot.slane %v8593_v35, 7  ;;  %7247 = vmatpush3.bf16.msra.mxu0 %v7780_v34 }
 0x1de   : > { %v6993_v18 = vpop.f32.mrf.mxu0  ;;  %7248 = vmatprep.subr.bf16.mxu0 %v7781_v6 }
 0x1df   : > { %v8824_v26 = vadd.f32 %v2616_v23, %v1672_v28  ;;  %v1670_v60 = vadd.f32 %v1591_v3, %v1366_v11  ;;  %v1377_v5 = vadd.f32 %v6993_v18, %v8574_v49  ;;  %v7041_v43 = vpop.f32.mrf.mxu1  ;;  %v2523_v49 = vsel %vm2431_vm0, %v8582_v9, %v10997_v24 }
 0x1e0   : > { %v8829_v7 = vpop.f32.mrf.mxu0  ;;  %v2522_v45 = vsel %vm2431_vm0, %v8593_v35, %v10999_v48  ;;  %v2620_v9 = vsel %vm2528_vm1, %v2581_v4, %v2523_v49  ;;  %v11002_v4 = vrot.slane %v8613_v29, 7 }
 0x1e1   : > { %10995 = vst [vmem:[#allocation44_spill] sm:$0xff] %v8824_v26  ;;  %v8831_v38 = vadd.f32 %v2614_v27, %v1670_v60  ;;  %v1673_v50 = vadd.f32 %v7041_v43, %v1377_v5  ;;  %v8833_v2 = vpop.f32.mrf.mxu1  ;;  %v2618_v60 = vsel %vm2528_vm1, %v2577_v42, %v2522_v45  ;;  %v2589_v27 = vrot.slane %v8613_v29, %v8666_v15 }
 0x1e2   : > { %v6996_v40 = vpop.f32.mrf.mxu0  ;;  %v11004_v42 = vrot.slane %v8624_v57, 7  ;;  %7249 = vmatpush3.bf16.msra.mxu0 %v7781_v6 }
 0x1e3   : > { %10996 = vst [vmem:[#allocation45_spill] sm:$0xff] %v8831_v38  ;;  %v8842_v44 = vadd.f32 %v8590_v21, %v1673_v50  ;;  %v1390_v0 = vadd.f32 %v6996_v40, %v8584_v22  ;;  %v7044_v19 = vpop.f32.mrf.mxu1 }
 0x1e4   : > { %v1381_v20 = vpop.f32.mrf.mxu0 }
 0x1e5   : > { %10998 = vst [vmem:[#allocation46_spill] sm:$0xff] %v8842_v44  ;;  %v1676_v53 = vadd.f32 %v7044_v19, %v1390_v0  ;;  %v1382_v28 = vadd.f32 %v1381_v20, %v8595_v8  ;;  %v1607_v11 = vpop.f32.mrf.mxu1  ;;  %v2585_v0 = vrot.slane %v8624_v57, %v8666_v15  ;;  %v2524_v20 = vsel %vm2431_vm0, %v8624_v57, %v11004_v42 }
 0x1e6   : > { %v6997_v21 = vpop.f32.mrf.mxu0 }
 0x1e7   : > { %v8854_v3 = vadd.f32 %v2620_v9, %v1676_v53  ;;  %v1674_v22 = vadd.f32 %v1607_v11, %v1382_v28  ;;  %v1393_v23 = vadd.f32 %v6997_v21, %v8605_v31  ;;  %v7045_v18 = vpop.f32.mrf.mxu1  ;;  %v2525_v31 = vsel %vm2431_vm0, %v8613_v29, %v11002_v4 }
 0x1e8   : > { %v8859_v5 = vpop.f32.mrf.mxu0  ;;  %v2624_v29 = vsel %vm2528_vm1, %v2589_v27, %v2525_v31  ;;  %v2622_v21 = vsel %vm2528_vm1, %v2585_v0, %v2524_v20  ;;  %v11010_v0 = vrot.slane %v8656_v61, 7  ;;  %v11011_v20 = vld [vmem:[#allocation26_spill] sm:$0xff] }
 0x1e9   : > { %11000 = vst [vmem:[#allocation47_spill] sm:$0xff] %v8854_v3  ;;  %v8861_v35 = vadd.f32 %v2618_v60, %v1674_v22  ;;  %v1677_v43 = vadd.f32 %v7045_v18, %v1393_v23  ;;  %v8863_v8 = vpop.f32.mrf.mxu1  ;;  %v2597_v18 = vrot.slane %v8646_v62, %v8666_v15 }
 0x1ea   : > { %v7000_v50 = vpop.f32.mrf.mxu0 }
 0x1eb   : > { %11001 = vst [vmem:[#allocation48_spill] sm:$0xff] %v8861_v35  ;;  %v8872_v40 = vadd.f32 %v8621_v39, %v1677_v43  ;;  %v1406_v24 = vadd.f32 %v7000_v50, %v8615_v41  ;;  %v7048_v49 = vpop.f32.mrf.mxu1  ;;  %v11007_v43 = vrot.slane %v8646_v62, 7  ;;  %v11009_v50 = vld [vmem:[#allocation25_spill] sm:$0xff] }
 0x1ec   : > { %v1397_v19 = vpop.f32.mrf.mxu0 }
 0x1ed   : > { %11003 = vst [vmem:[#allocation49_spill] sm:$0xff] %v8872_v40  ;;  %v1680_v48 = vadd.f32 %v7048_v49, %v1406_v24  ;;  %v1398_v45 = vadd.f32 %v1397_v19, %v8626_v13  ;;  %v1623_v53 = vpop.f32.mrf.mxu1  ;;  %v2593_v24 = vrot.slane %v8656_v61, %v8666_v15  ;;  %v2526_v19 = vsel %vm2431_vm0, %v8656_v61, %v11010_v0 }
 0x1ee   : > { %v7001_v39 = vpop.f32.mrf.mxu0 }
 0x1ef   : > { %v8884_v28 = vadd.f32 %v2624_v29, %v1680_v48  ;;  %v1678_v41 = vadd.f32 %v1623_v53, %v1398_v45  ;;  %v1409_v11 = vadd.f32 %v7001_v39, %v8636_v33  ;;  %v7049_v9 = vpop.f32.mrf.mxu1  ;;  %v2527_v33 = vsel %vm2431_vm0, %v8646_v62, %v11007_v43  ;;  %v11013_v39 = vld [vmem:[#allocation29_spill] sm:$0xff] }
 0x1f0   : > { %v8889_v22 = vpop.f32.mrf.mxu0  ;;  %v2628_v62 = vsel %vm2528_vm1, %v2597_v18, %v2527_v33  ;;  %v11015_v18 = vld [vmem:[#allocation31_spill] sm:$0xff] }
 0x1f1   : > { %11005 = vst [vmem:[#allocation50_spill] sm:$0xff] %v8884_v28  ;;  %v8891_v57 = vadd.f32 %v2622_v21, %v1678_v41  ;;  %v1681_v23 = vadd.f32 %v7049_v9, %v1409_v11  ;;  %v8893_v13 = vpop.f32.mrf.mxu1  ;;  %v2626_v9 = vsel %vm2528_vm1, %v2593_v24, %v2526_v19  ;;  %v7775_v19 = vld [vmem:[#allocation7 + $0xf8] sm:$0xff]  }
 0x1f2   : > { %v7004_v60 = vpop.f32.mrf.mxu0  ;;  %7198 = vmatprep.subr.bf16.mxu1 %v7775_v19 }
 0x1f3   : > { %11006 = vst [vmem:[#allocation51_spill] sm:$0xff] %v8891_v57  ;;  %v8902_v27 = vadd.f32 %v8653_v63, %v1681_v23  ;;  %v1422_v4 = vadd.f32 %v7004_v60, %v11009_v50  ;;  %v7052_v31 = vpop.f32.mrf.mxu1  ;;  %7199 = vmatpush3.bf16.msra.mxu1 %v7775_v19 }
 0x1f4   : > { %v1413_v49 = vpop.f32.mrf.mxu0  ;;  %7200 = vmatprep.subr.bf16.mxu1 %v7776_v59 }
 0x1f5   : > { %11008 = vst [vmem:[#allocation52_spill] sm:$0xff] %v8902_v27  ;;  %v1684_v42 = vadd.f32 %v7052_v31, %v1422_v4  ;;  %v1414_v48 = vadd.f32 %v1413_v49, %v11011_v20  ;;  %v1639_v45 = vpop.f32.mrf.mxu1 }
 0x1f6   : > { %v7005_v63 = vpop.f32.mrf.mxu0 }
 0x1f7   : > { %v8914_v53 = vadd.f32 %v2628_v62, %v1684_v42  ;;  %v1682_v29 = vadd.f32 %v1639_v45, %v1414_v48  ;;  %v1425_v41 = vadd.f32 %v7005_v63, %v11013_v39  ;;  %v7053_v11 = vpop.f32.mrf.mxu1  ;;  %7201 = vmatpush3.bf16.msra.mxu1 %v7776_v59  ;;  %v11033_v59 = vld [vmem:[#allocation12_spill] sm:$0xff] }
 0x1f8   : > { %v8919_v21 = vpop.f32.mrf.mxu0 }
 0x1f9   : > { %11012 = vst [vmem:[#allocation25_spill] sm:$0xff] %v8914_v53  ;;  %v8921_v61 = vadd.f32 %v2626_v9, %v1682_v29  ;;  %v1685_v23 = vadd.f32 %v7053_v11, %v1425_v41  ;;  %v8923_v60 = vpop.f32.mrf.mxu1 }
 0x1fa   : > { %v8925_v43 = vpop.f32.mrf.mxu0 }
 0x1fb   : > { %11014 = vst [vmem:[#allocation26_spill] sm:$0xff] %v8921_v61  ;;  %v8928_v33 = vadd.f32 %v11015_v18, %v1685_v23  ;;  %v8930_v50 = vpop.f32.mrf.mxu1 }
 0x1fc   : > { %v8932_v4 = vpop.f32.mrf.mxu0 }
 0x1fd   : > { %11016 = vst [vmem:[#allocation29_spill] sm:$0xff] %v8928_v33  ;;  %v8934_v31 = vpop.f32.mrf.mxu1 }
 0x1fe   : > { %v8936_v49 = vpop.f32.mrf.mxu0 }
 0x1ff   : > { %v8938_v24 = vpop.f32.mrf.mxu1 }
 0x200   : > { %v8940_v0 = vpop.f32.mrf.mxu0 }
 0x201   : > { %v8942_v42 = vpop.f32.mrf.mxu1 }
 0x202   : > { %v8944_v20 = vpop.f32.mrf.mxu0 }
 0x203   : > { %v8946_v48 = vpop.f32.mrf.mxu1 }
 0x204   : > { %v8948_v45 = vpop.f32.mrf.mxu0 }
 0x205   : > { %v8950_v62 = vpop.f32.mrf.mxu1 }
 0x206   : > { %v8952_v63 = vpop.f32.mrf.mxu0 }
 0x207   : > { %v8954_v29 = vpop.f32.mrf.mxu1 }
 0x208   : > { %v8956_v39 = vpop.f32.mrf.mxu0 }
 0x209   : > { %v8958_v41 = vpop.f32.mrf.mxu1 }
 0x20a   : > { %v8960_v11 = vpop.f32.mrf.mxu0 }
 0x20b   : > { %v8964_v23 = vpop.f32.mrf.mxu1 }
 0x20c   : > { %v8962_v9 = vpop.f32.mrf.mxu0 }
 0x20d   : > { %v8970_v15 = vpop.f32.mrf.mxu1 }
 0x20e   : > { %v8966_v18 = vpop.f32.mrf.mxu0 }
 0x20f   : > { %v8976_v53 = vpop.f32.mrf.mxu1 }
 0x210   : > { %v8968_v19 = vpop.f32.mrf.mxu0 }
 0x211   : > { %v8982_v27 = vpop.f32.mrf.mxu1 }
 0x212   : > { %v8972_v61 = vpop.f32.mrf.mxu0 }
 0x213   : > { %v8988_v40 = vpop.f32.mrf.mxu1 }
 0x214   : > { %v8974_v33 = vpop.f32.mrf.mxu0 }
 0x215   : > { %v8994_v44 = vpop.f32.mrf.mxu1 }
 0x216   : > { %v8978_v32 = vpop.f32.mrf.mxu0 }
 0x217   : > { %v9000_v55 = vpop.f32.mrf.mxu1 }
 0x218   : > { %v8980_v57 = vpop.f32.mrf.mxu0 }
 0x219   : > { %v9006_v30 = vpop.f32.mrf.mxu1 }
 0x21a   : > { %v8984_v28 = vpop.f32.mrf.mxu0  ;;  %11025 = vst [vmem:[#allocation60_spill] sm:$0xff] %v9006_v30  ;;  %v1369_v30 = vadd.f32 %v8829_v7, %v11037_v25  ;;  %v7782_v7 = vld [vmem:[#allocation7 + $0xd0] sm:$0xff]  }
 0x21b   : > { %11017 = vst [vmem:[#allocation31_spill] sm:$0xff] %v8984_v28  ;;  %v7786_v28 = vld [vmem:[#allocation7 + $0x18] sm:$0xff]  }
 0x21c   : > { %v8986_v35 = vpop.f32.mrf.mxu0 }
 0x21d   : > { %11018 = vst [vmem:[#allocation53_spill] sm:$0xff] %v8986_v35 }
 0x21e   : > { %v8990_v3 = vpop.f32.mrf.mxu0 }
 0x21f   : > { %11019 = vst [vmem:[#allocation54_spill] sm:$0xff] %v8990_v3  ;;  %v9012_v3 = vpop.f32.mrf.mxu1 }
 0x220   : > { %v8992_v38 = vpop.f32.mrf.mxu0  ;;  %11028 = vst [vmem:[#allocation63_spill] sm:$0xff] %v9012_v3  ;;  %v7779_v3 = vld [vmem:[#allocation7 + $0xd8] sm:$0xff]  }
 0x221   : > { %11020 = vst [vmem:[#allocation55_spill] sm:$0xff] %v8992_v38  ;;  %v9018_v12 = vpop.f32.mrf.mxu1 }
 0x222   : > { %v8996_v26 = vpop.f32.mrf.mxu0  ;;  %11031 = vst [vmem:[#allocation66_spill] sm:$0xff] %v9018_v12 }
 0x223   : > { %11021 = vst [vmem:[#allocation56_spill] sm:$0xff] %v8996_v26  ;;  %v7777_v26 = vld [vmem:[#allocation7 + $0xe8] sm:$0xff]  }
 0x224   : > { %v8998_v54 = vpop.f32.mrf.mxu0  ;;  %7202 = vmatprep.subr.bf16.mxu1 %v7777_v26 }
 0x225   : > { %11022 = vst [vmem:[#allocation57_spill] sm:$0xff] %v8998_v54  ;;  %v7783_v54 = vld [vmem:[#allocation7 + $0x28] sm:$0xff]   ;;  %7203 = vmatpush3.bf16.msra.mxu1 %v7777_v26  ;;  %v11035_v26 = vld [vmem:[#allocation16_spill] sm:$0xff] }
 0x226   : > { %v9002_v58 = vpop.f32.mrf.mxu0  ;;  %7250 = vmatprep.subr.bf16.mxu0 %v7783_v54 }
 0x227   : > { %11023 = vst [vmem:[#allocation58_spill] sm:$0xff] %v9002_v58  ;;  %7251 = vmatpush3.bf16.msra.mxu0 %v7783_v54  ;;  %v7784_v58 = vld [vmem:[#allocation7 + $0x20] sm:$0xff]   ;;  %v1337_v54 = vadd.f32 %v8769_v16, %v11035_v26 }
 0x228   : > { %v9004_v47 = vpop.f32.mrf.mxu0  ;;  %7252 = vmatprep.subr.bf16.mxu0 %v7784_v58 }
 0x229   : > { %11024 = vst [vmem:[#allocation59_spill] sm:$0xff] %v9004_v47  ;;  %v7778_v47 = vld [vmem:[#allocation7 + $0xe0] sm:$0xff]  }
 0x22a   : > { %v9008_v17 = vpop.f32.mrf.mxu0  ;;  %7204 = vmatprep.subr.bf16.mxu1 %v7778_v47 }
 0x22b   : > { %11026 = vst [vmem:[#allocation61_spill] sm:$0xff] %v9008_v17  ;;  %7205 = vmatpush3.bf16.msra.mxu1 %v7778_v47  ;;  %7253 = vmatpush3.bf16.msra.mxu0 %v7784_v58  ;;  %v11034_v17 = vld [vmem:[#allocation14_spill] sm:$0xff] }
 0x22c   : > { %v9010_v38 = vpop.f32.mrf.mxu0  ;;  %7206 = vmatprep.subr.bf16.mxu1 %v7779_v3  ;;  %7254 = vmatprep.subr.bf16.mxu0 %v7786_v28 }
 0x22d   : > { %11027 = vst [vmem:[#allocation62_spill] sm:$0xff] %v9010_v38  ;;  %v1305_v38 = vadd.f32 %v8709_v51, %v11033_v59  ;;  %v11039_v51 = vld [vmem:[#allocation24_spill] sm:$0xff] }
 0x22e   : > { %v9014_v34 = vpop.f32.mrf.mxu0  ;;  %v1401_v59 = vadd.f32 %v8889_v22, %v11039_v51  ;;  %v1671_v22 = vadd.f32 %v8833_v2, %v1369_v30 }
 0x22f   : > { %11029 = vst [vmem:[#allocation64_spill] sm:$0xff] %v9014_v34  ;;  %v1321_v34 = vadd.f32 %v8739_v14, %v11034_v17  ;;  %v9038_v17 = vpop.f32.mrf.mxu1  ;;  %7207 = vmatpush3.bf16.msra.mxu1 %v7779_v3  ;;  %7255 = vmatpush3.bf16.msra.mxu0 %v7786_v28  ;;  %v1655_v16 = vadd.f32 %v8713_v37, %v1305_v38  ;;  %v11040_v37 = vld [vmem:[#allocation30_spill] sm:$0xff]  ;;  %v9056_v38 = vadd.s32 8, %v8641_v52 }
 0x230   : > { %v9016_v35 = vpop.f32.mrf.mxu0  ;;  %v1679_v51 = vadd.f32 %v8893_v13, %v1401_v59  ;;  %7208 = vmatprep.subr.bf16.mxu1 %v7782_v7  ;;  %v2020_v13 = vadd.f32 %v8930_v50, %v8925_v43  ;;  %v11046_v59 = vld [vmem:[#allocation21_spill] sm:$0xff]  ;;  %v2023_v43 = vadd.f32 %v8938_v24, %v8936_v49  ;;  %v2036_v49 = vadd.f32 %v8946_v48, %v8944_v20 }
 0x231   : > { %11030 = vst [vmem:[#allocation65_spill] sm:$0xff] %v9016_v35  ;;  %v11036_v35 = vld [vmem:[#allocation18_spill] sm:$0xff]  ;;  %v1659_v25 = vadd.f32 %v8743_v36, %v1321_v34  ;;  %v9051_v3 = vpop.f32.mrf.mxu1  ;;  %v1417_v36 = vadd.f32 %v8919_v21, %v11040_v37  ;;  %11041 = vst [vmem:[#allocation12_spill] sm:$0xff] %v9056_v38  ;;  %v7785_v21 = vld [vmem:[#allocation7 + $0xc8] sm:$0xff]   ;;  %vm2760_vm3 = vcmp.eq.s32.totalorder %v9056_v38, 15  ;;  %v2028_v24 = vadd.f32 %v8950_v62, %v8948_v45 }
 0x232   : > { %v9020_v6 = vpop.f32.mrf.mxu0  ;;  %v1353_v12 = vadd.f32 %v8799_v1, %v11036_v35  ;;  %v1663_v1 = vadd.f32 %v8773_v46, %v1337_v54  ;;  %v7789_v34 = vld [vmem:[#allocation7 + $0x8] sm:$0xff]   ;;  %v11045_v54 = vld [vmem:[#allocation19_spill] sm:$0xff]  ;;  %v9114_v20 = vadd.f32 %v8976_v53, %v8966_v18  ;;  %v9127_v53 = vadd.f32 %v8994_v44, %v8974_v33 }
 0x233   : > { %11032 = vst [vmem:[#allocation67_spill] sm:$0xff] %v9020_v6  ;;  %v11038_v6 = vld [vmem:[#allocation22_spill] sm:$0xff]  ;;  %7209 = vmatpush3.bf16.msra.mxu1 %v7782_v7  ;;  %v9073_v7 = vadd.f32 %v11046_v59, %v1671_v22  ;;  %v9085_v50 = vpop.f32.mrf.mxu1  ;;  %v9091_v22 = vadd.f32 %v8923_v60, %v1417_v36  ;;  %v7788_v36 = vld [vmem:[#allocation7 + $0xc0] sm:$0xff]  }
 0x234   : > { %v1385_v47 = vadd.f32 %v8859_v5, %v11038_v6  ;;  %v9034_v58 = vpop.f32.mrf.mxu0  ;;  %v7787_v5 = vld [vmem:[#allocation7 + $0x10] sm:$0xff]   ;;  %v1667_v35 = vadd.f32 %v8803_v56, %v1353_v12  ;;  %v11042_v12 = vld [vmem:[#allocation13_spill] sm:$0xff]  ;;  %v11043_v56 = vld [vmem:[#allocation15_spill] sm:$0xff]  ;;  %7210 = vmatprep.subr.bf16.mxu1 %v7785_v21 }
 0x235   : > { %7256 = vmatprep.subr.bf16.mxu0 %v7787_v5  ;;  %v9059_v30 = vadd.f32 %v11042_v12, %v1655_v16  ;;  %v9062_v2 = vadd.f32 %v11043_v56, %v1659_v25  ;;  %v2012_v25 = vadd.f32 %v8934_v31, %v8932_v4  ;;  %v9088_v56 = vsub.s32 6, %v8641_v52  ;;  %v2091_v45 = vpop.f32.mrf.mxu1  ;;  %v11051_v59 = vld [vmem:[#allocation34_spill] sm:$0xff] }
 0x236   : > { %v9040_v14 = vpop.f32.mrf.mxu0  ;;  %v1675_v6 = vadd.f32 %v8863_v8, %v1385_v47  ;;  %7257 = vmatpush3.bf16.msra.mxu0 %v7787_v5  ;;  %v11044_v8 = vld [vmem:[#allocation17_spill] sm:$0xff]  ;;  %v9070_v47 = vadd.f32 %v11045_v54, %v1667_v35  ;;  %v11047_v5 = vld [vmem:[#allocation23_spill] sm:$0xff]  ;;  %v2015_v4 = vadd.f32 %v8942_v42, %v8940_v0  ;;  %v2031_v0 = vadd.f32 %v8958_v41, %v8956_v39 }
 0x237   : > { %v9065_v28 = vadd.f32 %v11044_v8, %v1663_v1  ;;  %v11048_v1 = vld [vmem:[#allocation27_spill] sm:$0xff]  ;;  %11049 = vst [vmem:[#allocation14_spill] sm:$0xff] %v9088_v56  ;;  %7258 = vmatprep.subr.bf16.mxu0 %v7789_v34  ;;  %7211 = vmatpush3.bf16.msra.mxu1 %v7785_v21  ;;  %v9106_v42 = vadd.f32 %v8964_v23, %v8960_v11  ;;  %v11050_v21 = vld [vmem:[#allocation60_spill] sm:$0xff]  ;;  %v7141_v54 = vpop.f32.mrf.mxu1 }
 0x238   : > { %v9048_v26 = vpop.f32.mrf.mxu0  ;;  %v9076_v16 = vadd.f32 %v11047_v5, %v1675_v6  ;;  %v9081_v12 = vadd.f32 %v11048_v1, %v1679_v51  ;;  %v2039_v51 = vadd.f32 %v8954_v29, %v8952_v63  ;;  %v9110_v8 = vadd.f32 %v8970_v15, %v8962_v9  ;;  %7212 = vmatprep.subr.bf16.mxu1 %v7788_v36  ;;  %v11053_v1 = vld [vmem:[#allocation63_spill] sm:$0xff] }
 0x239   : > { %v9119_v39 = vadd.f32 %v8982_v27, %v8968_v19  ;;  %v9123_v15 = vadd.f32 %v8988_v40, %v8972_v61  ;;  %v9134_v19 = vadd.f32 %v9000_v55, %v8978_v32  ;;  %v9150_v55 = vld [vmem:[#allocation7 + $0x1b8] sm:$0xff]  }
 0x23a   : > { %v7168_v46 = vpop.f32.mrf.mxu0  ;;  %7259 = vmatpush3.bf16.msra.mxu0 %v7789_v34  ;;  %v9143_v34 = vadd.f32 %v11050_v21, %v8980_v57 }
 0x23b   : > { %v2366_v35 = vadd.f32 %v7168_v46, %v2020_v13  ;;  %v7790_v46 = vld [vmem:[#allocation7] sm:$0xff]   ;;  %7213 = vmatpush3.bf16.msra.mxu1 %v7788_v36  ;;  %v11057_v36 = vld [vmem:[#allocation54_spill] sm:$0xff] }
 0x23c   : > { %v2237_v37 = vpop.f32.mrf.mxu0  ;;  %7260 = vmatprep.subr.bf16.mxu0 %v7790_v46  ;;  %7294 = vmatprep.subr.bf16.mxu1 %v9150_v55 }
 0x23d   : > { %v2364_v31 = vadd.f32 %v2237_v37, %v2012_v25  ;;  %v2666_v62 = vrot.slane %v2366_v35, 1  ;;  %v11052_v37 = vld [vmem:[#allocation31_spill] sm:$0xff]  ;;  %v11054_v35 = vld [vmem:[#allocation33_spill] sm:$0xff] }
 0x23e   : > { %v7169_v6 = vpop.f32.mrf.mxu0  ;;  %7261 = vmatpush3.bf16.msra.mxu0 %v7790_v46  ;;  %v9167_v46 = vadd.f32 %v9038_v17, %v11057_v36 }
 0x23f   : > { %v2367_v60 = vadd.f32 %v7169_v6, %v2023_v43  ;;  %v2663_v41 = vrot.slane %v2364_v31, 1  ;;  %v11055_v6 = vld [vmem:[#allocation53_spill] sm:$0xff] }
 0x240   : > { %v2240_v48 = vpop.f32.mrf.mxu0 }
 0x241   : > { %v2667_v63 = vrot.slane %v2367_v60, 1  ;;  %v2772_v29 = vrot.slane %v2367_v60, %v9088_v56  ;;  %v2365_v13 = vadd.f32 %v2240_v48, %v2015_v4 }
 0x242   : > { %v7172_v11 = vpop.f32.mrf.mxu0 }
 0x243   : > { %v2668_v9 = vsel %vm2662_vm2, %v2666_v62, %v2667_v63  ;;  %v2744_v23 = vsel %vm2662_vm2, %v2667_v63, %v2367_v60  ;;  %v2664_v18 = vrot.slane %v2365_v13, 1  ;;  %v2768_v27 = vrot.slane %v2365_v13, %v9088_v56  ;;  %v11058_v63 = vld [vmem:[#allocation55_spill] sm:$0xff] }
 0x244   : > { %v2832_v40 = vsel %vm2760_vm3, %v2772_v29, %v2744_v23  ;;  %v9139_v44 = vadd.f32 %v8704_v10, %v2668_v9  ;;  %v2370_v61 = vadd.f32 %v7172_v11, %v2036_v49  ;;  %v2253_v33 = vpop.f32.mrf.mxu0  ;;  %v9154_v10 = vadd.f32 %v11053_v1, %v11052_v37  ;;  %v11056_v49 = vld [vmem:[#allocation66_spill] sm:$0xff]  ;;  %v2094_v9 = vpop.f32.mrf.mxu1  ;;  %v11061_v1 = vld [vmem:[#allocation35_spill] sm:$0xff] }
 0x245   : > { %v9146_v5 = vadd.f32 %v11051_v59, %v2832_v40  ;;  %v2665_v25 = vsel %vm2662_vm2, %v2663_v41, %v2664_v18  ;;  %v2743_v32 = vsel %vm2662_vm2, %v2664_v18, %v2365_v13  ;;  %v2368_v4 = vadd.f32 %v2253_v33, %v2028_v24  ;;  %v11059_v24 = vld [vmem:[#allocation56_spill] sm:$0xff]  ;;  %v11060_v18 = vld [vmem:[#allocation57_spill] sm:$0xff] }
 0x246   : > { %v2830_v43 = vsel %vm2760_vm3, %v2768_v27, %v2743_v32  ;;  %v9159_v57 = vadd.f32 %v11054_v35, %v2665_v25  ;;  %v7173_v31 = vpop.f32.mrf.mxu0  ;;  %v9163_v60 = vadd.f32 %v11056_v49, %v11055_v6  ;;  %v9175_v29 = vadd.f32 %v9051_v3, %v11058_v63  ;;  %v11062_v49 = vld [vmem:[#allocation37_spill] sm:$0xff]  ;;  %v11063_v63 = vld [vmem:[#allocation58_spill] sm:$0xff] }
 0x247   : > { %v9170_v48 = vadd.f32 %v9059_v30, %v2830_v43  ;;  %v2371_v62 = vadd.f32 %v7173_v31, %v2039_v51  ;;  %v9179_v13 = vadd.f32 %v9085_v50, %v11059_v24  ;;  %v2672_v11 = vrot.slane %v2370_v61, 1 }
 0x248   : > { %v2963_v41 = vmul.f32 %v9159_v57, %v9159_v57  ;;  %v2256_v17 = vpop.f32.mrf.mxu0  ;;  %v9189_v27 = vadd.f32 %v2091_v45, %v11060_v18  ;;  %v2965_v50 = vmul.f32 %v9139_v44, %v9139_v44  ;;  %v2669_v40 = vrot.slane %v2368_v4, 1  ;;  %v7144_v4 = vpop.f32.mrf.mxu1  ;;  %v11065_v18 = vld [vmem:[#allocation36_spill] sm:$0xff] }
 0x249   : > { %v2925_v30 = vadd.f32 %v9170_v48, %v9159_v57  ;;  %v2964_v51 = vmul.f32 %v9170_v48, %v9170_v48  ;;  %v2673_v23 = vrot.slane %v2371_v62, 1  ;;  %v2780_v3 = vrot.slane %v2371_v62, %v9088_v56 }
 0x24a   : > { %v2369_v33 = vadd.f32 %v2256_v17, %v2031_v0  ;;  %v7176_v61 = vpop.f32.mrf.mxu0  ;;  %v2966_v0 = vmul.f32 %v9146_v5, %v9146_v5  ;;  %v9209_v24 = vadd.f32 %v7141_v54, %v11063_v63 }
 0x24b   : > { %v2926_v21 = vadd.f32 %v2925_v30, %v9139_v44  ;;  %v2995_v59 = vadd.f32 %v2964_v51, %v2963_v41  ;;  %v2674_v25 = vsel %vm2662_vm2, %v2672_v11, %v2673_v23  ;;  %v2746_v32 = vsel %vm2662_vm2, %v2673_v23, %v2371_v62  ;;  %v11064_v51 = vld [vmem:[#allocation59_spill] sm:$0xff] }
 0x24c   : > { %v2836_v37 = vsel %vm2760_vm3, %v2780_v3, %v2746_v32  ;;  %v9199_v43 = vadd.f32 %v11061_v1, %v2674_v25  ;;  %v2670_v45 = vrot.slane %v2369_v33, 1  ;;  %v2776_v35 = vrot.slane %v2369_v33, %v9088_v56  ;;  %v2269_v31 = vpop.f32.mrf.mxu0 }
 0x24d   : > { %v2996_v6 = vadd.f32 %v2995_v59, %v2965_v50  ;;  %v9205_v36 = vadd.f32 %v11062_v49, %v2836_v37  ;;  %v2927_v62 = vadd.f32 %v2926_v21, %v9146_v5  ;;  %v2374_v17 = vadd.f32 %v7176_v61, %v9106_v42  ;;  %v11066_v59 = vld [vmem:[#allocation61_spill] sm:$0xff] }
 0x24e   : > { %v2671_v41 = vsel %vm2662_vm2, %v2669_v40, %v2670_v45  ;;  %v2745_v11 = vsel %vm2662_vm2, %v2670_v45, %v2369_v33  ;;  %v7177_v30 = vpop.f32.mrf.mxu0  ;;  %v9215_v23 = vadd.f32 %v2094_v9, %v11064_v51  ;;  %v9223_v54 = vadd.f32 %v7144_v4, %v11066_v59  ;;  %v11067_v51 = vld [vmem:[#allocation38_spill] sm:$0xff]  ;;  %v11069_v59 = vld [vmem:[#allocation40_spill] sm:$0xff] }
 0x24f   : > { %v2834_v3 = vsel %vm2760_vm3, %v2776_v35, %v2745_v11  ;;  %v9220_v50 = vadd.f32 %v11065_v18, %v2671_v41  ;;  %v2997_v21 = vadd.f32 %v2996_v6, %v2966_v0  ;;  %v2372_v33 = vadd.f32 %v2269_v31, %v9110_v8  ;;  %v11068_v18 = vld [vmem:[#allocation62_spill] sm:$0xff] }
 0x250   : > { %v9226_v40 = vadd.f32 %v9062_v2, %v2834_v3  ;;  %v2375_v42 = vadd.f32 %v7177_v30, %v9114_v20  ;;  %v2272_v61 = vpop.f32.mrf.mxu0  ;;  %v2969_v9 = vmul.f32 %v9199_v43, %v9199_v43  ;;  %v2678_v2 = vrot.slane %v2374_v17, 1  ;;  %v2107_v20 = vpop.f32.mrf.mxu1 }
 0x251   : > { %v2928_v25 = vadd.f32 %v2927_v62, %v9220_v50  ;;  %v2967_v32 = vmul.f32 %v9220_v50, %v9220_v50  ;;  %v2373_v37 = vadd.f32 %v2272_v61, %v9119_v39  ;;  %v2675_v49 = vrot.slane %v2372_v33, 1 }
 0x252   : > { %v2968_v1 = vmul.f32 %v9226_v40, %v9226_v40  ;;  %v2679_v45 = vrot.slane %v2375_v42, 1  ;;  %v2788_v8 = vrot.slane %v2375_v42, %v9088_v56  ;;  %v7180_v35 = vpop.f32.mrf.mxu0 }
 0x253   : > { %v2929_v31 = vadd.f32 %v2928_v25, %v9226_v40  ;;  %v2998_v4 = vadd.f32 %v2997_v21, %v2967_v32  ;;  %v2676_v0 = vrot.slane %v2373_v37, 1  ;;  %v2784_v6 = vrot.slane %v2373_v37, %v9088_v56 }
 0x254   : > { %v2680_v62 = vsel %vm2662_vm2, %v2678_v2, %v2679_v45  ;;  %v2748_v39 = vsel %vm2662_vm2, %v2679_v45, %v2375_v42  ;;  %v2378_v63 = vadd.f32 %v7180_v35, %v9123_v15  ;;  %v2285_v41 = vpop.f32.mrf.mxu0  ;;  %v9251_v21 = vadd.f32 %v2107_v20, %v11068_v18  ;;  %v11070_v2 = vld [vmem:[#allocation39_spill] sm:$0xff] }
 0x255   : > { %v2930_v11 = vadd.f32 %v2929_v31, %v9199_v43  ;;  %v2999_v17 = vadd.f32 %v2998_v4, %v2968_v1  ;;  %v2840_v30 = vsel %vm2760_vm3, %v2788_v8, %v2748_v39  ;;  %v9248_v3 = vadd.f32 %v11067_v51, %v2680_v62  ;;  %v7145_v4 = vpop.f32.mrf.mxu1 }
 0x256   : > { %v9254_v33 = vadd.f32 %v11069_v59, %v2840_v30  ;;  %v2677_v42 = vsel %vm2662_vm2, %v2675_v49, %v2676_v0  ;;  %v2747_v15 = vsel %vm2662_vm2, %v2676_v0, %v2373_v37  ;;  %v7181_v61 = vpop.f32.mrf.mxu0  ;;  %v2970_v25 = vmul.f32 %v9205_v36, %v9205_v36 }
 0x257   : > { %v3000_v32 = vadd.f32 %v2999_v17, %v2969_v9  ;;  %v2838_v1 = vsel %vm2760_vm3, %v2784_v6, %v2747_v15  ;;  %v9263_v45 = vadd.f32 %v11070_v2, %v2677_v42  ;;  %v2931_v35 = vadd.f32 %v2930_v11, %v9205_v36  ;;  %v2110_v42 = vpop.f32.mrf.mxu1 }
 0x258   : > { %v9266_v8 = vadd.f32 %v9065_v28, %v2838_v1  ;;  %v2684_v20 = vrot.slane %v2378_v63, 1  ;;  %v2376_v31 = vadd.f32 %v2285_v41, %v9127_v53  ;;  %v2288_v37 = vpop.f32.mrf.mxu0  ;;  %v2379_v49 = vadd.f32 %v7181_v61, %v9134_v19 }
 0x259   : > { %v2971_v0 = vmul.f32 %v9263_v45, %v9263_v45  ;;  %v3001_v9 = vadd.f32 %v3000_v32, %v2970_v25  ;;  %v2377_v6 = vadd.f32 %v2288_v37, %v9143_v34  ;;  %v2973_v62 = vmul.f32 %v9248_v3, %v9248_v3 }
 0x25a   : > { %v2932_v28 = vadd.f32 %v2931_v35, %v9263_v45  ;;  %v2972_v39 = vmul.f32 %v9266_v8, %v9266_v8  ;;  %v2681_v63 = vrot.slane %v2376_v31, 1  ;;  %v7184_v53 = vpop.f32.mrf.mxu0  ;;  %v2685_v11 = vrot.slane %v2379_v49, 1  ;;  %v11071_v35 = vld [vmem:[#allocation41_spill] sm:$0xff] }
 0x25b   : > { %v3002_v41 = vadd.f32 %v3001_v9, %v2971_v0  ;;  %v2796_v17 = vrot.slane %v2379_v49, %v9088_v56  ;;  %v2682_v30 = vrot.slane %v2377_v6, 1  ;;  %v2974_v19 = vmul.f32 %v9254_v33, %v9254_v33  ;;  %v11072_v9 = vld [vmem:[#allocation43_spill] sm:$0xff] }
 0x25c   : > { %v2933_v34 = vadd.f32 %v2932_v28, %v9266_v8  ;;  %v2792_v51 = vrot.slane %v2377_v6, %v9088_v56  ;;  %v2382_v18 = vadd.f32 %v7184_v53, %v9154_v10  ;;  %v2301_v59 = vpop.f32.mrf.mxu0  ;;  %v2686_v61 = vsel %vm2662_vm2, %v2684_v20, %v2685_v11 }
 0x25d   : > { %v3003_v15 = vadd.f32 %v3002_v41, %v2972_v39  ;;  %v2750_v25 = vsel %vm2662_vm2, %v2685_v11, %v2379_v49  ;;  %v2683_v32 = vsel %vm2662_vm2, %v2681_v63, %v2682_v30  ;;  %v9292_v31 = vadd.f32 %v11071_v35, %v2686_v61  ;;  %v11073_v49 = vld [vmem:[#allocation42_spill] sm:$0xff]  ;;  %v11074_v63 = vld [vmem:[#allocation64_spill] sm:$0xff]  ;;  %v11075_v41 = vld [vmem:[#allocation65_spill] sm:$0xff] }
 0x25e   : > { %v2934_v1 = vadd.f32 %v2933_v34, %v9248_v3  ;;  %v2844_v2 = vsel %vm2760_vm3, %v2796_v17, %v2750_v25  ;;  %v2749_v37 = vsel %vm2662_vm2, %v2682_v30, %v2377_v6  ;;  %v7185_v10 = vpop.f32.mrf.mxu0  ;;  %v9301_v39 = vadd.f32 %v11073_v49, %v2683_v32 }
 0x25f   : > { %v3004_v0 = vadd.f32 %v3003_v15, %v2973_v62  ;;  %v9296_v28 = vadd.f32 %v11072_v9, %v2844_v2  ;;  %v2842_v20 = vsel %vm2760_vm3, %v2792_v51, %v2749_v37  ;;  %v9304_v53 = vadd.f32 %v7145_v4, %v11074_v63  ;;  %v9325_v37 = vld [vmem:[#allocation7 + $0x138] sm:$0xff]  }
 0x260   : > { %v9307_v11 = vadd.f32 %v2110_v42, %v11075_v41  ;;  %v9310_v17 = vadd.f32 %v9070_v47, %v2842_v20  ;;  %v2935_v6 = vadd.f32 %v2934_v1, %v9254_v33  ;;  %v2304_v62 = vpop.f32.mrf.mxu0  ;;  %v2977_v30 = vmul.f32 %v9292_v31, %v9292_v31  ;;  %7342 = vmatprep.subr.bf16.mxu0 %v9325_v37 }
 0x261   : > { %v2975_v34 = vmul.f32 %v9301_v39, %v9301_v39  ;;  %v3005_v51 = vadd.f32 %v3004_v0, %v2974_v19  ;;  %v2380_v15 = vadd.f32 %v2301_v59, %v9163_v60  ;;  %v2383_v47 = vadd.f32 %v7185_v10, %v9167_v46 }
 0x262   : > { %v2936_v4 = vadd.f32 %v2935_v6, %v9301_v39  ;;  %v2976_v42 = vmul.f32 %v9310_v17, %v9310_v17  ;;  %v2381_v61 = vadd.f32 %v2304_v62, %v9175_v29  ;;  %v7188_v25 = vpop.f32.mrf.mxu0  ;;  %v2978_v32 = vmul.f32 %v9296_v28, %v9296_v28 }
 0x263   : > { %v3006_v1 = vadd.f32 %v3005_v51, %v2975_v34  ;;  %v2690_v2 = vrot.slane %v2382_v18, 1  ;;  %v2687_v35 = vrot.slane %v2380_v15, 1  ;;  %v2691_v19 = vrot.slane %v2383_v47, 1  ;;  %v7148_v18 = vpop.f32.mrf.mxu1  ;;  %v11076_v15 = vld [vmem:[#allocation44_spill] sm:$0xff] }
 0x264   : > { %v2937_v60 = vadd.f32 %v2936_v4, %v9310_v17  ;;  %v2804_v59 = vrot.slane %v2383_v47, %v9088_v56  ;;  %v2688_v0 = vrot.slane %v2381_v61, 1  ;;  %v2317_v9 = vpop.f32.mrf.mxu0  ;;  %v2800_v46 = vrot.slane %v2381_v61, %v9088_v56  ;;  %v11077_v4 = vld [vmem:[#allocation46_spill] sm:$0xff] }
 0x265   : > { %v3007_v20 = vadd.f32 %v3006_v1, %v2976_v42  ;;  %v2386_v29 = vadd.f32 %v7188_v25, %v9179_v13  ;;  %v2384_v10 = vadd.f32 %v2317_v9, %v9189_v27  ;;  %v2692_v63 = vsel %vm2662_vm2, %v2690_v2, %v2691_v19  ;;  %v11078_v1 = vld [vmem:[#allocation45_spill] sm:$0xff] }
 0x266   : > { %v2938_v49 = vadd.f32 %v2937_v60, %v9292_v31  ;;  %v2752_v41 = vsel %vm2662_vm2, %v2691_v19, %v2383_v47  ;;  %v2689_v6 = vsel %vm2662_vm2, %v2687_v35, %v2688_v0  ;;  %v7189_v62 = vpop.f32.mrf.mxu0  ;;  %v9340_v13 = vadd.f32 %v11076_v15, %v2692_v63  ;;  %v11079_v35 = vld [vmem:[#allocation67_spill] sm:$0xff] }
 0x267   : > { %v3008_v34 = vadd.f32 %v3007_v20, %v2977_v30  ;;  %v2848_v51 = vsel %vm2760_vm3, %v2804_v59, %v2752_v41  ;;  %v2751_v27 = vsel %vm2662_vm2, %v2688_v0, %v2381_v61  ;;  %v9349_v47 = vadd.f32 %v11078_v1, %v2689_v6 }
 0x268   : > { %v9344_v42 = vadd.f32 %v11077_v4, %v2848_v51  ;;  %v2846_v25 = vsel %vm2760_vm3, %v2800_v46, %v2751_v27  ;;  %v2939_v2 = vadd.f32 %v2938_v49, %v9296_v28  ;;  %v2320_v30 = vpop.f32.mrf.mxu0  ;;  %v2132_v60 = vadd.f32 %v7148_v18, %v11079_v35  ;;  %v2123_v4 = vpop.f32.mrf.mxu1  ;;  %v11080_v35 = vld [vmem:[#allocation47_spill] sm:$0xff] }
 0x269   : > { %v9354_v19 = vadd.f32 %v9073_v7, %v2846_v25  ;;  %v3009_v59 = vadd.f32 %v3008_v34, %v2978_v32  ;;  %v2696_v9 = vrot.slane %v2386_v29, 1  ;;  %v2981_v61 = vmul.f32 %v9340_v13, %v9340_v13 }
 0x26a   : > { %v2940_v0 = vadd.f32 %v2939_v2, %v9349_v47  ;;  %v2979_v20 = vmul.f32 %v9349_v47, %v9349_v47  ;;  %v2387_v46 = vadd.f32 %v7189_v62, %v9209_v24  ;;  %v7192_v63 = vpop.f32.mrf.mxu0  ;;  %v2982_v49 = vmul.f32 %v9344_v42, %v9344_v42 }
 0x26b   : > { %v2980_v7 = vmul.f32 %v9354_v19, %v9354_v19  ;;  %v2693_v18 = vrot.slane %v2384_v10, 1  ;;  %v2385_v32 = vadd.f32 %v2320_v30, %v9215_v23  ;;  %v2390_v62 = vadd.f32 %v7192_v63, %v9223_v54 }
 0x26c   : > { %v2941_v29 = vadd.f32 %v2940_v0, %v9354_v19  ;;  %v3010_v41 = vadd.f32 %v3009_v59, %v2979_v20  ;;  %v2697_v6 = vrot.slane %v2387_v46, 1  ;;  %v2812_v34 = vrot.slane %v2387_v46, %v9088_v56  ;;  %v2333_v51 = vpop.f32.mrf.mxu0  ;;  %v11081_v20 = vld [vmem:[#allocation49_spill] sm:$0xff] }
 0x26d   : > { %v2694_v15 = vrot.slane %v2385_v32, 1  ;;  %v2808_v24 = vrot.slane %v2385_v32, %v9088_v56  ;;  %v2388_v27 = vadd.f32 %v2333_v51, %v9251_v21 }
 0x26e   : > { %v2942_v25 = vadd.f32 %v2941_v29, %v9340_v13  ;;  %v3011_v10 = vadd.f32 %v3010_v41, %v2980_v7  ;;  %v2698_v23 = vsel %vm2662_vm2, %v2696_v9, %v2697_v6  ;;  %v2754_v1 = vsel %vm2662_vm2, %v2697_v6, %v2387_v46  ;;  %v7193_v2 = vpop.f32.mrf.mxu0  ;;  %v11082_v7 = vld [vmem:[#allocation48_spill] sm:$0xff] }
 0x26f   : > { %v2852_v30 = vsel %vm2760_vm3, %v2812_v34, %v2754_v1  ;;  %v9378_v59 = vadd.f32 %v11080_v35, %v2698_v23  ;;  %v2695_v0 = vsel %vm2662_vm2, %v2693_v18, %v2694_v15  ;;  %v2753_v54 = vsel %vm2662_vm2, %v2694_v15, %v2385_v32  ;;  %v7149_v32 = vpop.f32.mrf.mxu1 }
 0x270   : > { %v3012_v21 = vadd.f32 %v3011_v10, %v2981_v61  ;;  %v9383_v63 = vadd.f32 %v11081_v20, %v2852_v30  ;;  %v2850_v9 = vsel %vm2760_vm3, %v2808_v24, %v2753_v54  ;;  %v9388_v46 = vadd.f32 %v11082_v7, %v2695_v0  ;;  %v2336_v29 = vpop.f32.mrf.mxu0 }
 0x271   : > { %v2124_v41 = vadd.f32 %v2123_v4, %v9034_v58  ;;  %v9392_v6 = vadd.f32 %v9076_v16, %v2850_v9  ;;  %v2943_v18 = vadd.f32 %v2942_v25, %v9344_v42  ;;  %v2702_v34 = vrot.slane %v2390_v62, 1  ;;  %v2126_v54 = vpop.f32.mrf.mxu1 }
 0x272   : > { %v2985_v61 = vmul.f32 %v9378_v59, %v9378_v59  ;;  %v2983_v51 = vmul.f32 %v9388_v46, %v9388_v46  ;;  %v3013_v15 = vadd.f32 %v3012_v21, %v2982_v49  ;;  %v2391_v24 = vadd.f32 %v7193_v2, %v9304_v53  ;;  %v7196_v10 = vpop.f32.mrf.mxu0 }
 0x273   : > { %v2944_v23 = vadd.f32 %v2943_v18, %v9388_v46  ;;  %v2984_v58 = vmul.f32 %v9392_v6, %v9392_v6  ;;  %v2699_v16 = vrot.slane %v2388_v27, 1  ;;  %v2389_v4 = vadd.f32 %v2336_v29, %v9307_v11  ;;  %v11083_v18 = vld [vmem:[#allocation50_spill] sm:$0xff] }
 0x274   : > { %v2986_v62 = vmul.f32 %v9383_v63, %v9383_v63  ;;  %v3014_v25 = vadd.f32 %v3013_v15, %v2983_v51  ;;  %v2703_v1 = vrot.slane %v2391_v24, 1  ;;  %v2820_v30 = vrot.slane %v2391_v24, %v9088_v56  ;;  %v2349_v35 = vpop.f32.mrf.mxu0 }
 0x275   : > { %v2945_v49 = vadd.f32 %v2944_v23, %v9392_v6  ;;  %v2700_v53 = vrot.slane %v2389_v4, 1  ;;  %v2816_v2 = vrot.slane %v2389_v4, %v9088_v56  ;;  %v2394_v0 = vadd.f32 %v7196_v10, %v2132_v60  ;;  %v11084_v60 = vld [vmem:[#allocation52_spill] sm:$0xff] }
 0x276   : > { %v3015_v21 = vadd.f32 %v3014_v25, %v2984_v58  ;;  %v2704_v27 = vsel %vm2662_vm2, %v2702_v34, %v2703_v1  ;;  %v2756_v11 = vsel %vm2662_vm2, %v2703_v1, %v2391_v24  ;;  %v2392_v20 = vadd.f32 %v2349_v35, %v2124_v41  ;;  %v7197_v9 = vpop.f32.mrf.mxu0  ;;  %v11085_v58 = vld [vmem:[#allocation51_spill] sm:$0xff] }
 0x277   : > { %v2946_v7 = vadd.f32 %v2945_v49, %v9378_v59  ;;  %v2856_v29 = vsel %vm2760_vm3, %v2820_v30, %v2756_v11  ;;  %v9415_v51 = vadd.f32 %v11083_v18, %v2704_v27  ;;  %v2701_v15 = vsel %vm2662_vm2, %v2699_v16, %v2700_v53  ;;  %v11086_v49 = vld [vmem:[#allocation32_spill] sm:$0xff] }
 0x278   : > { %v3016_v23 = vadd.f32 %v3015_v21, %v2985_v61  ;;  %v9419_v10 = vadd.f32 %v11084_v60, %v2856_v29  ;;  %v2755_v34 = vsel %vm2662_vm2, %v2700_v53, %v2389_v4  ;;  %v9423_v24 = vadd.f32 %v11085_v58, %v2701_v15  ;;  %v2352_v41 = vpop.f32.mrf.mxu0  ;;  %v11087_v58 = vld [vmem:[#allocation25_spill] sm:$0xff] }
 0x279   : > { %v2135_v25 = vadd.f32 %v7149_v32, %v9040_v14  ;;  %v2127_v1 = vadd.f32 %v2126_v54, %v9048_v26  ;;  %v2854_v30 = vsel %vm2760_vm3, %v2816_v2, %v2755_v34  ;;  %v2947_v35 = vadd.f32 %v2946_v7, %v9383_v63 }
 0x27a   : > { %v9431_v61 = vadd.f32 %v9081_v12, %v2854_v30  ;;  %v2987_v16 = vmul.f32 %v9423_v24, %v9423_v24  ;;  %v3017_v4 = vadd.f32 %v3016_v23, %v2986_v62  ;;  %v2890_v53 = vadd.f32 %v11086_v49, %v9091_v22 }
 0x27b   : > { %v2948_v21 = vadd.f32 %v2947_v35, %v9423_v24  ;;  %v2395_v14 = vadd.f32 %v7197_v9, %v2135_v25  ;;  %v2393_v32 = vadd.f32 %v2352_v41, %v2127_v1  ;;  %v2708_v54 = vrot.slane %v2394_v0, 1  ;;  %v11088_v1 = vld [vmem:[#allocation29_spill] sm:$0xff] }
 0x27c   : > { %v2988_v26 = vmul.f32 %v9431_v61, %v9431_v61  ;;  %v3018_v2 = vadd.f32 %v3017_v4, %v2987_v16  ;;  %v2705_v27 = vrot.slane %v2392_v20, 1  ;;  %v2989_v62 = vmul.f32 %v9415_v51, %v9415_v51  ;;  %v11089_v16 = vld [vmem:[#allocation26_spill] sm:$0xff] }
 0x27d   : > { %v2949_v12 = vadd.f32 %v2948_v21, %v9431_v61  ;;  %v2709_v11 = vrot.slane %v2395_v14, 1  ;;  %v2828_v7 = vrot.slane %v2395_v14, %v9088_v56  ;;  %v2706_v29 = vrot.slane %v2393_v32, 1 }
 0x27e   : > { %v2990_v22 = vmul.f32 %v9419_v10, %v9419_v10  ;;  %v3019_v9 = vadd.f32 %v3018_v2, %v2988_v26  ;;  %v2824_v18 = vrot.slane %v2393_v32, %v9088_v56 }
 0x27f   : > { %v2950_v15 = vadd.f32 %v2949_v12, %v9415_v51  ;;  %v2710_v0 = vsel %vm2662_vm2, %v2708_v54, %v2709_v11  ;;  %v2758_v20 = vsel %vm2662_vm2, %v2709_v11, %v2395_v14  ;;  %v2707_v23 = vsel %vm2662_vm2, %v2705_v27, %v2706_v29 }
 0x280   : > { %v3020_v60 = vadd.f32 %v3019_v9, %v2989_v62  ;;  %v2860_v34 = vsel %vm2760_vm3, %v2828_v7, %v2758_v20  ;;  %v9454_v41 = vadd.f32 %v11087_v58, %v2710_v0  ;;  %v2757_v25 = vsel %vm2662_vm2, %v2706_v29, %v2393_v32 }
 0x281   : > { %v9458_v30 = vadd.f32 %v11088_v1, %v2860_v34  ;;  %v2858_v35 = vsel %vm2760_vm3, %v2824_v18, %v2757_v25  ;;  %v9463_v4 = vadd.f32 %v11089_v16, %v2707_v23  ;;  %v2951_v49 = vadd.f32 %v2950_v15, %v9419_v10 }
 0x282   : > { %v9466_v21 = vadd.f32 %v2890_v53, %v2858_v35  ;;  %v3021_v14 = vadd.f32 %v3020_v60, %v2990_v22  ;;  %v2993_v12 = vmul.f32 %v9454_v41, %v9454_v41 }
 0x283   : > { %v2952_v26 = vadd.f32 %v2951_v49, %v9463_v4  ;;  %v2991_v2 = vmul.f32 %v9463_v4, %v9463_v4  ;;  %v2994_v53 = vmul.f32 %v9458_v30, %v9458_v30 }
 0x284   : > { %v2992_v32 = vmul.f32 %v9466_v21, %v9466_v21 }
 0x285   : > { %v2953_v54 = vadd.f32 %v2952_v26, %v9466_v21  ;;  %v3022_v27 = vadd.f32 %v3021_v14, %v2991_v2 }
 0x287   : > { %v2954_v11 = vadd.f32 %v2953_v54, %v9454_v41  ;;  %v3023_v7 = vadd.f32 %v3022_v27, %v2992_v32 }
 0x289   : > { %v2955_v29 = vadd.f32 %v2954_v11, %v9458_v30  ;;  %v3024_v62 = vadd.f32 %v3023_v7, %v2993_v12 }
 0x28b   : > { %v2956_v22 = vrot.slane %v2955_v29, 4  ;;  %v3025_v9 = vadd.f32 %v3024_v62, %v2994_v53 }
 0x28d   : > { %v2957_v18 = vadd.f32 %v2956_v22, %v2955_v29  ;;  %v3026_v15 = vrot.slane %v3025_v9, 4 }
 0x28f   : > { %v2958_v0 = vrot.slane %v2957_v18, 2  ;;  %v3027_v20 = vadd.f32 %v3026_v15, %v3025_v9 }
 0x291   : > { %v2959_v23 = vadd.f32 %v2958_v0, %v2957_v18  ;;  %v3028_v60 = vrot.slane %v3027_v20, 2 }
 0x293   : > { %v2960_v34 = vrot.slane %v2959_v23, 1  ;;  %v3029_v58 = vadd.f32 %v3028_v60, %v3027_v20 }
 0x295   : > { %v2961_v25 = vadd.f32 %v2960_v34, %v2959_v23  ;;  %v3030_v1 = vrot.slane %v3029_v58, 1 }
 0x297   : > { %v9480_v35 = vmul.f32 0.00390625, %v2961_v25  ;;  %v3031_v16 = vadd.f32 %v3030_v1, %v3029_v58 }
 0x299   : > { %v3032_v49 = vmul.f32 0.00390625, %v3031_v16  ;;  %v3033_v14 = vmul.f32 %v9480_v35, %v9480_v35  ;;  %v3063_v26 = vsub.f32 %v9463_v4, %v9480_v35  ;;  %v3064_v2 = vsub.f32 %v9466_v21, %v9480_v35 }
 0x29a   : > { %v3047_v27 = vsub.f32 %v9301_v39, %v9480_v35  ;;  %v3048_v12 = vsub.f32 %v9310_v17, %v9480_v35  ;;  %v3049_v11 = vsub.f32 %v9292_v31, %v9480_v35  ;;  %v3050_v7 = vsub.f32 %v9296_v28, %v9480_v35 }
 0x29b   : > { %v3034_v32 = vsub.f32 %v3032_v49, %v3033_v14  ;;  %v3051_v4 = vsub.f32 %v9349_v47, %v9480_v35  ;;  %v3052_v21 = vsub.f32 %v9354_v19, %v9480_v35  ;;  %v3053_v29 = vsub.f32 %v9340_v13, %v9480_v35 }
 0x29c   : > { %v3054_v39 = vsub.f32 %v9344_v42, %v9480_v35  ;;  %v3055_v17 = vsub.f32 %v9388_v46, %v9480_v35  ;;  %v3056_v31 = vsub.f32 %v9392_v6, %v9480_v35  ;;  %v3057_v28 = vsub.f32 %v9378_v59, %v9480_v35 }
 0x29d   : > { %v3067_v54 = vmax.f32 %v3034_v32, 0.0  ;;  %v3058_v47 = vsub.f32 %v9383_v63, %v9480_v35  ;;  %v3059_v19 = vsub.f32 %v9423_v24, %v9480_v35  ;;  %v3060_v13 = vsub.f32 %v9431_v61, %v9480_v35 }
 0x29e   : > { %v3061_v42 = vsub.f32 %v9415_v51, %v9480_v35  ;;  %v3062_v46 = vsub.f32 %v9419_v10, %v9480_v35  ;;  %v3065_v6 = vsub.f32 %v9454_v41, %v9480_v35  ;;  %v3066_v59 = vsub.f32 %v9458_v30, %v9480_v35 }
 0x29f   : > { %v3068_v53 = vadd.f32 1e-05, %v3067_v54  ;;  %v3035_v63 = vsub.f32 %v9159_v57, %v9480_v35  ;;  %v3036_v24 = vsub.f32 %v9170_v48, %v9480_v35  ;;  %v3037_v61 = vsub.f32 %v9139_v44, %v9480_v35 }
 0x2a0   : > { %v3038_v51 = vsub.f32 %v9146_v5, %v9480_v35  ;;  %v3039_v10 = vsub.f32 %v9220_v50, %v9480_v35  ;;  %v3040_v41 = vsub.f32 %v9226_v40, %v9480_v35  ;;  %v3041_v30 = vsub.f32 %v9199_v43, %v9480_v35 }
 0x2a1   : > { %7847 = vrsqrt.f32 %v3068_v53  ;;  %v3042_v57 = vsub.f32 %v9205_v36, %v9480_v35  ;;  %v3043_v48 = vsub.f32 %v9263_v45, %v9480_v35  ;;  %v3044_v44 = vsub.f32 %v9266_v8, %v9480_v35 }
 0x2a2   : > { %v3045_v5 = vsub.f32 %v9248_v3, %v9480_v35  ;;  %v3046_v50 = vsub.f32 %v9254_v33, %v9480_v35 }
 0x2ae   : > { %v7848_v62 = vpop.eup %7847 }
 0x2af   : > { %v3098_v40 = vmul.f32 %v7848_v62, %v3063_v26  ;;  %v3099_v22 = vmul.f32 %v7848_v62, %v3064_v2  ;;  %v9548_v9 = vmul.f32 %v7848_v62, %v3035_v63  ;;  %v9550_v43 = vmul.f32 %v7848_v62, %v3036_v24 }
 0x2b0   : > { %v3072_v36 = vmul.f32 %v7848_v62, %v3037_v61  ;;  %v3073_v18 = vmul.f32 %v7848_v62, %v3038_v51  ;;  %v3074_v15 = vmul.f32 %v7848_v62, %v3039_v10  ;;  %v3075_v0 = vmul.f32 %v7848_v62, %v3040_v41 }
 0x2b1   : > { %v3130_v45 = vmax.f32 %v3098_v40, 0.0  ;;  %v3131_v20 = vmax.f32 %v3099_v22, 0.0  ;;  %v3076_v23 = vmul.f32 %v7848_v62, %v3041_v30  ;;  %v3077_v8 = vmul.f32 %v7848_v62, %v3042_v57 }
 0x2b2   : > { %v3078_v60 = vmul.f32 %v7848_v62, %v3043_v48  ;;  %v3079_v34 = vmul.f32 %v7848_v62, %v3044_v44  ;;  %v3080_v3 = vmul.f32 %v7848_v62, %v3045_v5  ;;  %v3081_v58 = vmul.f32 %v7848_v62, %v3046_v50 }
 0x2b3   : > { %v9552_v25 = vpack.c.bf16 %v3131_v20, %v3130_v45  ;;  %v3082_v33 = vmul.f32 %v7848_v62, %v3047_v27  ;;  %v3083_v1 = vmul.f32 %v7848_v62, %v3048_v12  ;;  %v3084_v35 = vmul.f32 %v7848_v62, %v3049_v11 }
 0x2b4   : > { %v3085_v16 = vmul.f32 %v7848_v62, %v3050_v7  ;;  %v3086_v49 = vmul.f32 %v7848_v62, %v3051_v4  ;;  %v3087_v14 = vmul.f32 %v7848_v62, %v3052_v21  ;;  %v3088_v26 = vmul.f32 %v7848_v62, %v3053_v29 }
 0x2b5   : > { %v3089_v2 = vmul.f32 %v7848_v62, %v3054_v39  ;;  %v3090_v32 = vmul.f32 %v7848_v62, %v3055_v17  ;;  %v3091_v54 = vmul.f32 %v7848_v62, %v3056_v31  ;;  %v3092_v53 = vmul.f32 %v7848_v62, %v3057_v28 }
 0x2b6   : > { %v3093_v63 = vmul.f32 %v7848_v62, %v3058_v47  ;;  %v3094_v24 = vmul.f32 %v7848_v62, %v3059_v19  ;;  %v3095_v61 = vmul.f32 %v7848_v62, %v3060_v13  ;;  %v3096_v51 = vmul.f32 %v7848_v62, %v3061_v42 }
 0x2b7   : > { %v3097_v10 = vmul.f32 %v7848_v62, %v3062_v46  ;;  %v3100_v41 = vmul.f32 %v7848_v62, %v3065_v6  ;;  %v3101_v30 = vmul.f32 %v7848_v62, %v3066_v59  ;;  %v3102_v57 = vmax.f32 %v9548_v9, 0.0 }
 0x2b8   : > { %v3103_v27 = vmax.f32 %v9550_v43, 0.0  ;;  %v3104_v12 = vmax.f32 %v3072_v36, 0.0  ;;  %v3105_v11 = vmax.f32 %v3073_v18, 0.0  ;;  %v3106_v7 = vmax.f32 %v3074_v15, 0.0 }
 0x2b9   : > { %v3107_v4 = vmax.f32 %v3075_v0, 0.0  ;;  %v3108_v21 = vmax.f32 %v3076_v23, 0.0  ;;  %v3109_v29 = vmax.f32 %v3077_v8, 0.0  ;;  %v3110_v39 = vmax.f32 %v3078_v60, 0.0 }
 0x2ba   : > { %v3111_v17 = vmax.f32 %v3079_v34, 0.0  ;;  %v3112_v31 = vmax.f32 %v3080_v3, 0.0  ;;  %v3113_v28 = vmax.f32 %v3081_v58, 0.0  ;;  %v3114_v47 = vmax.f32 %v3082_v33, 0.0 }
 0x2bb   : > { %v3115_v19 = vmax.f32 %v3083_v1, 0.0  ;;  %v3116_v13 = vmax.f32 %v3084_v35, 0.0  ;;  %v3117_v42 = vmax.f32 %v3085_v16, 0.0  ;;  %v3118_v46 = vmax.f32 %v3086_v49, 0.0 }
 0x2bc   : > { %v3119_v6 = vmax.f32 %v3087_v14, 0.0  ;;  %v3120_v59 = vmax.f32 %v3088_v26, 0.0  ;;  %v3121_v62 = vmax.f32 %v3089_v2, 0.0  ;;  %v3122_v48 = vmax.f32 %v3090_v32, 0.0  ;;  %v7792_v14 = vld [vmem:[#allocation7 + $0x1b0] sm:$0xff]   ;;  %v7793_v2 = vld [vmem:[#allocation7 + $0x1a8] sm:$0xff]  }
 0x2bd   : > { %v3123_v44 = vmax.f32 %v3091_v54, 0.0  ;;  %v3124_v5 = vmax.f32 %v3092_v53, 0.0  ;;  %v3125_v50 = vmax.f32 %v3093_v63, 0.0  ;;  %v3126_v40 = vmax.f32 %v3094_v24, 0.0  ;;  %v7797_v26 = vld [vmem:[#allocation7 + $0x130] sm:$0xff]   ;;  %v7799_v32 = vld [vmem:[#allocation7 + $0x128] sm:$0xff]  }
 0x2be   : > { %v3127_v22 = vmax.f32 %v3095_v61, 0.0  ;;  %v3128_v9 = vmax.f32 %v3096_v51, 0.0  ;;  %v3129_v43 = vmax.f32 %v3097_v10, 0.0  ;;  %v3132_v36 = vmax.f32 %v3100_v41, 0.0  ;;  %v7794_v54 = vld [vmem:[#allocation7 + $0x1a0] sm:$0xff]   ;;  %v7798_v63 = vld [vmem:[#allocation7 + $0x190] sm:$0xff]  }
 0x2bf   : > { %v3133_v18 = vmax.f32 %v3101_v30, 0.0  ;;  %v9556_v15 = vpack.c.bf16 %v3105_v11, %v3104_v12  ;;  %v9558_v0 = vpack.c.bf16 %v3107_v4, %v3106_v7  ;;  %v9560_v45 = vpack.c.bf16 %v3109_v29, %v3108_v21  ;;  %v7800_v53 = vld [vmem:[#allocation7 + $0x120] sm:$0xff]   ;;  %v7803_v24 = vld [vmem:[#allocation7 + $0x110] sm:$0xff]   ;;  %v7801_v61 = vld [vmem:[#allocation7 + $0x188] sm:$0xff]  }
 0x2c0   : > { %v9562_v20 = vpack.c.bf16 %v3111_v17, %v3110_v39  ;;  %v9564_v23 = vpack.c.bf16 %v3113_v28, %v3112_v31  ;;  %v9566_v8 = vpack.c.bf16 %v3115_v19, %v3114_v47  ;;  %v9568_v60 = vpack.c.bf16 %v3117_v42, %v3116_v13  ;;  %v7805_v51 = vld [vmem:[#allocation7 + $0x108] sm:$0xff]   ;;  %v7804_v10 = vld [vmem:[#allocation7 + $0x180] sm:$0xff]   ;;  %v7807_v30 = vld [vmem:[#allocation7 + $0x78] sm:$0xff]  }
 0x2c1   : > { %v9570_v34 = vpack.c.bf16 %v3119_v6, %v3118_v46  ;;  %v9572_v3 = vpack.c.bf16 %v3121_v62, %v3120_v59  ;;  %v9574_v58 = vpack.c.bf16 %v3123_v44, %v3122_v48  ;;  %v9576_v33 = vpack.c.bf16 %v3125_v50, %v3124_v5  ;;  %7262 = vmatprep.mubr.bf16.mxu0 %v9556_v15  ;;  %v7806_v41 = vld [vmem:[#allocation7 + $0x100] sm:$0xff]   ;;  %v7813_v12 = vld [vmem:[#allocation7 + $0x1f0] sm:$0xff]   ;;  %v7809_v11 = vld [vmem:[#allocation7 + $0x68] sm:$0xff]  }
 0x2c2   : > { %v9579_v1 = vpack.c.bf16 %v3127_v22, %v3126_v40  ;;  %v9581_v35 = vpack.c.bf16 %v3129_v43, %v3128_v9  ;;  %v9583_v16 = vpack.c.bf16 %v3133_v18, %v3132_v36  ;;  %v9585_v49 = vpack.c.bf16 %v3103_v27, %v3102_v57  ;;  %v7812_v57 = vld [vmem:[#allocation7 + $0x1f8] sm:$0xff]   ;;  %v7808_v27 = vld [vmem:[#allocation7 + $0x70] sm:$0xff]   ;;  %v7815_v7 = vld [vmem:[#allocation7 + $0x1e8] sm:$0xff]  }
 0x2c3   : > { %v7810_v4 = vld [vmem:[#allocation7 + $0x60] sm:$0xff]   ;;  %v7811_v29 = vld [vmem:[#allocation7 + $0x58] sm:$0xff]   ;;  %v7814_v17 = vld [vmem:[#allocation7 + $0x50] sm:$0xff]  }
 0x2c4   : > { %7214 = vmatprep.mubr.bf16.mxu1 %v9585_v49  ;;  %7263 = vmatmul.mubr.bf16.vlgmr.msra.gmra.mxu0 %v9585_v49  ;;  %v7816_v21 = vld [vmem:[#allocation7 + $0x1e0] sm:$0xff]   ;;  %v7818_v39 = vld [vmem:[#allocation7 + $0x1d8] sm:$0xff]   ;;  %v7819_v31 = vld [vmem:[#allocation7 + $0x1d0] sm:$0xff]  }
 0x2c5   : > { %7215 = vmatmul.mubr.bf16.vlgmr.msra.gmra.mxu1 %v9556_v15  ;;  %7266 = vmatprep.mubr.bf16.mxu0 %v9556_v15  ;;  %v7817_v28 = vld [vmem:[#allocation7 + $0x48] sm:$0xff]   ;;  %v7820_v19 = vld [vmem:[#allocation7 + $0x40] sm:$0xff]   ;;  %v7823_v42 = vld [vmem:[#allocation7 + $0x178] sm:$0xff]  }
 0x2c6   : > { %7218 = vmatprep.mubr.bf16.mxu1 %v9558_v0  ;;  %7295 = vmatpush3.bf16.msra.mxu1 %v9150_v55  ;;  %v7795_v55 = vld [vmem:[#allocation7 + $0x198] sm:$0xff]   ;;  %v7821_v47 = vld [vmem:[#allocation7 + $0x1c8] sm:$0xff]   ;;  %v7822_v13 = vld [vmem:[#allocation7 + $0x1c0] sm:$0xff]  }
 0x2c7   : > { %7296 = vmatprep.subr.bf16.mxu1 %v7792_v14  ;;  %7343 = vmatpush3.bf16.msra.mxu0 %v9325_v37  ;;  %v7802_v37 = vld [vmem:[#allocation7 + $0x118] sm:$0xff]   ;;  %v7824_v6 = vld [vmem:[#allocation7 + $0x170] sm:$0xff]   ;;  %v7825_v62 = vld [vmem:[#allocation7 + $0x168] sm:$0xff]  }
 0x2c8   : > { %7344 = vmatprep.subr.bf16.mxu0 %v7797_v26  ;;  %v7828_v46 = vld [vmem:[#allocation7 + $0xb8] sm:$0xff]   ;;  %v7829_v59 = vld [vmem:[#allocation7 + $0xb0] sm:$0xff]   ;;  %v7831_v48 = vld [vmem:[#allocation7 + $0xa8] sm:$0xff]  }
 0x2c9   : > { %v7826_v44 = vld [vmem:[#allocation7 + $0x160] sm:$0xff]   ;;  %v7827_v50 = vld [vmem:[#allocation7 + $0x158] sm:$0xff]   ;;  %v7830_v22 = vld [vmem:[#allocation7 + $0x150] sm:$0xff]  }
 0x2ca   : > { %7297 = vmatpush3.bf16.msra.mxu1 %v7792_v14  ;;  %v7832_v5 = vld [vmem:[#allocation7 + $0xa0] sm:$0xff]   ;;  %v7834_v40 = vld [vmem:[#allocation7 + $0x98] sm:$0xff]   ;;  %v7835_v9 = vld [vmem:[#allocation7 + $0x90] sm:$0xff]  }
 0x2cb   : > { %7298 = vmatprep.subr.bf16.mxu1 %v7793_v2  ;;  %7345 = vmatpush3.bf16.msra.mxu0 %v7797_v26  ;;  %v7833_v43 = vld [vmem:[#allocation7 + $0x148] sm:$0xff]   ;;  %v7836_v18 = vld [vmem:[#allocation7 + $0x140] sm:$0xff]   ;;  %v7839_v26 = vld [vmem:[#allocation7 + $0x238] sm:$0xff]  }
 0x2cc   : > { %7267 = vmatmul.mubr.bf16.gmra.mxu0 %v9558_v0  ;;  %7346 = vmatprep.subr.bf16.mxu0 %v7799_v32  ;;  %v7837_v36 = vld [vmem:[#allocation7 + $0x88] sm:$0xff]   ;;  %v7838_v14 = vld [vmem:[#allocation7 + $0x80] sm:$0xff]  }
 0x2cd   : > { %7219 = vmatmul.mubr.bf16.gmra.mxu1 %v9560_v45  ;;  %7270 = vmatprep.mubr.bf16.mxu0 %v9560_v45 }
 0x2ce   : > { %7222 = vmatprep.mubr.bf16.mxu1 %v9562_v20  ;;  %7299 = vmatpush3.bf16.msra.mxu1 %v7793_v2  ;;  %v7840_v2 = vld [vmem:[#allocation7 + $0x230] sm:$0xff]  }
 0x2cf   : > { %7300 = vmatprep.subr.bf16.mxu1 %v7794_v54  ;;  %7347 = vmatpush3.bf16.msra.mxu0 %v7799_v32 }
 0x2d0   : > { %7348 = vmatprep.subr.bf16.mxu0 %v7800_v53 }
 0x2d2   : > { %7301 = vmatpush3.bf16.msra.mxu1 %v7794_v54 }
 0x2d3   : > { %7302 = vmatprep.subr.bf16.mxu1 %v7795_v55  ;;  %7349 = vmatpush3.bf16.msra.mxu0 %v7800_v53 }
 0x2d4   : > { %7271 = vmatmul.mubr.bf16.gmra.mxu0 %v9562_v20  ;;  %7350 = vmatprep.subr.bf16.mxu0 %v7802_v37 }
 0x2d5   : > { %7223 = vmatmul.mubr.bf16.gmra.mxu1 %v9564_v23  ;;  %7274 = vmatprep.mubr.bf16.mxu0 %v9564_v23 }
 0x2d6   : > { %7226 = vmatprep.mubr.bf16.mxu1 %v9566_v8  ;;  %7303 = vmatpush3.bf16.msra.mxu1 %v7795_v55 }
 0x2d7   : > { %7304 = vmatprep.subr.bf16.mxu1 %v7798_v63  ;;  %7351 = vmatpush3.bf16.msra.mxu0 %v7802_v37 }
 0x2d8   : > { %7352 = vmatprep.subr.bf16.mxu0 %v7803_v24 }
 0x2da   : > { %7305 = vmatpush3.bf16.msra.mxu1 %v7798_v63  ;;  %v7841_v63 = vld [vmem:[#allocation7 + $0x228] sm:$0xff]  }
 0x2db   : > { %7306 = vmatprep.subr.bf16.mxu1 %v7801_v61  ;;  %7353 = vmatpush3.bf16.msra.mxu0 %v7803_v24 }
 0x2dc   : > { %7275 = vmatmul.mubr.bf16.gmra.mxu0 %v9566_v8  ;;  %7354 = vmatprep.subr.bf16.mxu0 %v7805_v51 }
 0x2dd   : > { %7227 = vmatmul.mubr.bf16.gmra.mxu1 %v9568_v60  ;;  %7278 = vmatprep.mubr.bf16.mxu0 %v9568_v60 }
 0x2de   : > { %7230 = vmatprep.mubr.bf16.mxu1 %v9570_v34  ;;  %7307 = vmatpush3.bf16.msra.mxu1 %v7801_v61 }
 0x2df   : > { %7308 = vmatprep.subr.bf16.mxu1 %v7804_v10  ;;  %7355 = vmatpush3.bf16.msra.mxu0 %v7805_v51 }
 0x2e0   : > { %7356 = vmatprep.subr.bf16.mxu0 %v7806_v41 }
 0x2e2   : > { %7309 = vmatpush3.bf16.msra.mxu1 %v7804_v10 }
 0x2e3   : > { %7357 = vmatpush3.bf16.msra.mxu0 %v7806_v41  ;;  %7390 = vmatprep.subr.bf16.mxu1 %v7807_v30 }
 0x2e4   : > { %7279 = vmatmul.mubr.bf16.gmra.mxu0 %v9570_v34  ;;  %7438 = vmatprep.subr.bf16.mxu0 %v7812_v57 }
 0x2e5   : > { %7231 = vmatmul.mubr.bf16.gmra.mxu1 %v9572_v3  ;;  %7282 = vmatprep.mubr.bf16.mxu0 %v9572_v3 }
 0x2e6   : > { %7234 = vmatprep.mubr.bf16.mxu1 %v9574_v58 }
 0x2ec   : > { %7283 = vmatmul.mubr.bf16.gmra.mxu0 %v9574_v58 }
 0x2ed   : > { %7235 = vmatmul.mubr.bf16.gmra.mxu1 %v9576_v33  ;;  %7286 = vmatprep.mubr.bf16.mxu0 %v9576_v33 }
 0x2ee   : > { %7238 = vmatprep.mubr.bf16.mxu1 %v9579_v1 }
 0x2f4   : > { %7287 = vmatmul.mubr.bf16.gmra.mxu0 %v9579_v1 }
 0x2f5   : > { %7239 = vmatmul.mubr.bf16.gmra.mxu1 %v9581_v35  ;;  %7290 = vmatprep.mubr.bf16.mxu0 %v9581_v35 }
 0x2f6   : > { %7242 = vmatprep.mubr.bf16.mxu1 %v9552_v25 }
 0x2fc   : > { %7291 = vmatmul.mubr.bf16.gmra.mxu0 %v9552_v25 }
 0x2fd   : > { %7243 = vmatmul.mubr.bf16.gmra.mxu1 %v9583_v16  ;;  %7358 = vmatprep.mubr.bf16.mxu0 %v9585_v49 }
 0x2fe   : > { %7310 = vmatprep.mubr.bf16.mxu1 %v9556_v15 }
 0x304   : > { %7359 = vmatmul.mubr.bf16.vlgmr.msra.gmra.mxu0 %v9556_v15 }
 0x305   : > { %7311 = vmatmul.mubr.bf16.vlgmr.msra.gmra.mxu1 %v9558_v0  ;;  %7362 = vmatprep.mubr.bf16.mxu0 %v9558_v0 }
 0x306   : > { %7314 = vmatprep.mubr.bf16.mxu1 %v9560_v45  ;;  %7391 = vmatpush3.bf16.msra.mxu1 %v7807_v30  ;;  %v7842_v30 = vld [vmem:[#allocation7 + $0x220] sm:$0xff]  }
 0x307   : > { %7392 = vmatprep.subr.bf16.mxu1 %v7808_v27  ;;  %7439 = vmatpush3.bf16.msra.mxu0 %v7812_v57 }
 0x308   : > { %7440 = vmatprep.subr.bf16.mxu0 %v7813_v12 }
 0x30a   : > { %7393 = vmatpush3.bf16.msra.mxu1 %v7808_v27 }
 0x30b   : > { %7394 = vmatprep.subr.bf16.mxu1 %v7809_v11  ;;  %7441 = vmatpush3.bf16.msra.mxu0 %v7813_v12 }
 0x30c   : > { %7363 = vmatmul.mubr.bf16.gmra.mxu0 %v9560_v45  ;;  %7442 = vmatprep.subr.bf16.mxu0 %v7815_v7 }
 0x30d   : > { %7315 = vmatmul.mubr.bf16.gmra.mxu1 %v9562_v20  ;;  %7366 = vmatprep.mubr.bf16.mxu0 %v9562_v20 }
 0x30e   : > { %7318 = vmatprep.mubr.bf16.mxu1 %v9564_v23  ;;  %7395 = vmatpush3.bf16.msra.mxu1 %v7809_v11 }
 0x30f   : > { %7396 = vmatprep.subr.bf16.mxu1 %v7810_v4  ;;  %7443 = vmatpush3.bf16.msra.mxu0 %v7815_v7 }
 0x310   : > { %7444 = vmatprep.subr.bf16.mxu0 %v7816_v21 }
 0x312   : > { %7397 = vmatpush3.bf16.msra.mxu1 %v7810_v4 }
 0x313   : > { %7398 = vmatprep.subr.bf16.mxu1 %v7811_v29  ;;  %7445 = vmatpush3.bf16.msra.mxu0 %v7816_v21  ;;  %v7843_v21 = vld [vmem:[#allocation7 + $0x218] sm:$0xff]  }
 0x314   : > { %7367 = vmatmul.mubr.bf16.gmra.mxu0 %v9564_v23  ;;  %7446 = vmatprep.subr.bf16.mxu0 %v7818_v39 }
 0x315   : > { %7319 = vmatmul.mubr.bf16.gmra.mxu1 %v9566_v8  ;;  %7370 = vmatprep.mubr.bf16.mxu0 %v9566_v8 }
 0x316   : > { %7322 = vmatprep.mubr.bf16.mxu1 %v9568_v60  ;;  %7399 = vmatpush3.bf16.msra.mxu1 %v7811_v29 }
 0x317   : > { %7400 = vmatprep.subr.bf16.mxu1 %v7814_v17  ;;  %7447 = vmatpush3.bf16.msra.mxu0 %v7818_v39 }
 0x318   : > { %7448 = vmatprep.subr.bf16.mxu0 %v7819_v31 }
 0x31a   : > { %7401 = vmatpush3.bf16.msra.mxu1 %v7814_v17 }
 0x31b   : > { %7402 = vmatprep.subr.bf16.mxu1 %v7817_v28  ;;  %7449 = vmatpush3.bf16.msra.mxu0 %v7819_v31 }
 0x31c   : > { %7371 = vmatmul.mubr.bf16.gmra.mxu0 %v9568_v60  ;;  %7450 = vmatprep.subr.bf16.mxu0 %v7821_v47 }
 0x31d   : > { %7323 = vmatmul.mubr.bf16.gmra.mxu1 %v9570_v34  ;;  %7374 = vmatprep.mubr.bf16.mxu0 %v9570_v34 }
 0x31e   : > { %7326 = vmatprep.mubr.bf16.mxu1 %v9572_v3  ;;  %7403 = vmatpush3.bf16.msra.mxu1 %v7817_v28 }
 0x31f   : > { %7404 = vmatprep.subr.bf16.mxu1 %v7820_v19  ;;  %7451 = vmatpush3.bf16.msra.mxu0 %v7821_v47 }
 0x320   : > { %7452 = vmatprep.subr.bf16.mxu0 %v7822_v13 }
 0x322   : > { %7405 = vmatpush3.bf16.msra.mxu1 %v7820_v19  ;;  %v7844_v19 = vld [vmem:[#allocation7 + $0x210] sm:$0xff]  }
 0x323   : > { %7453 = vmatpush3.bf16.msra.mxu0 %v7822_v13  ;;  %7486 = vmatprep.subr.bf16.mxu1 %v7823_v42 }
 0x324   : > { %7375 = vmatmul.mubr.bf16.gmra.mxu0 %v9572_v3  ;;  %7534 = vmatprep.subr.bf16.mxu0 %v7828_v46 }
 0x325   : > { %7327 = vmatmul.mubr.bf16.gmra.mxu1 %v9574_v58  ;;  %7378 = vmatprep.mubr.bf16.mxu0 %v9574_v58 }
 0x326   : > { %7330 = vmatprep.mubr.bf16.mxu1 %v9576_v33 }
 0x32c   : > { %7379 = vmatmul.mubr.bf16.gmra.mxu0 %v9576_v33 }
 0x32d   : > { %7331 = vmatmul.mubr.bf16.gmra.mxu1 %v9579_v1  ;;  %7382 = vmatprep.mubr.bf16.mxu0 %v9579_v1 }
 0x32e   : > { %7334 = vmatprep.mubr.bf16.mxu1 %v9581_v35 }
 0x334   : > { %7383 = vmatmul.mubr.bf16.gmra.mxu0 %v9581_v35 }
 0x335   : > { %7335 = vmatmul.mubr.bf16.gmra.mxu1 %v9552_v25  ;;  %7386 = vmatprep.mubr.bf16.mxu0 %v9552_v25 }
 0x336   : > { %7338 = vmatprep.mubr.bf16.mxu1 %v9583_v16 }
 0x33c   : > { %7387 = vmatmul.mubr.bf16.gmra.mxu0 %v9583_v16 }
 0x33d   : > { %7339 = vmatmul.mubr.bf16.gmra.mxu1 %v9552_v25  ;;  %7454 = vmatprep.mubr.bf16.mxu0 %v9556_v15 }
 0x33e   : > { %7406 = vmatprep.mubr.bf16.mxu1 %v9556_v15 }
 0x344   : > { %7455 = vmatmul.mubr.bf16.vlgmr.msra.gmra.mxu0 %v9558_v0 }
 0x345   : > { %7407 = vmatmul.mubr.bf16.vlgmr.msra.gmra.mxu1 %v9585_v49  ;;  %7458 = vmatprep.mubr.bf16.mxu0 %v9560_v45 }
 0x346   : > { %7410 = vmatprep.mubr.bf16.mxu1 %v9556_v15  ;;  %7487 = vmatpush3.bf16.msra.mxu1 %v7823_v42 }
 0x347   : > { %7488 = vmatprep.subr.bf16.mxu1 %v7824_v6  ;;  %7535 = vmatpush3.bf16.msra.mxu0 %v7828_v46 }
 0x348   : > { %7536 = vmatprep.subr.bf16.mxu0 %v7829_v59 }
 0x34a   : > { %7489 = vmatpush3.bf16.msra.mxu1 %v7824_v6 }
 0x34b   : > { %7490 = vmatprep.subr.bf16.mxu1 %v7825_v62  ;;  %7537 = vmatpush3.bf16.msra.mxu0 %v7829_v59 }
 0x34c   : > { %7459 = vmatmul.mubr.bf16.gmra.mxu0 %v9562_v20  ;;  %7538 = vmatprep.subr.bf16.mxu0 %v7831_v48 }
 0x34d   : > { %7411 = vmatmul.mubr.bf16.gmra.mxu1 %v9558_v0  ;;  %7462 = vmatprep.mubr.bf16.mxu0 %v9564_v23 }
 0x34e   : > { %7414 = vmatprep.mubr.bf16.mxu1 %v9560_v45  ;;  %7491 = vmatpush3.bf16.msra.mxu1 %v7825_v62 }
 0x34f   : > { %7492 = vmatprep.subr.bf16.mxu1 %v7826_v44  ;;  %7539 = vmatpush3.bf16.msra.mxu0 %v7831_v48  ;;  %v7845_v48 = vld [vmem:[#allocation7 + $0x208] sm:$0xff]  }
 0x350   : > { %7540 = vmatprep.subr.bf16.mxu0 %v7832_v5 }
 0x352   : > { %7493 = vmatpush3.bf16.msra.mxu1 %v7826_v44 }
 0x353   : > { %7494 = vmatprep.subr.bf16.mxu1 %v7827_v50  ;;  %7541 = vmatpush3.bf16.msra.mxu0 %v7832_v5 }
 0x354   : > { %7463 = vmatmul.mubr.bf16.gmra.mxu0 %v9566_v8  ;;  %7542 = vmatprep.subr.bf16.mxu0 %v7834_v40 }
 0x355   : > { %7415 = vmatmul.mubr.bf16.gmra.mxu1 %v9562_v20  ;;  %7466 = vmatprep.mubr.bf16.mxu0 %v9568_v60 }
 0x356   : > { %7418 = vmatprep.mubr.bf16.mxu1 %v9564_v23  ;;  %7495 = vmatpush3.bf16.msra.mxu1 %v7827_v50 }
 0x357   : > { %7496 = vmatprep.subr.bf16.mxu1 %v7830_v22  ;;  %7543 = vmatpush3.bf16.msra.mxu0 %v7834_v40 }
 0x358   : > { %7544 = vmatprep.subr.bf16.mxu0 %v7835_v9 }
 0x35a   : > { %7497 = vmatpush3.bf16.msra.mxu1 %v7830_v22 }
 0x35b   : > { %7498 = vmatprep.subr.bf16.mxu1 %v7833_v43  ;;  %7545 = vmatpush3.bf16.msra.mxu0 %v7835_v9 }
 0x35c   : > { %7467 = vmatmul.mubr.bf16.gmra.mxu0 %v9570_v34  ;;  %7546 = vmatprep.subr.bf16.mxu0 %v7837_v36 }
 0x35d   : > { %7419 = vmatmul.mubr.bf16.gmra.mxu1 %v9566_v8  ;;  %7470 = vmatprep.mubr.bf16.mxu0 %v9572_v3 }
 0x35e   : > { %7422 = vmatprep.mubr.bf16.mxu1 %v9568_v60  ;;  %7499 = vmatpush3.bf16.msra.mxu1 %v7833_v43  ;;  %v7846_v43 = vld [vmem:[#allocation7 + $0x200] sm:$0xff]  }
 0x35f   : > { %7500 = vmatprep.subr.bf16.mxu1 %v7836_v18  ;;  %7547 = vmatpush3.bf16.msra.mxu0 %v7837_v36 }
 0x360   : > { %7548 = vmatprep.subr.bf16.mxu0 %v7838_v14 }
 0x362   : > { %7501 = vmatpush3.bf16.msra.mxu1 %v7836_v18 }
 0x363   : > { %7549 = vmatpush3.bf16.msra.mxu0 %v7838_v14  ;;  %7582 = vmatprep.subr.bf16.mxu1 %v7839_v26 }
 0x364   : > { %7471 = vmatmul.mubr.bf16.gmra.mxu0 %v9574_v58 }
 0x365   : > { %7423 = vmatmul.mubr.bf16.gmra.mxu1 %v9570_v34  ;;  %7474 = vmatprep.mubr.bf16.mxu0 %v9576_v33 }
 0x366   : > { %7426 = vmatprep.mubr.bf16.mxu1 %v9572_v3 }
 0x36c   : > { %7475 = vmatmul.mubr.bf16.gmra.mxu0 %v9579_v1 }
 0x36d   : > { %7427 = vmatmul.mubr.bf16.gmra.mxu1 %v9574_v58  ;;  %7478 = vmatprep.mubr.bf16.mxu0 %v9581_v35 }
 0x36e   : > { %7430 = vmatprep.mubr.bf16.mxu1 %v9576_v33 }
 0x374   : > { %7479 = vmatmul.mubr.bf16.gmra.mxu0 %v9552_v25 }
 0x375   : > { %7431 = vmatmul.mubr.bf16.gmra.mxu1 %v9579_v1  ;;  %7482 = vmatprep.mubr.bf16.mxu0 %v9583_v16 }
 0x376   : > { %7434 = vmatprep.mubr.bf16.mxu1 %v9581_v35 }
 0x37c   : > { %7483 = vmatmul.mubr.bf16.gmra.mxu0 %v9552_v25 }
 0x37d   : > { %7435 = vmatmul.mubr.bf16.gmra.mxu1 %v9552_v25  ;;  %7550 = vmatprep.mubr.bf16.mxu0 %v9556_v15 }
 0x37e   : > { %7502 = vmatprep.mubr.bf16.mxu1 %v9585_v49 }
 0x384   : > { %v7264_v32 = vpop.f32.mrf.mxu0  ;;  %7551 = vmatmul.mubr.bf16.vlgmr.msra.gmra.mxu0 %v9585_v49 }
 0x385   : > { %v7216_v54 = vpop.f32.mrf.mxu1  ;;  %7503 = vmatmul.mubr.bf16.vlgmr.msra.gmra.mxu1 %v9556_v15  ;;  %7554 = vmatprep.mubr.bf16.mxu0 %v9556_v15 }
 0x386   : > { %v9689_v53 = vadd.f32 %v7264_v32, %v7216_v54  ;;  %7506 = vmatprep.mubr.bf16.mxu1 %v9558_v0  ;;  %7583 = vmatpush3.bf16.msra.mxu1 %v7839_v26  ;;  %v3474_v55 = vpop.f32.mrf.mxu0 }
 0x387   : > { %v3265_v37 = vpop.f32.mrf.mxu1  ;;  %7584 = vmatprep.subr.bf16.mxu1 %v7840_v2 }
 0x388   : > { %v9692_v24 = vadd.f32 %v3474_v55, %v3265_v37  ;;  %v7265_v61 = vpop.f32.mrf.mxu0 }
 0x389   : > { %v7217_v51 = vpop.f32.mrf.mxu1 }
 0x38a   : > { %v9694_v10 = vadd.f32 %v7265_v61, %v7217_v51  ;;  %v3477_v49 = vpop.f32.mrf.mxu0  ;;  %7585 = vmatpush3.bf16.msra.mxu1 %v7840_v2 }
 0x38b   : > { %v3268_v41 = vpop.f32.mrf.mxu1  ;;  %7586 = vmatprep.subr.bf16.mxu1 %v7841_v63 }
 0x38c   : > { %v9696_v57 = vadd.f32 %v3477_v49, %v3268_v41  ;;  %v7268_v27 = vpop.f32.mrf.mxu0  ;;  %7555 = vmatmul.mubr.bf16.gmra.mxu0 %v9558_v0 }
 0x38d   : > { %v7220_v12 = vpop.f32.mrf.mxu1  ;;  %7507 = vmatmul.mubr.bf16.gmra.mxu1 %v9560_v45  ;;  %7558 = vmatprep.mubr.bf16.mxu0 %v9560_v45 }
 0x38e   : > { %v9701_v11 = vadd.f32 %v7268_v27, %v7220_v12  ;;  %7510 = vmatprep.mubr.bf16.mxu1 %v9562_v20  ;;  %v3490_v7 = vpop.f32.mrf.mxu0  ;;  %7587 = vmatpush3.bf16.msra.mxu1 %v7841_v63 }
 0x38f   : > { %v3281_v4 = vpop.f32.mrf.mxu1  ;;  %7588 = vmatprep.subr.bf16.mxu1 %v7842_v30 }
 0x390   : > { %v9704_v29 = vadd.f32 %v3490_v7, %v3281_v4  ;;  %v7269_v39 = vpop.f32.mrf.mxu0 }
 0x391   : > { %v7221_v17 = vpop.f32.mrf.mxu1 }
 0x392   : > { %v9706_v31 = vadd.f32 %v7269_v39, %v7221_v17  ;;  %v3493_v28 = vpop.f32.mrf.mxu0  ;;  %7589 = vmatpush3.bf16.msra.mxu1 %v7842_v30 }
 0x393   : > { %v3284_v47 = vpop.f32.mrf.mxu1  ;;  %7590 = vmatprep.subr.bf16.mxu1 %v7843_v21 }
 0x394   : > { %v9708_v13 = vadd.f32 %v3493_v28, %v3284_v47  ;;  %v7272_v42 = vpop.f32.mrf.mxu0  ;;  %7559 = vmatmul.mubr.bf16.gmra.mxu0 %v9562_v20 }
 0x395   : > { %v7224_v46 = vpop.f32.mrf.mxu1  ;;  %7511 = vmatmul.mubr.bf16.gmra.mxu1 %v9564_v23  ;;  %7562 = vmatprep.mubr.bf16.mxu0 %v9564_v23 }
 0x396   : > { %v9713_v6 = vadd.f32 %v7272_v42, %v7224_v46  ;;  %7514 = vmatprep.mubr.bf16.mxu1 %v9566_v8  ;;  %v3506_v59 = vpop.f32.mrf.mxu0  ;;  %7591 = vmatpush3.bf16.msra.mxu1 %v7843_v21 }
 0x397   : > { %v3297_v62 = vpop.f32.mrf.mxu1  ;;  %7592 = vmatprep.subr.bf16.mxu1 %v7844_v19 }
 0x398   : > { %v9716_v44 = vadd.f32 %v3506_v59, %v3297_v62  ;;  %v7273_v5 = vpop.f32.mrf.mxu0 }
 0x399   : > { %v7225_v50 = vpop.f32.mrf.mxu1 }
 0x39a   : > { %v9718_v40 = vadd.f32 %v7273_v5, %v7225_v50  ;;  %v3509_v22 = vpop.f32.mrf.mxu0  ;;  %7593 = vmatpush3.bf16.msra.mxu1 %v7844_v19 }
 0x39b   : > { %v3300_v9 = vpop.f32.mrf.mxu1  ;;  %7594 = vmatprep.subr.bf16.mxu1 %v7845_v48 }
 0x39c   : > { %v9720_v36 = vadd.f32 %v3509_v22, %v3300_v9  ;;  %v7276_v18 = vpop.f32.mrf.mxu0  ;;  %7563 = vmatmul.mubr.bf16.gmra.mxu0 %v9566_v8 }
 0x39d   : > { %v7228_v14 = vpop.f32.mrf.mxu1  ;;  %7515 = vmatmul.mubr.bf16.gmra.mxu1 %v9568_v60  ;;  %7566 = vmatprep.mubr.bf16.mxu0 %v9568_v60 }
 0x39e   : > { %v9725_v26 = vadd.f32 %v7276_v18, %v7228_v14  ;;  %7518 = vmatprep.mubr.bf16.mxu1 %v9570_v34  ;;  %v3522_v2 = vpop.f32.mrf.mxu0  ;;  %7595 = vmatpush3.bf16.msra.mxu1 %v7845_v48 }
 0x39f   : > { %v3313_v32 = vpop.f32.mrf.mxu1  ;;  %7596 = vmatprep.subr.bf16.mxu1 %v7846_v43 }
 0x3a0   : > { %v9728_v54 = vadd.f32 %v3522_v2, %v3313_v32  ;;  %v7277_v55 = vpop.f32.mrf.mxu0 }
 0x3a1   : > { %v7229_v37 = vpop.f32.mrf.mxu1 }
 0x3a2   : > { %v9730_v63 = vadd.f32 %v7277_v55, %v7229_v37  ;;  %v3525_v61 = vpop.f32.mrf.mxu0  ;;  %7597 = vmatpush3.bf16.msra.mxu1 %v7846_v43 }
 0x3a3   : > { %v3316_v51 = vpop.f32.mrf.mxu1 }
 0x3a4   : > { %v9732_v49 = vadd.f32 %v3525_v61, %v3316_v51  ;;  %v7280_v41 = vpop.f32.mrf.mxu0  ;;  %7567 = vmatmul.mubr.bf16.gmra.mxu0 %v9570_v34 }
 0x3a5   : > { %v7232_v30 = vpop.f32.mrf.mxu1  ;;  %7519 = vmatmul.mubr.bf16.gmra.mxu1 %v9572_v3  ;;  %7570 = vmatprep.mubr.bf16.mxu0 %v9572_v3 }
 0x3a6   : > { %v9737_v27 = vadd.f32 %v7280_v41, %v7232_v30  ;;  %7522 = vmatprep.mubr.bf16.mxu1 %v9574_v58  ;;  %v3538_v12 = vpop.f32.mrf.mxu0 }
 0x3a7   : > { %v3329_v7 = vpop.f32.mrf.mxu1 }
 0x3a8   : > { %v9740_v4 = vadd.f32 %v3538_v12, %v3329_v7  ;;  %v7281_v21 = vpop.f32.mrf.mxu0 }
 0x3a9   : > { %v7233_v39 = vpop.f32.mrf.mxu1 }
 0x3aa   : > { %v9742_v17 = vadd.f32 %v7281_v21, %v7233_v39  ;;  %v3541_v28 = vpop.f32.mrf.mxu0 }
 0x3ab   : > { %v3332_v47 = vpop.f32.mrf.mxu1 }
 0x3ac   : > { %v9744_v19 = vadd.f32 %v3541_v28, %v3332_v47  ;;  %v7284_v42 = vpop.f32.mrf.mxu0  ;;  %7571 = vmatmul.mubr.bf16.gmra.mxu0 %v9574_v58 }
 0x3ad   : > { %v7236_v46 = vpop.f32.mrf.mxu1  ;;  %7523 = vmatmul.mubr.bf16.gmra.mxu1 %v9576_v33  ;;  %7574 = vmatprep.mubr.bf16.mxu0 %v9576_v33 }
 0x3ae   : > { %v9749_v59 = vadd.f32 %v7284_v42, %v7236_v46  ;;  %7526 = vmatprep.mubr.bf16.mxu1 %v9579_v1  ;;  %v3554_v62 = vpop.f32.mrf.mxu0 }
 0x3af   : > { %v3345_v48 = vpop.f32.mrf.mxu1 }
 0x3b0   : > { %v9752_v5 = vadd.f32 %v3554_v62, %v3345_v48  ;;  %v7285_v50 = vpop.f32.mrf.mxu0 }
 0x3b1   : > { %v7237_v22 = vpop.f32.mrf.mxu1 }
 0x3b2   : > { %v9754_v9 = vadd.f32 %v7285_v50, %v7237_v22  ;;  %v3557_v43 = vpop.f32.mrf.mxu0 }
 0x3b3   : > { %v3348_v18 = vpop.f32.mrf.mxu1 }
 0x3b4   : > { %v9756_v14 = vadd.f32 %v3557_v43, %v3348_v18  ;;  %v7288_v2 = vpop.f32.mrf.mxu0  ;;  %7575 = vmatmul.mubr.bf16.gmra.mxu0 %v9579_v1 }
 0x3b5   : > { %v7240_v32 = vpop.f32.mrf.mxu1  ;;  %7527 = vmatmul.mubr.bf16.gmra.mxu1 %v9581_v35  ;;  %7578 = vmatprep.mubr.bf16.mxu0 %v9581_v35 }
 0x3b6   : > { %v9761_v55 = vadd.f32 %v7288_v2, %v7240_v32  ;;  %7530 = vmatprep.mubr.bf16.mxu1 %v9552_v25  ;;  %v3570_v37 = vpop.f32.mrf.mxu0 }
 0x3b7   : > { %v3361_v61 = vpop.f32.mrf.mxu1 }
 0x3b8   : > { %v9764_v51 = vadd.f32 %v3570_v37, %v3361_v61  ;;  %v7289_v41 = vpop.f32.mrf.mxu0 }
 0x3b9   : > { %v7241_v30 = vpop.f32.mrf.mxu1 }
 0x3ba   : > { %v9766_v12 = vadd.f32 %v7289_v41, %v7241_v30  ;;  %v3573_v7 = vpop.f32.mrf.mxu0 }
 0x3bb   : > { %v3364_v21 = vpop.f32.mrf.mxu1 }
 0x3bc   : > { %v9768_v39 = vadd.f32 %v3573_v7, %v3364_v21  ;;  %v7292_v28 = vpop.f32.mrf.mxu0  ;;  %7579 = vmatmul.mubr.bf16.gmra.mxu0 %v9552_v25 }
 0x3bd   : > { %v7244_v47 = vpop.f32.mrf.mxu1  ;;  %7531 = vmatmul.mubr.bf16.gmra.mxu1 %v9583_v16 }
 0x3be   : > { %v9772_v42 = vadd.f32 %v7292_v28, %v7244_v47  ;;  %7598 = vmatprep.mubr.bf16.mxu1 %v9556_v15  ;;  %v3586_v46 = vpop.f32.mrf.mxu0 }
 0x3bf   : > { %v3377_v62 = vpop.f32.mrf.mxu1 }
 0x3c0   : > { %v9775_v48 = vadd.f32 %v3586_v46, %v3377_v62  ;;  %v7293_v50 = vpop.f32.mrf.mxu0 }
 0x3c1   : > { %v7245_v22 = vpop.f32.mrf.mxu1 }
 0x3c2   : > { %v9777_v43 = vadd.f32 %v7293_v50, %v7245_v22  ;;  %v3589_v18 = vpop.f32.mrf.mxu0 }
 0x3c3   : > { %v3380_v2 = vpop.f32.mrf.mxu1 }
 0x3c4   : > { %v9779_v32 = vadd.f32 %v3589_v18, %v3380_v2  ;;  %v9781_v37 = vpop.f32.mrf.mxu0 }
 0x3c5   : > { %v7312_v61 = vpop.f32.mrf.mxu1  ;;  %7599 = vmatmul.mubr.bf16.vlgmr.msra.gmra.mxu1 %v9558_v0 }
 0x3c6   : > { %v9785_v41 = vadd.f32 %v7312_v61, %v9689_v53  ;;  %7602 = vmatprep.mubr.bf16.mxu1 %v9560_v45  ;;  %v9788_v15 = vpop.f32.mrf.mxu0 }
 0x3c7   : > { %v3700_v30 = vpop.f32.mrf.mxu1 }
 0x3c8   : > { %v9791_v7 = vadd.f32 %v3700_v30, %v9692_v24  ;;  %v9793_v21 = vpop.f32.mrf.mxu0  ;;  %v10918_v0 = vrot.slane %v9785_v41, 7 }
 0x3c9   : > { %v7313_v28 = vpop.f32.mrf.mxu1 }
 0x3ca   : > { %v3830_v47 = vadd.f32 %v7313_v28, %v9694_v10  ;;  %v9796_v46 = vpop.f32.mrf.mxu0  ;;  %v10919_v24 = vrot.slane %v9791_v7, 7 }
 0x3cb   : > { %v3703_v62 = vpop.f32.mrf.mxu1 }
 0x3cc   : > { %v5315_v53 = vrot.slane %v3830_v47, 7  ;;  %v3828_v50 = vadd.f32 %v3703_v62, %v9696_v57  ;;  %v9800_v45 = vpop.f32.mrf.mxu0 }
 0x3cd   : > { %v7316_v22 = vpop.f32.mrf.mxu1  ;;  %7603 = vmatmul.mubr.bf16.gmra.mxu1 %v9562_v20 }
 0x3ce   : > { %v5312_v18 = vrot.slane %v3828_v50, 7  ;;  %v9805_v2 = vadd.f32 %v7316_v22, %v9701_v11  ;;  %7606 = vmatprep.mubr.bf16.mxu1 %v9564_v23  ;;  %v9808_v10 = vpop.f32.mrf.mxu0  ;;  %v9813_v61 = vsel %vm2431_vm0, %v10918_v0, %v5315_v53 }
 0x3cf   : > { %v3716_v57 = vpop.f32.mrf.mxu1 }
 0x3d0   : > { %v9816_v30 = vadd.f32 %v3716_v57, %v9704_v29  ;;  %v9818_v20 = vpop.f32.mrf.mxu0  ;;  %v9823_v11 = vsel %vm2431_vm0, %v10919_v24, %v5312_v18  ;;  %v10920_v53 = vrot.slane %v9805_v2, 7 }
 0x3d1   : > { %v7317_v28 = vpop.f32.mrf.mxu1 }
 0x3d2   : > { %v3834_v23 = vadd.f32 %v7317_v28, %v9706_v31  ;;  %v9826_v47 = vpop.f32.mrf.mxu0  ;;  %v10925_v0 = vrot.slane %v9816_v30, 7 }
 0x3d3   : > { %v3719_v62 = vpop.f32.mrf.mxu1 }
 0x3d4   : > { %v5321_v50 = vrot.slane %v3834_v23, 7  ;;  %v3832_v22 = vadd.f32 %v3719_v62, %v9708_v13  ;;  %v9830_v29 = vpop.f32.mrf.mxu0 }
 0x3d5   : > { %v7320_v57 = vpop.f32.mrf.mxu1  ;;  %7607 = vmatmul.mubr.bf16.gmra.mxu1 %v9566_v8 }
 0x3d6   : > { %v5318_v18 = vrot.slane %v3832_v22, 7  ;;  %v9835_v24 = vadd.f32 %v7320_v57, %v9713_v6  ;;  %7610 = vmatprep.mubr.bf16.mxu1 %v9568_v60  ;;  %v9838_v31 = vpop.f32.mrf.mxu0  ;;  %v9843_v28 = vsel %vm2431_vm0, %v10920_v53, %v5321_v50 }
 0x3d7   : > { %v3732_v13 = vpop.f32.mrf.mxu1 }
 0x3d8   : > { %v9846_v23 = vadd.f32 %v3732_v13, %v9716_v44  ;;  %v9848_v8 = vpop.f32.mrf.mxu0  ;;  %v9853_v6 = vsel %vm2431_vm0, %v10925_v0, %v5318_v18  ;;  %v10926_v50 = vrot.slane %v9835_v24, 7 }
 0x3d9   : > { %v7321_v62 = vpop.f32.mrf.mxu1 }
 0x3da   : > { %v3838_v60 = vadd.f32 %v7321_v62, %v9718_v40  ;;  %v9856_v22 = vpop.f32.mrf.mxu0  ;;  %v10927_v56 = vrot.slane %v9846_v23, 7 }
 0x3db   : > { %v3735_v57 = vpop.f32.mrf.mxu1 }
 0x3dc   : > { %v5327_v53 = vrot.slane %v3838_v60, 7  ;;  %v3836_v38 = vadd.f32 %v3735_v57, %v9720_v36  ;;  %v9860_v44 = vpop.f32.mrf.mxu0 }
 0x3dd   : > { %v7324_v13 = vpop.f32.mrf.mxu1  ;;  %7611 = vmatmul.mubr.bf16.gmra.mxu1 %v9570_v34 }
 0x3de   : > { %v5324_v18 = vrot.slane %v3836_v38, 7  ;;  %v9865_v0 = vadd.f32 %v7324_v13, %v9725_v26  ;;  %7614 = vmatprep.mubr.bf16.mxu1 %v9572_v3  ;;  %v9868_v40 = vpop.f32.mrf.mxu0  ;;  %v9873_v62 = vsel %vm2431_vm0, %v10926_v50, %v5327_v53 }
 0x3df   : > { %11090 = vst [vmem:[#allocation16_spill] sm:$0xff] %v9868_v40  ;;  %v3748_v36 = vpop.f32.mrf.mxu1 }
 0x3e0   : > { %v9876_v60 = vadd.f32 %v3748_v36, %v9728_v54  ;;  %v9878_v34 = vpop.f32.mrf.mxu0  ;;  %v9883_v38 = vsel %vm2431_vm0, %v10927_v56, %v5324_v18  ;;  %v10928_v53 = vrot.slane %v9865_v0, 7 }
 0x3e1   : > { %11091 = vst [vmem:[#allocation18_spill] sm:$0xff] %v9878_v34  ;;  %v7325_v26 = vpop.f32.mrf.mxu1 }
 0x3e2   : > { %v3842_v3 = vadd.f32 %v7325_v26, %v9730_v63  ;;  %v9886_v57 = vpop.f32.mrf.mxu0  ;;  %v10929_v34 = vrot.slane %v9876_v60, 7 }
 0x3e3   : > { %v3751_v13 = vpop.f32.mrf.mxu1 }
 0x3e4   : > { %v5333_v50 = vrot.slane %v3842_v3, 7  ;;  %v3840_v40 = vadd.f32 %v3751_v13, %v9732_v49  ;;  %v9890_v54 = vpop.f32.mrf.mxu0 }
 0x3e5   : > { %v7328_v36 = vpop.f32.mrf.mxu1  ;;  %7615 = vmatmul.mubr.bf16.gmra.mxu1 %v9574_v58 }
 0x3e6   : > { %v5330_v18 = vrot.slane %v3840_v40, 7  ;;  %v9895_v56 = vadd.f32 %v7328_v36, %v9737_v27  ;;  %7618 = vmatprep.mubr.bf16.mxu1 %v9576_v33  ;;  %v9898_v63 = vpop.f32.mrf.mxu0  ;;  %v9903_v26 = vsel %vm2431_vm0, %v10928_v53, %v5333_v50 }
 0x3e7   : > { %11092 = vst [vmem:[#allocation20_spill] sm:$0xff] %v9898_v63  ;;  %v3764_v49 = vpop.f32.mrf.mxu1 }
 0x3e8   : > { %v9906_v3 = vadd.f32 %v3764_v49, %v9740_v4  ;;  %v9908_v58 = vpop.f32.mrf.mxu0  ;;  %v9913_v27 = vsel %vm2431_vm0, %v10929_v34, %v5330_v18  ;;  %v10930_v50 = vrot.slane %v9895_v56, 7 }
 0x3e9   : > { %11093 = vst [vmem:[#allocation22_spill] sm:$0xff] %v9908_v58  ;;  %v7329_v40 = vpop.f32.mrf.mxu1 }
 0x3ea   : > { %v3846_v33 = vadd.f32 %v7329_v40, %v9742_v17  ;;  %v9916_v13 = vpop.f32.mrf.mxu0  ;;  %v10931_v58 = vrot.slane %v9906_v3, 7 }
 0x3eb   : > { %v3767_v36 = vpop.f32.mrf.mxu1 }
 0x3ec   : > { %v5339_v53 = vrot.slane %v3846_v33, 7  ;;  %v3844_v63 = vadd.f32 %v3767_v36, %v9744_v19  ;;  %v9920_v4 = vpop.f32.mrf.mxu0 }
 0x3ed   : > { %v7332_v49 = vpop.f32.mrf.mxu1  ;;  %7619 = vmatmul.mubr.bf16.gmra.mxu1 %v9579_v1 }
 0x3ee   : > { %v5336_v18 = vrot.slane %v3844_v63, 7  ;;  %v9925_v34 = vadd.f32 %v7332_v49, %v9749_v59  ;;  %7622 = vmatprep.mubr.bf16.mxu1 %v9581_v35  ;;  %v9928_v17 = vpop.f32.mrf.mxu0  ;;  %v9933_v40 = vsel %vm2431_vm0, %v10930_v50, %v5339_v53 }
 0x3ef   : > { %11094 = vst [vmem:[#allocation24_spill] sm:$0xff] %v9928_v17  ;;  %v3780_v19 = vpop.f32.mrf.mxu1 }
 0x3f0   : > { %v9936_v33 = vadd.f32 %v3780_v19, %v9752_v5  ;;  %v9938_v1 = vpop.f32.mrf.mxu0  ;;  %v9943_v59 = vsel %vm2431_vm0, %v10931_v58, %v5336_v18  ;;  %v10932_v53 = vrot.slane %v9925_v34, 7 }
 0x3f1   : > { %11095 = vst [vmem:[#allocation30_spill] sm:$0xff] %v9938_v1  ;;  %v7333_v63 = vpop.f32.mrf.mxu1 }
 0x3f2   : > { %v3850_v35 = vadd.f32 %v7333_v63, %v9754_v9  ;;  %v9946_v36 = vpop.f32.mrf.mxu0  ;;  %v10933_v1 = vrot.slane %v9936_v33, 7 }
 0x3f3   : > { %v3783_v49 = vpop.f32.mrf.mxu1 }
 0x3f4   : > { %v5345_v50 = vrot.slane %v3850_v35, 7  ;;  %v3848_v17 = vadd.f32 %v3783_v49, %v9756_v14  ;;  %v9950_v5 = vpop.f32.mrf.mxu0 }
 0x3f5   : > { %11096 = vst [vmem:[#allocation13_spill] sm:$0xff] %v9950_v5  ;;  %v7336_v19 = vpop.f32.mrf.mxu1  ;;  %7623 = vmatmul.mubr.bf16.gmra.mxu1 %v9552_v25 }
 0x3f6   : > { %v5342_v18 = vrot.slane %v3848_v17, 7  ;;  %v9955_v58 = vadd.f32 %v7336_v19, %v9761_v55  ;;  %7626 = vmatprep.mubr.bf16.mxu1 %v9583_v16  ;;  %v9958_v9 = vpop.f32.mrf.mxu0  ;;  %v9963_v63 = vsel %vm2431_vm0, %v10932_v53, %v5345_v50 }
 0x3f7   : > { %11097 = vst [vmem:[#allocation15_spill] sm:$0xff] %v9958_v9  ;;  %v3796_v14 = vpop.f32.mrf.mxu1 }
 0x3f8   : > { %v9966_v35 = vadd.f32 %v3796_v14, %v9764_v51  ;;  %v9968_v49 = vpop.f32.mrf.mxu0  ;;  %v9973_v55 = vsel %vm2431_vm0, %v10933_v1, %v5342_v18  ;;  %v10934_v50 = vrot.slane %v9955_v58, 7 }
 0x3f9   : > { %11099 = vst [vmem:[#allocation19_spill] sm:$0xff] %v9968_v49  ;;  %11100 = vst [vmem:[#allocation21_spill] sm:$0xff] %v9973_v55  ;;  %v7337_v17 = vpop.f32.mrf.mxu1 }
 0x3fa   : > { %11098 = vst [vmem:[#allocation17_spill] sm:$0xff] %v9966_v35  ;;  %v3854_v16 = vadd.f32 %v7337_v17, %v9766_v12  ;;  %v9976_v19 = vpop.f32.mrf.mxu0  ;;  %v10935_v49 = vrot.slane %v9966_v35, 7 }
 0x3fb   : > { %11101 = vst [vmem:[#allocation23_spill] sm:$0xff] %v9976_v19  ;;  %v3799_v9 = vpop.f32.mrf.mxu1 }
 0x3fc   : > { %v5351_v53 = vrot.slane %v3854_v16, 7  ;;  %v3852_v5 = vadd.f32 %v3799_v9, %v9768_v39  ;;  %v9980_v51 = vpop.f32.mrf.mxu0 }
 0x3fd   : > { %11102 = vst [vmem:[#allocation27_spill] sm:$0xff] %v9980_v51  ;;  %v7340_v14 = vpop.f32.mrf.mxu1  ;;  %7627 = vmatmul.mubr.bf16.gmra.mxu1 %v9552_v25 }
 0x3fe   : > { %v5348_v18 = vrot.slane %v3852_v5, 7  ;;  %v9985_v1 = vadd.f32 %v7340_v14, %v9772_v42  ;;  %v9987_v12 = vpop.f32.mrf.mxu0  ;;  %v9992_v17 = vsel %vm2431_vm0, %v10934_v50, %v5351_v53 }
 0x3ff   : > { %11104 = vst [vmem:[#allocation34_spill] sm:$0xff] %v9987_v12  ;;  %11105 = vst [vmem:[#allocation31_spill] sm:$0xff] %v9992_v17  ;;  %v3812_v16 = vpop.f32.mrf.mxu1  ;;  %v11110_v17 = vld [vmem:[#allocation28_spill] sm:$0xff] }
 0x400   : > { %11103 = vst [vmem:[#allocation60_spill] sm:$0xff] %v9985_v1  ;;  %v9995_v39 = vadd.f32 %v3812_v16, %v9775_v48  ;;  %v9997_v9 = vpop.f32.mrf.mxu0  ;;  %v10002_v25 = vsel %vm2431_vm0, %v10935_v49, %v5348_v18  ;;  %v10936_v53 = vrot.slane %v9985_v1, 7  ;;  %v11109_v16 = vrot.slane %v9785_v41, 7 }
 0x401   : > { %11106 = vst [vmem:[#allocation63_spill] sm:$0xff] %v9997_v9  ;;  %11107 = vst [vmem:[#allocation33_spill] sm:$0xff] %v10002_v25  ;;  %v7341_v42 = vpop.f32.mrf.mxu1  ;;  %v5414_v18 = vrot.slane %v9785_v41, %v11110_v17 }
 0x402   : > { %v3858_v5 = vadd.f32 %v7341_v42, %v9777_v43  ;;  %v10005_v14 = vpop.f32.mrf.mxu0  ;;  %v5392_v9 = vsel %vm2431_vm0, %v9785_v41, %v11109_v16  ;;  %v11112_v16 = vrot.slane %v9791_v7, 7 }
 0x403   : > { %11108 = vst [vmem:[#allocation53_spill] sm:$0xff] %v10005_v14  ;;  %v3815_v12 = vpop.f32.mrf.mxu1 }
 0x404   : > { %v5357_v50 = vrot.slane %v3858_v5, 7  ;;  %v3856_v51 = vadd.f32 %v3815_v12, %v9779_v32  ;;  %v7456_v48 = vpop.f32.mrf.mxu0  ;;  %v5410_v12 = vrot.slane %v9791_v7, %v11110_v17  ;;  %v5391_v41 = vsel %vm2431_vm0, %v9791_v7, %v11112_v16 }
 0x405   : > { %v7408_v49 = vpop.f32.mrf.mxu1 }
 0x406   : > { %v5354_v42 = vrot.slane %v3856_v51, 7  ;;  %v4193_v14 = vadd.f32 %v7408_v49, %v9781_v37  ;;  %v4410_v25 = vpop.f32.mrf.mxu0  ;;  %v10020_v32 = vsel %vm2431_vm0, %v10936_v53, %v5357_v50  ;;  %v11113_v37 = vrot.slane %v9995_v39, 7 }
 0x407   : > { %11111 = vst [vmem:[#allocation66_spill] sm:$0xff] %v10020_v32  ;;  %v4184_v5 = vpop.f32.mrf.mxu1  ;;  %v5473_v50 = vsel %vm2528_vm1, %v5414_v18, %v5392_v9  ;;  %v5471_v7 = vsel %vm2528_vm1, %v5410_v12, %v5391_v41  ;;  %v5422_v9 = vrot.slane %v9805_v2, %v11110_v17 }
 0x408   : > { %v4539_v19 = vadd.f32 %v7456_v48, %v4193_v14  ;;  %v4185_v51 = vadd.f32 %v4184_v5, %v9788_v15  ;;  %v7457_v43 = vpop.f32.mrf.mxu0  ;;  %v10032_v49 = vsel %vm2431_vm0, %v11113_v37, %v5354_v42 }
 0x409   : > { %v7409_v53 = vpop.f32.mrf.mxu1 }
 0x40a   : > { %v10036_v32 = vadd.f32 %v5473_v50, %v4539_v19  ;;  %v4537_v1 = vadd.f32 %v4410_v25, %v4185_v51  ;;  %v4196_v55 = vadd.f32 %v7409_v53, %v9793_v21  ;;  %v4413_v35 = vpop.f32.mrf.mxu0  ;;  %v11114_v19 = vrot.slane %v9805_v2, 7 }
 0x40b   : > { %v4187_v15 = vpop.f32.mrf.mxu1 }
 0x40c   : > { %v10041_v14 = vadd.f32 %v5471_v7, %v4537_v1  ;;  %v4540_v48 = vadd.f32 %v7457_v43, %v4196_v55  ;;  %v4188_v42 = vadd.f32 %v4187_v15, %v9796_v46  ;;  %v7460_v5 = vpop.f32.mrf.mxu0  ;;  %v5394_v21 = vsel %vm2431_vm0, %v9805_v2, %v11114_v19 }
 0x40d   : > { %v7412_v18 = vpop.f32.mrf.mxu1  ;;  %v5418_v46 = vrot.slane %v9816_v30, %v11110_v17  ;;  %v11115_v43 = vrot.slane %v9816_v30, 7  ;;  %v11118_v19 = vrot.slane %v9835_v24, 7 }
 0x40e   : > { %v10051_v25 = vadd.f32 %v9813_v61, %v4540_v48  ;;  %v4538_v53 = vadd.f32 %v4413_v35, %v4188_v42  ;;  %v4209_v1 = vadd.f32 %v7412_v18, %v9800_v45  ;;  %v4426_v12 = vpop.f32.mrf.mxu0  ;;  %v5477_v45 = vsel %vm2528_vm1, %v5422_v9, %v5394_v21 }
 0x40f   : > { %v4200_v55 = vpop.f32.mrf.mxu1  ;;  %v5393_v16 = vsel %vm2431_vm0, %v9816_v30, %v11115_v43  ;;  %v5430_v9 = vrot.slane %v9835_v24, %v11110_v17 }
 0x410   : > { %v10061_v41 = vadd.f32 %v9823_v11, %v4538_v53  ;;  %v4543_v2 = vadd.f32 %v7460_v5, %v4209_v1  ;;  %v4201_v61 = vadd.f32 %v4200_v55, %v9808_v10  ;;  %v7461_v51 = vpop.f32.mrf.mxu0  ;;  %v5475_v30 = vsel %vm2528_vm1, %v5418_v46, %v5393_v16 }
 0x411   : > { %v7413_v35 = vpop.f32.mrf.mxu1  ;;  %v11120_v55 = vrot.slane %v9846_v23, 7 }
 0x412   : > { %v10066_v37 = vadd.f32 %v5477_v45, %v4543_v2  ;;  %v4541_v50 = vadd.f32 %v4426_v12, %v4201_v61  ;;  %v4212_v7 = vadd.f32 %v7413_v35, %v9818_v20  ;;  %v4429_v15 = vpop.f32.mrf.mxu0  ;;  %v5396_v20 = vsel %vm2431_vm0, %v9835_v24, %v11118_v19 }
 0x413   : > { %v4203_v48 = vpop.f32.mrf.mxu1  ;;  %v5395_v43 = vsel %vm2431_vm0, %v9846_v23, %v11120_v55 }
 0x414   : > { %11116 = vst [vmem:[#allocation54_spill] sm:$0xff] %v10066_v37  ;;  %v10071_v11 = vadd.f32 %v5475_v30, %v4541_v50  ;;  %v4544_v42 = vadd.f32 %v7461_v51, %v4212_v7  ;;  %v4204_v10 = vadd.f32 %v4203_v48, %v9826_v47  ;;  %v7464_v5 = vpop.f32.mrf.mxu0  ;;  %v5426_v47 = vrot.slane %v9846_v23, %v11110_v17 }
 0x415   : > { %v7416_v18 = vpop.f32.mrf.mxu1  ;;  %v5438_v48 = vrot.slane %v9865_v0, %v11110_v17 }
 0x416   : > { %11117 = vst [vmem:[#allocation55_spill] sm:$0xff] %v10071_v11  ;;  %v10081_v21 = vadd.f32 %v9843_v28, %v4544_v42  ;;  %v4542_v53 = vadd.f32 %v4429_v15, %v4204_v10  ;;  %v4225_v1 = vadd.f32 %v7416_v18, %v9830_v29  ;;  %v4442_v12 = vpop.f32.mrf.mxu0  ;;  %v5481_v29 = vsel %vm2528_vm1, %v5430_v9, %v5396_v20 }
 0x417   : > { %v4216_v46 = vpop.f32.mrf.mxu1  ;;  %v5479_v23 = vsel %vm2528_vm1, %v5426_v47, %v5395_v43  ;;  %v11124_v10 = vrot.slane %v9865_v0, 7  ;;  %v11128_v47 = vld [vmem:[#allocation16_spill] sm:$0xff] }
 0x418   : > { %11119 = vst [vmem:[#allocation56_spill] sm:$0xff] %v10081_v21  ;;  %v10091_v16 = vadd.f32 %v9853_v6, %v4542_v53  ;;  %v4547_v24 = vadd.f32 %v7464_v5, %v4225_v1  ;;  %v4217_v28 = vadd.f32 %v4216_v46, %v9838_v31  ;;  %v7465_v2 = vpop.f32.mrf.mxu0  ;;  %v11126_v53 = vrot.slane %v9876_v60, 7 }
 0x419   : > { %v7417_v61 = vpop.f32.mrf.mxu1 }
 0x41a   : > { %11121 = vst [vmem:[#allocation57_spill] sm:$0xff] %v10091_v16  ;;  %v10096_v51 = vadd.f32 %v5481_v29, %v4547_v24  ;;  %v4545_v45 = vadd.f32 %v4442_v12, %v4217_v28  ;;  %v4228_v35 = vadd.f32 %v7417_v61, %v9848_v8  ;;  %v4445_v50 = vpop.f32.mrf.mxu0  ;;  %v5398_v8 = vsel %vm2431_vm0, %v9865_v0, %v11124_v10  ;;  %v11130_v28 = vld [vmem:[#allocation18_spill] sm:$0xff] }
 0x41b   : > { %v4219_v7 = vpop.f32.mrf.mxu1  ;;  %v5397_v1 = vsel %vm2431_vm0, %v9876_v60, %v11126_v53 }
 0x41c   : > { %11122 = vst [vmem:[#allocation35_spill] sm:$0xff] %v10096_v51  ;;  %v10101_v6 = vadd.f32 %v5479_v23, %v4545_v45  ;;  %v4548_v15 = vadd.f32 %v7465_v2, %v4228_v35  ;;  %v4220_v31 = vadd.f32 %v4219_v7, %v9856_v22  ;;  %v7468_v30 = vpop.f32.mrf.mxu0  ;;  %v5434_v22 = vrot.slane %v9876_v60, %v11110_v17 }
 0x41d   : > { %v7420_v42 = vpop.f32.mrf.mxu1  ;;  %v5446_v23 = vrot.slane %v9895_v56, %v11110_v17 }
 0x41e   : > { %11123 = vst [vmem:[#allocation37_spill] sm:$0xff] %v10101_v6  ;;  %v10111_v5 = vadd.f32 %v9873_v62, %v4548_v15  ;;  %v4546_v9 = vadd.f32 %v4445_v50, %v4220_v31  ;;  %v4241_v18 = vadd.f32 %v7420_v42, %v9860_v44  ;;  %v4458_v19 = vpop.f32.mrf.mxu0  ;;  %v5485_v44 = vsel %vm2528_vm1, %v5438_v48, %v5398_v8 }
 0x41f   : > { %v4232_v20 = vpop.f32.mrf.mxu1  ;;  %v5483_v60 = vsel %vm2528_vm1, %v5434_v22, %v5397_v1  ;;  %v11132_v15 = vrot.slane %v9895_v56, 7  ;;  %v11136_v22 = vld [vmem:[#allocation20_spill] sm:$0xff] }
 0x420   : > { %11125 = vst [vmem:[#allocation58_spill] sm:$0xff] %v10111_v5  ;;  %v10121_v12 = vadd.f32 %v9883_v38, %v4546_v9  ;;  %v4551_v0 = vadd.f32 %v7468_v30, %v4241_v18  ;;  %v4233_v62 = vadd.f32 %v4232_v20, %v11128_v47  ;;  %v7469_v46 = vpop.f32.mrf.mxu0  ;;  %v11134_v9 = vrot.slane %v9906_v3, 7  ;;  %v11138_v47 = vld [vmem:[#allocation22_spill] sm:$0xff] }
 0x421   : > { %v7421_v55 = vpop.f32.mrf.mxu1  ;;  %v5400_v31 = vsel %vm2431_vm0, %v9895_v56, %v11132_v15  ;;  %v11142_v15 = vrot.slane %v9936_v33, 7 }
 0x422   : > { %11127 = vst [vmem:[#allocation59_spill] sm:$0xff] %v10121_v12  ;;  %v10126_v43 = vadd.f32 %v5485_v44, %v4551_v0  ;;  %v4549_v24 = vadd.f32 %v4458_v19, %v4233_v62  ;;  %v4244_v2 = vadd.f32 %v7421_v55, %v11130_v28  ;;  %v4461_v29 = vpop.f32.mrf.mxu0  ;;  %v5399_v18 = vsel %vm2431_vm0, %v9906_v3, %v11134_v9 }
 0x423   : > { %v4235_v61 = vpop.f32.mrf.mxu1 }
 0x424   : > { %11129 = vst [vmem:[#allocation36_spill] sm:$0xff] %v10126_v43  ;;  %v10131_v38 = vadd.f32 %v5483_v60, %v4549_v24  ;;  %v4552_v45 = vadd.f32 %v7469_v46, %v4244_v2  ;;  %v4236_v35 = vadd.f32 %v4235_v61, %v9886_v57  ;;  %v7472_v50 = vpop.f32.mrf.mxu0  ;;  %v5442_v57 = vrot.slane %v9906_v3, %v11110_v17 }
 0x425   : > { %v7424_v7 = vpop.f32.mrf.mxu1  ;;  %v5454_v2 = vrot.slane %v9925_v34, %v11110_v17  ;;  %v11140_v60 = vrot.slane %v9925_v34, 7 }
 0x426   : > { %11131 = vst [vmem:[#allocation61_spill] sm:$0xff] %v10131_v38  ;;  %v10141_v30 = vadd.f32 %v9903_v26, %v4552_v45  ;;  %v4550_v48 = vadd.f32 %v4461_v29, %v4236_v35  ;;  %v4257_v42 = vadd.f32 %v7424_v7, %v9890_v54  ;;  %v4474_v10 = vpop.f32.mrf.mxu0  ;;  %v5489_v54 = vsel %vm2528_vm1, %v5446_v23, %v5400_v31 }
 0x427   : > { %v4248_v8 = vpop.f32.mrf.mxu1  ;;  %v5487_v3 = vsel %vm2528_vm1, %v5442_v57, %v5399_v18  ;;  %v5402_v61 = vsel %vm2431_vm0, %v9925_v34, %v11140_v60  ;;  %v5401_v31 = vsel %vm2431_vm0, %v9936_v33, %v11142_v15  ;;  %v11146_v18 = vld [vmem:[#allocation30_spill] sm:$0xff] }
 0x428   : > { %11133 = vst [vmem:[#allocation38_spill] sm:$0xff] %v10141_v30  ;;  %v10151_v19 = vadd.f32 %v9913_v27, %v4550_v48  ;;  %v4555_v56 = vadd.f32 %v7472_v50, %v4257_v42  ;;  %v4249_v26 = vadd.f32 %v4248_v8, %v11136_v22  ;;  %v7473_v20 = vpop.f32.mrf.mxu0  ;;  %v11144_v42 = vld [vmem:[#allocation24_spill] sm:$0xff] }
 0x429   : > { %v7425_v53 = vpop.f32.mrf.mxu1 }
 0x42a   : > { %11135 = vst [vmem:[#allocation62_spill] sm:$0xff] %v10151_v19  ;;  %v10156_v1 = vadd.f32 %v5489_v54, %v4555_v56  ;;  %v4553_v0 = vadd.f32 %v4474_v10, %v4249_v26  ;;  %v4260_v62 = vadd.f32 %v7425_v53, %v11138_v47  ;;  %v4477_v46 = vpop.f32.mrf.mxu0 }
 0x42b   : > { %v4251_v44 = vpop.f32.mrf.mxu1 }
 0x42c   : > { %11137 = vst [vmem:[#allocation40_spill] sm:$0xff] %v10156_v1  ;;  %v10161_v27 = vadd.f32 %v5487_v3, %v4553_v0  ;;  %v4556_v55 = vadd.f32 %v7473_v20, %v4260_v62  ;;  %v4252_v24 = vadd.f32 %v4251_v44, %v9916_v13  ;;  %v7476_v28 = vpop.f32.mrf.mxu0  ;;  %v5450_v13 = vrot.slane %v9936_v33, %v11110_v17 }
 0x42d   : > { %v7428_v29 = vpop.f32.mrf.mxu1  ;;  %v5462_v0 = vrot.slane %v9955_v58, %v11110_v17  ;;  %v11148_v62 = vrot.slane %v9955_v58, 7 }
 0x42e   : > { %11139 = vst [vmem:[#allocation39_spill] sm:$0xff] %v10161_v27  ;;  %v10171_v45 = vadd.f32 %v9933_v40, %v4556_v55  ;;  %v4554_v35 = vadd.f32 %v4477_v46, %v4252_v24  ;;  %v4273_v50 = vadd.f32 %v7428_v29, %v9920_v4  ;;  %v4490_v23 = vpop.f32.mrf.mxu0  ;;  %v5493_v4 = vsel %vm2528_vm1, %v5454_v2, %v5402_v61  ;;  %v11150_v55 = vld [vmem:[#allocation13_spill] sm:$0xff] }
 0x42f   : > { %v4264_v7 = vpop.f32.mrf.mxu1  ;;  %v5491_v33 = vsel %vm2528_vm1, %v5450_v13, %v5401_v31  ;;  %v5404_v46 = vsel %vm2431_vm0, %v9955_v58, %v11148_v62  ;;  %v11151_v2 = vld [vmem:[#allocation17_spill] sm:$0xff] }
 0x430   : > { %11141 = vst [vmem:[#allocation41_spill] sm:$0xff] %v10171_v45  ;;  %v10181_v48 = vadd.f32 %v9943_v59, %v4554_v35  ;;  %v4559_v34 = vadd.f32 %v7476_v28, %v4273_v50  ;;  %v4265_v40 = vadd.f32 %v4264_v7, %v11144_v42  ;;  %v7477_v10 = vpop.f32.mrf.mxu0  ;;  %v11152_v60 = vrot.slane %v11151_v2, 7  ;;  %v11153_v35 = vld [vmem:[#allocation21_spill] sm:$0xff]  ;;  %v11157_v42 = vld [vmem:[#allocation19_spill] sm:$0xff] }
 0x431   : > { %v7429_v57 = vpop.f32.mrf.mxu1  ;;  %v5497_v7 = vsel %vm2528_vm1, %v5462_v0, %v5404_v46 }
 0x432   : > { %11143 = vst [vmem:[#allocation43_spill] sm:$0xff] %v10181_v48  ;;  %v10186_v8 = vadd.f32 %v5493_v4, %v4559_v34  ;;  %v4557_v9 = vadd.f32 %v4490_v23, %v4265_v40  ;;  %v4276_v56 = vadd.f32 %v7429_v57, %v11146_v18  ;;  %v4493_v22 = vpop.f32.mrf.mxu0  ;;  %v5403_v61 = vsel %vm2431_vm0, %v11151_v2, %v11152_v60  ;;  %v11155_v23 = vld [vmem:[#allocation15_spill] sm:$0xff]  ;;  %v11166_v60 = vld [vmem:[#allocation33_spill] sm:$0xff] }
 0x433   : > { %v4267_v26 = vpop.f32.mrf.mxu1 }
 0x434   : > { %11145 = vst [vmem:[#allocation42_spill] sm:$0xff] %v10186_v8  ;;  %v10191_v59 = vadd.f32 %v5491_v33, %v4557_v9  ;;  %v4560_v20 = vadd.f32 %v7477_v10, %v4276_v56  ;;  %v4268_v54 = vadd.f32 %v4267_v26, %v9946_v36  ;;  %v7480_v53 = vpop.f32.mrf.mxu0  ;;  %v5458_v36 = vrot.slane %v11151_v2, %v11110_v17  ;;  %v11159_v56 = vld [vmem:[#allocation23_spill] sm:$0xff]  ;;  %v11160_v26 = vld [vmem:[#allocation60_spill] sm:$0xff] }
 0x435   : > { %v7432_v47 = vpop.f32.mrf.mxu1 }
 0x436   : > { %11147 = vst [vmem:[#allocation64_spill] sm:$0xff] %v10191_v59  ;;  %v10201_v3 = vadd.f32 %v9963_v63, %v4560_v20  ;;  %v4558_v44 = vadd.f32 %v4493_v22, %v4268_v54  ;;  %v4289_v24 = vadd.f32 %v7432_v47, %v11150_v55  ;;  %v4506_v28 = vpop.f32.mrf.mxu0  ;;  %v5495_v4 = vsel %vm2528_vm1, %v5458_v36, %v5403_v61  ;;  %v11162_v47 = vld [vmem:[#allocation31_spill] sm:$0xff] }
 0x437   : > { %v4280_v29 = vpop.f32.mrf.mxu1  ;;  %v5470_v20 = vrot.slane %v11160_v26, %v11110_v17  ;;  %v11165_v36 = vrot.slane %v9995_v39, 7 }
 0x438   : > { %11149 = vst [vmem:[#allocation65_spill] sm:$0xff] %v10201_v3  ;;  %v10211_v50 = vadd.f32 %v11153_v35, %v4558_v44  ;;  %v4563_v58 = vadd.f32 %v7480_v53, %v4289_v24  ;;  %v4281_v63 = vadd.f32 %v4280_v29, %v11155_v23  ;;  %v7481_v13 = vpop.f32.mrf.mxu0  ;;  %v11161_v53 = vrot.slane %v11160_v26, 7  ;;  %v11164_v44 = vld [vmem:[#allocation27_spill] sm:$0xff] }
 0x439   : > { %v7433_v15 = vpop.f32.mrf.mxu1  ;;  %v5405_v29 = vsel %vm2431_vm0, %v9995_v39, %v11165_v36 }
 0x43a   : > { %11154 = vst [vmem:[#allocation44_spill] sm:$0xff] %v10211_v50  ;;  %v10216_v31 = vadd.f32 %v5497_v7, %v4563_v58  ;;  %v4561_v34 = vadd.f32 %v4506_v28, %v4281_v63  ;;  %v4292_v40 = vadd.f32 %v7433_v15, %v11157_v42  ;;  %v4509_v10 = vpop.f32.mrf.mxu0  ;;  %v5406_v0 = vsel %vm2431_vm0, %v11160_v26, %v11161_v53  ;;  %v11168_v58 = vld [vmem:[#allocation34_spill] sm:$0xff] }
 0x43b   : > { %v4283_v57 = vpop.f32.mrf.mxu1  ;;  %v5466_v28 = vrot.slane %v9995_v39, %v11110_v17  ;;  %v11173_v26 = vld [vmem:[#allocation66_spill] sm:$0xff] }
 0x43c   : > { %11156 = vst [vmem:[#allocation46_spill] sm:$0xff] %v10216_v31  ;;  %v10221_v9 = vadd.f32 %v5495_v4, %v4561_v34  ;;  %v4564_v18 = vadd.f32 %v7481_v13, %v4292_v40  ;;  %v4284_v22 = vadd.f32 %v4283_v57, %v11159_v56  ;;  %v7484_v33 = vpop.f32.mrf.mxu0  ;;  %v5501_v13 = vsel %vm2528_vm1, %v5470_v20, %v5406_v0  ;;  %v11170_v34 = vld [vmem:[#allocation63_spill] sm:$0xff] }
 0x43d   : > { %v7436_v54 = vpop.f32.mrf.mxu1  ;;  %v5499_v39 = vsel %vm2528_vm1, %v5466_v28, %v5405_v29 }
 0x43e   : > { %11158 = vst [vmem:[#allocation45_spill] sm:$0xff] %v10221_v9  ;;  %v10231_v62 = vadd.f32 %v11162_v47, %v4564_v18  ;;  %v4562_v46 = vadd.f32 %v4509_v10, %v4284_v22  ;;  %v4305_v55 = vadd.f32 %v7436_v54, %v11164_v44  ;;  %v4522_v24 = vpop.f32.mrf.mxu0  ;;  %v11172_v18 = vld [vmem:[#allocation53_spill] sm:$0xff] }
 0x43f   : > { %v4296_v2 = vpop.f32.mrf.mxu1 }
 0x440   : > { %11163 = vst [vmem:[#allocation67_spill] sm:$0xff] %v10231_v62  ;;  %v10241_v61 = vadd.f32 %v11166_v60, %v4562_v46  ;;  %v4567_v35 = vadd.f32 %v7484_v33, %v4305_v55  ;;  %v4297_v23 = vadd.f32 %v4296_v2, %v11168_v58  ;;  %v7485_v63 = vpop.f32.mrf.mxu0 }
 0x441   : > { %v7437_v7 = vpop.f32.mrf.mxu1 }
 0x442   : > { %11167 = vst [vmem:[#allocation47_spill] sm:$0xff] %v10241_v61  ;;  %v10246_v15 = vadd.f32 %v5501_v13, %v4567_v35  ;;  %v4565_v17 = vadd.f32 %v4522_v24, %v4297_v23  ;;  %v4308_v42 = vadd.f32 %v7437_v7, %v11170_v34  ;;  %v4525_v40 = vpop.f32.mrf.mxu0 }
 0x443   : > { %v4299_v10 = vpop.f32.mrf.mxu1 }
 0x444   : > { %11169 = vst [vmem:[#allocation49_spill] sm:$0xff] %v10246_v15  ;;  %v10251_v4 = vadd.f32 %v5499_v39, %v4565_v17  ;;  %v4568_v57 = vadd.f32 %v7485_v63, %v4308_v42  ;;  %v4300_v56 = vadd.f32 %v4299_v10, %v11172_v18  ;;  %v7552_v22 = vpop.f32.mrf.mxu0 }
 0x445   : > { %v7504_v33 = vpop.f32.mrf.mxu1 }
 0x446   : > { %11171 = vst [vmem:[#allocation48_spill] sm:$0xff] %v10251_v4  ;;  %v10255_v20 = vadd.f32 %v11173_v26, %v4568_v57  ;;  %v4566_v54 = vadd.f32 %v4525_v40, %v4300_v56  ;;  %v4894_v53 = vpop.f32.mrf.mxu0  ;;  %v4903_v6 = vadd.f32 %v7552_v22, %v7504_v33 }
 0x447   : > { %v4685_v0 = vpop.f32.mrf.mxu1 }
 0x448   : > { %11174 = vst [vmem:[#allocation50_spill] sm:$0xff] %v10255_v20  ;;  %v10258_v47 = vadd.f32 %v10032_v49, %v4566_v54  ;;  %v7553_v46 = vpop.f32.mrf.mxu0  ;;  %v4895_v5 = vadd.f32 %v4894_v53, %v4685_v0 }
 0x449   : > { %v7505_v52 = vpop.f32.mrf.mxu1 }
 0x44a   : > { %11175 = vst [vmem:[#allocation52_spill] sm:$0xff] %v10258_v47  ;;  %v4897_v44 = vpop.f32.mrf.mxu0  ;;  %v4906_v51 = vadd.f32 %v7553_v46, %v7505_v52  ;;  %v11186_v46 = vld [vmem:[#allocation14_spill] sm:$0xff] }
 0x44b   : > { %v4688_v55 = vpop.f32.mrf.mxu1 }
 0x44c   : > { %v7556_v24 = vpop.f32.mrf.mxu0 }
 0x44d   : > { %v7508_v28 = vpop.f32.mrf.mxu1 }
 0x44e   : > { %v4910_v2 = vpop.f32.mrf.mxu0 }
 0x44f   : > { %v4701_v36 = vpop.f32.mrf.mxu1 }
 0x450   : > { %v7557_v29 = vpop.f32.mrf.mxu0 }
 0x451   : > { %v7509_v60 = vpop.f32.mrf.mxu1 }
 0x452   : > { %v4913_v58 = vpop.f32.mrf.mxu0 }
 0x453   : > { %v4704_v35 = vpop.f32.mrf.mxu1 }
 0x454   : > { %v7560_v13 = vpop.f32.mrf.mxu0  ;;  %v4914_v21 = vadd.f32 %v4913_v58, %v4704_v35 }
 0x455   : > { %v7512_v23 = vpop.f32.mrf.mxu1 }
 0x456   : > { %v4926_v34 = vpop.f32.mrf.mxu0  ;;  %v10294_v37 = vadd.f32 %v7560_v13, %v7512_v23 }
 0x457   : > { %v4717_v63 = vpop.f32.mrf.mxu1 }
 0x458   : > { %v7561_v40 = vpop.f32.mrf.mxu0 }
 0x459   : > { %v7513_v7 = vpop.f32.mrf.mxu1 }
 0x45a   : > { %v4929_v57 = vpop.f32.mrf.mxu0 }
 0x45b   : > { %v4720_v17 = vpop.f32.mrf.mxu1 }
 0x45c   : > { %v7564_v26 = vpop.f32.mrf.mxu0 }
 0x45d   : > { %v7516_v49 = vpop.f32.mrf.mxu1 }
 0x45e   : > { %v4942_v4 = vpop.f32.mrf.mxu0 }
 0x45f   : > { %v4733_v42 = vpop.f32.mrf.mxu1 }
 0x460   : > { %v7565_v61 = vpop.f32.mrf.mxu0  ;;  %v10305_v52 = vadd.f32 %v4942_v4, %v4733_v42 }
 0x461   : > { %v7517_v39 = vpop.f32.mrf.mxu1 }
 0x462   : > { %v4945_v31 = vpop.f32.mrf.mxu0 }
 0x463   : > { %v10260_v10 = vpop.f32.mrf.mxu1 }
 0x464   : > { %v7568_v3 = vpop.f32.mrf.mxu0 }
 0x465   : > { %v10262_v18 = vpop.f32.mrf.mxu1 }
 0x466   : > { %v4958_v27 = vpop.f32.mrf.mxu0  ;;  %v10326_v58 = vadd.f32 %v7568_v3, %v10262_v18 }
 0x467   : > { %v10264_v56 = vpop.f32.mrf.mxu1 }
 0x468   : > { %v7569_v19 = vpop.f32.mrf.mxu0 }
 0x469   : > { %v10266_v54 = vpop.f32.mrf.mxu1 }
 0x46a   : > { %v4961_v43 = vpop.f32.mrf.mxu0 }
 0x46b   : > { %v10268_v47 = vpop.f32.mrf.mxu1 }
 0x46c   : > { %v7572_v16 = vpop.f32.mrf.mxu0  ;;  %v10343_v3 = vadd.f32 %v4961_v43, %v10268_v47 }
 0x46d   : > { %v10270_v20 = vpop.f32.mrf.mxu1 }
 0x46e   : > { %v4974_v33 = vpop.f32.mrf.mxu0 }
 0x46f   : > { %v10272_v15 = vpop.f32.mrf.mxu1 }
 0x470   : > { %v10356_v43 = vadd.f32 %v4974_v33, %v10272_v15 }
 0x471   : > { %v10274_v9 = vpop.f32.mrf.mxu1 }
 0x472   : > { %11176 = vst [vmem:[#allocation51_spill] sm:$0xff] %v10274_v9  ;;  %v4922_v9 = vadd.f32 %v7557_v29, %v7509_v60  ;;  %v7573_v60 = vpop.f32.mrf.mxu0 }
 0x473   : > { %v10276_v62 = vpop.f32.mrf.mxu1 }
 0x474   : > { %11177 = vst [vmem:[#allocation32_spill] sm:$0xff] %v10276_v62  ;;  %v4919_v62 = vadd.f32 %v7556_v24, %v7508_v28 }
 0x475   : > { %v10278_v50 = vpop.f32.mrf.mxu1 }
 0x476   : > { %11178 = vst [vmem:[#allocation25_spill] sm:$0xff] %v10278_v50  ;;  %v4898_v50 = vadd.f32 %v4897_v44, %v4688_v55 }
 0x477   : > { %v10280_v59 = vpop.f32.mrf.mxu1 }
 0x478   : > { %11179 = vst [vmem:[#allocation29_spill] sm:$0xff] %v10280_v59 }
 0x479   : > { %v10282_v8 = vpop.f32.mrf.mxu1 }
 0x47a   : > { %11180 = vst [vmem:[#allocation26_spill] sm:$0xff] %v10282_v8 }
 0x47b   : > { %v10284_v48 = vpop.f32.mrf.mxu1 }
 0x47c   : > { %11181 = vst [vmem:[#allocation28_spill] sm:$0xff] %v10284_v48 }
 0x47d   : > { %v10286_v45 = vpop.f32.mrf.mxu1 }
 0x47e   : > { %11182 = vst [vmem:[#allocation16_spill] sm:$0xff] %v10286_v45  ;;  %v4911_v45 = vadd.f32 %v4910_v2, %v4701_v36 }
 0x47f   : > { %v10288_v1 = vpop.f32.mrf.mxu1 }
 0x480   : > { %11183 = vst [vmem:[#allocation18_spill] sm:$0xff] %v10288_v1 }
 0x481   : > { %v10290_v38 = vpop.f32.mrf.mxu1 }
 0x482   : > { %11184 = vst [vmem:[#allocation20_spill] sm:$0xff] %v10290_v38  ;;  %v10296_v38 = vadd.f32 %v4926_v34, %v4717_v63  ;;  %v10334_v63 = vadd.f32 %v4958_v27, %v10264_v56  ;;  %v4977_v27 = vpop.f32.mrf.mxu0  ;;  %v11188_v56 = vld [vmem:[#allocation54_spill] sm:$0xff] }
 0x483   : > { %v10292_v30 = vpop.f32.mrf.mxu1 }
 0x484   : > { %11185 = vst [vmem:[#allocation22_spill] sm:$0xff] %v10292_v30  ;;  %v10298_v30 = vadd.f32 %v7561_v40, %v7513_v7  ;;  %v7576_v33 = vpop.f32.mrf.mxu0 }
 0x485   : > { %v7600_v12 = vpop.f32.mrf.mxu1 }
 0x486   : > { %v5249_v8 = vadd.f32 %v7600_v12, %v4903_v6 }
 0x487   : > { %v5120_v59 = vpop.f32.mrf.mxu1 }
 0x488   : > { %v5247_v48 = vadd.f32 %v5120_v59, %v4895_v5  ;;  %v5538_v53 = vrot.slane %v5249_v8, 1  ;;  %v10301_v5 = vadd.f32 %v4929_v57, %v4720_v17  ;;  %v10303_v59 = vadd.f32 %v7564_v26, %v7516_v49 }
 0x489   : > { %v7601_v11 = vpop.f32.mrf.mxu1  ;;  %v10310_v8 = vadd.f32 %v7565_v61, %v7517_v39  ;;  %v10346_v17 = vadd.f32 %v7572_v16, %v10270_v20 }
 0x48a   : > { %v5250_v1 = vadd.f32 %v7601_v11, %v4906_v51  ;;  %v5535_v11 = vrot.slane %v5247_v48, 1  ;;  %v10318_v48 = vadd.f32 %v4945_v31, %v10260_v10 }
 0x48b   : > { %v5123_v22 = vpop.f32.mrf.mxu1 }
 0x48c   : > { %v5539_v0 = vrot.slane %v5250_v1, 1  ;;  %v5638_v6 = vrot.slane %v5250_v1, %v11186_v46  ;;  %v5248_v12 = vadd.f32 %v5123_v22, %v4898_v50 }
 0x48d   : > { %v7604_v51 = vpop.f32.mrf.mxu1 }
 0x48e   : > { %v5540_v44 = vsel %vm2662_vm2, %v5538_v53, %v5539_v0  ;;  %v5616_v55 = vsel %vm2662_vm2, %v5539_v0, %v5250_v1  ;;  %v5536_v24 = vrot.slane %v5248_v12, 1  ;;  %v5634_v28 = vrot.slane %v5248_v12, %v11186_v46  ;;  %v11189_v0 = vld [vmem:[#allocation56_spill] sm:$0xff] }
 0x48f   : > { %v5698_v50 = vsel %vm2760_vm3, %v5638_v6, %v5616_v55  ;;  %v10315_v36 = vadd.f32 %v10036_v32, %v5540_v44  ;;  %v5253_v29 = vadd.f32 %v7604_v51, %v4919_v62  ;;  %v5136_v4 = vpop.f32.mrf.mxu1 }
 0x490   : > { %v10321_v35 = vadd.f32 %v10051_v25, %v5698_v50  ;;  %v5537_v1 = vsel %vm2662_vm2, %v5535_v11, %v5536_v24  ;;  %v5615_v61 = vsel %vm2662_vm2, %v5536_v24, %v5248_v12  ;;  %v5251_v23 = vadd.f32 %v5136_v4, %v4911_v45  ;;  %v11190_v11 = vld [vmem:[#allocation51_spill] sm:$0xff]  ;;  %v11191_v50 = vld [vmem:[#allocation32_spill] sm:$0xff] }
 0x491   : > { %v5696_v32 = vsel %vm2760_vm3, %v5634_v28, %v5615_v61  ;;  %v10331_v62 = vadd.f32 %v10041_v14, %v5537_v1  ;;  %v7605_v31 = vpop.f32.mrf.mxu1  ;;  %v10337_v25 = vadd.f32 %v7569_v19, %v10266_v54  ;;  %v5544_v45 = vrot.slane %v5253_v29, 1  ;;  %v11192_v1 = vld [vmem:[#allocation55_spill] sm:$0xff] }
 0x492   : > { %v10340_v13 = vadd.f32 %v10061_v41, %v5696_v32  ;;  %v5254_v7 = vadd.f32 %v7605_v31, %v4922_v9  ;;  %v5831_v16 = vmul.f32 %v10315_v36, %v10315_v36  ;;  %v5541_v20 = vrot.slane %v5251_v23, 1  ;;  %v11193_v23 = vld [vmem:[#allocation25_spill] sm:$0xff] }
 0x493   : > { %v5829_v14 = vmul.f32 %v10331_v62, %v10331_v62  ;;  %v5139_v34 = vpop.f32.mrf.mxu1  ;;  %v10376_v51 = vadd.f32 %v7573_v60, %v11190_v11  ;;  %v10382_v29 = vadd.f32 %v4977_v27, %v11191_v50  ;;  %v10390_v60 = vadd.f32 %v7576_v33, %v11193_v23  ;;  %v11194_v31 = vld [vmem:[#allocation57_spill] sm:$0xff]  ;;  %v11195_v33 = vld [vmem:[#allocation35_spill] sm:$0xff] }
 0x494   : > { %v5791_v19 = vadd.f32 %v10340_v13, %v10331_v62  ;;  %v5830_v41 = vmul.f32 %v10340_v13, %v10340_v13  ;;  %v5545_v49 = vrot.slane %v5254_v7, 1  ;;  %v5646_v9 = vrot.slane %v5254_v7, %v11186_v46 }
 0x495   : > { %v5252_v47 = vadd.f32 %v5139_v34, %v4914_v21  ;;  %v7608_v42 = vpop.f32.mrf.mxu1  ;;  %v5832_v21 = vmul.f32 %v10321_v35, %v10321_v35 }
 0x496   : > { %v5792_v40 = vadd.f32 %v5791_v19, %v10315_v36  ;;  %v5861_v39 = vadd.f32 %v5830_v41, %v5829_v14  ;;  %v5546_v10 = vsel %vm2662_vm2, %v5544_v45, %v5545_v49  ;;  %v5618_v57 = vsel %vm2662_vm2, %v5545_v49, %v5254_v7 }
 0x497   : > { %v5702_v18 = vsel %vm2760_vm3, %v5646_v9, %v5618_v57  ;;  %v10366_v26 = vadd.f32 %v11188_v56, %v5546_v10  ;;  %v5542_v15 = vrot.slane %v5252_v47, 1  ;;  %v5642_v54 = vrot.slane %v5252_v47, %v11186_v46  ;;  %v5152_v22 = vpop.f32.mrf.mxu1 }
 0x498   : > { %v5862_v53 = vadd.f32 %v5861_v39, %v5831_v16  ;;  %v10372_v6 = vadd.f32 %v11189_v0, %v5702_v18  ;;  %v5793_v12 = vadd.f32 %v5792_v40, %v10321_v35  ;;  %v5257_v24 = vadd.f32 %v7608_v42, %v10294_v37 }
 0x499   : > { %v5543_v44 = vsel %vm2662_vm2, %v5541_v20, %v5542_v15  ;;  %v5617_v55 = vsel %vm2662_vm2, %v5542_v15, %v5252_v47  ;;  %v7609_v28 = vpop.f32.mrf.mxu1  ;;  %v5255_v14 = vadd.f32 %v5152_v22, %v10296_v38  ;;  %v5835_v34 = vmul.f32 %v10366_v26, %v10366_v26 }
 0x49a   : > { %v5700_v4 = vsel %vm2760_vm3, %v5642_v54, %v5617_v55  ;;  %v10387_v61 = vadd.f32 %v11192_v1, %v5543_v44  ;;  %v5863_v32 = vadd.f32 %v5862_v53, %v5832_v21  ;;  %v5258_v37 = vadd.f32 %v7609_v28, %v10298_v30  ;;  %v4990_v30 = vpop.f32.mrf.mxu0  ;;  %v11196_v53 = vld [vmem:[#allocation29_spill] sm:$0xff] }
 0x49b   : > { %v10393_v7 = vadd.f32 %v11194_v31, %v5700_v4  ;;  %v5155_v45 = vpop.f32.mrf.mxu1  ;;  %v5550_v9 = vrot.slane %v5257_v24, 1  ;;  %v5547_v10 = vrot.slane %v5255_v14, 1  ;;  %v10418_v0 = vadd.f32 %v4990_v30, %v11196_v53  ;;  %v11198_v4 = vld [vmem:[#allocation37_spill] sm:$0xff]  ;;  %v11200_v53 = vld [vmem:[#allocation36_spill] sm:$0xff] }
 0x49c   : > { %v5794_v27 = vadd.f32 %v5793_v12, %v10387_v61  ;;  %v5833_v19 = vmul.f32 %v10387_v61, %v10387_v61  ;;  %v5256_v41 = vadd.f32 %v5155_v45, %v10301_v5  ;;  %v5551_v16 = vrot.slane %v5258_v37, 1  ;;  %v11197_v12 = vld [vmem:[#allocation58_spill] sm:$0xff] }
 0x49d   : > { %v5834_v49 = vmul.f32 %v10393_v7, %v10393_v7  ;;  %v5654_v38 = vrot.slane %v5258_v37, %v11186_v46  ;;  %v7612_v20 = vpop.f32.mrf.mxu1  ;;  %v5836_v24 = vmul.f32 %v10372_v6, %v10372_v6 }
 0x49e   : > { %v5795_v47 = vadd.f32 %v5794_v27, %v10393_v7  ;;  %v5864_v42 = vadd.f32 %v5863_v32, %v5833_v19  ;;  %v5548_v40 = vrot.slane %v5256_v41, 1  ;;  %v5650_v39 = vrot.slane %v5256_v41, %v11186_v46  ;;  %v11199_v32 = vld [vmem:[#allocation59_spill] sm:$0xff]  ;;  %v7577_v27 = vpop.f32.mrf.mxu0 }
 0x49f   : > { %v5552_v57 = vsel %vm2662_vm2, %v5550_v9, %v5551_v16  ;;  %v5620_v5 = vsel %vm2662_vm2, %v5551_v16, %v5258_v37  ;;  %v5261_v18 = vadd.f32 %v7612_v20, %v10303_v59  ;;  %v5168_v56 = vpop.f32.mrf.mxu1 }
 0x4a0   : > { %v5796_v15 = vadd.f32 %v5795_v47, %v10366_v26  ;;  %v5865_v54 = vadd.f32 %v5864_v42, %v5834_v49  ;;  %v5706_v22 = vsel %vm2760_vm3, %v5654_v38, %v5620_v5  ;;  %v10415_v21 = vadd.f32 %v11195_v33, %v5552_v57  ;;  %v4993_v5 = vpop.f32.mrf.mxu0 }
 0x4a1   : > { %v10421_v11 = vadd.f32 %v11197_v12, %v5706_v22  ;;  %v5549_v44 = vsel %vm2662_vm2, %v5547_v10, %v5548_v40  ;;  %v5619_v59 = vsel %vm2662_vm2, %v5548_v40, %v5256_v41  ;;  %v7613_v55 = vpop.f32.mrf.mxu1  ;;  %v5556_v14 = vrot.slane %v5261_v18, 1 }
 0x4a2   : > { %v5866_v28 = vadd.f32 %v5865_v54, %v5835_v34  ;;  %v5704_v50 = vsel %vm2760_vm3, %v5650_v39, %v5619_v59  ;;  %v10430_v1 = vadd.f32 %v11198_v4, %v5549_v44  ;;  %v5797_v31 = vadd.f32 %v5796_v15, %v10372_v6 }
 0x4a3   : > { %v10433_v23 = vadd.f32 %v11199_v32, %v5704_v50  ;;  %v5259_v37 = vadd.f32 %v5168_v56, %v10305_v52  ;;  %v5171_v45 = vpop.f32.mrf.mxu1  ;;  %v5262_v41 = vadd.f32 %v7613_v55, %v10310_v8  ;;  %v5839_v9 = vmul.f32 %v10415_v21, %v10415_v21  ;;  %v11201_v55 = vld [vmem:[#allocation38_spill] sm:$0xff]  ;;  %v11202_v50 = vld [vmem:[#allocation61_spill] sm:$0xff] }
 0x4a4   : > { %v5837_v19 = vmul.f32 %v10430_v1, %v10430_v1  ;;  %v5867_v34 = vadd.f32 %v5866_v28, %v5836_v24  ;;  %v5260_v49 = vadd.f32 %v5171_v45, %v10318_v48  ;;  %v5798_v16 = vadd.f32 %v5797_v31, %v10430_v1  ;;  %v11203_v32 = vld [vmem:[#allocation26_spill] sm:$0xff] }
 0x4a5   : > { %v5838_v38 = vmul.f32 %v10433_v23, %v10433_v23  ;;  %v5553_v20 = vrot.slane %v5259_v37, 1  ;;  %v7616_v52 = vpop.f32.mrf.mxu1  ;;  %v5557_v47 = vrot.slane %v5262_v41, 1  ;;  %v5662_v42 = vrot.slane %v5262_v41, %v11186_v46  ;;  %v11205_v45 = vld [vmem:[#allocation62_spill] sm:$0xff] }
 0x4a6   : > { %v5868_v30 = vadd.f32 %v5867_v34, %v5837_v19  ;;  %v5554_v40 = vrot.slane %v5260_v49, 1  ;;  %v5840_v8 = vmul.f32 %v10421_v11, %v10421_v11  ;;  %v5799_v48 = vadd.f32 %v5798_v16, %v10433_v23 }
 0x4a7   : > { %v5658_v39 = vrot.slane %v5260_v49, %v11186_v46  ;;  %v5265_v10 = vadd.f32 %v7616_v52, %v10326_v58  ;;  %v5184_v57 = vpop.f32.mrf.mxu1  ;;  %v5558_v56 = vsel %vm2662_vm2, %v5556_v14, %v5557_v47  ;;  %v5622_v15 = vsel %vm2662_vm2, %v5557_v47, %v5262_v41  ;;  %v11204_v14 = vld [vmem:[#allocation28_spill] sm:$0xff] }
 0x4a8   : > { %v5869_v18 = vadd.f32 %v5868_v30, %v5838_v38  ;;  %v5555_v54 = vsel %vm2662_vm2, %v5553_v20, %v5554_v40  ;;  %v5800_v22 = vadd.f32 %v5799_v48, %v10415_v21  ;;  %v5710_v33 = vsel %vm2760_vm3, %v5662_v42, %v5622_v15 }
 0x4a9   : > { %v10459_v12 = vadd.f32 %v11200_v53, %v5558_v56  ;;  %v5621_v44 = vsel %vm2662_vm2, %v5554_v40, %v5260_v49  ;;  %v7617_v58 = vpop.f32.mrf.mxu1  ;;  %v10463_v24 = vadd.f32 %v11201_v55, %v5710_v33  ;;  %v10468_v4 = vadd.f32 %v11202_v50, %v5555_v54  ;;  %v7580_v54 = vpop.f32.mrf.mxu0  ;;  %v11206_v55 = vld [vmem:[#allocation40_spill] sm:$0xff] }
 0x4aa   : > { %v5870_v59 = vadd.f32 %v5869_v18, %v5839_v9  ;;  %v5708_v28 = vsel %vm2760_vm3, %v5658_v39, %v5621_v44  ;;  %v10471_v31 = vadd.f32 %v7577_v27, %v11203_v32  ;;  %v10474_v37 = vadd.f32 %v4993_v5, %v11204_v14  ;;  %v11208_v14 = vld [vmem:[#allocation39_spill] sm:$0xff] }
 0x4ab   : > { %v10477_v19 = vadd.f32 %v11205_v45, %v5708_v28  ;;  %v5801_v34 = vadd.f32 %v5800_v22, %v10421_v11  ;;  %v5187_v41 = vpop.f32.mrf.mxu1  ;;  %v5843_v49 = vmul.f32 %v10459_v12, %v10459_v12  ;;  %v5841_v9 = vmul.f32 %v10468_v4, %v10468_v4 }
 0x4ac   : > { %v5871_v16 = vadd.f32 %v5870_v59, %v5840_v8  ;;  %v5263_v38 = vadd.f32 %v5184_v57, %v10334_v63  ;;  %v5266_v52 = vadd.f32 %v7617_v58, %v10337_v25  ;;  %v5264_v30 = vadd.f32 %v5187_v41, %v10343_v3 }
 0x4ad   : > { %v5802_v27 = vadd.f32 %v5801_v34, %v10468_v4  ;;  %v5842_v20 = vmul.f32 %v10477_v19, %v10477_v19  ;;  %v7620_v47 = vpop.f32.mrf.mxu1  ;;  %v5844_v42 = vmul.f32 %v10463_v24, %v10463_v24  ;;  %v5562_v48 = vrot.slane %v5265_v10, 1 }
 0x4ae   : > { %v5872_v40 = vadd.f32 %v5871_v16, %v5841_v9  ;;  %v5559_v39 = vrot.slane %v5263_v38, 1  ;;  %v5563_v5 = vrot.slane %v5266_v52, 1  ;;  %v5670_v63 = vrot.slane %v5266_v52, %v11186_v46  ;;  %v11210_v16 = vld [vmem:[#allocation43_spill] sm:$0xff] }
 0x4af   : > { %v5803_v8 = vadd.f32 %v5802_v27, %v10477_v19  ;;  %v5560_v57 = vrot.slane %v5264_v30, 1  ;;  %v5200_v18 = vpop.f32.mrf.mxu1  ;;  %v5666_v15 = vrot.slane %v5264_v30, %v11186_v46  ;;  %v5269_v25 = vadd.f32 %v7620_v47, %v10346_v17 }
 0x4b0   : > { %v5873_v56 = vadd.f32 %v5872_v40, %v5842_v20  ;;  %v5267_v3 = vadd.f32 %v5200_v18, %v10356_v43  ;;  %v5564_v10 = vsel %vm2662_vm2, %v5562_v48, %v5563_v5  ;;  %v5624_v33 = vsel %vm2662_vm2, %v5563_v5, %v5266_v52  ;;  %v11207_v43 = vld [vmem:[#allocation41_spill] sm:$0xff] }
 0x4b1   : > { %v5804_v22 = vadd.f32 %v5803_v8, %v10459_v12  ;;  %v5561_v53 = vsel %vm2662_vm2, %v5559_v39, %v5560_v57  ;;  %v7621_v44 = vpop.f32.mrf.mxu1  ;;  %v5714_v59 = vsel %vm2760_vm3, %v5670_v63, %v5624_v33  ;;  %v10504_v28 = vadd.f32 %v11206_v55, %v5564_v10  ;;  %v5006_v10 = vpop.f32.mrf.mxu0 }
 0x4b2   : > { %v5874_v58 = vadd.f32 %v5873_v56, %v5843_v49  ;;  %v5623_v17 = vsel %vm2662_vm2, %v5560_v57, %v5264_v30  ;;  %v10508_v50 = vadd.f32 %v11207_v43, %v5714_v59  ;;  %v10513_v45 = vadd.f32 %v11208_v14, %v5561_v53  ;;  %v11209_v49 = vld [vmem:[#allocation16_spill] sm:$0xff]  ;;  %v11211_v59 = vld [vmem:[#allocation42_spill] sm:$0xff]  ;;  %v11212_v43 = vld [vmem:[#allocation65_spill] sm:$0xff] }
 0x4b3   : > { %v5712_v32 = vsel %vm2760_vm3, %v5666_v15, %v5623_v17  ;;  %v5805_v34 = vadd.f32 %v5804_v22, %v10463_v24  ;;  %v5203_v41 = vpop.f32.mrf.mxu1  ;;  %v5015_v9 = vadd.f32 %v7580_v54, %v11209_v49  ;;  %v5568_v20 = vrot.slane %v5269_v25, 1 }
 0x4b4   : > { %v10518_v38 = vadd.f32 %v11210_v16, %v5712_v32  ;;  %v5875_v27 = vadd.f32 %v5874_v58, %v5844_v42  ;;  %v5847_v52 = vmul.f32 %v10504_v28, %v10504_v28  ;;  %v5845_v47 = vmul.f32 %v10513_v45, %v10513_v45  ;;  %v11214_v16 = vld [vmem:[#allocation18_spill] sm:$0xff] }
 0x4b5   : > { %v5806_v30 = vadd.f32 %v5805_v34, %v10513_v45  ;;  %v5270_v40 = vadd.f32 %v7621_v44, %v10376_v51  ;;  %v7624_v48 = vpop.f32.mrf.mxu1  ;;  %v5848_v39 = vmul.f32 %v10508_v50, %v10508_v50  ;;  %v5565_v5 = vrot.slane %v5267_v3, 1  ;;  %v11213_v34 = vld [vmem:[#allocation64_spill] sm:$0xff] }
 0x4b6   : > { %v5846_v8 = vmul.f32 %v10518_v38, %v10518_v38  ;;  %v5268_v42 = vadd.f32 %v5203_v41, %v10382_v29  ;;  %v5876_v57 = vadd.f32 %v5875_v27, %v5845_v47  ;;  %v5273_v54 = vadd.f32 %v7624_v48, %v10390_v60  ;;  %v7581_v48 = vpop.f32.mrf.mxu0 }
 0x4b7   : > { %v5807_v63 = vadd.f32 %v5806_v30, %v10518_v38  ;;  %v5569_v18 = vrot.slane %v5270_v40, 1  ;;  %v5678_v56 = vrot.slane %v5270_v40, %v11186_v46  ;;  %v5216_v15 = vpop.f32.mrf.mxu1  ;;  %v5007_v27 = vadd.f32 %v5006_v10, %v11214_v16 }
 0x4b8   : > { %v5566_v25 = vrot.slane %v5268_v42, 1  ;;  %v5674_v51 = vrot.slane %v5268_v42, %v11186_v46  ;;  %v5271_v22 = vadd.f32 %v5216_v15, %v10418_v0  ;;  %v5877_v3 = vadd.f32 %v5876_v57, %v5846_v8 }
 0x4b9   : > { %v5808_v33 = vadd.f32 %v5807_v63, %v10504_v28  ;;  %v5570_v29 = vsel %vm2662_vm2, %v5568_v20, %v5569_v18  ;;  %v5626_v53 = vsel %vm2662_vm2, %v5569_v18, %v5270_v40  ;;  %v7625_v44 = vpop.f32.mrf.mxu1  ;;  %v11215_v20 = vld [vmem:[#allocation44_spill] sm:$0xff]  ;;  %v5574_v40 = vrot.slane %v5273_v54, 1 }
 0x4ba   : > { %v5718_v58 = vsel %vm2760_vm3, %v5678_v56, %v5626_v53  ;;  %v10542_v55 = vadd.f32 %v11211_v59, %v5570_v29  ;;  %v5567_v17 = vsel %vm2662_vm2, %v5565_v5, %v5566_v25  ;;  %v5625_v60 = vsel %vm2662_vm2, %v5566_v25, %v5268_v42  ;;  %v5009_v53 = vpop.f32.mrf.mxu0 }
 0x4bb   : > { %v5878_v0 = vadd.f32 %v5877_v3, %v5847_v52  ;;  %v10547_v32 = vadd.f32 %v11212_v43, %v5718_v58  ;;  %v5716_v14 = vsel %vm2760_vm3, %v5674_v51, %v5625_v60  ;;  %v10552_v41 = vadd.f32 %v11213_v34, %v5567_v17  ;;  %v5219_v49 = vpop.f32.mrf.mxu1 }
 0x4bc   : > { %v10556_v30 = vadd.f32 %v11215_v20, %v5716_v14  ;;  %v5809_v47 = vadd.f32 %v5808_v33, %v10508_v50  ;;  %v5851_v52 = vmul.f32 %v10542_v55, %v10542_v55  ;;  %v5274_v42 = vadd.f32 %v7625_v44, %v10471_v31  ;;  %v11218_v20 = vld [vmem:[#allocation45_spill] sm:$0xff] }
 0x4bd   : > { %v5849_v8 = vmul.f32 %v10552_v41, %v10552_v41  ;;  %v5879_v5 = vadd.f32 %v5878_v0, %v5848_v39  ;;  %v7628_v63 = vpop.f32.mrf.mxu1  ;;  %v5571_v56 = vrot.slane %v5271_v22, 1  ;;  %v5272_v15 = vadd.f32 %v5219_v49, %v10474_v37  ;;  %v11216_v0 = vld [vmem:[#allocation46_spill] sm:$0xff] }
 0x4be   : > { %v5810_v57 = vadd.f32 %v5809_v47, %v10552_v41  ;;  %v5850_v18 = vmul.f32 %v10556_v30, %v10556_v30  ;;  %v5852_v25 = vmul.f32 %v10547_v32, %v10547_v32  ;;  %v5575_v54 = vrot.slane %v5274_v42, 1 }
 0x4bf   : > { %v5880_v51 = vadd.f32 %v5879_v5, %v5849_v8  ;;  %v5686_v10 = vrot.slane %v5274_v42, %v11186_v46  ;;  %v5232_v33 = vpop.f32.mrf.mxu1  ;;  %v5572_v31 = vrot.slane %v5272_v15, 1  ;;  %v5682_v3 = vrot.slane %v5272_v15, %v11186_v46  ;;  %v11220_v5 = vld [vmem:[#allocation22_spill] sm:$0xff] }
 0x4c0   : > { %v5811_v39 = vadd.f32 %v5810_v57, %v10556_v30  ;;  %v5277_v29 = vadd.f32 %v7628_v63, %v5015_v9  ;;  %v5576_v22 = vsel %vm2662_vm2, %v5574_v40, %v5575_v54  ;;  %v5628_v37 = vsel %vm2662_vm2, %v5575_v54, %v5274_v42  ;;  %v11217_v9 = vld [vmem:[#allocation67_spill] sm:$0xff]  ;;  %v11219_v40 = vld [vmem:[#allocation20_spill] sm:$0xff] }
 0x4c1   : > { %v5881_v44 = vadd.f32 %v5880_v51, %v5850_v18  ;;  %v5275_v58 = vadd.f32 %v5232_v33, %v5007_v27  ;;  %v7629_v59 = vpop.f32.mrf.mxu1  ;;  %v5722_v60 = vsel %vm2760_vm3, %v5686_v10, %v5628_v37  ;;  %v10579_v43 = vadd.f32 %v11216_v0, %v5576_v22  ;;  %v11221_v18 = vld [vmem:[#allocation47_spill] sm:$0xff] }
 0x4c2   : > { %v5812_v17 = vadd.f32 %v5811_v39, %v10542_v55  ;;  %v5573_v14 = vsel %vm2662_vm2, %v5571_v56, %v5572_v31  ;;  %v10583_v49 = vadd.f32 %v11217_v9, %v5722_v60  ;;  %v5627_v16 = vsel %vm2662_vm2, %v5572_v31, %v5272_v15  ;;  %v11222_v9 = vld [vmem:[#allocation49_spill] sm:$0xff] }
 0x4c3   : > { %v5882_v34 = vadd.f32 %v5881_v44, %v5851_v52  ;;  %v10587_v47 = vadd.f32 %v11218_v20, %v5573_v14  ;;  %v5235_v27 = vpop.f32.mrf.mxu1  ;;  %v5018_v8 = vadd.f32 %v7581_v48, %v11219_v40  ;;  %v5010_v42 = vadd.f32 %v5009_v53, %v11220_v5 }
 0x4c4   : > { %v5720_v63 = vsel %vm2760_vm3, %v5682_v3, %v5627_v16  ;;  %v5813_v57 = vadd.f32 %v5812_v17, %v10547_v32  ;;  %v5580_v39 = vrot.slane %v5277_v29, 1  ;;  %v5577_v31 = vrot.slane %v5275_v58, 1 }
 0x4c5   : > { %v10595_v52 = vadd.f32 %v11221_v18, %v5720_v63  ;;  %v5853_v56 = vmul.f32 %v10587_v47, %v10587_v47  ;;  %v5883_v15 = vadd.f32 %v5882_v34, %v5852_v25  ;;  %v5278_v54 = vadd.f32 %v7629_v59, %v5018_v8  ;;  %v11224_v8 = vld [vmem:[#allocation48_spill] sm:$0xff] }
 0x4c6   : > { %v5814_v51 = vadd.f32 %v5813_v57, %v10587_v47  ;;  %v5276_v10 = vadd.f32 %v5235_v27, %v5010_v42  ;;  %v5855_v37 = vmul.f32 %v10579_v43, %v10579_v43  ;;  %v5856_v25 = vmul.f32 %v10583_v49, %v10583_v49  ;;  %v11223_v27 = vld [vmem:[#allocation50_spill] sm:$0xff]  ;;  %v11225_v63 = vld [vmem:[#allocation52_spill] sm:$0xff] }
 0x4c7   : > { %v5854_v48 = vmul.f32 %v10595_v52, %v10595_v52  ;;  %v5884_v33 = vadd.f32 %v5883_v15, %v5853_v56  ;;  %v5581_v53 = vrot.slane %v5278_v54, 1  ;;  %v5694_v44 = vrot.slane %v5278_v54, %v11186_v46 }
 0x4c8   : > { %v5815_v3 = vadd.f32 %v5814_v51, %v10595_v52  ;;  %v5578_v22 = vrot.slane %v5276_v10, 1  ;;  %v5690_v17 = vrot.slane %v5276_v10, %v11186_v46 }
 0x4c9   : > { %v5885_v59 = vadd.f32 %v5884_v33, %v5854_v48  ;;  %v5582_v29 = vsel %vm2662_vm2, %v5580_v39, %v5581_v53  ;;  %v5630_v58 = vsel %vm2662_vm2, %v5581_v53, %v5278_v54 }
 0x4ca   : > { %v5816_v60 = vadd.f32 %v5815_v3, %v10579_v43  ;;  %v5579_v0 = vsel %vm2662_vm2, %v5577_v31, %v5578_v22  ;;  %v5726_v34 = vsel %vm2760_vm3, %v5694_v44, %v5630_v58  ;;  %v10616_v16 = vadd.f32 %v11222_v9, %v5582_v29 }
 0x4cb   : > { %v5886_v14 = vadd.f32 %v5885_v59, %v5855_v37  ;;  %v5629_v20 = vsel %vm2662_vm2, %v5578_v22, %v5276_v10  ;;  %v10620_v40 = vadd.f32 %v11223_v27, %v5726_v34  ;;  %v10625_v5 = vadd.f32 %v11224_v8, %v5579_v0 }
 0x4cc   : > { %v5724_v46 = vsel %vm2760_vm3, %v5690_v17, %v5629_v20  ;;  %v5817_v42 = vadd.f32 %v5816_v60, %v10583_v49  ;;  %v5859_v10 = vmul.f32 %v10616_v16, %v10616_v16 }
 0x4cd   : > { %v10629_v57 = vadd.f32 %v11225_v63, %v5724_v46  ;;  %v5887_v18 = vadd.f32 %v5886_v14, %v5856_v25  ;;  %v5857_v15 = vmul.f32 %v10625_v5, %v10625_v5  ;;  %v5860_v39 = vmul.f32 %v10620_v40, %v10620_v40 }
 0x4ce   : > { %v5818_v56 = vadd.f32 %v5817_v42, %v10625_v5 }
 0x4cf   : > { %v5858_v51 = vmul.f32 %v10629_v57, %v10629_v57  ;;  %v5888_v54 = vadd.f32 %v5887_v18, %v5857_v15 }
 0x4d0   : > { %v5819_v2 = vadd.f32 %v5818_v56, %v10629_v57 }
 0x4d1   : > { %v5889_v33 = vadd.f32 %v5888_v54, %v5858_v51 }
 0x4d2   : > { %v5820_v48 = vadd.f32 %v5819_v2, %v10616_v16 }
 0x4d3   : > { %v5890_v3 = vadd.f32 %v5889_v33, %v5859_v10 }
 0x4d4   : > { %v5821_v31 = vadd.f32 %v5820_v48, %v10620_v40 }
 0x4d5   : > { %v5891_v44 = vadd.f32 %v5890_v3, %v5860_v39 }
 0x4d6   : > { %v5822_v53 = vrot.slane %v5821_v31, 4 }
 0x4d7   : > { %v5892_v37 = vrot.slane %v5891_v44, 4 }
 0x4d8   : > { %v5823_v22 = vadd.f32 %v5822_v53, %v5821_v31 }
 0x4d9   : > { %v5893_v59 = vadd.f32 %v5892_v37, %v5891_v44 }
 0x4da   : > { %v5824_v25 = vrot.slane %v5823_v22, 2 }
 0x4db   : > { %v5894_v60 = vrot.slane %v5893_v59, 2 }
 0x4dc   : > { %v5825_v17 = vadd.f32 %v5824_v25, %v5823_v22 }
 0x4dd   : > { %v5895_v58 = vadd.f32 %v5894_v60, %v5893_v59  ;;  %v5997_v59 = vld [vmem:[%s8164_s6 + $0xe8] sm:$0xff] }
 0x4de   : > { %v5826_v29 = vrot.slane %v5825_v17, 1 }
 0x4df   : > { %v5896_v14 = vrot.slane %v5895_v58, 1 }
 0x4e0   : > { %v5827_v0 = vadd.f32 %v5826_v29, %v5825_v17 }
 0x4e1   : > { %v5897_v9 = vadd.f32 %v5896_v14, %v5895_v58 }
 0x4e2   : > { %v10643_v34 = vmul.f32 0.00390625, %v5827_v0 }
 0x4e3   : > { %v5898_v20 = vmul.f32 0.00390625, %v5897_v9 }
 0x4e4   : > { %v5899_v27 = vmul.f32 %v10643_v34, %v10643_v34  ;;  %v5929_v46 = vsub.f32 %v10625_v5, %v10643_v34  ;;  %v5930_v8 = vsub.f32 %v10629_v57, %v10643_v34  ;;  %v5913_v18 = vsub.f32 %v10468_v4, %v10643_v34 }
 0x4e5   : > { %v5914_v56 = vsub.f32 %v10477_v19, %v10643_v34  ;;  %v5915_v15 = vsub.f32 %v10459_v12, %v10643_v34  ;;  %v5916_v51 = vsub.f32 %v10463_v24, %v10643_v34  ;;  %v5917_v5 = vsub.f32 %v10513_v45, %v10643_v34 }
 0x4e6   : > { %v5900_v42 = vsub.f32 %v5898_v20, %v5899_v27  ;;  %v5918_v57 = vsub.f32 %v10518_v38, %v10643_v34  ;;  %v5919_v54 = vsub.f32 %v10504_v28, %v10643_v34  ;;  %v5920_v4 = vsub.f32 %v10508_v50, %v10643_v34 }
 0x4e7   : > { %v5921_v19 = vsub.f32 %v10552_v41, %v10643_v34  ;;  %v5922_v12 = vsub.f32 %v10556_v30, %v10643_v34  ;;  %v5923_v24 = vsub.f32 %v10542_v55, %v10643_v34  ;;  %v5924_v45 = vsub.f32 %v10547_v32, %v10643_v34  ;;  %v5983_v41 = vld [vmem:[%s8164_s6 + $0x78] sm:$0xff] }
 0x4e8   : > { %v5933_v63 = vmax.f32 %v5900_v42, 0.0  ;;  %v5925_v38 = vsub.f32 %v10587_v47, %v10643_v34  ;;  %v5926_v28 = vsub.f32 %v10595_v52, %v10643_v34  ;;  %v5927_v50 = vsub.f32 %v10579_v43, %v10643_v34  ;;  %v5971_v42 = vld [vmem:[%s8164_s6 + $0x18] sm:$0xff]  ;;  %v5986_v47 = vld [vmem:[%s8164_s6 + $0x90] sm:$0xff] }
 0x4e9   : > { %v5928_v10 = vsub.f32 %v10583_v49, %v10643_v34  ;;  %v5931_v48 = vsub.f32 %v10616_v16, %v10643_v34  ;;  %v5932_v33 = vsub.f32 %v10620_v40, %v10643_v34  ;;  %v5901_v39 = vsub.f32 %v10331_v62, %v10643_v34  ;;  %v5989_v40 = vld [vmem:[%s8164_s6 + $0xa8] sm:$0xff] }
 0x4ea   : > { %v5934_v2 = vadd.f32 1e-05, %v5933_v63  ;;  %v5902_v31 = vsub.f32 %v10340_v13, %v10643_v34  ;;  %v5903_v3 = vsub.f32 %v10315_v36, %v10643_v34  ;;  %v5904_v53 = vsub.f32 %v10321_v35, %v10643_v34  ;;  %v5996_v13 = vld [vmem:[%s8164_s6 + $0xe0] sm:$0xff] }
 0x4eb   : > { %v5905_v44 = vsub.f32 %v10387_v61, %v10643_v34  ;;  %v5906_v22 = vsub.f32 %v10393_v7, %v10643_v34  ;;  %v5907_v37 = vsub.f32 %v10366_v26, %v10643_v34  ;;  %v5908_v62 = vsub.f32 %v10372_v6, %v10643_v34  ;;  %v5968_v63 = vld [vmem:[%s8164_s6] sm:$0xff] }
 0x4ec   : > { %7849 = vrsqrt.f32 %v5934_v2  ;;  %v5909_v36 = vsub.f32 %v10430_v1, %v10643_v34  ;;  %v5910_v35 = vsub.f32 %v10433_v23, %v10643_v34  ;;  %v5911_v61 = vsub.f32 %v10415_v21, %v10643_v34  ;;  %v5969_v2 = vld [vmem:[%s8164_s6 + $0x8] sm:$0xff] }
 0x4ed   : > { %v5912_v7 = vsub.f32 %v10421_v11, %v10643_v34 }
 0x4f9   : > { %v7850_v25 = vpop.eup %7849 }
 0x4fa   : > { %v5964_v17 = vmul.f32 %v7850_v25, %v5929_v46  ;;  %v5965_v26 = vmul.f32 %v7850_v25, %v5930_v8  ;;  %v5936_v6 = vmul.f32 %v7850_v25, %v5901_v39  ;;  %v5937_v60 = vmul.f32 %v7850_v25, %v5902_v31  ;;  %v5970_v8 = vld [vmem:[%s8164_s6 + $0x10] sm:$0xff] }
 0x4fb   : > { %v5938_v29 = vmul.f32 %v7850_v25, %v5903_v3  ;;  %v5939_v1 = vmul.f32 %v7850_v25, %v5904_v53  ;;  %v5940_v58 = vmul.f32 %v7850_v25, %v5905_v44  ;;  %v5941_v0 = vmul.f32 %v7850_v25, %v5906_v22  ;;  %v5974_v44 = vld [vmem:[%s8164_s6 + $0x30] sm:$0xff]  ;;  %v5975_v22 = vld [vmem:[%s8164_s6 + $0x38] sm:$0xff] }
 0x4fc   : > { %v6028_v23 = vadd.f32 %v5996_v13, %v5964_v17  ;;  %v6029_v14 = vadd.f32 %v5997_v59, %v5965_v26  ;;  %v5942_v9 = vmul.f32 %v7850_v25, %v5907_v37  ;;  %v5943_v21 = vmul.f32 %v7850_v25, %v5908_v62  ;;  %v5972_v37 = vld [vmem:[%s8164_s6 + $0x20] sm:$0xff]  ;;  %v5973_v62 = vld [vmem:[%s8164_s6 + $0x28] sm:$0xff]  ;;  %v5991_v26 = vld [vmem:[%s8164_s6 + $0xb8] sm:$0xff] }
 0x4fd   : > { %v5944_v20 = vmul.f32 %v7850_v25, %v5909_v36  ;;  %v5945_v11 = vmul.f32 %v7850_v25, %v5910_v35  ;;  %v5946_v27 = vmul.f32 %v7850_v25, %v5911_v61  ;;  %v5947_v46 = vmul.f32 %v7850_v25, %v5912_v7 }
 0x4fe   : > { %6060 = vst [vmem:[%s10719_s18 + $0xe0] sm:$0xff] %v6028_v23  ;;  %6061 = vst [vmem:[%s10719_s18 + $0xe8] sm:$0xff] %v6029_v14  ;;  %v5948_v39 = vmul.f32 %v7850_v25, %v5913_v18  ;;  %v5949_v31 = vmul.f32 %v7850_v25, %v5914_v56  ;;  %v10723_v3 = vmul.f32 %v7850_v25, %v5915_v15  ;;  %v5978_v18 = vld [vmem:[%s8164_s6 + $0x50] sm:$0xff]  ;;  %v5979_v56 = vld [vmem:[%s8164_s6 + $0x58] sm:$0xff] }
 0x4ff   : > { %v10725_v53 = vmul.f32 %v7850_v25, %v5916_v51  ;;  %v5952_v13 = vmul.f32 %v7850_v25, %v5917_v5  ;;  %v5953_v59 = vmul.f32 %v7850_v25, %v5918_v57  ;;  %v10731_v36 = vmul.f32 %v7850_v25, %v5919_v54  ;;  %v5976_v15 = vld [vmem:[%s8164_s6 + $0x40] sm:$0xff]  ;;  %v5977_v51 = vld [vmem:[%s8164_s6 + $0x48] sm:$0xff] }
 0x500   : > { %v10733_v35 = vmul.f32 %v7850_v25, %v5920_v4  ;;  %v5956_v61 = vmul.f32 %v7850_v25, %v5921_v19  ;;  %v5957_v5 = vmul.f32 %v7850_v25, %v5922_v12  ;;  %v10748_v57 = vmul.f32 %v7850_v25, %v5923_v24  ;;  %v5982_v4 = vld [vmem:[%s8164_s6 + $0x70] sm:$0xff]  ;;  %v5980_v19 = vld [vmem:[%s8164_s6 + $0x60] sm:$0xff]  ;;  %v5981_v24 = vld [vmem:[%s8164_s6 + $0x68] sm:$0xff] }
 0x501   : > { %v10753_v54 = vmul.f32 %v7850_v25, %v5924_v45  ;;  %v5960_v30 = vmul.f32 %v7850_v25, %v5925_v38  ;;  %v5961_v55 = vmul.f32 %v7850_v25, %v5926_v28  ;;  %v10767_v32 = vmul.f32 %v7850_v25, %v5927_v50  ;;  %v5987_v45 = vld [vmem:[%s8164_s6 + $0x98] sm:$0xff]  ;;  %v5984_v28 = vld [vmem:[%s8164_s6 + $0x80] sm:$0xff]  ;;  %v5985_v50 = vld [vmem:[%s8164_s6 + $0x88] sm:$0xff] }
 0x502   : > { %v10772_v12 = vmul.f32 %v7850_v25, %v5928_v10  ;;  %v10780_v52 = vmul.f32 %v7850_v25, %v5931_v48  ;;  %v10785_v43 = vmul.f32 %v7850_v25, %v5932_v33  ;;  %v6000_v38 = vadd.f32 %v5968_v63, %v5936_v6  ;;  %v5990_v10 = vld [vmem:[%s8164_s6 + $0xb0] sm:$0xff]  ;;  %v5988_v23 = vld [vmem:[%s8164_s6 + $0xa0] sm:$0xff] }
 0x503   : > { %v6001_v49 = vadd.f32 %v5969_v2, %v5937_v60  ;;  %v6002_v7 = vadd.f32 %v5970_v8, %v5938_v29  ;;  %v6003_v17 = vadd.f32 %v5971_v42, %v5939_v1  ;;  %v6004_v16 = vadd.f32 %v5972_v37, %v5940_v58  ;;  %v5994_v60 = vld [vmem:[%s8164_s6 + $0xd0] sm:$0xff]  ;;  %v5992_v29 = vld [vmem:[%s8164_s6 + $0xc0] sm:$0xff]  ;;  %v5993_v1 = vld [vmem:[%s8164_s6 + $0xc8] sm:$0xff] }
 0x504   : > { %v6005_v48 = vadd.f32 %v5973_v62, %v5941_v0  ;;  %v6006_v34 = vadd.f32 %v5974_v44, %v5942_v9  ;;  %v6007_v33 = vadd.f32 %v5975_v22, %v5943_v21  ;;  %v6008_v25 = vadd.f32 %v5976_v15, %v5944_v20  ;;  %6032 = vst [vmem:[%s10719_s18] sm:$0xff] %v6000_v38  ;;  %v5995_v21 = vld [vmem:[%s8164_s6 + $0xd8] sm:$0xff]  ;;  %v5998_v20 = vld [vmem:[%s8164_s6 + $0xf0] sm:$0xff] }
 0x505   : > { %v6009_v6 = vadd.f32 %v5977_v51, %v5945_v11  ;;  %6033 = vst [vmem:[%s10719_s18 + $0x8] sm:$0xff] %v6001_v49  ;;  %v6010_v58 = vadd.f32 %v5978_v18, %v5946_v27  ;;  %v6011_v0 = vadd.f32 %v5979_v56, %v5947_v46  ;;  %v6012_v14 = vadd.f32 %v5980_v19, %v5948_v39  ;;  %v5999_v11 = vld [vmem:[%s8164_s6 + $0xf8] sm:$0xff] }
 0x506   : > { %v6013_v9 = vadd.f32 %v5981_v24, %v5949_v31  ;;  %6034 = vst [vmem:[%s10719_s18 + $0x10] sm:$0xff] %v6002_v7  ;;  %6035 = vst [vmem:[%s10719_s18 + $0x18] sm:$0xff] %v6003_v17  ;;  %v6014_v27 = vadd.f32 %v5982_v4, %v10723_v3  ;;  %v6015_v46 = vadd.f32 %v5983_v41, %v10725_v53 }
 0x507   : > { %6036 = vst [vmem:[%s10719_s18 + $0x20] sm:$0xff] %v6004_v16  ;;  %6037 = vst [vmem:[%s10719_s18 + $0x28] sm:$0xff] %v6005_v48  ;;  %v6016_v8 = vadd.f32 %v5984_v28, %v5952_v13  ;;  %v6017_v42 = vadd.f32 %v5985_v50, %v5953_v59  ;;  %v6018_v63 = vadd.f32 %v5986_v47, %v10731_v36 }
 0x508   : > { %6038 = vst [vmem:[%s10719_s18 + $0x30] sm:$0xff] %v6006_v34  ;;  %6039 = vst [vmem:[%s10719_s18 + $0x38] sm:$0xff] %v6007_v33  ;;  %v6019_v2 = vadd.f32 %v5987_v45, %v10733_v35  ;;  %v6020_v39 = vadd.f32 %v5988_v23, %v5956_v61  ;;  %v6021_v31 = vadd.f32 %v5989_v40, %v5957_v5 }
 0x509   : > { %6040 = vst [vmem:[%s10719_s18 + $0x40] sm:$0xff] %v6008_v25  ;;  %6041 = vst [vmem:[%s10719_s18 + $0x48] sm:$0xff] %v6009_v6  ;;  %v6022_v3 = vadd.f32 %v5990_v10, %v10748_v57  ;;  %v6023_v53 = vadd.f32 %v5991_v26, %v10753_v54  ;;  %v6024_v44 = vadd.f32 %v5992_v29, %v5960_v30 }
 0x50a   : > { %6042 = vst [vmem:[%s10719_s18 + $0x50] sm:$0xff] %v6010_v58  ;;  %6043 = vst [vmem:[%s10719_s18 + $0x58] sm:$0xff] %v6011_v0  ;;  %v6025_v22 = vadd.f32 %v5993_v1, %v5961_v55  ;;  %v6026_v37 = vadd.f32 %v5994_v60, %v10767_v32  ;;  %v6027_v62 = vadd.f32 %v5995_v21, %v10772_v12 }
 0x50b   : > { %6044 = vst [vmem:[%s10719_s18 + $0x60] sm:$0xff] %v6012_v14  ;;  %6045 = vst [vmem:[%s10719_s18 + $0x68] sm:$0xff] %v6013_v9  ;;  %v6030_v13 = vadd.f32 %v5998_v20, %v10780_v52  ;;  %v6031_v59 = vadd.f32 %v5999_v11, %v10785_v43 }
 0x50c   : > { %6046 = vst [vmem:[%s10719_s18 + $0x70] sm:$0xff] %v6014_v27  ;;  %6047 = vst [vmem:[%s10719_s18 + $0x78] sm:$0xff] %v6015_v46 }
 0x50d   : > { %6048 = vst [vmem:[%s10719_s18 + $0x80] sm:$0xff] %v6016_v8  ;;  %6049 = vst [vmem:[%s10719_s18 + $0x88] sm:$0xff] %v6017_v42 }
 0x50e   : > { %6050 = vst [vmem:[%s10719_s18 + $0x90] sm:$0xff] %v6018_v63  ;;  %6051 = vst [vmem:[%s10719_s18 + $0x98] sm:$0xff] %v6019_v2 }
 0x50f   : > { %6052 = vst [vmem:[%s10719_s18 + $0xa0] sm:$0xff] %v6020_v39  ;;  %6053 = vst [vmem:[%s10719_s18 + $0xa8] sm:$0xff] %v6021_v31 }
 0x510   : > { %6054 = vst [vmem:[%s10719_s18 + $0xb0] sm:$0xff] %v6022_v3  ;;  %6055 = vst [vmem:[%s10719_s18 + $0xb8] sm:$0xff] %v6023_v53 }
 0x511   : > { %6056 = vst [vmem:[%s10719_s18 + $0xc0] sm:$0xff] %v6024_v44  ;;  %6057 = vst [vmem:[%s10719_s18 + $0xc8] sm:$0xff] %v6025_v22 }
 0x512   : > { %6058 = vst [vmem:[%s10719_s18 + $0xd0] sm:$0xff] %v6026_v37  ;;  %6059 = vst [vmem:[%s10719_s18 + $0xd8] sm:$0xff] %v6027_v62 }
 0x513   : > { %6062 = vst [vmem:[%s10719_s18 + $0xf0] sm:$0xff] %v6030_v13  ;;  %6063 = vst [vmem:[%s10719_s18 + $0xf8] sm:$0xff] %v6031_v59 }
 0x514   : > { %7944 = shalt.err (!%p7941_p9)
}
 0x515   : > { %s7945_s22 = scalar_lea.hbm %s10830_s29, 4096  ;;  %s7949_s26 = scalar_lea.hbm %s10896_s3, 8192 }
 0x516   : > { %p7946_p13 = scmp.ne.s32.totalorder %s10830_s29, %s7945_s22  ;;  %p7950_p4 = scmp.lt.s32.totalorder %s10830_s29, %s10896_s3 }
 0x517   : > { %p7951_p8 = scmp.lt.s32.totalorder %s7949_s26, %s7945_s22 }
 0x518   : > { %p7947_p5 = pnand %p7946_p13, %p11226_p10 }
 0x519   : > { %p7952_p3 = por %p7951_p8, %p7950_p4 }
 0x51a   : > { %p7948_p0 = pneg %p7947_p5 }
 0x51c   : > { %p7953_p11 = pnand %p7952_p3, %p7948_p0 }
 0x51e   : > { %7956 = shalt.err (!%p7953_p11)
}
 0x51f   : > { %s8009_s6 = smov 128   ;;  %s8010_s18 = smov 8  }
 0x520   : > { %7640 = dma.vmem_to_hbm [thread:$0]  (%p11226_p10), %s10834_s25, 4096, %s10830_s29, %s6065_s16, %s8009_s6, %s8009_s6, %s8010_s18  }
 0x521 PF: > { %s6093_s20 = sand.u32 1, %s7987_s12   ;;  %p11227_p1 = scmp.ne.s32.totalorder %s10942_s19, 0 }
 0x522   : > { %p11228_p2 = scmp.ge.s32.totalorder %s7999_s15, 2  ;;  %s6094_s27 = scalar_lea.sflag [#allocation4], %s6093_s20 }
 0x524   : > { %p7654_p6 = pnand %p11228_p2, %p11227_p1 }
 0x526   : > { %p7655_p12 = pneg %p7654_p6 }
 0x528   : > { %7982 = dma.done.wait (%p7655_p12), %s6094_s27, 4096  }
 0x529   : > { %7984 = vsyncadd (%p7655_p12), %s6094_s27, 4294963200  ;;  %p17_p7 = scmp.ge.s32.totalorder %s8103_s7, 4   ;;  %s11229_s12 = smov %s7991_s13 }
 0x52a   : > { %s11230_s13 = smov %s7995_s14  ;;  %s11231_s14 = smov %s8119_s11 }
 0x52b   : > { %s11232_s15 = smov %s8103_s7  ;;  %19 = sbr.rel (!%p17_p7) target bundleno = 6 (0x6), region = 101 }
 0x530   :  { %6099 = vsyncpa [#allocation3], 1 }
 0x531   :  { %6101 = vsyncpa [#allocation3 + $0x1], 1 }
 0x532   :  { %6102 = vsyncpa [#allocation6], 1 }
 0x533   :  { %6103 = vsyncpa [#allocation4], 1 }
 0x534   :  { %6105 = vsyncpa [#allocation4 + $0x1], 1 }

</bundles_post_ra>
